<compile_context>
chip_gen: v6e
topology: v6e:2x2x1
jax: 0.10.0
libtpu: 0.0.40
codegen_flags: <defaults>
</compile_context>

<pallas_src>
import math
import functools

import numpy as np
import jax
import jax.numpy as jnp
from jax.experimental import pallas as pl
from jax.experimental.pallas import tpu as pltpu

LN_EPS = 1e-5


def _layernorm(x, w, b):
    mean = jnp.mean(x, axis=-1, keepdims=True)
    var = jnp.mean((x - mean) ** 2, axis=-1, keepdims=True)
    return (x - mean) * jax.lax.rsqrt(var + LN_EPS) * w + b


def globally_attentive_kernel(
    x_ref, pe_ref,
    ln1w_ref, ln1b_ref,
    wqkv_ref, bqkv_ref,
    wo_ref, bo_ref,
    ln2w_ref, ln2b_ref,
    o_ref,
    *, num_heads, head_dim, rows, chunks, seq, approx_softmax,
):
    K, S = chunks, seq
    N = num_heads * head_dim
    KS = K * S
    T = rows * K                      # attention sequences in this block
    TS = rows * KS                    # tokens in this block (MXU M dim)
    cdt = wqkv_ref.dtype              # MXU input dtype (bf16 on the perf path)

    # Fold the module's permute(0,2,3,1).view(B*K, S, N) into the kernel:
    # native [rows, N, K*S] -> internal [rows*K*S, N] with one last-two-dims transpose
    # (XLU work, hidden under the matmuls) instead of wrapper-side HBM transposes.
    x2 = jnp.transpose(x_ref[...].astype(jnp.float32), (0, 2, 1)).reshape(TS, N)

    # LayerNorm1 over the whole row batch, then positional encoding (broadcast over T).
    h = _layernorm(x2, ln1w_ref[0], ln1b_ref[0])
    h = (h.reshape(T, S, N) + pe_ref[...].astype(jnp.float32)).reshape(TS, N)
    resid2 = h
    # TODO(synk): at very large TS, park resid2 in a small VMEM scratch to shorten vreg
    # live ranges across the attention section.

    # Fused QKV projection: one (TS, N) @ (N, 3N) MXU matmul, f32 accumulation.
    qkv = jnp.dot(h.astype(cdt), wqkv_ref[...],
                  preferred_element_type=jnp.float32) + bqkv_ref[0]
    q = qkv[:, 0 * N:1 * N].reshape(T, S, N)
    k = qkv[:, 1 * N:2 * N].reshape(T, S, N)
    v = qkv[:, 2 * N:3 * N].reshape(T, S, N)

    wo = wo_ref[...]
    scale = 1.0 / math.sqrt(head_dim)
    out_acc = jnp.zeros((TS, N), jnp.float32)
    for hd in range(num_heads):                       # static unroll; batched over T
        lo = hd * head_dim
        qh = (q[:, :, lo:lo + head_dim] * scale).astype(cdt)
        kh = k[:, :, lo:lo + head_dim].astype(cdt)
        vh = v[:, :, lo:lo + head_dim].astype(cdt)
        s = jnp.einsum("tqd,tkd->tqk", qh, kh,
                       preferred_element_type=jnp.float32)            # (T, S, S)
        s = s - jnp.max(s, axis=-1, keepdims=True)
        p = jnp.exp(s)
        denom = jnp.sum(p, axis=-1, keepdims=True)
        if approx_softmax:
            p = p * pl.reciprocal(denom, approx=True)  # EUP slot, off the VALU path
        else:
            p = p / denom                              # exact softmax (f32 check path)
        oh = jnp.einsum("tqk,tkd->tqd", p.astype(cdt), vh,
                        preferred_element_type=jnp.float32)            # (T, S, dh)
        # Feed this head's output straight into its rows of the output projection and
        # accumulate: no per-head lane assembly, no masked 4-lane stores, and no VMEM
        # scratch slab round trip.
        out_acc = out_acc + jnp.dot(oh.reshape(TS, head_dim).astype(cdt),
                                    wo[lo:lo + head_dim, :],
                                    preferred_element_type=jnp.float32)
    attn = out_acc + bo_ref[0]

    # Dropout(p=0.1) evaluated in eval mode (identity) + residual, then LayerNorm2.
    h2 = attn + resid2
    y2 = _layernorm(h2, ln2w_ref[0], ln2b_ref[0])

    # Back to native [rows, N, K*S] layout; outer residual with the original input is
    # added in native layout by re-reading x_ref (short live range, lane-dense store).
    y_nat = jnp.transpose(y2.reshape(rows, KS, N), (0, 2, 1))
    o_ref[...] = (y_nat + x_ref[...].astype(jnp.float32)).astype(o_ref.dtype)


def _device_info():
    """(vmem_capacity_bytes, multi_core?) — generation-aware with safe fallbacks."""
    vmem = 64 * 1024 * 1024            # conservative default (v7x-sized VMEM)
    try:
        vmem = int(getattr(pltpu.get_tpu_info(), "vmem_capacity_bytes", vmem))
    except Exception:
        pass
    multi_core = True                  # assume 2 TensorCores (v7x / megacore) unless known single-core
    try:
        kind = jax.devices()[0].device_kind.lower()
        if any(tag in kind for tag in ("v5e", "v5 lite", "v6e", "v6 lite", "lite")):
            multi_core = False         # v5e / v6e: one TensorCore per chip
    except Exception:
        pass
    return vmem, multi_core


def _choose_grid(batch, chunk_seq, per_row_bytes, const_bytes, vmem_budget,
                 multi_core, max_ts=1024):
    """Rows-of-[N, K*S] per grid step and the padded batch size.

    Single-TensorCore chips (v5e/v6e): minimum number of steps that fits the VMEM
    budget (ideally 1 big step -> MXU M dim = B*K*S, amortized ~0.35us/step overhead).
    Multi-TensorCore chips (v7x): minimum EVEN step count >= 2 so the 'parallel' grid
    axis load-balances across both cores.  `max_ts` bounds rows*K*S for vreg pressure.
    """
    cap = max(1, int((vmem_budget - const_bytes) // max(per_row_bytes, 1)))
    cap = max(1, min(cap, max(1, max_ts // chunk_seq)))
    if multi_core and batch >= 2:
        steps, incr = 2, 2
    else:
        steps, incr = 1, 1
    while -(-batch // steps) > cap:
        steps += incr
    rows = -(-batch // steps)
    return rows, rows * steps


def globally_attentive(x, params, num_heads, *,
                       compute_dtype=jnp.bfloat16, approx_softmax=None, max_ts=1024):
    """x: [B, N, K, S] (same convention as the PyTorch module)."""
    B, N, K, S = x.shape
    assert N % num_heads == 0, "in_channels must be divisible by num_heads"
    assert params["pe"].shape[0] >= S, "positional encoding max_len < S"
    head_dim = N // num_heads
    KS = K * S

    if approx_softmax is None:
        # Only use the approximate (EUP) reciprocal on the low-precision perf path so the
        # f32 path actually validates exact softmax semantics.
        approx_softmax = (compute_dtype != jnp.float32)

    # Free, layout-preserving reshape; the (N <-> S) relayout happens inside the kernel.
    x2d = x.reshape(B, N, KS)

    pe = params["pe"][:S].astype(jnp.float32)                # (S, N)
    row2 = lambda a: a.reshape(1, -1).astype(jnp.float32)    # 1D params -> (1, ...)
    wqkv = jnp.concatenate(
        [params["wq"], params["wk"], params["wv"]], axis=1).astype(compute_dtype)
    bqkv = jnp.concatenate(
        [params["bq"], params["bk"], params["bv"]]).reshape(1, -1).astype(jnp.float32)
    wo = params["wo"].astype(compute_dtype)

    # ---- generation-aware grid / VMEM sizing --------------------------------------
    vmem_cap, multi_core = _device_info()
    # ~96-100 MiB on v5e/v6e (128 MiB physical), ~48 MiB on v7x (64 MiB physical).
    vmem_limit = min(max(int(vmem_cap * 0.75), 16 * 1024 * 1024), 100 * 1024 * 1024)
    budget = int(vmem_limit * 0.6)     # headroom for spills / compiler internal scratch
    x_bytes = jnp.dtype(x.dtype).itemsize
    w_bytes = jnp.dtype(compute_dtype).itemsize
    # per batch-row: double-buffered input block + double-buffered output block
    per_row = 2 * (N * KS * x_bytes) + 2 * (N * KS * x_bytes)
    # grid-invariant operands (pe, LN params, fused Wqkv/bqkv, Wo/bo), double-buffered
    const = 2 * (S * N * 4 + 4 * N * 4 + N * 3 * N * w_bytes + 3 * N * 4
                 + N * N * w_bytes + N * 4)
    rows, B_pad = _choose_grid(B, KS, per_row, const, budget, multi_core, max_ts=max_ts)
    if B_pad != B:                     # pad batch instead of degrading to tiny blocks
        x2d = jnp.pad(x2d, ((0, B_pad - B), (0, 0), (0, 0)))
    grid = (B_pad // rows,)

    kernel = functools.partial(
        globally_attentive_kernel,
        num_heads=num_heads, head_dim=head_dim, rows=rows, chunks=K, seq=S,
        approx_softmax=approx_softmax)

    # Grid-invariant operands (constant index_map).
    # TODO(synk): they could be single-buffered (pipeline_mode=pl.Buffered(1)) to free
    # VMEM for a larger `rows` at big N; kept default-buffered here (accounted in `const`).
    const2d = lambda shp: pl.BlockSpec(shp, lambda i: (0, 0))

    out = pl.pallas_call(
        kernel,
        out_shape=jax.ShapeDtypeStruct((B_pad, N, KS), x.dtype),
        grid_spec=pltpu.PrefetchScalarGridSpec(
            num_scalar_prefetch=0,
            grid=grid,
            in_specs=[
                pl.BlockSpec((rows, N, KS), lambda i: (i, 0, 0)),   # x, native layout
                const2d((S, N)),                                    # pe
                const2d((1, N)), const2d((1, N)),                   # ln1 w, b
                const2d((N, 3 * N)), const2d((1, 3 * N)),           # fused Wqkv, bqkv
                const2d((N, N)), const2d((1, N)),                   # Wo, bo
                const2d((1, N)), const2d((1, N)),                   # ln2 w, b
            ],
            out_specs=pl.BlockSpec((rows, N, KS), lambda i: (i, 0, 0)),
        ),
        compiler_params=pltpu.CompilerParams(
            dimension_semantics=("parallel",),
            vmem_limit_bytes=vmem_limit),
    )(
        x2d, pe,
        row2(params["ln1_w"]), row2(params["ln1_b"]),
        wqkv, bqkv,
        wo, row2(params["bo"]),
        row2(params["ln2_w"]), row2(params["ln2_b"]),
    )

    return out[:B].reshape(B, N, K, S)


def globally_attentive_ref(x, params, num_heads):
    """Pure-JAX f32 reference with identical semantics (eval-mode dropout)."""
    B, N, K, S = x.shape
    head_dim = N // num_heads
    h0 = jnp.transpose(x, (0, 2, 3, 1)).reshape(B * K, S, N).astype(jnp.float32)

    h = _layernorm(h0, params["ln1_w"], params["ln1_b"]) + params["pe"][:S]
    resid2 = h
    q = h @ params["wq"] + params["bq"]
    k = h @ params["wk"] + params["bk"]
    v = h @ params["wv"] + params["bv"]

    def split(t):  # (BK, S, N) -> (BK, H, S, dh)
        return jnp.transpose(t.reshape(B * K, S, num_heads, head_dim), (0, 2, 1, 3))

    qh, kh, vh = split(q), split(k), split(v)
    s = jnp.einsum("bhqd,bhkd->bhqk", qh, kh) / math.sqrt(head_dim)
    p = jax.nn.softmax(s, axis=-1)
    o = jnp.einsum("bhqk,bhkd->bhqd", p, vh)
    o = jnp.transpose(o, (0, 2, 1, 3)).reshape(B * K, S, N)
    o = o @ params["wo"] + params["bo"]

    h2 = o + resid2
    y = _layernorm(h2, params["ln2_w"], params["ln2_b"]) + h0
    return jnp.transpose(y.reshape(B, K, S, N), (0, 3, 1, 2)).astype(x.dtype)


def make_params(key, in_channels, max_len):
    N = in_channels
    ks = jax.random.split(key, 8)
    scale = 0.1

    # sinusoidal positional encoding buffer
    position = jnp.arange(max_len, dtype=jnp.float32)[:, None]
    div_term = jnp.exp(
        jnp.arange(0, N, 2, dtype=jnp.float32) * (-math.log(10000.0) / N))
    pe = jnp.zeros((max_len, N), dtype=jnp.float32)
    pe = pe.at[:, 0::2].set(jnp.sin(position * div_term))
    pe = pe.at[:, 1::2].set(jnp.cos(position * div_term))

    return {
        "pe": pe,
        "ln1_w": jnp.ones((N,), jnp.float32),
        "ln1_b": jnp.zeros((N,), jnp.float32),
        "wq": scale * jax.random.normal(ks[0], (N, N), jnp.float32),
        "bq": scale * jax.random.normal(ks[1], (N,), jnp.float32),
        "wk": scale * jax.random.normal(ks[2], (N, N), jnp.float32),
        "bk": scale * jax.random.normal(ks[3], (N,), jnp.float32),
        "wv": scale * jax.random.normal(ks[4], (N, N), jnp.float32),
        "bv": scale * jax.random.normal(ks[5], (N,), jnp.float32),
        "wo": scale * jax.random.normal(ks[6], (N, N), jnp.float32),
        "bo": scale * jax.random.normal(ks[7], (N,), jnp.float32),
        "ln2_w": jnp.ones((N,), jnp.float32),
        "ln2_b": jnp.zeros((N,), jnp.float32),
    }


if __name__ == "__main__":
    # x is [B, in_channels, K, S]; K*S = 128 keeps the native-layout DMA lane-dense.
    B, N, K, S = 2, 32, 8, 16
    NUM_HEADS = 8

    key = jax.random.PRNGKey(0)
    kx, kp = jax.random.split(key)
    x = jax.random.normal(kx, (B, N, K, S), jnp.float32)
    params = make_params(kp, in_channels=N, max_len=64)

    ref = jax.block_until_ready(globally_attentive_ref(x, params, NUM_HEADS))

    # f32 MXU path with exact softmax: validates the fused kernel semantics.
    out_f32 = jax.block_until_ready(
        globally_attentive(x, params, NUM_HEADS, compute_dtype=jnp.float32))
    np.testing.assert_allclose(np.asarray(out_f32), np.asarray(ref),
                               rtol=2e-3, atol=2e-3)

    # bf16 MXU path (performance default; approx softmax reciprocal on the EUP).
    out_bf16 = jax.block_until_ready(
        globally_attentive(x, params, NUM_HEADS, compute_dtype=jnp.bfloat16))
    np.testing.assert_allclose(np.asarray(out_bf16), np.asarray(ref),
                               rtol=1e-1, atol=1e-1)

    print("KERNEL_OK")
</pallas_src>

<mosaic_0001>
module attributes {stable_mosaic.version = 11 : i64} {
  func.func @globally_attentive_kernel(%arg0: i32, %arg1: memref<1x32x128xf32, #tpu.memory_space<vmem>>, %arg2: memref<16x32xf32, #tpu.memory_space<vmem>>, %arg3: memref<1x32xf32, #tpu.memory_space<vmem>>, %arg4: memref<1x32xf32, #tpu.memory_space<vmem>>, %arg5: memref<32x96xf32, #tpu.memory_space<vmem>>, %arg6: memref<1x96xf32, #tpu.memory_space<vmem>>, %arg7: memref<32x32xf32, #tpu.memory_space<vmem>>, %arg8: memref<1x32xf32, #tpu.memory_space<vmem>>, %arg9: memref<1x32xf32, #tpu.memory_space<vmem>>, %arg10: memref<1x32xf32, #tpu.memory_space<vmem>>, %arg11: memref<1x32x128xf32, #tpu.memory_space<vmem>>) attributes {dimension_semantics = [#tpu.dimension_semantics<parallel>], iteration_bounds = array<i64: 2>, scalar_prefetch = 0 : i64, scratch_operands = 0 : i64, tpu.core_type = #tpu.core_type<tc>, window_params = [{transform_indices = @transform_0, window_bounds = array<i64: 1, 32, 128>}, {pipeline_mode = #tpu.pipeline_mode<synchronous>, transform_indices = @transform_1, window_bounds = array<i64: 16, 32>}, {pipeline_mode = #tpu.pipeline_mode<synchronous>, transform_indices = @transform_2, window_bounds = array<i64: 1, 32>}, {pipeline_mode = #tpu.pipeline_mode<synchronous>, transform_indices = @transform_3, window_bounds = array<i64: 1, 32>}, {pipeline_mode = #tpu.pipeline_mode<synchronous>, transform_indices = @transform_4, window_bounds = array<i64: 32, 96>}, {pipeline_mode = #tpu.pipeline_mode<synchronous>, transform_indices = @transform_5, window_bounds = array<i64: 1, 96>}, {pipeline_mode = #tpu.pipeline_mode<synchronous>, transform_indices = @transform_6, window_bounds = array<i64: 32, 32>}, {pipeline_mode = #tpu.pipeline_mode<synchronous>, transform_indices = @transform_7, window_bounds = array<i64: 1, 32>}, {pipeline_mode = #tpu.pipeline_mode<synchronous>, transform_indices = @transform_8, window_bounds = array<i64: 1, 32>}, {pipeline_mode = #tpu.pipeline_mode<synchronous>, transform_indices = @transform_9, window_bounds = array<i64: 1, 32>}, {transform_indices = @transform_10, window_bounds = array<i64: 1, 32, 128>}]} {
    %c0 = arith.constant 0 : index
    %c0_0 = arith.constant 0 : index
    %c0_1 = arith.constant 0 : index
    %0 = vector.load %arg1[%c0, %c0_0, %c0_1] : memref<1x32x128xf32, #tpu.memory_space<vmem>>, vector<1x32x128xf32>
    %1 = tpu.transpose %0, [0, 2, 1] : vector<1x32x128xf32> -> vector<1x128x32xf32>
    %2 = vector.shape_cast %1 : vector<1x128x32xf32> to vector<128x32xf32>
    %c0_2 = arith.constant 0 : index
    %c0_3 = arith.constant 0 : index
    %3 = vector.load %arg3[%c0_2, %c0_3] : memref<1x32xf32, #tpu.memory_space<vmem>>, vector<1x32xf32>
    %4 = vector.shape_cast %3 : vector<1x32xf32> to vector<32xf32>
    %c0_4 = arith.constant 0 : index
    %c0_5 = arith.constant 0 : index
    %5 = vector.load %arg4[%c0_4, %c0_5] : memref<1x32xf32, #tpu.memory_space<vmem>>, vector<1x32xf32>
    %6 = vector.shape_cast %5 : vector<1x32xf32> to vector<32xf32>
    %cst = arith.constant dense<0.000000e+00> : vector<128xf32>
    %7 = vector.multi_reduction <add>, %2, %cst [1] : vector<128x32xf32> to vector<128xf32>
    %8 = vector.shape_cast %7 : vector<128xf32> to vector<128x1xf32>
    %cst_6 = arith.constant 3.200000e+01 : f32
    %9 = vector.broadcast %cst_6 : f32 to vector<128x1xf32>
    %10 = arith.divf %8, %9 : vector<128x1xf32>
    %11 = vector.broadcast %10 : vector<128x1xf32> to vector<128x32xf32>
    %12 = arith.subf %2, %11 : vector<128x32xf32>
    %13 = arith.mulf %12, %12 : vector<128x32xf32>
    %cst_7 = arith.constant dense<0.000000e+00> : vector<128xf32>
    %14 = vector.multi_reduction <add>, %13, %cst_7 [1] : vector<128x32xf32> to vector<128xf32>
    %15 = vector.shape_cast %14 : vector<128xf32> to vector<128x1xf32>
    %cst_8 = arith.constant 3.200000e+01 : f32
    %16 = vector.broadcast %cst_8 : f32 to vector<128x1xf32>
    %17 = arith.divf %15, %16 : vector<128x1xf32>
    %18 = vector.broadcast %10 : vector<128x1xf32> to vector<128x32xf32>
    %19 = arith.subf %2, %18 : vector<128x32xf32>
    %cst_9 = arith.constant 9.99999974E-6 : f32
    %20 = vector.broadcast %cst_9 : f32 to vector<128x1xf32>
    %21 = arith.addf %17, %20 : vector<128x1xf32>
    %22 = math.rsqrt %21 : vector<128x1xf32>
    %23 = vector.broadcast %22 : vector<128x1xf32> to vector<128x32xf32>
    %24 = arith.mulf %19, %23 : vector<128x32xf32>
    %25 = vector.shape_cast %4 : vector<32xf32> to vector<1x32xf32>
    %26 = vector.broadcast %25 : vector<1x32xf32> to vector<128x32xf32>
    %27 = arith.mulf %24, %26 : vector<128x32xf32>
    %28 = vector.shape_cast %6 : vector<32xf32> to vector<1x32xf32>
    %29 = vector.broadcast %28 : vector<1x32xf32> to vector<128x32xf32>
    %30 = arith.addf %27, %29 : vector<128x32xf32>
    %31 = vector.shape_cast %30 : vector<128x32xf32> to vector<8x16x32xf32>
    %c0_10 = arith.constant 0 : index
    %c0_11 = arith.constant 0 : index
    %32 = vector.load %arg2[%c0_10, %c0_11] : memref<16x32xf32, #tpu.memory_space<vmem>>, vector<16x32xf32>
    %33 = vector.shape_cast %32 : vector<16x32xf32> to vector<1x16x32xf32>
    %34 = vector.broadcast %33 : vector<1x16x32xf32> to vector<8x16x32xf32>
    %35 = arith.addf %31, %34 : vector<8x16x32xf32>
    %36 = vector.shape_cast %35 : vector<8x16x32xf32> to vector<128x32xf32>
    %c0_12 = arith.constant 0 : index
    %c0_13 = arith.constant 0 : index
    %37 = vector.load %arg5[%c0_12, %c0_13] : memref<32x96xf32, #tpu.memory_space<vmem>>, vector<32x96xf32>
    %cst_14 = arith.constant dense<0.000000e+00> : vector<128x96xf32>
    %38 = tpu.matmul %36, %37, %cst_14 {dimension_numbers = #tpu.dot_dimension_numbers<[1], [0], [0], [1], [0, 0, 1, 1], [], []>} : vector<128x32xf32>, vector<32x96xf32>, vector<128x96xf32> -> vector<128x96xf32>
    %c0_15 = arith.constant 0 : index
    %c0_16 = arith.constant 0 : index
    %39 = vector.load %arg6[%c0_15, %c0_16] : memref<1x96xf32, #tpu.memory_space<vmem>>, vector<1x96xf32>
    %40 = vector.shape_cast %39 : vector<1x96xf32> to vector<96xf32>
    %41 = vector.shape_cast %40 : vector<96xf32> to vector<1x96xf32>
    %42 = vector.broadcast %41 : vector<1x96xf32> to vector<128x96xf32>
    %43 = arith.addf %38, %42 : vector<128x96xf32>
    %44 = vector.extract_strided_slice %43 {offsets = [0, 0], sizes = [128, 32], strides = [1, 1]} : vector<128x96xf32> to vector<128x32xf32>
    %45 = vector.shape_cast %44 : vector<128x32xf32> to vector<8x16x32xf32>
    %46 = vector.extract_strided_slice %43 {offsets = [0, 32], sizes = [128, 32], strides = [1, 1]} : vector<128x96xf32> to vector<128x32xf32>
    %47 = vector.shape_cast %46 : vector<128x32xf32> to vector<8x16x32xf32>
    %48 = vector.extract_strided_slice %43 {offsets = [0, 64], sizes = [128, 32], strides = [1, 1]} : vector<128x96xf32> to vector<128x32xf32>
    %49 = vector.shape_cast %48 : vector<128x32xf32> to vector<8x16x32xf32>
    %c0_17 = arith.constant 0 : index
    %c0_18 = arith.constant 0 : index
    %50 = vector.load %arg7[%c0_17, %c0_18] : memref<32x32xf32, #tpu.memory_space<vmem>>, vector<32x32xf32>
    %cst_19 = arith.constant 0.000000e+00 : f32
    %51 = vector.broadcast %cst_19 : f32 to vector<128x32xf32>
    %52 = vector.extract_strided_slice %45 {offsets = [0, 0, 0], sizes = [8, 16, 4], strides = [1, 1, 1]} : vector<8x16x32xf32> to vector<8x16x4xf32>
    %cst_20 = arith.constant 5.000000e-01 : f32
    %53 = vector.broadcast %cst_20 : f32 to vector<8x16x4xf32>
    %54 = arith.mulf %52, %53 : vector<8x16x4xf32>
    %55 = vector.extract_strided_slice %47 {offsets = [0, 0, 0], sizes = [8, 16, 4], strides = [1, 1, 1]} : vector<8x16x32xf32> to vector<8x16x4xf32>
    %56 = vector.extract_strided_slice %49 {offsets = [0, 0, 0], sizes = [8, 16, 4], strides = [1, 1, 1]} : vector<8x16x32xf32> to vector<8x16x4xf32>
    "tpu.trace_start"() <{level = 10 : i32, message = "tqd,tkd->tqk"}> : () -> ()
    %cst_21 = arith.constant dense<0.000000e+00> : vector<8x16x16xf32>
    %57 = tpu.matmul %54, %55, %cst_21 {dimension_numbers = #tpu.dot_dimension_numbers<[2], [2], [1], [1], [0, 0, 0, 1, 1, 1], [0], [0]>} : vector<8x16x4xf32>, vector<8x16x4xf32>, vector<8x16x16xf32> -> vector<8x16x16xf32>
    "tpu.trace_stop"() : () -> ()
    %cst_22 = arith.constant dense<0xFF800000> : vector<8x16xf32>
    %58 = vector.multi_reduction <maximumf>, %57, %cst_22 [2] : vector<8x16x16xf32> to vector<8x16xf32>
    %59 = vector.shape_cast %58 : vector<8x16xf32> to vector<8x16x1xf32>
    %60 = vector.broadcast %59 : vector<8x16x1xf32> to vector<8x16x16xf32>
    %61 = arith.subf %57, %60 : vector<8x16x16xf32>
    %62 = math.exp %61 : vector<8x16x16xf32>
    %cst_23 = arith.constant dense<0.000000e+00> : vector<8x16xf32>
    %63 = vector.multi_reduction <add>, %62, %cst_23 [2] : vector<8x16x16xf32> to vector<8x16xf32>
    %64 = vector.shape_cast %63 : vector<8x16xf32> to vector<8x16x1xf32>
    %65 = vector.broadcast %64 : vector<8x16x1xf32> to vector<8x16x16xf32>
    %66 = arith.divf %62, %65 : vector<8x16x16xf32>
    "tpu.trace_start"() <{level = 10 : i32, message = "tqk,tkd->tqd"}> : () -> ()
    %cst_24 = arith.constant dense<0.000000e+00> : vector<8x16x4xf32>
    %67 = tpu.matmul %66, %56, %cst_24 {dimension_numbers = #tpu.dot_dimension_numbers<[2], [1], [1], [2], [0, 0, 0, 1, 1, 2], [0], [0]>} : vector<8x16x16xf32>, vector<8x16x4xf32>, vector<8x16x4xf32> -> vector<8x16x4xf32>
    "tpu.trace_stop"() : () -> ()
    %68 = vector.shape_cast %67 : vector<8x16x4xf32> to vector<128x4xf32>
    %69 = vector.extract_strided_slice %50 {offsets = [0, 0], sizes = [4, 32], strides = [1, 1]} : vector<32x32xf32> to vector<4x32xf32>
    %cst_25 = arith.constant dense<0.000000e+00> : vector<128x32xf32>
    %70 = tpu.matmul %68, %69, %cst_25 {dimension_numbers = #tpu.dot_dimension_numbers<[1], [0], [0], [1], [0, 0, 1, 1], [], []>} : vector<128x4xf32>, vector<4x32xf32>, vector<128x32xf32> -> vector<128x32xf32>
    %71 = arith.addf %51, %70 : vector<128x32xf32>
    %72 = vector.extract_strided_slice %45 {offsets = [0, 0, 4], sizes = [8, 16, 4], strides = [1, 1, 1]} : vector<8x16x32xf32> to vector<8x16x4xf32>
    %cst_26 = arith.constant 5.000000e-01 : f32
    %73 = vector.broadcast %cst_26 : f32 to vector<8x16x4xf32>
    %74 = arith.mulf %72, %73 : vector<8x16x4xf32>
    %75 = vector.extract_strided_slice %47 {offsets = [0, 0, 4], sizes = [8, 16, 4], strides = [1, 1, 1]} : vector<8x16x32xf32> to vector<8x16x4xf32>
    %76 = vector.extract_strided_slice %49 {offsets = [0, 0, 4], sizes = [8, 16, 4], strides = [1, 1, 1]} : vector<8x16x32xf32> to vector<8x16x4xf32>
    "tpu.trace_start"() <{level = 10 : i32, message = "tqd,tkd->tqk"}> : () -> ()
    %cst_27 = arith.constant dense<0.000000e+00> : vector<8x16x16xf32>
    %77 = tpu.matmul %74, %75, %cst_27 {dimension_numbers = #tpu.dot_dimension_numbers<[2], [2], [1], [1], [0, 0, 0, 1, 1, 1], [0], [0]>} : vector<8x16x4xf32>, vector<8x16x4xf32>, vector<8x16x16xf32> -> vector<8x16x16xf32>
    "tpu.trace_stop"() : () -> ()
    %cst_28 = arith.constant dense<0xFF800000> : vector<8x16xf32>
    %78 = vector.multi_reduction <maximumf>, %77, %cst_28 [2] : vector<8x16x16xf32> to vector<8x16xf32>
    %79 = vector.shape_cast %78 : vector<8x16xf32> to vector<8x16x1xf32>
    %80 = vector.broadcast %79 : vector<8x16x1xf32> to vector<8x16x16xf32>
    %81 = arith.subf %77, %80 : vector<8x16x16xf32>
    %82 = math.exp %81 : vector<8x16x16xf32>
    %cst_29 = arith.constant dense<0.000000e+00> : vector<8x16xf32>
    %83 = vector.multi_reduction <add>, %82, %cst_29 [2] : vector<8x16x16xf32> to vector<8x16xf32>
    %84 = vector.shape_cast %83 : vector<8x16xf32> to vector<8x16x1xf32>
    %85 = vector.broadcast %84 : vector<8x16x1xf32> to vector<8x16x16xf32>
    %86 = arith.divf %82, %85 : vector<8x16x16xf32>
    "tpu.trace_start"() <{level = 10 : i32, message = "tqk,tkd->tqd"}> : () -> ()
    %cst_30 = arith.constant dense<0.000000e+00> : vector<8x16x4xf32>
    %87 = tpu.matmul %86, %76, %cst_30 {dimension_numbers = #tpu.dot_dimension_numbers<[2], [1], [1], [2], [0, 0, 0, 1, 1, 2], [0], [0]>} : vector<8x16x16xf32>, vector<8x16x4xf32>, vector<8x16x4xf32> -> vector<8x16x4xf32>
    "tpu.trace_stop"() : () -> ()
    %88 = vector.shape_cast %87 : vector<8x16x4xf32> to vector<128x4xf32>
    %89 = vector.extract_strided_slice %50 {offsets = [4, 0], sizes = [4, 32], strides = [1, 1]} : vector<32x32xf32> to vector<4x32xf32>
    %cst_31 = arith.constant dense<0.000000e+00> : vector<128x32xf32>
    %90 = tpu.matmul %88, %89, %cst_31 {dimension_numbers = #tpu.dot_dimension_numbers<[1], [0], [0], [1], [0, 0, 1, 1], [], []>} : vector<128x4xf32>, vector<4x32xf32>, vector<128x32xf32> -> vector<128x32xf32>
    %91 = arith.addf %71, %90 : vector<128x32xf32>
    %92 = vector.extract_strided_slice %45 {offsets = [0, 0, 8], sizes = [8, 16, 4], strides = [1, 1, 1]} : vector<8x16x32xf32> to vector<8x16x4xf32>
    %cst_32 = arith.constant 5.000000e-01 : f32
    %93 = vector.broadcast %cst_32 : f32 to vector<8x16x4xf32>
    %94 = arith.mulf %92, %93 : vector<8x16x4xf32>
    %95 = vector.extract_strided_slice %47 {offsets = [0, 0, 8], sizes = [8, 16, 4], strides = [1, 1, 1]} : vector<8x16x32xf32> to vector<8x16x4xf32>
    %96 = vector.extract_strided_slice %49 {offsets = [0, 0, 8], sizes = [8, 16, 4], strides = [1, 1, 1]} : vector<8x16x32xf32> to vector<8x16x4xf32>
    "tpu.trace_start"() <{level = 10 : i32, message = "tqd,tkd->tqk"}> : () -> ()
    %cst_33 = arith.constant dense<0.000000e+00> : vector<8x16x16xf32>
    %97 = tpu.matmul %94, %95, %cst_33 {dimension_numbers = #tpu.dot_dimension_numbers<[2], [2], [1], [1], [0, 0, 0, 1, 1, 1], [0], [0]>} : vector<8x16x4xf32>, vector<8x16x4xf32>, vector<8x16x16xf32> -> vector<8x16x16xf32>
    "tpu.trace_stop"() : () -> ()
    %cst_34 = arith.constant dense<0xFF800000> : vector<8x16xf32>
    %98 = vector.multi_reduction <maximumf>, %97, %cst_34 [2] : vector<8x16x16xf32> to vector<8x16xf32>
    %99 = vector.shape_cast %98 : vector<8x16xf32> to vector<8x16x1xf32>
    %100 = vector.broadcast %99 : vector<8x16x1xf32> to vector<8x16x16xf32>
    %101 = arith.subf %97, %100 : vector<8x16x16xf32>
    %102 = math.exp %101 : vector<8x16x16xf32>
    %cst_35 = arith.constant dense<0.000000e+00> : vector<8x16xf32>
    %103 = vector.multi_reduction <add>, %102, %cst_35 [2] : vector<8x16x16xf32> to vector<8x16xf32>
    %104 = vector.shape_cast %103 : vector<8x16xf32> to vector<8x16x1xf32>
    %105 = vector.broadcast %104 : vector<8x16x1xf32> to vector<8x16x16xf32>
    %106 = arith.divf %102, %105 : vector<8x16x16xf32>
    "tpu.trace_start"() <{level = 10 : i32, message = "tqk,tkd->tqd"}> : () -> ()
    %cst_36 = arith.constant dense<0.000000e+00> : vector<8x16x4xf32>
    %107 = tpu.matmul %106, %96, %cst_36 {dimension_numbers = #tpu.dot_dimension_numbers<[2], [1], [1], [2], [0, 0, 0, 1, 1, 2], [0], [0]>} : vector<8x16x16xf32>, vector<8x16x4xf32>, vector<8x16x4xf32> -> vector<8x16x4xf32>
    "tpu.trace_stop"() : () -> ()
    %108 = vector.shape_cast %107 : vector<8x16x4xf32> to vector<128x4xf32>
    %109 = vector.extract_strided_slice %50 {offsets = [8, 0], sizes = [4, 32], strides = [1, 1]} : vector<32x32xf32> to vector<4x32xf32>
    %cst_37 = arith.constant dense<0.000000e+00> : vector<128x32xf32>
    %110 = tpu.matmul %108, %109, %cst_37 {dimension_numbers = #tpu.dot_dimension_numbers<[1], [0], [0], [1], [0, 0, 1, 1], [], []>} : vector<128x4xf32>, vector<4x32xf32>, vector<128x32xf32> -> vector<128x32xf32>
    %111 = arith.addf %91, %110 : vector<128x32xf32>
    %112 = vector.extract_strided_slice %45 {offsets = [0, 0, 12], sizes = [8, 16, 4], strides = [1, 1, 1]} : vector<8x16x32xf32> to vector<8x16x4xf32>
    %cst_38 = arith.constant 5.000000e-01 : f32
    %113 = vector.broadcast %cst_38 : f32 to vector<8x16x4xf32>
    %114 = arith.mulf %112, %113 : vector<8x16x4xf32>
    %115 = vector.extract_strided_slice %47 {offsets = [0, 0, 12], sizes = [8, 16, 4], strides = [1, 1, 1]} : vector<8x16x32xf32> to vector<8x16x4xf32>
    %116 = vector.extract_strided_slice %49 {offsets = [0, 0, 12], sizes = [8, 16, 4], strides = [1, 1, 1]} : vector<8x16x32xf32> to vector<8x16x4xf32>
    "tpu.trace_start"() <{level = 10 : i32, message = "tqd,tkd->tqk"}> : () -> ()
    %cst_39 = arith.constant dense<0.000000e+00> : vector<8x16x16xf32>
    %117 = tpu.matmul %114, %115, %cst_39 {dimension_numbers = #tpu.dot_dimension_numbers<[2], [2], [1], [1], [0, 0, 0, 1, 1, 1], [0], [0]>} : vector<8x16x4xf32>, vector<8x16x4xf32>, vector<8x16x16xf32> -> vector<8x16x16xf32>
    "tpu.trace_stop"() : () -> ()
    %cst_40 = arith.constant dense<0xFF800000> : vector<8x16xf32>
    %118 = vector.multi_reduction <maximumf>, %117, %cst_40 [2] : vector<8x16x16xf32> to vector<8x16xf32>
    %119 = vector.shape_cast %118 : vector<8x16xf32> to vector<8x16x1xf32>
    %120 = vector.broadcast %119 : vector<8x16x1xf32> to vector<8x16x16xf32>
    %121 = arith.subf %117, %120 : vector<8x16x16xf32>
    %122 = math.exp %121 : vector<8x16x16xf32>
    %cst_41 = arith.constant dense<0.000000e+00> : vector<8x16xf32>
    %123 = vector.multi_reduction <add>, %122, %cst_41 [2] : vector<8x16x16xf32> to vector<8x16xf32>
    %124 = vector.shape_cast %123 : vector<8x16xf32> to vector<8x16x1xf32>
    %125 = vector.broadcast %124 : vector<8x16x1xf32> to vector<8x16x16xf32>
    %126 = arith.divf %122, %125 : vector<8x16x16xf32>
    "tpu.trace_start"() <{level = 10 : i32, message = "tqk,tkd->tqd"}> : () -> ()
    %cst_42 = arith.constant dense<0.000000e+00> : vector<8x16x4xf32>
    %127 = tpu.matmul %126, %116, %cst_42 {dimension_numbers = #tpu.dot_dimension_numbers<[2], [1], [1], [2], [0, 0, 0, 1, 1, 2], [0], [0]>} : vector<8x16x16xf32>, vector<8x16x4xf32>, vector<8x16x4xf32> -> vector<8x16x4xf32>
    "tpu.trace_stop"() : () -> ()
    %128 = vector.shape_cast %127 : vector<8x16x4xf32> to vector<128x4xf32>
    %129 = vector.extract_strided_slice %50 {offsets = [12, 0], sizes = [4, 32], strides = [1, 1]} : vector<32x32xf32> to vector<4x32xf32>
    %cst_43 = arith.constant dense<0.000000e+00> : vector<128x32xf32>
    %130 = tpu.matmul %128, %129, %cst_43 {dimension_numbers = #tpu.dot_dimension_numbers<[1], [0], [0], [1], [0, 0, 1, 1], [], []>} : vector<128x4xf32>, vector<4x32xf32>, vector<128x32xf32> -> vector<128x32xf32>
    %131 = arith.addf %111, %130 : vector<128x32xf32>
    %132 = vector.extract_strided_slice %45 {offsets = [0, 0, 16], sizes = [8, 16, 4], strides = [1, 1, 1]} : vector<8x16x32xf32> to vector<8x16x4xf32>
    %cst_44 = arith.constant 5.000000e-01 : f32
    %133 = vector.broadcast %cst_44 : f32 to vector<8x16x4xf32>
    %134 = arith.mulf %132, %133 : vector<8x16x4xf32>
    %135 = vector.extract_strided_slice %47 {offsets = [0, 0, 16], sizes = [8, 16, 4], strides = [1, 1, 1]} : vector<8x16x32xf32> to vector<8x16x4xf32>
    %136 = vector.extract_strided_slice %49 {offsets = [0, 0, 16], sizes = [8, 16, 4], strides = [1, 1, 1]} : vector<8x16x32xf32> to vector<8x16x4xf32>
    "tpu.trace_start"() <{level = 10 : i32, message = "tqd,tkd->tqk"}> : () -> ()
    %cst_45 = arith.constant dense<0.000000e+00> : vector<8x16x16xf32>
    %137 = tpu.matmul %134, %135, %cst_45 {dimension_numbers = #tpu.dot_dimension_numbers<[2], [2], [1], [1], [0, 0, 0, 1, 1, 1], [0], [0]>} : vector<8x16x4xf32>, vector<8x16x4xf32>, vector<8x16x16xf32> -> vector<8x16x16xf32>
    "tpu.trace_stop"() : () -> ()
    %cst_46 = arith.constant dense<0xFF800000> : vector<8x16xf32>
    %138 = vector.multi_reduction <maximumf>, %137, %cst_46 [2] : vector<8x16x16xf32> to vector<8x16xf32>
    %139 = vector.shape_cast %138 : vector<8x16xf32> to vector<8x16x1xf32>
    %140 = vector.broadcast %139 : vector<8x16x1xf32> to vector<8x16x16xf32>
    %141 = arith.subf %137, %140 : vector<8x16x16xf32>
    %142 = math.exp %141 : vector<8x16x16xf32>
    %cst_47 = arith.constant dense<0.000000e+00> : vector<8x16xf32>
    %143 = vector.multi_reduction <add>, %142, %cst_47 [2] : vector<8x16x16xf32> to vector<8x16xf32>
    %144 = vector.shape_cast %143 : vector<8x16xf32> to vector<8x16x1xf32>
    %145 = vector.broadcast %144 : vector<8x16x1xf32> to vector<8x16x16xf32>
    %146 = arith.divf %142, %145 : vector<8x16x16xf32>
    "tpu.trace_start"() <{level = 10 : i32, message = "tqk,tkd->tqd"}> : () -> ()
    %cst_48 = arith.constant dense<0.000000e+00> : vector<8x16x4xf32>
    %147 = tpu.matmul %146, %136, %cst_48 {dimension_numbers = #tpu.dot_dimension_numbers<[2], [1], [1], [2], [0, 0, 0, 1, 1, 2], [0], [0]>} : vector<8x16x16xf32>, vector<8x16x4xf32>, vector<8x16x4xf32> -> vector<8x16x4xf32>
    "tpu.trace_stop"() : () -> ()
    %148 = vector.shape_cast %147 : vector<8x16x4xf32> to vector<128x4xf32>
    %149 = vector.extract_strided_slice %50 {offsets = [16, 0], sizes = [4, 32], strides = [1, 1]} : vector<32x32xf32> to vector<4x32xf32>
    %cst_49 = arith.constant dense<0.000000e+00> : vector<128x32xf32>
    %150 = tpu.matmul %148, %149, %cst_49 {dimension_numbers = #tpu.dot_dimension_numbers<[1], [0], [0], [1], [0, 0, 1, 1], [], []>} : vector<128x4xf32>, vector<4x32xf32>, vector<128x32xf32> -> vector<128x32xf32>
    %151 = arith.addf %131, %150 : vector<128x32xf32>
    %152 = vector.extract_strided_slice %45 {offsets = [0, 0, 20], sizes = [8, 16, 4], strides = [1, 1, 1]} : vector<8x16x32xf32> to vector<8x16x4xf32>
    %cst_50 = arith.constant 5.000000e-01 : f32
    %153 = vector.broadcast %cst_50 : f32 to vector<8x16x4xf32>
    %154 = arith.mulf %152, %153 : vector<8x16x4xf32>
    %155 = vector.extract_strided_slice %47 {offsets = [0, 0, 20], sizes = [8, 16, 4], strides = [1, 1, 1]} : vector<8x16x32xf32> to vector<8x16x4xf32>
    %156 = vector.extract_strided_slice %49 {offsets = [0, 0, 20], sizes = [8, 16, 4], strides = [1, 1, 1]} : vector<8x16x32xf32> to vector<8x16x4xf32>
    "tpu.trace_start"() <{level = 10 : i32, message = "tqd,tkd->tqk"}> : () -> ()
    %cst_51 = arith.constant dense<0.000000e+00> : vector<8x16x16xf32>
    %157 = tpu.matmul %154, %155, %cst_51 {dimension_numbers = #tpu.dot_dimension_numbers<[2], [2], [1], [1], [0, 0, 0, 1, 1, 1], [0], [0]>} : vector<8x16x4xf32>, vector<8x16x4xf32>, vector<8x16x16xf32> -> vector<8x16x16xf32>
    "tpu.trace_stop"() : () -> ()
    %cst_52 = arith.constant dense<0xFF800000> : vector<8x16xf32>
    %158 = vector.multi_reduction <maximumf>, %157, %cst_52 [2] : vector<8x16x16xf32> to vector<8x16xf32>
    %159 = vector.shape_cast %158 : vector<8x16xf32> to vector<8x16x1xf32>
    %160 = vector.broadcast %159 : vector<8x16x1xf32> to vector<8x16x16xf32>
    %161 = arith.subf %157, %160 : vector<8x16x16xf32>
    %162 = math.exp %161 : vector<8x16x16xf32>
    %cst_53 = arith.constant dense<0.000000e+00> : vector<8x16xf32>
    %163 = vector.multi_reduction <add>, %162, %cst_53 [2] : vector<8x16x16xf32> to vector<8x16xf32>
    %164 = vector.shape_cast %163 : vector<8x16xf32> to vector<8x16x1xf32>
    %165 = vector.broadcast %164 : vector<8x16x1xf32> to vector<8x16x16xf32>
    %166 = arith.divf %162, %165 : vector<8x16x16xf32>
    "tpu.trace_start"() <{level = 10 : i32, message = "tqk,tkd->tqd"}> : () -> ()
    %cst_54 = arith.constant dense<0.000000e+00> : vector<8x16x4xf32>
    %167 = tpu.matmul %166, %156, %cst_54 {dimension_numbers = #tpu.dot_dimension_numbers<[2], [1], [1], [2], [0, 0, 0, 1, 1, 2], [0], [0]>} : vector<8x16x16xf32>, vector<8x16x4xf32>, vector<8x16x4xf32> -> vector<8x16x4xf32>
    "tpu.trace_stop"() : () -> ()
    %168 = vector.shape_cast %167 : vector<8x16x4xf32> to vector<128x4xf32>
    %169 = vector.extract_strided_slice %50 {offsets = [20, 0], sizes = [4, 32], strides = [1, 1]} : vector<32x32xf32> to vector<4x32xf32>
    %cst_55 = arith.constant dense<0.000000e+00> : vector<128x32xf32>
    %170 = tpu.matmul %168, %169, %cst_55 {dimension_numbers = #tpu.dot_dimension_numbers<[1], [0], [0], [1], [0, 0, 1, 1], [], []>} : vector<128x4xf32>, vector<4x32xf32>, vector<128x32xf32> -> vector<128x32xf32>
    %171 = arith.addf %151, %170 : vector<128x32xf32>
    %172 = vector.extract_strided_slice %45 {offsets = [0, 0, 24], sizes = [8, 16, 4], strides = [1, 1, 1]} : vector<8x16x32xf32> to vector<8x16x4xf32>
    %cst_56 = arith.constant 5.000000e-01 : f32
    %173 = vector.broadcast %cst_56 : f32 to vector<8x16x4xf32>
    %174 = arith.mulf %172, %173 : vector<8x16x4xf32>
    %175 = vector.extract_strided_slice %47 {offsets = [0, 0, 24], sizes = [8, 16, 4], strides = [1, 1, 1]} : vector<8x16x32xf32> to vector<8x16x4xf32>
    %176 = vector.extract_strided_slice %49 {offsets = [0, 0, 24], sizes = [8, 16, 4], strides = [1, 1, 1]} : vector<8x16x32xf32> to vector<8x16x4xf32>
    "tpu.trace_start"() <{level = 10 : i32, message = "tqd,tkd->tqk"}> : () -> ()
    %cst_57 = arith.constant dense<0.000000e+00> : vector<8x16x16xf32>
    %177 = tpu.matmul %174, %175, %cst_57 {dimension_numbers = #tpu.dot_dimension_numbers<[2], [2], [1], [1], [0, 0, 0, 1, 1, 1], [0], [0]>} : vector<8x16x4xf32>, vector<8x16x4xf32>, vector<8x16x16xf32> -> vector<8x16x16xf32>
    "tpu.trace_stop"() : () -> ()
    %cst_58 = arith.constant dense<0xFF800000> : vector<8x16xf32>
    %178 = vector.multi_reduction <maximumf>, %177, %cst_58 [2] : vector<8x16x16xf32> to vector<8x16xf32>
    %179 = vector.shape_cast %178 : vector<8x16xf32> to vector<8x16x1xf32>
    %180 = vector.broadcast %179 : vector<8x16x1xf32> to vector<8x16x16xf32>
    %181 = arith.subf %177, %180 : vector<8x16x16xf32>
    %182 = math.exp %181 : vector<8x16x16xf32>
    %cst_59 = arith.constant dense<0.000000e+00> : vector<8x16xf32>
    %183 = vector.multi_reduction <add>, %182, %cst_59 [2] : vector<8x16x16xf32> to vector<8x16xf32>
    %184 = vector.shape_cast %183 : vector<8x16xf32> to vector<8x16x1xf32>
    %185 = vector.broadcast %184 : vector<8x16x1xf32> to vector<8x16x16xf32>
    %186 = arith.divf %182, %185 : vector<8x16x16xf32>
    "tpu.trace_start"() <{level = 10 : i32, message = "tqk,tkd->tqd"}> : () -> ()
    %cst_60 = arith.constant dense<0.000000e+00> : vector<8x16x4xf32>
    %187 = tpu.matmul %186, %176, %cst_60 {dimension_numbers = #tpu.dot_dimension_numbers<[2], [1], [1], [2], [0, 0, 0, 1, 1, 2], [0], [0]>} : vector<8x16x16xf32>, vector<8x16x4xf32>, vector<8x16x4xf32> -> vector<8x16x4xf32>
    "tpu.trace_stop"() : () -> ()
    %188 = vector.shape_cast %187 : vector<8x16x4xf32> to vector<128x4xf32>
    %189 = vector.extract_strided_slice %50 {offsets = [24, 0], sizes = [4, 32], strides = [1, 1]} : vector<32x32xf32> to vector<4x32xf32>
    %cst_61 = arith.constant dense<0.000000e+00> : vector<128x32xf32>
    %190 = tpu.matmul %188, %189, %cst_61 {dimension_numbers = #tpu.dot_dimension_numbers<[1], [0], [0], [1], [0, 0, 1, 1], [], []>} : vector<128x4xf32>, vector<4x32xf32>, vector<128x32xf32> -> vector<128x32xf32>
    %191 = arith.addf %171, %190 : vector<128x32xf32>
    %192 = vector.extract_strided_slice %45 {offsets = [0, 0, 28], sizes = [8, 16, 4], strides = [1, 1, 1]} : vector<8x16x32xf32> to vector<8x16x4xf32>
    %cst_62 = arith.constant 5.000000e-01 : f32
    %193 = vector.broadcast %cst_62 : f32 to vector<8x16x4xf32>
    %194 = arith.mulf %192, %193 : vector<8x16x4xf32>
    %195 = vector.extract_strided_slice %47 {offsets = [0, 0, 28], sizes = [8, 16, 4], strides = [1, 1, 1]} : vector<8x16x32xf32> to vector<8x16x4xf32>
    %196 = vector.extract_strided_slice %49 {offsets = [0, 0, 28], sizes = [8, 16, 4], strides = [1, 1, 1]} : vector<8x16x32xf32> to vector<8x16x4xf32>
    "tpu.trace_start"() <{level = 10 : i32, message = "tqd,tkd->tqk"}> : () -> ()
    %cst_63 = arith.constant dense<0.000000e+00> : vector<8x16x16xf32>
    %197 = tpu.matmul %194, %195, %cst_63 {dimension_numbers = #tpu.dot_dimension_numbers<[2], [2], [1], [1], [0, 0, 0, 1, 1, 1], [0], [0]>} : vector<8x16x4xf32>, vector<8x16x4xf32>, vector<8x16x16xf32> -> vector<8x16x16xf32>
    "tpu.trace_stop"() : () -> ()
    %cst_64 = arith.constant dense<0xFF800000> : vector<8x16xf32>
    %198 = vector.multi_reduction <maximumf>, %197, %cst_64 [2] : vector<8x16x16xf32> to vector<8x16xf32>
    %199 = vector.shape_cast %198 : vector<8x16xf32> to vector<8x16x1xf32>
    %200 = vector.broadcast %199 : vector<8x16x1xf32> to vector<8x16x16xf32>
    %201 = arith.subf %197, %200 : vector<8x16x16xf32>
    %202 = math.exp %201 : vector<8x16x16xf32>
    %cst_65 = arith.constant dense<0.000000e+00> : vector<8x16xf32>
    %203 = vector.multi_reduction <add>, %202, %cst_65 [2] : vector<8x16x16xf32> to vector<8x16xf32>
    %204 = vector.shape_cast %203 : vector<8x16xf32> to vector<8x16x1xf32>
    %205 = vector.broadcast %204 : vector<8x16x1xf32> to vector<8x16x16xf32>
    %206 = arith.divf %202, %205 : vector<8x16x16xf32>
    "tpu.trace_start"() <{level = 10 : i32, message = "tqk,tkd->tqd"}> : () -> ()
    %cst_66 = arith.constant dense<0.000000e+00> : vector<8x16x4xf32>
    %207 = tpu.matmul %206, %196, %cst_66 {dimension_numbers = #tpu.dot_dimension_numbers<[2], [1], [1], [2], [0, 0, 0, 1, 1, 2], [0], [0]>} : vector<8x16x16xf32>, vector<8x16x4xf32>, vector<8x16x4xf32> -> vector<8x16x4xf32>
    "tpu.trace_stop"() : () -> ()
    %208 = vector.shape_cast %207 : vector<8x16x4xf32> to vector<128x4xf32>
    %209 = vector.extract_strided_slice %50 {offsets = [28, 0], sizes = [4, 32], strides = [1, 1]} : vector<32x32xf32> to vector<4x32xf32>
    %cst_67 = arith.constant dense<0.000000e+00> : vector<128x32xf32>
    %210 = tpu.matmul %208, %209, %cst_67 {dimension_numbers = #tpu.dot_dimension_numbers<[1], [0], [0], [1], [0, 0, 1, 1], [], []>} : vector<128x4xf32>, vector<4x32xf32>, vector<128x32xf32> -> vector<128x32xf32>
    %211 = arith.addf %191, %210 : vector<128x32xf32>
    %c0_68 = arith.constant 0 : index
    %c0_69 = arith.constant 0 : index
    %212 = vector.load %arg8[%c0_68, %c0_69] : memref<1x32xf32, #tpu.memory_space<vmem>>, vector<1x32xf32>
    %213 = vector.shape_cast %212 : vector<1x32xf32> to vector<32xf32>
    %214 = vector.shape_cast %213 : vector<32xf32> to vector<1x32xf32>
    %215 = vector.broadcast %214 : vector<1x32xf32> to vector<128x32xf32>
    %216 = arith.addf %211, %215 : vector<128x32xf32>
    %217 = arith.addf %216, %36 : vector<128x32xf32>
    %c0_70 = arith.constant 0 : index
    %c0_71 = arith.constant 0 : index
    %218 = vector.load %arg9[%c0_70, %c0_71] : memref<1x32xf32, #tpu.memory_space<vmem>>, vector<1x32xf32>
    %219 = vector.shape_cast %218 : vector<1x32xf32> to vector<32xf32>
    %c0_72 = arith.constant 0 : index
    %c0_73 = arith.constant 0 : index
    %220 = vector.load %arg10[%c0_72, %c0_73] : memref<1x32xf32, #tpu.memory_space<vmem>>, vector<1x32xf32>
    %221 = vector.shape_cast %220 : vector<1x32xf32> to vector<32xf32>
    %cst_74 = arith.constant dense<0.000000e+00> : vector<128xf32>
    %222 = vector.multi_reduction <add>, %217, %cst_74 [1] : vector<128x32xf32> to vector<128xf32>
    %223 = vector.shape_cast %222 : vector<128xf32> to vector<128x1xf32>
    %cst_75 = arith.constant 3.200000e+01 : f32
    %224 = vector.broadcast %cst_75 : f32 to vector<128x1xf32>
    %225 = arith.divf %223, %224 : vector<128x1xf32>
    %226 = vector.broadcast %225 : vector<128x1xf32> to vector<128x32xf32>
    %227 = arith.subf %217, %226 : vector<128x32xf32>
    %228 = arith.mulf %227, %227 : vector<128x32xf32>
    %cst_76 = arith.constant dense<0.000000e+00> : vector<128xf32>
    %229 = vector.multi_reduction <add>, %228, %cst_76 [1] : vector<128x32xf32> to vector<128xf32>
    %230 = vector.shape_cast %229 : vector<128xf32> to vector<128x1xf32>
    %cst_77 = arith.constant 3.200000e+01 : f32
    %231 = vector.broadcast %cst_77 : f32 to vector<128x1xf32>
    %232 = arith.divf %230, %231 : vector<128x1xf32>
    %233 = vector.broadcast %225 : vector<128x1xf32> to vector<128x32xf32>
    %234 = arith.subf %217, %233 : vector<128x32xf32>
    %cst_78 = arith.constant 9.99999974E-6 : f32
    %235 = vector.broadcast %cst_78 : f32 to vector<128x1xf32>
    %236 = arith.addf %232, %235 : vector<128x1xf32>
    %237 = math.rsqrt %236 : vector<128x1xf32>
    %238 = vector.broadcast %237 : vector<128x1xf32> to vector<128x32xf32>
    %239 = arith.mulf %234, %238 : vector<128x32xf32>
    %240 = vector.shape_cast %219 : vector<32xf32> to vector<1x32xf32>
    %241 = vector.broadcast %240 : vector<1x32xf32> to vector<128x32xf32>
    %242 = arith.mulf %239, %241 : vector<128x32xf32>
    %243 = vector.shape_cast %221 : vector<32xf32> to vector<1x32xf32>
    %244 = vector.broadcast %243 : vector<1x32xf32> to vector<128x32xf32>
    %245 = arith.addf %242, %244 : vector<128x32xf32>
    %246 = vector.shape_cast %245 : vector<128x32xf32> to vector<1x128x32xf32>
    %247 = tpu.transpose %246, [0, 2, 1] : vector<1x128x32xf32> -> vector<1x32x128xf32>
    %c0_79 = arith.constant 0 : index
    %c0_80 = arith.constant 0 : index
    %c0_81 = arith.constant 0 : index
    %248 = vector.load %arg1[%c0_79, %c0_80, %c0_81] : memref<1x32x128xf32, #tpu.memory_space<vmem>>, vector<1x32x128xf32>
    %249 = arith.addf %247, %248 : vector<1x32x128xf32>
    %c0_82 = arith.constant 0 : index
    %c0_83 = arith.constant 0 : index
    %c0_84 = arith.constant 0 : index
    %250 = vector.load %arg11[%c0_82, %c0_83, %c0_84] : memref<1x32x128xf32, #tpu.memory_space<vmem>>, vector<1x32x128xf32>
    tpu.vector_store %arg11[%c0_82, %c0_83, %c0_84], %249 {strides = array<i32>} : memref<1x32x128xf32, #tpu.memory_space<vmem>>, vector<1x32x128xf32>,
    return
  }
  func.func @transform_0(%arg0: i32) -> (i32, i32, i32) {
    %c0_i32 = arith.constant 0 : i32
    %c0_i32_0 = arith.constant 0 : i32
    %c0_i32_1 = arith.constant 0 : i32
    return %arg0, %c0_i32, %c0_i32_0 : i32, i32, i32
  }
  func.func @transform_1(%arg0: i32) -> (i32, i32) {
    %c0_i32 = arith.constant 0 : i32
    %c0_i32_0 = arith.constant 0 : i32
    %c0_i32_1 = arith.constant 0 : i32
    return %c0_i32, %c0_i32_0 : i32, i32
  }
  func.func @transform_2(%arg0: i32) -> (i32, i32) {
    %c0_i32 = arith.constant 0 : i32
    %c0_i32_0 = arith.constant 0 : i32
    %c0_i32_1 = arith.constant 0 : i32
    return %c0_i32, %c0_i32_0 : i32, i32
  }
  func.func @transform_3(%arg0: i32) -> (i32, i32) {
    %c0_i32 = arith.constant 0 : i32
    %c0_i32_0 = arith.constant 0 : i32
    %c0_i32_1 = arith.constant 0 : i32
    return %c0_i32, %c0_i32_0 : i32, i32
  }
  func.func @transform_4(%arg0: i32) -> (i32, i32) {
    %c0_i32 = arith.constant 0 : i32
    %c0_i32_0 = arith.constant 0 : i32
    %c0_i32_1 = arith.constant 0 : i32
    return %c0_i32, %c0_i32_0 : i32, i32
  }
  func.func @transform_5(%arg0: i32) -> (i32, i32) {
    %c0_i32 = arith.constant 0 : i32
    %c0_i32_0 = arith.constant 0 : i32
    %c0_i32_1 = arith.constant 0 : i32
    return %c0_i32, %c0_i32_0 : i32, i32
  }
  func.func @transform_6(%arg0: i32) -> (i32, i32) {
    %c0_i32 = arith.constant 0 : i32
    %c0_i32_0 = arith.constant 0 : i32
    %c0_i32_1 = arith.constant 0 : i32
    return %c0_i32, %c0_i32_0 : i32, i32
  }
  func.func @transform_7(%arg0: i32) -> (i32, i32) {
    %c0_i32 = arith.constant 0 : i32
    %c0_i32_0 = arith.constant 0 : i32
    %c0_i32_1 = arith.constant 0 : i32
    return %c0_i32, %c0_i32_0 : i32, i32
  }
  func.func @transform_8(%arg0: i32) -> (i32, i32) {
    %c0_i32 = arith.constant 0 : i32
    %c0_i32_0 = arith.constant 0 : i32
    %c0_i32_1 = arith.constant 0 : i32
    return %c0_i32, %c0_i32_0 : i32, i32
  }
  func.func @transform_9(%arg0: i32) -> (i32, i32) {
    %c0_i32 = arith.constant 0 : i32
    %c0_i32_0 = arith.constant 0 : i32
    %c0_i32_1 = arith.constant 0 : i32
    return %c0_i32, %c0_i32_0 : i32, i32
  }
  func.func @transform_10(%arg0: i32) -> (i32, i32, i32) {
    %c0_i32 = arith.constant 0 : i32
    %c0_i32_0 = arith.constant 0 : i32
    %c0_i32_1 = arith.constant 0 : i32
    return %arg0, %c0_i32, %c0_i32_0 : i32, i32, i32
  }
}

</mosaic_0001>

<bundles_post_ra>
// kernel: tpu_custom_call.1
= control target key start
LH: loop header
LB: loop body
LE: loop exit
PB: predicated region body
PF: predicated region fallthrough
CT: control target
= control target key end

     0   :  { %s23297_s0 = inlined_call_operand.hbm [shape: f32[2,32,128], index: 0, kind: input, shape index: {}]   ;;  %s23298_s1 = inlined_call_operand.hbm [shape: f32[16,32], index: 1, kind: input, shape index: {}]   ;;  %s23299_s2 = inlined_call_operand.vmem [shape: f32[1,32], index: 2, kind: input, shape index: {}]   ;;  %s23300_s3 = inlined_call_operand.vmem [shape: f32[1,32], index: 3, kind: input, shape index: {}]   ;;  %s23301_s4 = inlined_call_operand.hbm [shape: f32[32,96], index: 4, kind: input, shape index: {}]   ;;  %s23302_s5 = inlined_call_operand.vmem [shape: f32[1,96], index: 5, kind: input, shape index: {}]   ;;  %s23303_s6 = inlined_call_operand.hbm [shape: f32[32,32], index: 6, kind: input, shape index: {}]   ;;  %s23304_s7 = inlined_call_operand.vmem [shape: f32[1,32], index: 7, kind: input, shape index: {}]   ;;  %s23305_s8 = inlined_call_operand.vmem [shape: f32[1,32], index: 8, kind: input, shape index: {}]   ;;  %s23306_s9 = inlined_call_operand.vmem [shape: f32[1,32], index: 9, kind: input, shape index: {}]   ;;  %s23307_s10 = inlined_call_operand.hbm [shape: f32[2,32,128], index: 10, kind: output, shape index: {}]  }
   0x1   :  { %23362 = sst [smem:[#allocation73_spill]] %s23298_s1 }
   0x2   :  { %23363 = sst [smem:[#allocation74_spill]] %s23301_s4 }
   0x3   :  { %23364 = sst [smem:[#allocation75_spill]] %s23303_s6 }
   0x4   :  { %15 = vsyncpa [#allocation3], 0 }
   0x5   :  { %17 = vsyncpa [#allocation3 + $0x1], 0 }
   0x6   :  { %18 = vsyncpa [#allocation6], 0 }
   0x7   :  { %19 = vsyncpa [#allocation9], 0 }
   0x8   :  { %20 = vsyncpa [#allocation4], 0 }
   0x9   :  { %22 = vsyncpa [#allocation4 + $0x1], 0  ;;  %s19194_s13 = smov 0   ;;  %s19196_s14 = smov 0  }
   0xa   :  { %s19198_s15 = smov 0   ;;  %s19200_s16 = smov 0  }
   0xb LB: > { %s19215_s17 = sadd.s32 4294967295, %s19105_s16   ;;  %s15876_s18 = sadd.s32 4294967294, %s19105_s16   ;;  %s19105_s16 = sphi %s19200_s16, %s23693_s16   ;;  %s19101_s15 = sphi %s19198_s15, %s23692_s15   ;;  %s19097_s14 = sphi %s19196_s14, %s23691_s14   ;;  %s19093_s13 = sphi %s19194_s13, %s23690_s13  }
   0xc   : > { %p48_p0 = scmp.ne.s32.totalorder %s19097_s14, %s19093_s13  ;;  %p23308_p1 = scmp.eq.s32.totalorder %s19215_s17, 0 }
   0xd   : > { %p261_p2 = scmp.eq.s32.totalorder %s19215_s17, 1  ;;  %p267_p3 = scmp.eq.s32.totalorder %s15876_s18, 1 }
   0xe   : > { %p19224_p4 = por %p23308_p1, %p48_p0  ;;  %p15877_p5 = scmp.ge.s32.totalorder %s19105_s16, 1 }
   0xf   : > { %p19229_p6 = por %p267_p3, %p48_p0  ;;  %p274_p7 = scmp.lt.s32.totalorder %s19105_s16, 3 }
  0x10   : > { %s23365_s19 = scalar_select %p19224_p4, 1, 0 }
  0x11   : > { %s23366_s20 = scalar_select %p19229_p6, 1, 0 }
  0x12   : > { %p19234_p8 = pnand %p15877_p5, %p274_p7  ;;  %s19107_s22 = smov [#allocation5]  }
  0x13   : > { %s286_s23 = sshll.u32 %s19107_s22, 4  ;;  %s19108_s25 = smov [#allocation7]   ;;  %s287_s23 = int_to_ptr.vmem [resolvable:$true] %s286_s23 }
  0x14   : > { %s23367_s21 = scalar_select %p19234_p8, 1, 0 }
  0x15   : > { %p18262_p9 = pneg %p19234_p8  ;;  %s305_s26 = sshll.u32 %s19108_s25, 4  ;;  %s306_s26 = int_to_ptr.vmem [resolvable:$true] %s305_s26 }
  0x16   : > { %s19109_s27 = smov [#allocation8]   ;;  %s18938_s29 = scalar_lea.vmem %s287_s23, 256 }
  0x17   : > { %p19243_p11 = pnand %p18262_p9, %p23308_p1  ;;  %s321_s28 = sshll.u32 %s19109_s27, 4  ;;  %s322_s28 = int_to_ptr.vmem [resolvable:$true] %s321_s28 }
  0x18   : > { %p18939_p13 = scmp.ne.s32.totalorder %s287_s23, %s18938_s29  ;;  %p18946_p5 = scmp.lt.s32.totalorder %s287_s23, %s287_s23 }
  0x19   : > { %p18929_p12 = pneg %p19243_p11  ;;  %p18947_p7 = scmp.lt.s32.totalorder %s18938_s29, %s18938_s29 }
  0x1b   : > { %p18941_p0 = pnand %p18939_p13, %p18929_p12  ;;  %p18948_p9 = por %p18947_p7, %p18946_p5 }
  0x1d   : > { %p18942_p3 = pneg %p18941_p0 }
  0x1f   : > { %p18949_p10 = pnand %p18948_p9, %p18942_p3 }
  0x21   : > { %18952 = shalt.err (!%p18949_p10)
}
  0x22   : > { %s23309_s30 = smov 128   ;;  %s23310_s11 = smov 8  }
  0x23   : > { %s23369_s1 = sld [smem:[#allocation73_spill]]  ;;  %s18964_s22 = scalar_lea.vmem %s306_s26, 512 }
  0x24   : > { %p18965_p13 = scmp.ne.s32.totalorder %s306_s26, %s18964_s22  ;;  %p18972_p3 = scmp.lt.s32.totalorder %s306_s26, %s306_s26 }
  0x25   : > { %p18973_p10 = scmp.lt.s32.totalorder %s18964_s22, %s18964_s22 }
  0x26   : > { %p18967_p0 = pnand %p18965_p13, %p18929_p12 }
  0x27   : > { %p18974_p7 = por %p18973_p10, %p18972_p3 }
  0x28   : > { %p18968_p5 = pneg %p18967_p0 }
  0x29   : > { %18265 = dma.hbm_to_vmem [thread:$0]  (!%p19243_p11), %s23369_s1, 256, %s287_s23, [#allocation6], %s23309_s30, %s23309_s30, %s23310_s11  }
  0x2a   : > { %p18975_p9 = pnand %p18974_p7, %p18968_p5 }
  0x2c   : > { %18978 = shalt.err (!%p18975_p9)
}
  0x2d   : > { %s23370_s4 = sld [smem:[#allocation74_spill]]  ;;  %s18990_s23 = scalar_lea.vmem %s322_s28, 512 }
  0x2e   : > { %p18991_p1 = scmp.ne.s32.totalorder %s322_s28, %s18990_s23  ;;  %p18998_p3 = scmp.lt.s32.totalorder %s322_s28, %s322_s28 }
  0x2f   : > { %p18999_p5 = scmp.lt.s32.totalorder %s18990_s23, %s18990_s23 }
  0x30   : > { %p18993_p13 = pnand %p18991_p1, %p18929_p12 }
  0x31   : > { %p19000_p10 = por %p18999_p5, %p18998_p3 }
  0x32   : > { %p18994_p0 = pneg %p18993_p13 }
  0x33   : > { %18268 = dma.hbm_to_vmem [thread:$0]  (!%p19243_p11), %s23370_s4, 512, %s306_s26, [#allocation6], %s23309_s30, %s23309_s30, %s23310_s11  }
  0x34   : > { %p19001_p7 = pnand %p19000_p10, %p18994_p0 }
  0x36   : > { %19004 = shalt.err (!%p19001_p7)
}
  0x37   : > { %s23371_s6 = sld [smem:[#allocation75_spill]]  ;;  %s19283_s26 = sadd.s32 1, %s19105_s16  }
  0x38   : > { %s32_s24 = ssub.s32 %s19105_s16, %s19283_s26  ;;  %s35_s18 = sadd.s32 1, %s19101_s15 }
  0x39   : > { %p33_p1 = scmp.eq.s32.totalorder %s32_s24, 0  ;;  %p42_p12 = scmp.ne.s32.totalorder %s19101_s15, %s19097_s14 }
  0x3a   : > { %p43_p9 = scmp.eq.s32.totalorder %s19105_s16, 0  ;;  %p18283_p13 = scmp.lt.s32.totalorder %s19105_s16, 2 }
  0x3b   : > { %s19293_s22 = scalar_select %p33_p1, %s19101_s15, %s35_s18  }
  0x3c   : > { %p44_p0 = por %p43_p9, %p42_p12  ;;  %p19297_p3 = por %p261_p2, %p42_p12 }
  0x3d   : > { %18271 = dma.hbm_to_vmem [thread:$0]  (!%p19243_p11), %s23371_s6, 512, %s322_s28, [#allocation9], %s23309_s30, %s23309_s30, %s23310_s11  }
  0x3e   : > { %23372 = sst [smem:[#allocation15_spill]] %s19293_s22  ;;  %s344_s27 = sand.u32 1, %s19101_s15  }
  0x3f   : > { %s23373_s25 = scalar_select %p19297_p3, 1, 0 }
  0x40   : > { %s16438_s23 = sshll.u32 %s19105_s16, 9  ;;  %s15882_s28 = sshll.u32 %s344_s27, 5 }
  0x41   : > { %s19306_s30 = scalar_lea.hbm %s23297_s0, %s16438_s23  ;;  %s348_s24 = scalar_lea.vmem [#allocation2], %s15882_s28 }
  0x42   : > { %s355_s18 = sshll.u32 %s348_s24, 4  ;;  %p19308_p11 = pnand %p18283_p13, %p44_p0  ;;  %s19312_s18 = int_to_ptr.vmem [resolvable:$true] %s355_s18 }
  0x43   : > { %s19314_s1 = scalar_lea.sflag [#allocation3], %s344_s27  ;;  %s19005_s4 = scalar_lea.hbm %s19306_s30, 512 }
  0x44   : > { %p19006_p2 = scmp.ne.s32.totalorder %s19306_s30, %s19005_s4  ;;  %p19007_p5 = pneg %p19308_p11 }
  0x45   : > { %s19010_s28 = scalar_lea.hbm %s23297_s0, 1024  ;;  %p19011_p1 = scmp.lt.s32.totalorder %s19306_s30, %s23297_s0 }
  0x46   : > { %p19008_p10 = pnand %p19007_p5, %p19006_p2  ;;  %p19012_p12 = scmp.lt.s32.totalorder %s19010_s28, %s19005_s4 }
  0x48   : > { %p19009_p7 = pneg %p19008_p10  ;;  %p19013_p9 = por %p19012_p12, %p19011_p1 }
  0x4a   : > { %p19014_p13 = pnand %p19013_p9, %p19009_p7 }
  0x4c   : > { %19017 = shalt.err (!%p19014_p13)
}
  0x4d   : > { %s19018_s27 = scalar_lea.vmem %s19312_s18, 512  ;;  %s19112_s6 = smov [#allocation2]  }
  0x4e   : > { %p19019_p0 = scmp.ne.s32.totalorder %s19312_s18, %s19018_s27  ;;  %s19023_s22 = sshll.u32 %s19112_s6, 4  ;;  %s19024_s22 = int_to_ptr.vmem [resolvable:$false] %s19023_s22 }
  0x4f   : > { %s19025_s23 = scalar_lea.vmem %s19024_s22, 1024  ;;  %p19026_p10 = scmp.lt.s32.totalorder %s19312_s18, %s19024_s22 }
  0x50   : > { %p19021_p6 = pnand %p19019_p0, %p19007_p5  ;;  %p19027_p3 = scmp.lt.s32.totalorder %s19025_s23, %s19018_s27 }
  0x52   : > { %p19022_p2 = pneg %p19021_p6  ;;  %p19028_p4 = por %p19027_p3, %p19026_p10 }
  0x54   : > { %p19029_p8 = pnand %p19028_p4, %p19022_p2 }
  0x56   : > { %19032 = shalt.err (!%p19029_p8)
}
  0x57   : > { %s23375_s4 = smov 8   ;;  %s23376_s29 = smov 128  }
  0x58   : > { %18275 = dma.hbm_to_vmem [thread:$0]  (!%p19308_p11), %s19306_s30, 512, %s19312_s18, %s19314_s1, %s23376_s29, %s23376_s29, %s23375_s4  }
  0x59   : > { %p23377_p6 = scmp.ne.s32.totalorder %s23367_s21, 0 }
  0x5b   : > { %367 = sbr.rel (%p23377_p6) target bundleno = 7509 (0x1d55), region = 60 }
  0x60   : > { %s19341_s6 = sand.u32 1, %s19097_s14   ;;  %p23378_p4 = scmp.ne.s32.totalorder %s23365_s19, 0 }
  0x61   : > { %s15886_s22 = sshll.u32 %s19341_s6, 5  ;;  %s370_s28 = scalar_lea.sflag [#allocation3], %s19341_s6 }
  0x62   : > { %s19347_s11 = scalar_lea.vmem [#allocation2], %s15886_s22 }
  0x63   : > { %19076 = dma.done.wait (%p23378_p4), %s370_s28, 512  }
  0x64   : > { %19078 = vsyncadd (%p23378_p4), %s370_s28, 4294966784  ;;  %p23379_p8 = scmp.eq.s32.totalorder %s19215_s17, 0 }
  0x66   : > { %19080 = dma.done.wait (%p23379_p8), [#allocation6], 768   ;;  %p23380_p3 = pmov %p23379_p8 }
  0x68   : > { %19082 = vsyncadd (%p23380_p3), [#allocation6], 4294966528  ;;  %p23381_p11 = pmov %p23380_p3 }
  0x69   : > { %p23382_p5 = pmov %p23380_p3 }
  0x6a   : > { %19084 = dma.done.wait (%p23381_p11), [#allocation9], 512  }
  0x6b   : > { %19086 = vsyncadd (%p23382_p5), [#allocation9], 4294966784  ;;  %v422_v0 = vld [vmem:[%s19347_s11] sm:$0xff]  ;;  %v423_v1 = vld [vmem:[%s19347_s11 + $0x8] sm:$0xff]  ;;  %vm460_vm0 = vcmask 261120   ;;  %s19113_s24 = smov 96  }
  0x6c   : > { %426 = vxpose.xlu0.b32.start [1/4] (short) %v422_v0, 128  ;;  %v424_v2 = vld [vmem:[%s19347_s11 + $0x10] sm:$0xff]  ;;  %v425_v3 = vld [vmem:[%s19347_s11 + $0x18] sm:$0xff]  ;;  %vm962_vm1 = vcmask 31744   ;;  %s19114_s27 = smov 64   ;;  %s19115_s23 = smov 92   ;;  %vm1685_vm2 = vcmask 130048  }
  0x6d   : > { %s19116_s4 = smov 124   ;;  %s19117_s29 = smov 60   ;;  %vm4208_vm3 = vcmask 1043456  }
  0x6e   : > { %s19118_s28 = smov 88   ;;  %s19119_s1 = smov 120  }
  0x6f   : > { %s19120_s19 = smov 56   ;;  %s19121_s21 = smov 84  }
  0x70   : > { %427 = vxpose.xlu0.b32.cont [2/4] (short) %v423_v1, 128  ;;  %s19122_s30 = smov 116   ;;  %s19123_s18 = smov 52  }
  0x71   : > { %s19124_s12 = smov 80   ;;  %p23686_p1 = scmp.ne.s32.totalorder %s23373_s25, 0 }
  0x74   : > { %428 = vxpose.xlu0.b32.cont [3/4] (short) %v424_v2, 128 }
  0x78   : > { %429 = vxpose.xlu0.b32.end [4/4] (short) %v425_v3, 128 }
  0xe8   : > { %v442_v4 = vpop.trf.xlu0 }
  0xe9   : > { %v461_v5 = vsel %vm460_vm0, %v442_v4, 0.0 }
  0xea   : > { %462 = vadd.xlane.f32.xlu1 %v461_v5 }
  0xec   : > { %v443_v6 = vpop.trf.xlu0 }
  0xed   : > { %v464_v7 = vsel %vm460_vm0, %v443_v6, 0.0 }
  0xee   : > { %465 = vadd.xlane.f32.xlu1 %v464_v7 }
  0xf0   : > { %v444_v8 = vpop.trf.xlu0 }
  0xf1   : > { %v467_v9 = vsel %vm460_vm0, %v444_v8, 0.0 }
  0xf2   : > { %468 = vadd.xlane.f32.xlu1 %v467_v9 }
  0xf4   : > { %v445_v10 = vpop.trf.xlu0 }
  0xf5   : > { %v470_v11 = vsel %vm460_vm0, %v445_v10, 0.0 }
  0xf6   : > { %471 = vadd.xlane.f32.xlu1 %v470_v11 }
  0xf8   : > { %v446_v12 = vpop.trf.xlu0 }
  0xf9   : > { %v473_v13 = vsel %vm460_vm0, %v446_v12, 0.0 }
  0xfa   : > { %474 = vadd.xlane.f32.xlu0 %v473_v13 }
  0xfc   : > { %v19370_v14 = vpop.trf.xlu0 }
  0xfd   : > { %v476_v15 = vsel %vm460_vm0, %v19370_v14, 0.0 }
  0xfe   : > { %477 = vadd.xlane.f32.xlu1 %v476_v15 }
 0x100   : > { %v19374_v16 = vpop.trf.xlu0 }
 0x101   : > { %v479_v17 = vsel %vm460_vm0, %v19374_v16, 0.0 }
 0x102   : > { %480 = vadd.xlane.f32.xlu1 %v479_v17 }
 0x104   : > { %v19378_v18 = vpop.trf.xlu0 }
 0x105   : > { %v482_v19 = vsel %vm460_vm0, %v19378_v18, 0.0 }
 0x106   : > { %483 = vadd.xlane.f32.xlu1 %v482_v19 }
 0x108   : > { %v19382_v20 = vpop.trf.xlu0 }
 0x109   : > { %v485_v21 = vsel %vm460_vm0, %v19382_v20, 0.0 }
 0x10a   : > { %486 = vadd.xlane.f32.xlu1 %v485_v21  ;;  %v735_v21 = vld [vmem:[#allocation7 + $0x18] sm:$0xff] }
 0x10b   : > { %17108 = vmatprep.subr.mxu0 %v735_v21 }
 0x10c   : > { %v19386_v22 = vpop.trf.xlu0  ;;  %17109 = vmatpush3.msra.mxu0 %v735_v21 }
 0x10d   : > { %v488_v23 = vsel %vm460_vm0, %v19386_v22, 0.0 }
 0x10e   : > { %489 = vadd.xlane.f32.xlu1 %v488_v23 }
 0x110   : > { %v19390_v24 = vpop.trf.xlu0 }
 0x111   : > { %v491_v25 = vsel %vm460_vm0, %v19390_v24, 0.0 }
 0x112   : > { %492 = vadd.xlane.f32.xlu1 %v491_v25 }
 0x114   : > { %v19394_v26 = vpop.trf.xlu0 }
 0x115   : > { %v494_v27 = vsel %vm460_vm0, %v19394_v26, 0.0 }
 0x116   : > { %495 = vadd.xlane.f32.xlu1 %v494_v27  ;;  %v734_v27 = vld [vmem:[#allocation7 + $0x10] sm:$0xff] }
 0x117   : > { %17110 = vmatprep.subr.mxu0 %v734_v27 }
 0x118   : > { %v19398_v28 = vpop.trf.xlu0  ;;  %17111 = vmatpush3.msra.mxu0 %v734_v27 }
 0x119   : > { %v497_v29 = vsel %vm460_vm0, %v19398_v28, 0.0 }
 0x11a   : > { %498 = vadd.xlane.f32.xlu1 %v497_v29 }
 0x11c   : > { %v19402_v30 = vpop.trf.xlu0 }
 0x11d   : > { %v500_v31 = vsel %vm460_vm0, %v19402_v30, 0.0 }
 0x11e   : > { %501 = vadd.xlane.f32.xlu1 %v500_v31 }
 0x120   : > { %v19406_v32 = vpop.trf.xlu0 }
 0x121   : > { %v503_v33 = vsel %vm460_vm0, %v19406_v32, 0.0 }
 0x122   : > { %504 = vadd.xlane.f32.xlu1 %v503_v33 }
 0x124   : > { %v19410_v34 = vpop.trf.xlu0 }
 0x125   : > { %v506_v35 = vsel %vm460_vm0, %v19410_v34, 0.0 }
 0x126   : > { %507 = vadd.xlane.f32.xlu1 %v506_v35 }
 0x173   : > { %v463_v36 = vpop.xlane.xlu1 %462 }
 0x174   : > { %v510_v37 = vmul.f32 0.03125, %v463_v36 }
 0x176   : > { %v19414_v38 = vsub.f32 %v442_v4, %v510_v37  ;;  %v732_v37 = vld [vmem:[#allocation7] sm:$0xff] }
 0x177   : > { %v466_v39 = vpop.xlane.xlu1 %465 }
 0x178   : > { %v511_v40 = vmul.f32 0.03125, %v466_v39  ;;  %v542_v41 = vmul.f32 %v19414_v38, %v19414_v38 }
 0x17a   : > { %v19418_v42 = vsub.f32 %v443_v6, %v511_v40  ;;  %v558_v43 = vsel %vm460_vm0, %v542_v41, 0.0 }
 0x17b   : > { %v469_v44 = vpop.xlane.xlu1 %468  ;;  %559 = vadd.xlane.f32.xlu1 %v558_v43 }
 0x17c   : > { %v512_v45 = vmul.f32 0.03125, %v469_v44  ;;  %v543_v46 = vmul.f32 %v19418_v42, %v19418_v42 }
 0x17e   : > { %v19423_v47 = vsub.f32 %v444_v8, %v512_v45  ;;  %v561_v48 = vsel %vm460_vm0, %v543_v46, 0.0 }
 0x17f   : > { %v472_v49 = vpop.xlane.xlu1 %471  ;;  %562 = vadd.xlane.f32.xlu1 %v561_v48 }
 0x180   : > { %v513_v50 = vmul.f32 0.03125, %v472_v49  ;;  %v544_v51 = vmul.f32 %v19423_v47, %v19423_v47 }
 0x182   : > { %v19428_v52 = vsub.f32 %v445_v10, %v513_v50  ;;  %v564_v53 = vsel %vm460_vm0, %v544_v51, 0.0 }
 0x183   : > { %565 = vadd.xlane.f32.xlu1 %v564_v53  ;;  %v475_v54 = vpop.xlane.xlu0 %474 }
 0x184   : > { %v514_v55 = vmul.f32 0.03125, %v475_v54  ;;  %v545_v56 = vmul.f32 %v19428_v52, %v19428_v52 }
 0x186   : > { %v19433_v57 = vsub.f32 %v446_v12, %v514_v55  ;;  %v567_v58 = vsel %vm460_vm0, %v545_v56, 0.0 }
 0x187   : > { %v478_v59 = vpop.xlane.xlu1 %477  ;;  %568 = vadd.xlane.f32.xlu1 %v567_v58 }
 0x188   : > { %v515_v60 = vmul.f32 0.03125, %v478_v59  ;;  %v546_v61 = vmul.f32 %v19433_v57, %v19433_v57 }
 0x18a   : > { %v19439_v62 = vsub.f32 %v19370_v14, %v515_v60  ;;  %v570_v63 = vsel %vm460_vm0, %v546_v61, 0.0 }
 0x18b   : > { %v481_v0 = vpop.xlane.xlu1 %480  ;;  %571 = vadd.xlane.f32.xlu1 %v570_v63 }
 0x18c   : > { %v516_v1 = vmul.f32 0.03125, %v481_v0  ;;  %v547_v2 = vmul.f32 %v19439_v62, %v19439_v62 }
 0x18e   : > { %v19445_v3 = vsub.f32 %v19374_v16, %v516_v1  ;;  %v573_v4 = vsel %vm460_vm0, %v547_v2, 0.0 }
 0x18f   : > { %v484_v5 = vpop.xlane.xlu1 %483  ;;  %574 = vadd.xlane.f32.xlu1 %v573_v4 }
 0x190   : > { %v517_v6 = vmul.f32 0.03125, %v484_v5  ;;  %v548_v7 = vmul.f32 %v19445_v3, %v19445_v3 }
 0x192   : > { %v19451_v8 = vsub.f32 %v19378_v18, %v517_v6  ;;  %v576_v9 = vsel %vm460_vm0, %v548_v7, 0.0 }
 0x193   : > { %v487_v10 = vpop.xlane.xlu1 %486  ;;  %577 = vadd.xlane.f32.xlu1 %v576_v9 }
 0x194   : > { %v518_v11 = vmul.f32 0.03125, %v487_v10  ;;  %v549_v12 = vmul.f32 %v19451_v8, %v19451_v8 }
 0x196   : > { %v19457_v13 = vsub.f32 %v19382_v20, %v518_v11  ;;  %v579_v14 = vsel %vm460_vm0, %v549_v12, 0.0 }
 0x197   : > { %v490_v15 = vpop.xlane.xlu1 %489  ;;  %580 = vadd.xlane.f32.xlu1 %v579_v14 }
 0x198   : > { %v519_v16 = vmul.f32 0.03125, %v490_v15  ;;  %v550_v17 = vmul.f32 %v19457_v13, %v19457_v13 }
 0x19a   : > { %v19463_v18 = vsub.f32 %v19386_v22, %v519_v16  ;;  %v582_v19 = vsel %vm460_vm0, %v550_v17, 0.0  ;;  %v733_v22 = vld [vmem:[#allocation7 + $0x8] sm:$0xff]  ;;  %v19508_v16 = vld [vmem:[%s23299_s2] ss:$0 sm:$0xff] }
 0x19b   : > { %v493_v23 = vpop.xlane.xlu1 %492  ;;  %583 = vadd.xlane.f32.xlu1 %v582_v19  ;;  %17112 = vmatprep.subr.mxu0 %v733_v22 }
 0x19c   : > { %v520_v25 = vmul.f32 0.03125, %v493_v23  ;;  %v551_v20 = vmul.f32 %v19463_v18, %v19463_v18  ;;  %17113 = vmatpush3.msra.mxu0 %v733_v22  ;;  %v19514_v23 = vld [vmem:[%s23300_s3] ss:$0 sm:$0xff] }
 0x19d   : > { %17114 = vmatprep.subr.mxu0 %v732_v37 }
 0x19e   : > { %v19469_v29 = vsub.f32 %v19390_v24, %v520_v25  ;;  %v585_v31 = vsel %vm460_vm0, %v551_v20, 0.0  ;;  %17115 = vmatpush3.msra.mxu0 %v732_v37 }
 0x19f   : > { %v496_v33 = vpop.xlane.xlu1 %495  ;;  %586 = vadd.xlane.f32.xlu1 %v585_v31  ;;  %v19517_v31 = vld [vmem:[#allocation5] sm:$0xff] }
 0x1a0   : > { %v521_v35 = vmul.f32 0.03125, %v496_v33  ;;  %v552_v36 = vmul.f32 %v19469_v29, %v19469_v29 }
 0x1a2   : > { %v19475_v39 = vsub.f32 %v19394_v26, %v521_v35  ;;  %v588_v24 = vsel %vm460_vm0, %v552_v36, 0.0 }
 0x1a3   : > { %v499_v40 = vpop.xlane.xlu1 %498  ;;  %589 = vadd.xlane.f32.xlu1 %v588_v24 }
 0x1a4   : > { %v522_v41 = vmul.f32 0.03125, %v499_v40  ;;  %v553_v43 = vmul.f32 %v19475_v39, %v19475_v39 }
 0x1a6   : > { %v19481_v44 = vsub.f32 %v19398_v28, %v522_v41  ;;  %v591_v45 = vsel %vm460_vm0, %v553_v43, 0.0  ;;  %v19525_v41 = vld [vmem:[#allocation5 + $0x8] sm:$0xff] }
 0x1a7   : > { %v502_v46 = vpop.xlane.xlu1 %501  ;;  %592 = vadd.xlane.f32.xlu1 %v591_v45 }
 0x1a8   : > { %v523_v48 = vmul.f32 0.03125, %v502_v46  ;;  %v554_v26 = vmul.f32 %v19481_v44, %v19481_v44 }
 0x1aa   : > { %v19487_v49 = vsub.f32 %v19402_v30, %v523_v48  ;;  %v594_v50 = vsel %vm460_vm0, %v554_v26, 0.0 }
 0x1ab   : > { %v505_v51 = vpop.xlane.xlu1 %504  ;;  %595 = vadd.xlane.f32.xlu1 %v594_v50 }
 0x1ac   : > { %v524_v53 = vmul.f32 0.03125, %v505_v51  ;;  %v555_v28 = vmul.f32 %v19487_v49, %v19487_v49 }
 0x1ae   : > { %v19493_v54 = vsub.f32 %v19406_v32, %v524_v53  ;;  %v597_v55 = vsel %vm460_vm0, %v555_v28, 0.0 }
 0x1af   : > { %598 = vadd.xlane.f32.xlu0 %v597_v55  ;;  %v508_v56 = vpop.xlane.xlu1 %507 }
 0x1b0   : > { %v525_v58 = vmul.f32 0.03125, %v508_v56  ;;  %v556_v30 = vmul.f32 %v19493_v54, %v19493_v54 }
 0x1b2   : > { %v19499_v59 = vsub.f32 %v19410_v34, %v525_v58  ;;  %v600_v60 = vsel %vm460_vm0, %v556_v30, 0.0 }
 0x1b3   : > { %601 = vadd.xlane.f32.xlu1 %v600_v60 }
 0x1b4   : > { %v557_v61 = vmul.f32 %v19499_v59, %v19499_v59 }
 0x1b6   : > { %v603_v32 = vsel %vm460_vm0, %v557_v61, 0.0 }
 0x1b7   : > { %604 = vadd.xlane.f32.xlu0 %v603_v32 }
 0x204   : > { %v560_v63 = vpop.xlane.xlu1 %559 }
 0x205   : > { %v606_v0 = vmul.f32 0.03125, %v560_v63 }
 0x207   : > { %v622_v1 = vadd.f32 1e-05, %v606_v0 }
 0x208   : > { %v563_v2 = vpop.xlane.xlu1 %562 }
 0x209   : > { %18351 = vrsqrt.f32 %v622_v1  ;;  %v607_v4 = vmul.f32 0.03125, %v563_v2 }
 0x20b   : > { %v623_v5 = vadd.f32 1e-05, %v607_v4 }
 0x20c   : > { %v566_v6 = vpop.xlane.xlu1 %565 }
 0x20d   : > { %18353 = vrsqrt.f32 %v623_v5  ;;  %v608_v34 = vmul.f32 0.03125, %v566_v6 }
 0x20f   : > { %v624_v7 = vadd.f32 1e-05, %v608_v34 }
 0x210   : > { %v569_v9 = vpop.xlane.xlu1 %568 }
 0x211   : > { %18355 = vrsqrt.f32 %v624_v7  ;;  %v609_v10 = vmul.f32 0.03125, %v569_v9 }
 0x213   : > { %v625_v11 = vadd.f32 1e-05, %v609_v10 }
 0x214   : > { %v572_v12 = vpop.xlane.xlu1 %571 }
 0x215   : > { %18357 = vrsqrt.f32 %v625_v11  ;;  %v610_v14 = vmul.f32 0.03125, %v572_v12 }
 0x216   : > { %v18352_v15 = vpop.eup %18351 }
 0x217   : > { %v626_v17 = vadd.f32 1e-05, %v610_v14  ;;  %v654_v19 = vmul.f32 %v18352_v15, %v19414_v38 }
 0x218   : > { %v575_v21 = vpop.xlane.xlu1 %574 }
 0x219   : > { %18359 = vrsqrt.f32 %v626_v17  ;;  %v611_v25 = vmul.f32 0.03125, %v575_v21  ;;  %v676_v20 = vmul.f32 %v19508_v16, %v654_v19 }
 0x21a   : > { %v18354_v27 = vpop.eup %18353 }
 0x21b   : > { %v627_v22 = vadd.f32 1e-05, %v611_v25  ;;  %v698_v33 = vadd.f32 %v19514_v23, %v676_v20  ;;  %v655_v35 = vmul.f32 %v18354_v27, %v19418_v42 }
 0x21c   : > { %v578_v36 = vpop.xlane.xlu1 %577 }
 0x21d   : > { %18361 = vrsqrt.f32 %v627_v22  ;;  %v612_v38 = vmul.f32 0.03125, %v578_v36  ;;  %v19522_v37 = vadd.f32 %v19517_v31, %v698_v33  ;;  %v677_v24 = vmul.f32 %v19508_v16, %v655_v35 }
 0x21e   : > { %v18356_v40 = vpop.eup %18355 }
 0x21f   : > { %23383 = vst [vmem:[#allocation16_spill] sm:$0xff] %v19522_v37  ;;  %v628_v43 = vadd.f32 1e-05, %v612_v38  ;;  %17116 = vmatprep.mubr.msk.f32.mxu0 %vm460_vm0, %v19522_v37  ;;  %v699_v45 = vadd.f32 %v19514_v23, %v677_v24  ;;  %v656_v46 = vmul.f32 %v18356_v40, %v19423_v47 }
 0x220   : > { %v581_v42 = vpop.xlane.xlu1 %580 }
 0x221   : > { %18363 = vrsqrt.f32 %v628_v43  ;;  %v613_v48 = vmul.f32 0.03125, %v581_v42  ;;  %v19532_v26 = vadd.f32 %v19525_v41, %v699_v45  ;;  %v678_v50 = vmul.f32 %v19508_v16, %v656_v46 }
 0x222   : > { %v18358_v51 = vpop.eup %18357 }
 0x223   : > { %23384 = vst [vmem:[#allocation17_spill] sm:$0xff] %v19532_v26  ;;  %v629_v53 = vadd.f32 1e-05, %v613_v48  ;;  %17117 = vmatmul.mubr.msk.f32.vlgmr.msra.gmra.mxu0 %vm460_vm0, %v19532_v26  ;;  %v700_v28 = vadd.f32 %v19514_v23, %v678_v50  ;;  %v657_v55 = vmul.f32 %v18358_v51, %v19428_v52 }
 0x224   : > { %v584_v56 = vpop.xlane.xlu1 %583 }
 0x225   : > { %18365 = vrsqrt.f32 %v629_v53  ;;  %v614_v47 = vmul.f32 0.03125, %v584_v56  ;;  %v19540_v58 = vadd.f32 %v19517_v31, %v700_v28  ;;  %v679_v30 = vmul.f32 %v19508_v16, %v657_v55 }
 0x226   : > { %v18360_v60 = vpop.eup %18359 }
 0x227   : > { %23385 = vst [vmem:[#allocation18_spill] sm:$0xff] %v19540_v58  ;;  %v630_v61 = vadd.f32 1e-05, %v614_v47  ;;  %17119 = vmatprep.mubr.msk.f32.mxu0 %vm460_vm0, %v19540_v58  ;;  %v701_v32 = vadd.f32 %v19514_v23, %v679_v30  ;;  %v658_v63 = vmul.f32 %v18360_v60, %v19433_v57 }
 0x228   : > { %v587_v0 = vpop.xlane.xlu1 %586 }
 0x229   : > { %18367 = vrsqrt.f32 %v630_v61  ;;  %v615_v52 = vmul.f32 0.03125, %v587_v0  ;;  %v19548_v1 = vadd.f32 %v19525_v41, %v701_v32  ;;  %v680_v2 = vmul.f32 %v19508_v16, %v658_v63 }
 0x22a   : > { %v18362_v4 = vpop.eup %18361 }
 0x22b   : > { %23386 = vst [vmem:[#allocation19_spill] sm:$0xff] %v19548_v1  ;;  %v631_v5 = vadd.f32 1e-05, %v615_v52  ;;  %17120 = vmatmul.mubr.msk.f32.gmra.mxu0 %vm460_vm0, %v19548_v1  ;;  %v702_v6 = vadd.f32 %v19514_v23, %v680_v2  ;;  %v659_v34 = vmul.f32 %v18362_v4, %v19439_v62 }
 0x22c   : > { %v590_v7 = vpop.xlane.xlu1 %589 }
 0x22d   : > { %18369 = vrsqrt.f32 %v631_v5  ;;  %v616_v57 = vmul.f32 0.03125, %v590_v7  ;;  %v19556_v9 = vadd.f32 %v19517_v31, %v702_v6  ;;  %v681_v10 = vmul.f32 %v19508_v16, %v659_v34 }
 0x22e   : > { %v18364_v11 = vpop.eup %18363 }
 0x22f   : > { %23387 = vst [vmem:[#allocation20_spill] sm:$0xff] %v19556_v9  ;;  %v632_v12 = vadd.f32 1e-05, %v616_v57  ;;  %17122 = vmatprep.mubr.msk.f32.mxu0 %vm460_vm0, %v19556_v9  ;;  %v703_v14 = vadd.f32 %v19514_v23, %v681_v10  ;;  %v660_v15 = vmul.f32 %v18364_v11, %v19445_v3 }
 0x230   : > { %v593_v17 = vpop.xlane.xlu1 %592 }
 0x231   : > { %18371 = vrsqrt.f32 %v632_v12  ;;  %v617_v62 = vmul.f32 0.03125, %v593_v17  ;;  %v19564_v19 = vadd.f32 %v19525_v41, %v703_v14  ;;  %v682_v21 = vmul.f32 %v19508_v16, %v660_v15 }
 0x232   : > { %v18366_v25 = vpop.eup %18365 }
 0x233   : > { %23388 = vst [vmem:[#allocation21_spill] sm:$0xff] %v19564_v19  ;;  %v633_v20 = vadd.f32 1e-05, %v617_v62  ;;  %17123 = vmatmul.mubr.msk.f32.gmra.mxu0 %vm460_vm0, %v19564_v19  ;;  %v704_v27 = vadd.f32 %v19514_v23, %v682_v21  ;;  %v661_v22 = vmul.f32 %v18366_v25, %v19451_v8 }
 0x234   : > { %v596_v33 = vpop.xlane.xlu1 %595 }
 0x235   : > { %18373 = vrsqrt.f32 %v633_v20  ;;  %v618_v3 = vmul.f32 0.03125, %v596_v33  ;;  %v19572_v35 = vadd.f32 %v19517_v31, %v704_v27  ;;  %v683_v36 = vmul.f32 %v19508_v16, %v661_v22 }
 0x236   : > { %v18368_v38 = vpop.eup %18367 }
 0x237   : > { %23389 = vst [vmem:[#allocation22_spill] sm:$0xff] %v19572_v35  ;;  %v634_v24 = vadd.f32 1e-05, %v618_v3  ;;  %17125 = vmatprep.mubr.msk.f32.mxu0 %vm460_vm0, %v19572_v35  ;;  %v705_v40 = vadd.f32 %v19514_v23, %v683_v36  ;;  %v662_v43 = vmul.f32 %v18368_v38, %v19457_v13 }
 0x238   : > { %v599_v45 = vpop.xlane.xlu0 %598 }
 0x239   : > { %18375 = vrsqrt.f32 %v634_v24  ;;  %v619_v8 = vmul.f32 0.03125, %v599_v45  ;;  %v19580_v46 = vadd.f32 %v19525_v41, %v705_v40  ;;  %v684_v42 = vmul.f32 %v19508_v16, %v662_v43 }
 0x23a   : > { %v18370_v48 = vpop.eup %18369 }
 0x23b   : > { %23390 = vst [vmem:[#allocation23_spill] sm:$0xff] %v19580_v46  ;;  %v635_v50 = vadd.f32 1e-05, %v619_v8  ;;  %17126 = vmatmul.mubr.msk.f32.gmra.mxu0 %vm460_vm0, %v19580_v46  ;;  %v706_v51 = vadd.f32 %v19514_v23, %v684_v42  ;;  %v663_v53 = vmul.f32 %v18370_v48, %v19463_v18 }
 0x23c   : > { %v602_v28 = vpop.xlane.xlu1 %601 }
 0x23d   : > { %18377 = vrsqrt.f32 %v635_v50  ;;  %v620_v13 = vmul.f32 0.03125, %v602_v28  ;;  %v19588_v55 = vadd.f32 %v19517_v31, %v706_v51  ;;  %v685_v56 = vmul.f32 %v19508_v16, %v663_v53 }
 0x23e   : > { %v18372_v47 = vpop.eup %18371 }
 0x23f   : > { %23391 = vst [vmem:[#allocation24_spill] sm:$0xff] %v19588_v55  ;;  %v636_v30 = vadd.f32 1e-05, %v620_v13  ;;  %17128 = vmatprep.mubr.msk.f32.mxu0 %vm460_vm0, %v19588_v55  ;;  %v707_v60 = vadd.f32 %v19514_v23, %v685_v56  ;;  %v664_v61 = vmul.f32 %v18372_v47, %v19469_v29 }
 0x240   : > { %v605_v32 = vpop.xlane.xlu0 %604 }
 0x241   : > { %18379 = vrsqrt.f32 %v636_v30  ;;  %v621_v18 = vmul.f32 0.03125, %v605_v32  ;;  %v19596_v63 = vadd.f32 %v19525_v41, %v707_v60  ;;  %v686_v0 = vmul.f32 %v19508_v16, %v664_v61 }
 0x242   : > { %v18374_v52 = vpop.eup %18373 }
 0x243   : > { %23392 = vst [vmem:[#allocation25_spill] sm:$0xff] %v19596_v63  ;;  %v637_v2 = vadd.f32 1e-05, %v621_v18  ;;  %17129 = vmatmul.mubr.msk.f32.gmra.mxu0 %vm460_vm0, %v19596_v63  ;;  %v708_v4 = vadd.f32 %v19514_v23, %v686_v0  ;;  %v665_v5 = vmul.f32 %v18374_v52, %v19475_v39 }
 0x245   : > { %18381 = vrsqrt.f32 %v637_v2  ;;  %v19604_v29 = vadd.f32 %v19517_v31, %v708_v4  ;;  %v687_v6 = vmul.f32 %v19508_v16, %v665_v5 }
 0x246   : > { %v18376_v34 = vpop.eup %18375 }
 0x247   : > { %23393 = vst [vmem:[#allocation26_spill] sm:$0xff] %v19604_v29  ;;  %17131 = vmatprep.mubr.msk.f32.mxu0 %vm460_vm0, %v19604_v29  ;;  %v709_v7 = vadd.f32 %v19514_v23, %v687_v6  ;;  %v666_v57 = vmul.f32 %v18376_v34, %v19481_v44 }
 0x249   : > { %v19612_v10 = vadd.f32 %v19525_v41, %v709_v7  ;;  %v688_v11 = vmul.f32 %v19508_v16, %v666_v57 }
 0x24a   : > { %v18378_v39 = vpop.eup %18377 }
 0x24b   : > { %23394 = vst [vmem:[#allocation27_spill] sm:$0xff] %v19612_v10  ;;  %17132 = vmatmul.mubr.msk.f32.gmra.mxu0 %vm460_vm0, %v19612_v10  ;;  %v710_v12 = vadd.f32 %v19514_v23, %v688_v11  ;;  %v667_v14 = vmul.f32 %v18378_v39, %v19487_v49 }
 0x24d   : > { %v19620_v15 = vadd.f32 %v19517_v31, %v710_v12  ;;  %v689_v17 = vmul.f32 %v19508_v16, %v667_v14 }
 0x24e   : > { %v18380_v62 = vpop.eup %18379 }
 0x24f   : > { %23395 = vst [vmem:[#allocation28_spill] sm:$0xff] %v19620_v15  ;;  %17134 = vmatprep.mubr.msk.f32.mxu0 %vm460_vm0, %v19620_v15  ;;  %v711_v44 = vadd.f32 %v19514_v23, %v689_v17  ;;  %v668_v21 = vmul.f32 %v18380_v62, %v19493_v54 }
 0x251   : > { %v19628_v25 = vadd.f32 %v19525_v41, %v711_v44  ;;  %v690_v20 = vmul.f32 %v19508_v16, %v668_v21 }
 0x252   : > { %v18382_v27 = vpop.eup %18381 }
 0x253   : > { %23396 = vst [vmem:[#allocation29_spill] sm:$0xff] %v19628_v25  ;;  %17135 = vmatmul.mubr.msk.f32.gmra.mxu0 %vm460_vm0, %v19628_v25  ;;  %v712_v49 = vadd.f32 %v19514_v23, %v690_v20  ;;  %v669_v22 = vmul.f32 %v18382_v27, %v19499_v59  ;;  %v15893_v59 = vld [vmem:[%s23302_s5] ss:$0 sm:$0xff] }
 0x255   : > { %v19636_v33 = vadd.f32 %v19517_v31, %v712_v49  ;;  %v691_v3 = vmul.f32 %v19508_v16, %v669_v22 }
 0x257   : > { %23397 = vst [vmem:[#allocation30_spill] sm:$0xff] %v19636_v33  ;;  %17137 = vmatprep.mubr.msk.f32.mxu0 %vm460_vm0, %v19636_v33  ;;  %v713_v54 = vadd.f32 %v19514_v23, %v691_v3 }
 0x259   : > { %v19643_v36 = vadd.f32 %v19525_v41, %v713_v54 }
 0x25b   : > { %23398 = vst [vmem:[#allocation31_spill] sm:$0xff] %v19643_v36  ;;  %17138 = vmatmul.mubr.msk.f32.gmra.mxu0 %vm460_vm0, %v19643_v36 }
 0x2e3   : > { %v17118_v38 = vpop.f32.mrf.mxu0 }
 0x2e4   : > { %v19650_v31 = vadd.f32 %v17118_v38, %v15893_v59 }
 0x2e5   : > { %v857_v24 = vpop.f32.mrf.mxu0 }
 0x2e6   : > { %v19652_v16 = vadd.f32 %v15893_v59, %v857_v24  ;;  %960 = vrot.lane.b32.xlu1 %v19650_v31, %s19113_s24  ;;  %v19742_v39 = vmul.f32 0.5, %v19650_v31 }
 0x2e8   : > { %958 = vrot.lane.b32.xlu0 %v19652_v16, %s19113_s24  ;;  %v19659_v23 = vmul.f32 0.5, %v19652_v16  ;;  %23401 = vst [vmem:[#allocation34_spill] sm:$0xff] %v19742_v39 }
 0x2ea   : > { %23399 = vst [vmem:[#allocation32_spill] sm:$0xff] %v19659_v23  ;;  %17144 = vmatprep.mubr.msk.f32.mxu1 %vm962_vm1, %v19659_v23 }
 0x2eb   : > { %v17121_v41 = vpop.f32.mrf.mxu0 }
 0x2ec   : > { %v19663_v40 = vadd.f32 %v17121_v41, %v15893_v59 }
 0x2ed   : > { %v867_v43 = vpop.f32.mrf.mxu0 }
 0x2ee   : > { %1052 = vrot.lane.b32.xlu1 %v19663_v40, %s19113_s24  ;;  %v19667_v45 = vadd.f32 %v15893_v59, %v867_v43  ;;  %v19753_v12 = vmul.f32 0.5, %v19663_v40 }
 0x2f0   : > { %23402 = vst [vmem:[#allocation35_spill] sm:$0xff] %v19753_v12  ;;  %v19763_v14 = vmul.f32 0.5, %v19667_v45 }
 0x2f2   : > { %1050 = vrot.lane.b32.xlu1 %v19667_v45, %s19113_s24  ;;  %23403 = vst [vmem:[#allocation36_spill] sm:$0xff] %v19763_v14 }
 0x2f3   : > { %v17124_v8 = vpop.f32.mrf.mxu0 }
 0x2f4   : > { %v19671_v42 = vadd.f32 %v17124_v8, %v15893_v59 }
 0x2f5   : > { %v877_v48 = vpop.f32.mrf.mxu0 }
 0x2f6   : > { %v19673_v50 = vadd.f32 %v15893_v59, %v877_v48  ;;  %1143 = vrot.lane.b32.xlu0 %v19671_v42, %s19113_s24  ;;  %v19793_v22 = vmul.f32 0.5, %v19671_v42 }
 0x2f8   : > { %1141 = vrot.lane.b32.xlu1 %v19673_v50, %s19113_s24  ;;  %v19782_v27 = vmul.f32 0.5, %v19673_v50  ;;  %23405 = vst [vmem:[#allocation38_spill] sm:$0xff] %v19793_v22 }
 0x2fa   : > { %23404 = vst [vmem:[#allocation37_spill] sm:$0xff] %v19782_v27 }
 0x2fb   : > { %v17127_v51 = vpop.f32.mrf.mxu0 }
 0x2fc   : > { %v19679_v53 = vadd.f32 %v17127_v51, %v15893_v59 }
 0x2fd   : > { %v887_v28 = vpop.f32.mrf.mxu0 }
 0x2fe   : > { %v19681_v13 = vadd.f32 %v15893_v59, %v887_v28  ;;  %1234 = vrot.lane.b32.xlu0 %v19679_v53, %s19113_s24  ;;  %v19807_v38 = vmul.f32 0.5, %v19679_v53 }
 0x300   : > { %1232 = vrot.lane.b32.xlu1 %v19681_v13, %s19113_s24  ;;  %v19796_v54 = vmul.f32 0.5, %v19681_v13 }
 0x302   : > { %23406 = vst [vmem:[#allocation39_spill] sm:$0xff] %v19796_v54 }
 0x303   : > { %v17130_v56 = vpop.f32.mrf.mxu0 }
 0x304   : > { %v19687_v47 = vadd.f32 %v17130_v56, %v15893_v59 }
 0x305   : > { %v897_v30 = vpop.f32.mrf.mxu0 }
 0x306   : > { %23400 = vst [vmem:[#allocation33_spill] sm:$0xff] %v19687_v47  ;;  %v19689_v60 = vadd.f32 %v15893_v59, %v897_v30  ;;  %1325 = vrot.lane.b32.xlu0 %v19687_v47, %s19113_s24  ;;  %v19821_v8 = vmul.f32 0.5, %v19687_v47 }
 0x308   : > { %1323 = vrot.lane.b32.xlu1 %v19689_v60, %s19113_s24  ;;  %v19696_v61 = vmul.f32 0.5, %v19689_v60 }
 0x30a   : > { %17172 = vmatprep.mubr.msk.f32.mxu0 %vm962_vm1, %v19696_v61 }
 0x30b   : > { %v17133_v32 = vpop.f32.mrf.mxu0 }
 0x30c   : > { %v19700_v18 = vadd.f32 %v17133_v32, %v15893_v59 }
 0x30d   : > { %v907_v0 = vpop.f32.mrf.mxu0 }
 0x30e   : > { %v19702_v52 = vadd.f32 %v15893_v59, %v907_v0  ;;  %1416 = vrot.lane.b32.xlu0 %v19700_v18, %s19113_s24  ;;  %v19835_v56 = vmul.f32 0.5, %v19700_v18 }
 0x310   : > { %1414 = vrot.lane.b32.xlu1 %v19702_v52, %s19113_s24  ;;  %v19810_v41 = vmul.f32 0.5, %v19702_v52 }
 0x313   : > { %v17136_v2 = vpop.f32.mrf.mxu0 }
 0x314   : > { %v19708_v4 = vadd.f32 %v17136_v2, %v15893_v59 }
 0x315   : > { %v917_v5 = vpop.f32.mrf.mxu0 }
 0x316   : > { %v19710_v6 = vadd.f32 %v15893_v59, %v917_v5  ;;  %1507 = vrot.lane.b32.xlu0 %v19708_v4, %s19113_s24  ;;  %v19849_v2 = vmul.f32 0.5, %v19708_v4 }
 0x318   : > { %1505 = vrot.lane.b32.xlu1 %v19710_v6, %s19113_s24  ;;  %v19824_v51 = vmul.f32 0.5, %v19710_v6 }
 0x31b   : > { %v17139_v34 = vpop.f32.mrf.mxu0 }
 0x31c   : > { %v19716_v7 = vadd.f32 %v17139_v34, %v15893_v59 }
 0x31d   : > { %v927_v57 = vpop.f32.mrf.mxu0 }
 0x31e   : > { %v19718_v11 = vadd.f32 %v15893_v59, %v927_v57  ;;  %1598 = vrot.lane.b32.xlu0 %v19716_v7, %s19113_s24 }
 0x320   : > { %1596 = vrot.lane.b32.xlu1 %v19718_v11, %s19113_s24  ;;  %v19838_v32 = vmul.f32 0.5, %v19718_v11  ;;  %s19125_s24 = smov 112  }
 0x322   : > { %1862 = vrot.lane.b32.xlu0 %v19652_v16, %s19114_s27  ;;  %23407 = vst [vmem:[#allocation40_spill] sm:$0xff] %v19838_v32 }
 0x324   : > { %1864 = vrot.lane.b32.xlu1 %v19650_v31, %s19114_s27 }
 0x326   : > { %1949 = vrot.lane.b32.xlu0 %v19667_v45, %s19114_s27 }
 0x328   : > { %1951 = vrot.lane.b32.xlu1 %v19663_v40, %s19114_s27 }
 0x32a   : > { %2125 = vrot.lane.b32.xlu0 %v19679_v53, %s19114_s27 }
 0x32c   : > { %2038 = vrot.lane.b32.xlu1 %v19671_v42, %s19114_s27 }
 0x32e   : > { %2123 = vrot.lane.b32.xlu0 %v19681_v13, %s19114_s27 }
 0x330   : > { %2036 = vrot.lane.b32.xlu1 %v19673_v50, %s19114_s27 }
 0x332   : > { %2299 = vrot.lane.b32.xlu0 %v19700_v18, %s19114_s27 }
 0x334   : > { %2212 = vrot.lane.b32.xlu1 %v19687_v47, %s19114_s27 }
 0x336   : > { %2297 = vrot.lane.b32.xlu0 %v19702_v52, %s19114_s27 }
 0x338   : > { %2210 = vrot.lane.b32.xlu1 %v19689_v60, %s19114_s27 }
 0x33a   : > { %2473 = vrot.lane.b32.xlu0 %v19716_v7, %s19114_s27 }
 0x33c   : > { %2386 = vrot.lane.b32.xlu1 %v19708_v4, %s19114_s27 }
 0x33e   : > { %2655 = vrot.lane.b32.xlu0 %v19663_v40, %s19115_s23 }
 0x340   : > { %2384 = vrot.lane.b32.xlu1 %v19710_v6, %s19114_s27 }
 0x342   : > { %2560 = vrot.lane.b32.xlu0 %v19742_v39, %s19116_s4 }
 0x344   : > { %2564 = vrot.lane.b32.xlu1 %v19650_v31, %s19115_s23 }
 0x346   : > { %2746 = vrot.lane.b32.xlu0 %v19671_v42, %s19115_s23 }
 0x348   : > { %2562 = vrot.lane.b32.xlu1 %v19652_v16, %s19115_s23 }
 0x34a   : > { %2651 = vrot.lane.b32.xlu0 %v19753_v12, %s19116_s4 }
 0x34c   : > { %2558 = vrot.lane.b32.xlu1 %v19659_v23, %s19116_s4 }
 0x34e   : > { %2471 = vrot.lane.b32.xlu0 %v19718_v11, %s19114_s27  ;;  %s19126_s27 = smov 48  }
 0x350   : > { %2653 = vrot.lane.b32.xlu1 %v19667_v45, %s19115_s23 }
 0x354   : > { %2649 = vrot.lane.b32.xlu1 %v19763_v14, %s19116_s4 }
 0x358   : > { %v961_v17 = vpop.permute.xlu1 %960  ;;  %2744 = vrot.lane.b32.xlu1 %v19673_v50, %s19115_s23 }
 0x359   : > { %17140 = vmatprep.subr.msk.mxu1 %vm962_vm1, %v961_v17 }
 0x35a   : > { %17141 = vmatpush3.xpose.msk.msra.mxu1 %vm962_vm1, %v961_v17  ;;  %v959_v62 = vpop.permute.xlu0 %958 }
 0x35b   : > { %17142 = vmatprep.subr.msk.mxu1 %vm962_vm1, %v959_v62 }
 0x35e   : > { %17143 = vmatpush3.xpose.msk.msra.mxu1 %vm962_vm1, %v959_v62  ;;  %v19858_v62 = vmul.f32 0.5, %v19716_v7 }
 0x360   : > { %v1053_v44 = vpop.permute.xlu1 %1052 }
 0x361   : > { %17145 = vmatmul.mubr.msk.f32.vlgmr.msra.gmra.mxu1 %vm962_vm1, %v19742_v39  ;;  %17147 = vmatprep.subr.msk.mxu1 %vm962_vm1, %v1053_v44 }
 0x362   : > { %17148 = vmatpush3.xpose.msk.msra.mxu1 %vm962_vm1, %v1053_v44  ;;  %17151 = vmatprep.mubr.msk.f32.mxu1 %vm962_vm1, %v19763_v14 }
 0x364   : > { %v1051_v21 = vpop.permute.xlu1 %1050 }
 0x365   : > { %17149 = vmatprep.subr.msk.mxu1 %vm962_vm1, %v1051_v21 }
 0x366   : > { %17150 = vmatpush3.xpose.msk.msra.mxu1 %vm962_vm1, %v1051_v21 }
 0x368   : > { %v1144_v20 = vpop.permute.xlu0 %1143 }
 0x369   : > { %17152 = vmatmul.mubr.msk.f32.vlgmr.msra.gmra.mxu1 %vm962_vm1, %v19753_v12  ;;  %17154 = vmatprep.subr.msk.mxu1 %vm962_vm1, %v1144_v20 }
 0x36a   : > { %v1142_v49 = vpop.permute.xlu1 %1141  ;;  %17155 = vmatpush3.xpose.msk.msra.mxu1 %vm962_vm1, %v1144_v20  ;;  %17158 = vmatprep.mubr.msk.f32.mxu1 %vm962_vm1, %v19782_v27 }
 0x36b   : > { %17156 = vmatprep.subr.msk.mxu1 %vm962_vm1, %v1142_v49 }
 0x36e   : > { %17157 = vmatpush3.xpose.msk.msra.mxu1 %vm962_vm1, %v1142_v49 }
 0x370   : > { %v1235_v3 = vpop.permute.xlu0 %1234 }
 0x371   : > { %17159 = vmatmul.mubr.msk.f32.vlgmr.msra.gmra.mxu1 %vm962_vm1, %v19793_v22  ;;  %17161 = vmatprep.subr.msk.mxu1 %vm962_vm1, %v1235_v3 }
 0x372   : > { %v1233_v59 = vpop.permute.xlu1 %1232  ;;  %17162 = vmatpush3.xpose.msk.msra.mxu1 %vm962_vm1, %v1235_v3  ;;  %17165 = vmatprep.mubr.msk.f32.mxu1 %vm962_vm1, %v19796_v54 }
 0x373   : > { %17163 = vmatprep.subr.msk.mxu1 %vm962_vm1, %v1233_v59 }
 0x376   : > { %17164 = vmatpush3.xpose.msk.msra.mxu1 %vm962_vm1, %v1233_v59 }
 0x378   : > { %v1326_v24 = vpop.permute.xlu0 %1325 }
 0x379   : > { %17166 = vmatmul.mubr.msk.f32.vlgmr.msra.gmra.mxu1 %vm962_vm1, %v19807_v38  ;;  %17168 = vmatprep.subr.msk.mxu0 %vm962_vm1, %v1326_v24 }
 0x37a   : > { %v1324_v43 = vpop.permute.xlu1 %1323  ;;  %17169 = vmatpush3.xpose.msk.msra.mxu0 %vm962_vm1, %v1326_v24  ;;  %17179 = vmatprep.mubr.msk.f32.mxu1 %vm962_vm1, %v19810_v41 }
 0x37b   : > { %17170 = vmatprep.subr.msk.mxu0 %vm962_vm1, %v1324_v43 }
 0x37e   : > { %17171 = vmatpush3.xpose.msk.msra.mxu0 %vm962_vm1, %v1324_v43 }
 0x380   : > { %v1417_v48 = vpop.permute.xlu0 %1416 }
 0x381   : > { %17173 = vmatmul.mubr.msk.f32.vlgmr.msra.gmra.mxu0 %vm962_vm1, %v19821_v8  ;;  %17175 = vmatprep.subr.msk.mxu1 %vm962_vm1, %v1417_v48 }
 0x382   : > { %v1415_v28 = vpop.permute.xlu1 %1414  ;;  %17176 = vmatpush3.xpose.msk.msra.mxu1 %vm962_vm1, %v1417_v48  ;;  %17186 = vmatprep.mubr.msk.f32.mxu0 %vm962_vm1, %v19824_v51 }
 0x383   : > { %17177 = vmatprep.subr.msk.mxu1 %vm962_vm1, %v1415_v28 }
 0x386   : > { %17178 = vmatpush3.xpose.msk.msra.mxu1 %vm962_vm1, %v1415_v28 }
 0x388   : > { %v1508_v30 = vpop.permute.xlu0 %1507 }
 0x389   : > { %17180 = vmatmul.mubr.msk.f32.vlgmr.msra.gmra.mxu1 %vm962_vm1, %v19835_v56  ;;  %17182 = vmatprep.subr.msk.mxu0 %vm962_vm1, %v1508_v30 }
 0x38a   : > { %v1506_v0 = vpop.permute.xlu1 %1505  ;;  %17183 = vmatpush3.xpose.msk.msra.mxu0 %vm962_vm1, %v1508_v30  ;;  %17193 = vmatprep.mubr.msk.f32.mxu1 %vm962_vm1, %v19838_v32 }
 0x38b   : > { %17184 = vmatprep.subr.msk.mxu0 %vm962_vm1, %v1506_v0 }
 0x38e   : > { %17185 = vmatpush3.xpose.msk.msra.mxu0 %vm962_vm1, %v1506_v0 }
 0x390   : > { %v1599_v5 = vpop.permute.xlu0 %1598 }
 0x391   : > { %17187 = vmatmul.mubr.msk.f32.vlgmr.msra.gmra.mxu0 %vm962_vm1, %v19849_v2  ;;  %17189 = vmatprep.subr.msk.mxu1 %vm962_vm1, %v1599_v5 }
 0x392   : > { %v1597_v34 = vpop.permute.xlu1 %1596  ;;  %17190 = vmatpush3.xpose.msk.msra.mxu1 %vm962_vm1, %v1599_v5 }
 0x393   : > { %17191 = vmatprep.subr.msk.mxu1 %vm962_vm1, %v1597_v34 }
 0x394   : > { %v1863_v57 = vpop.permute.xlu0 %1862 }
 0x396   : > { %v1865_v17 = vpop.permute.xlu1 %1864  ;;  %17192 = vmatpush3.xpose.msk.msra.mxu1 %vm962_vm1, %v1597_v34 }
 0x397   : > { %17196 = vmatprep.subr.mxu0 %v1865_v17 }
 0x398   : > { %17197 = vmatpush3.msra.mxu0 %v1865_v17  ;;  %v1950_v44 = vpop.permute.xlu0 %1949 }
 0x399   : > { %17194 = vmatmul.mubr.msk.f32.vlgmr.msra.gmra.mxu1 %vm962_vm1, %v19858_v62  ;;  %17198 = vmatprep.subr.mxu0 %v1863_v57 }
 0x39a   : > { %v1952_v21 = vpop.permute.xlu1 %1951  ;;  %17199 = vmatpush3.msra.mxu0 %v1863_v57 }
 0x39b   : > { %17203 = vmatprep.subr.mxu1 %v1952_v21 }
 0x39c   : > { %17204 = vmatpush3.msra.mxu1 %v1952_v21  ;;  %v19862_v20 = vpop.permute.xlu0 %2125 }
 0x39d   : > { %17205 = vmatprep.subr.mxu1 %v1950_v44 }
 0x39e   : > { %v19864_v49 = vpop.permute.xlu1 %2038  ;;  %17206 = vmatpush3.msra.mxu1 %v1950_v44 }
 0x39f   : > { %17210 = vmatprep.subr.mxu0 %v19864_v49  ;;  %17217 = vmatprep.subr.mxu1 %v19862_v20 }
 0x421   : > { %v19868_v3 = vpop.f32.mrf.mxu1 }
 0x422   : > { %v1689_v59 = vsel %vm1685_vm2, %v19868_v3, -inf }
 0x423   : > { %1690 = vmax.xlane.f32.xlu1 %v1689_v59  ;;  %v19872_v24 = vpop.f32.mrf.mxu1 }
 0x424   : > { %v1686_v43 = vsel %vm1685_vm2, %v19872_v24, -inf }
 0x425   : > { %1687 = vmax.xlane.f32.xlu0 %v1686_v43 }
 0x429   : > { %v19876_v48 = vpop.f32.mrf.mxu1 }
 0x42a   : > { %v1695_v28 = vsel %vm1685_vm2, %v19876_v48, -inf }
 0x42b   : > { %1696 = vmax.xlane.f32.xlu1 %v1695_v28  ;;  %v19880_v30 = vpop.f32.mrf.mxu1 }
 0x42c   : > { %v1692_v0 = vsel %vm1685_vm2, %v19880_v30, -inf }
 0x42d   : > { %1693 = vmax.xlane.f32.xlu0 %v1692_v0 }
 0x431   : > { %v19884_v5 = vpop.f32.mrf.mxu1 }
 0x432   : > { %v1701_v34 = vsel %vm1685_vm2, %v19884_v5, -inf }
 0x433   : > { %1702 = vmax.xlane.f32.xlu0 %v1701_v34  ;;  %v19888_v57 = vpop.f32.mrf.mxu1 }
 0x434   : > { %v1698_v17 = vsel %vm1685_vm2, %v19888_v57, -inf }
 0x437   : > { %1699 = vmax.xlane.f32.xlu0 %v1698_v17 }
 0x439   : > { %v19892_v44 = vpop.f32.mrf.mxu1 }
 0x43a   : > { %v1707_v21 = vsel %vm1685_vm2, %v19892_v44, -inf }
 0x43b   : > { %1708 = vmax.xlane.f32.xlu1 %v1707_v21  ;;  %v19896_v59 = vpop.f32.mrf.mxu1 }
 0x43c   : > { %v1704_v43 = vsel %vm1685_vm2, %v19896_v59, -inf }
 0x43f   : > { %1705 = vmax.xlane.f32.xlu1 %v1704_v43 }
 0x441   : > { %v19900_v28 = vpop.f32.mrf.mxu0 }
 0x442   : > { %v1713_v0 = vsel %vm1685_vm2, %v19900_v28, -inf }
 0x443   : > { %1714 = vmax.xlane.f32.xlu0 %v1713_v0  ;;  %v19904_v34 = vpop.f32.mrf.mxu0 }
 0x444   : > { %v1710_v17 = vsel %vm1685_vm2, %v19904_v34, -inf }
 0x447   : > { %1711 = vmax.xlane.f32.xlu0 %v1710_v17 }
 0x449   : > { %v19908_v33 = vpop.f32.mrf.mxu1 }
 0x44a   : > { %v1719_v21 = vsel %vm1685_vm2, %v19908_v33, -inf }
 0x44b   : > { %1720 = vmax.xlane.f32.xlu1 %v1719_v21  ;;  %v19912_v36 = vpop.f32.mrf.mxu1 }
 0x44c   : > { %v1716_v43 = vsel %vm1685_vm2, %v19912_v36, -inf }
 0x44f   : > { %1717 = vmax.xlane.f32.xlu1 %v1716_v43  ;;  %v19932_v43 = vpop.permute.xlu1 %2036 }
 0x451   : > { %v19916_v15 = vpop.f32.mrf.mxu0 }
 0x452   : > { %v1725_v0 = vsel %vm1685_vm2, %v19916_v15, -inf }
 0x453   : > { %1726 = vmax.xlane.f32.xlu0 %v1725_v0  ;;  %v19920_v25 = vpop.f32.mrf.mxu0  ;;  %v19936_v0 = vpop.permute.xlu1 %2212 }
 0x454   : > { %v1722_v17 = vsel %vm1685_vm2, %v19920_v25, -inf }
 0x457   : > { %1723 = vmax.xlane.f32.xlu0 %v1722_v17  ;;  %v19940_v17 = vpop.permute.xlu1 %2210 }
 0x459   : > { %v19924_v29 = vpop.f32.mrf.mxu1 }
 0x45a   : > { %v1731_v21 = vsel %vm1685_vm2, %v19924_v29, -inf }
 0x45b   : > { %1732 = vmax.xlane.f32.xlu0 %v1731_v21  ;;  %v19944_v21 = vpop.permute.xlu0 %2123  ;;  %v19946_v10 = vpop.permute.xlu1 %2386 }
 0x45c   : > { %v19952_v46 = vpop.f32.mrf.mxu1 }
 0x45d   : > { %v1728_v19 = vsel %vm1685_vm2, %v19952_v46, -inf }
 0x45f   : > { %v19948_v55 = vpop.permute.xlu0 %2299  ;;  %v19950_v63 = vpop.permute.xlu1 %2384 }
 0x460   : > { %2740 = vrot.lane.b32.xlu1 %v19782_v27, %s19116_s4 }
 0x463   : > { %v19954_v35 = vpop.permute.xlu0 %2297  ;;  %v19958_v9 = vpop.permute.xlu1 %2564 }
 0x464   : > { %2835 = vrot.lane.b32.xlu1 %v19681_v13, %s19115_s23  ;;  %23408 = vst [vmem:[#allocation41_spill] sm:$0xff] %v19958_v9 }
 0x467   : > { %v19960_v1 = vpop.permute.xlu0 %2473  ;;  %v19962_v58 = vpop.permute.xlu1 %2562 }
 0x468   : > { %23409 = vst [vmem:[#allocation42_spill] sm:$0xff] %v19962_v58 }
 0x46b   : > { %v19964_v37 = vpop.permute.xlu0 %2655  ;;  %v19966_v26 = vpop.permute.xlu1 %2558 }
 0x46c   : > { %23410 = vst [vmem:[#allocation43_spill] sm:$0xff] %v19964_v37  ;;  %23411 = vst [vmem:[#allocation44_spill] sm:$0xff] %v19966_v26 }
 0x46f   : > { %v19972_v12 = vpop.permute.xlu1 %2653 }
 0x470   : > { %23413 = vst [vmem:[#allocation46_spill] sm:$0xff] %v19972_v12 }
 0x471   : > { %2837 = vrot.lane.b32.xlu0 %v19679_v53, %s19115_s23 }
 0x475   : > { %2742 = vrot.lane.b32.xlu0 %v19793_v22, %s19116_s4  ;;  %v19968_v22 = vpop.permute.xlu0 %2560 }
 0x476   : > { %23412 = vst [vmem:[#allocation45_spill] sm:$0xff] %v19968_v22 }
 0x479   : > { %2928 = vrot.lane.b32.xlu0 %v19687_v47, %s19115_s23  ;;  %v19974_v27 = vpop.permute.xlu0 %2746 }
 0x47a   : > { %23414 = vst [vmem:[#allocation47_spill] sm:$0xff] %v19974_v27 }
 0x47d   : > { %v19978_v39 = vpop.permute.xlu0 %2651 }
 0x47e   : > { %23416 = vst [vmem:[#allocation49_spill] sm:$0xff] %v19978_v39 }
 0x481   : > { %v19982_v23 = vpop.permute.xlu0 %2471 }
 0x482   : > { %23418 = vst [vmem:[#allocation51_spill] sm:$0xff] %v19982_v23 }
 0x488   : > { %1729 = vmax.xlane.f32.xlu1 %v1728_v19  ;;  %v19976_v19 = vpop.permute.xlu1 %2649 }
 0x489   : > { %23415 = vst [vmem:[#allocation48_spill] sm:$0xff] %v19976_v19 }
 0x48c   : > { %v19980_v14 = vpop.permute.xlu1 %2744 }
 0x48d   : > { %23417 = vst [vmem:[#allocation50_spill] sm:$0xff] %v19980_v14 }
 0x499   : > { %2831 = vrot.lane.b32.xlu1 %v19796_v54, %s19116_s4 }
 0x4ac   : > { %v1691_v47 = vpop.xlane.xlu1 %1690 }
 0x4ad   : > { %v1735_v58 = vsub.f32 %v19868_v3, %v1691_v47 }
 0x4ae   : > { %v1688_v26 = vpop.xlane.xlu0 %1687 }
 0x4af   : > { %v1752_v22 = vmul.f32 1.442695, %v1735_v58  ;;  %v1734_v37 = vsub.f32 %v19872_v24, %v1688_v26 }
 0x4b1   : > { %18383 = vpow2.f32 %v1752_v22  ;;  %v1750_v54 = vmul.f32 1.442695, %v1734_v37 }
 0x4b3   : > { %18385 = vpow2.f32 %v1750_v54 }
 0x4b4   : > { %v1697_v12 = vpop.xlane.xlu1 %1696 }
 0x4b5   : > { %v1737_v27 = vsub.f32 %v19876_v48, %v1697_v12 }
 0x4b6   : > { %v1694_v19 = vpop.xlane.xlu0 %1693 }
 0x4b7   : > { %v1756_v9 = vmul.f32 1.442695, %v1737_v27  ;;  %v1736_v39 = vsub.f32 %v19880_v30, %v1694_v19 }
 0x4b9   : > { %18387 = vpow2.f32 %v1756_v9  ;;  %v1754_v14 = vmul.f32 1.442695, %v1736_v39 }
 0x4bb   : > { %18389 = vpow2.f32 %v1754_v14 }
 0x4bc   : > { %v1703_v23 = vpop.xlane.xlu0 %1702 }
 0x4bd   : > { %v1739_v47 = vsub.f32 %v19884_v5, %v1703_v23 }
 0x4be   : > { %v19989_v3 = vpop.eup %18383 }
 0x4bf   : > { %v1760_v58 = vmul.f32 1.442695, %v1739_v47  ;;  %v1785_v37 = vsel %vm1685_vm2, %v19989_v3, 0.0 }
 0x4c0   : > { %v19993_v26 = vpop.eup %18385  ;;  %1786 = vadd.xlane.f32.xlu0 %v1785_v37  ;;  %v1700_v12 = vpop.xlane.xlu0 %1699 }
 0x4c1   : > { %18391 = vpow2.f32 %v1760_v58  ;;  %v1738_v27 = vsub.f32 %v19888_v57, %v1700_v12  ;;  %v1782_v9 = vsel %vm1685_vm2, %v19993_v26, 0.0 }
 0x4c2   : > { %1783 = vadd.xlane.f32.xlu1 %v1782_v9 }
 0x4c3   : > { %v1758_v39 = vmul.f32 1.442695, %v1738_v27 }
 0x4c4   : > { %v1709_v14 = vpop.xlane.xlu1 %1708 }
 0x4c5   : > { %18393 = vpow2.f32 %v1758_v39  ;;  %v1741_v23 = vsub.f32 %v19892_v44, %v1709_v14 }
 0x4c6   : > { %v19999_v22 = vpop.eup %18387 }
 0x4c7   : > { %v1764_v54 = vmul.f32 1.442695, %v1741_v23  ;;  %v1791_v24 = vsel %vm1685_vm2, %v19999_v22, 0.0 }
 0x4c8   : > { %v20003_v48 = vpop.eup %18389  ;;  %v1706_v30 = vpop.xlane.xlu1 %1705  ;;  %1792 = vadd.xlane.f32.xlu1 %v1791_v24 }
 0x4c9   : > { %18395 = vpow2.f32 %v1764_v54  ;;  %v1740_v5 = vsub.f32 %v19896_v59, %v1706_v30  ;;  %v1788_v19 = vsel %vm1685_vm2, %v20003_v48, 0.0 }
 0x4cb   : > { %v1762_v57 = vmul.f32 1.442695, %v1740_v5 }
 0x4cc   : > { %1789 = vadd.xlane.f32.xlu1 %v1788_v19  ;;  %v1715_v47 = vpop.xlane.xlu0 %1714 }
 0x4cd   : > { %18397 = vpow2.f32 %v1762_v57  ;;  %v1743_v44 = vsub.f32 %v19900_v28, %v1715_v47 }
 0x4ce   : > { %v20009_v58 = vpop.eup %18391 }
 0x4cf   : > { %v1768_v37 = vmul.f32 1.442695, %v1743_v44  ;;  %v1797_v12 = vsel %vm1685_vm2, %v20009_v58, 0.0 }
 0x4d0   : > { %1798 = vadd.xlane.f32.xlu0 %v1797_v12  ;;  %v1712_v27 = vpop.xlane.xlu0 %1711 }
 0x4d1   : > { %18399 = vpow2.f32 %v1768_v37  ;;  %v1742_v59 = vsub.f32 %v19904_v34, %v1712_v27 }
 0x4d2   : > { %v20014_v9 = vpop.eup %18393 }
 0x4d3   : > { %v1766_v39 = vmul.f32 1.442695, %v1742_v59  ;;  %v1794_v14 = vsel %vm1685_vm2, %v20014_v9, 0.0 }
 0x4d4   : > { %v1721_v23 = vpop.xlane.xlu1 %1720  ;;  %1795 = vadd.xlane.f32.xlu0 %v1794_v14 }
 0x4d5   : > { %18401 = vpow2.f32 %v1766_v39  ;;  %v1745_v28 = vsub.f32 %v19908_v33, %v1721_v23 }
 0x4d6   : > { %v20019_v54 = vpop.eup %18395 }
 0x4d7   : > { %v1772_v24 = vmul.f32 1.442695, %v1745_v28  ;;  %v1803_v30 = vsel %vm1685_vm2, %v20019_v54, 0.0 }
 0x4d8   : > { %v1718_v5 = vpop.xlane.xlu1 %1717  ;;  %1804 = vadd.xlane.f32.xlu1 %v1803_v30 }
 0x4d9   : > { %18403 = vpow2.f32 %v1772_v24  ;;  %v1744_v34 = vsub.f32 %v19912_v36, %v1718_v5 }
 0x4da   : > { %v20024_v57 = vpop.eup %18397 }
 0x4db   : > { %v1770_v19 = vmul.f32 1.442695, %v1744_v34  ;;  %v1800_v47 = vsel %vm1685_vm2, %v20024_v57, 0.0 }
 0x4dc   : > { %1801 = vadd.xlane.f32.xlu1 %v1800_v47  ;;  %v1727_v44 = vpop.xlane.xlu0 %1726 }
 0x4dd   : > { %18405 = vpow2.f32 %v1770_v19  ;;  %v1747_v33 = vsub.f32 %v19916_v15, %v1727_v44 }
 0x4de   : > { %v20029_v37 = vpop.eup %18399 }
 0x4df   : > { %v1776_v12 = vmul.f32 1.442695, %v1747_v33  ;;  %v1809_v27 = vsel %vm1685_vm2, %v20029_v37, 0.0 }
 0x4e0   : > { %1810 = vadd.xlane.f32.xlu0 %v1809_v27  ;;  %v1724_v59 = vpop.xlane.xlu0 %1723  ;;  %v20061_v27 = vpop.permute.xlu1 %2740 }
 0x4e1   : > { %18407 = vpow2.f32 %v1776_v12  ;;  %v1746_v36 = vsub.f32 %v19920_v25, %v1724_v59 }
 0x4e2   : > { %v20034_v39 = vpop.eup %18401 }
 0x4e3   : > { %v1774_v14 = vmul.f32 1.442695, %v1746_v36  ;;  %v1806_v23 = vsel %vm1685_vm2, %v20034_v39, 0.0 }
 0x4e4   : > { %1807 = vadd.xlane.f32.xlu0 %v1806_v23  ;;  %v1733_v28 = vpop.xlane.xlu0 %1732  ;;  %v20063_v59 = vpop.permute.xlu1 %2835 }
 0x4e5   : > { %18409 = vpow2.f32 %v1774_v14  ;;  %v1749_v15 = vsub.f32 %v19924_v29, %v1733_v28 }
 0x4e6   : > { %v20039_v24 = vpop.eup %18403 }
 0x4e7   : > { %v1780_v30 = vmul.f32 1.442695, %v1749_v15  ;;  %v1815_v5 = vsel %vm1685_vm2, %v20039_v24, 0.0 }
 0x4e8   : > { %1816 = vadd.xlane.f32.xlu1 %v1815_v5  ;;  %v20094_v15 = vpop.permute.xlu0 %2837 }
 0x4e9   : > { %18411 = vpow2.f32 %v1780_v30 }
 0x4ea   : > { %v20043_v25 = vpop.eup %18405 }
 0x4eb   : > { %v1812_v34 = vsel %vm1685_vm2, %v20043_v25, 0.0 }
 0x4ec   : > { %1813 = vadd.xlane.f32.xlu1 %v1812_v34  ;;  %v20100_v30 = vpop.permute.xlu0 %2742 }
 0x4ee   : > { %v20047_v19 = vpop.eup %18407 }
 0x4ef   : > { %v1821_v47 = vsel %vm1685_vm2, %v20047_v19, 0.0 }
 0x4f0   : > { %1822 = vadd.xlane.f32.xlu0 %v1821_v47  ;;  %v20104_v5 = vpop.permute.xlu0 %2928 }
 0x4f2   : > { %v20051_v29 = vpop.eup %18409 }
 0x4f3   : > { %v1818_v44 = vsel %vm1685_vm2, %v20051_v29, 0.0 }
 0x4f4   : > { %1819 = vadd.xlane.f32.xlu0 %v1818_v44 }
 0x4f6   : > { %v20055_v33 = vpop.eup %18411 }
 0x4f7   : > { %v1827_v12 = vsel %vm1685_vm2, %v20055_v33, 0.0 }
 0x4f8   : > { %1828 = vadd.xlane.f32.xlu0 %v1827_v12 }
 0x4fd   : > { %2926 = vrot.lane.b32.xlu1 %v19689_v60, %s19115_s23 }
 0x50e   : > { %2833 = vrot.lane.b32.xlu0 %v19807_v38, %s19116_s4 }
 0x511   : > { %v1730_v36 = vpop.xlane.xlu1 %1729 }
 0x512   : > { %v1748_v14 = vsub.f32 %v19952_v46, %v1730_v36  ;;  %3019 = vrot.lane.b32.xlu0 %v19700_v18, %s19115_s23 }
 0x514   : > { %v1778_v23 = vmul.f32 1.442695, %v1748_v14 }
 0x515   : > { %v20108_v34 = vpop.permute.xlu1 %2831 }
 0x516   : > { %18413 = vpow2.f32 %v1778_v23  ;;  %2924 = vrot.lane.b32.xlu0 %v19821_v8, %s19116_s4 }
 0x51a   : > { %3110 = vrot.lane.b32.xlu0 %v19708_v4, %s19115_s23 }
 0x51e   : > { %3015 = vrot.lane.b32.xlu0 %v19835_v56, %s19116_s4 }
 0x522   : > { %3201 = vrot.lane.b32.xlu0 %v19716_v7, %s19115_s23 }
 0x523   : > { %v20078_v28 = vpop.eup %18413 }
 0x524   : > { %v1824_v46 = vsel %vm1685_vm2, %v20078_v28, 0.0 }
 0x525   : > { %1825 = vadd.xlane.f32.xlu1 %v1824_v46 }
 0x526   : > { %3106 = vrot.lane.b32.xlu0 %v19849_v2, %s19116_s4 }
 0x52a   : > { %3195 = vrot.lane.b32.xlu0 %v19838_v32, %s19116_s4 }
 0x52e   : > { %3462 = vrot.lane.b32.xlu0 %v19652_v16, %s19117_s29 }
 0x532   : > { %3549 = vrot.lane.b32.xlu0 %v19667_v45, %s19117_s29 }
 0x536   : > { %2922 = vrot.lane.b32.xlu1 %v19696_v61, %s19116_s4  ;;  %3725 = vrot.lane.b32.xlu0 %v19679_v53, %s19117_s29 }
 0x53a   : > { %3017 = vrot.lane.b32.xlu1 %v19702_v52, %s19115_s23 }
 0x53e   : > { %3013 = vrot.lane.b32.xlu1 %v19810_v41, %s19116_s4 }
 0x542   : > { %3108 = vrot.lane.b32.xlu1 %v19710_v6, %s19115_s23 }
 0x546   : > { %3104 = vrot.lane.b32.xlu1 %v19824_v51, %s19116_s4 }
 0x549   : > { %v1787_v47 = vpop.xlane.xlu0 %1786 }
 0x54a   : > { %3199 = vrot.lane.b32.xlu1 %v19718_v11, %s19115_s23  ;;  %18415 = vrcp.f32 %v1787_v47  ;;  %s19127_s23 = smov 76  }
 0x54b   : > { %v1784_v44 = vpop.xlane.xlu1 %1783 }
 0x54c   : > { %18417 = vrcp.f32 %v1784_v44 }
 0x54e   : > { %3197 = vrot.lane.b32.xlu1 %v19858_v62, %s19116_s4  ;;  %s19128_s4 = smov 108  }
 0x551   : > { %v1793_v12 = vpop.xlane.xlu1 %1792 }
 0x552   : > { %3464 = vrot.lane.b32.xlu1 %v19650_v31, %s19117_s29  ;;  %18419 = vrcp.f32 %v1793_v12 }
 0x555   : > { %v1790_v36 = vpop.xlane.xlu1 %1789 }
 0x556   : > { %18421 = vrcp.f32 %v1790_v36  ;;  %3551 = vrot.lane.b32.xlu1 %v19663_v40, %s19117_s29 }
 0x557   : > { %v18416_v14 = vpop.eup %18415 }
 0x558   : > { %v1833_v44 = vmul.f32 %v18416_v14, %v19989_v3 }
 0x559   : > { %v18418_v23 = vpop.eup %18417  ;;  %v1799_v46 = vpop.xlane.xlu0 %1798 }
 0x55a   : > { %3638 = vrot.lane.b32.xlu1 %v19671_v42, %s19117_s29  ;;  %v1831_v47 = vmul.f32 %v18418_v23, %v19993_v26  ;;  %18423 = vrcp.f32 %v1799_v46 }
 0x55c   : > { %17200 = vmatprep.mubr.msk.f32.mxu0 %vm1685_vm2, %v1831_v47 }
 0x55d   : > { %17201 = vmatmul.mubr.msk.f32.vlgmr.msra.gmra.mxu0 %vm1685_vm2, %v1833_v44  ;;  %v1796_v12 = vpop.xlane.xlu0 %1795 }
 0x55e   : > { %17211 = vmatpush3.msra.mxu0 %v19864_v49  ;;  %18425 = vrcp.f32 %v1796_v12  ;;  %3636 = vrot.lane.b32.xlu1 %v19673_v50, %s19117_s29 }
 0x55f   : > { %17212 = vmatprep.subr.mxu0 %v19932_v43  ;;  %v18420_v3 = vpop.eup %18419 }
 0x560   : > { %17213 = vmatpush3.msra.mxu0 %v19932_v43  ;;  %v1837_v23 = vmul.f32 %v18420_v3, %v19999_v22 }
 0x561   : > { %17224 = vmatprep.subr.mxu0 %v19936_v0  ;;  %v1805_v26 = vpop.xlane.xlu1 %1804 }
 0x562   : > { %3723 = vrot.lane.b32.xlu1 %v19681_v13, %s19117_s29  ;;  %18427 = vrcp.f32 %v1805_v26 }
 0x563   : > { %v18422_v36 = vpop.eup %18421 }
 0x564   : > { %v1835_v14 = vmul.f32 %v18422_v36, %v20003_v48 }
 0x565   : > { %v1802_v49 = vpop.xlane.xlu1 %1801 }
 0x566   : > { %18429 = vrcp.f32 %v1802_v49  ;;  %17207 = vmatprep.mubr.msk.f32.mxu1 %vm1685_vm2, %v1835_v14  ;;  %v23419_v14 = vld [vmem:[#allocation41_spill] sm:$0xff] }
 0x567   : > { %17208 = vmatmul.mubr.msk.f32.vlgmr.msra.gmra.mxu1 %vm1685_vm2, %v1837_v23  ;;  %v18424_v46 = vpop.eup %18423  ;;  %v23421_v23 = vld [vmem:[#allocation43_spill] sm:$0xff] }
 0x568   : > { %17218 = vmatpush3.msra.mxu1 %v19862_v20  ;;  %v1841_v44 = vmul.f32 %v18424_v46, %v20009_v58  ;;  %v23423_v46 = vld [vmem:[#allocation42_spill] sm:$0xff] }
 0x569   : > { %17219 = vmatprep.subr.mxu1 %v19944_v21  ;;  %v1811_v43 = vpop.xlane.xlu0 %1810 }
 0x56a   : > { %17220 = vmatpush3.msra.mxu1 %v19944_v21  ;;  %18431 = vrcp.f32 %v1811_v43 }
 0x56b   : > { %v18426_v47 = vpop.eup %18425  ;;  %17231 = vmatprep.subr.mxu1 %v19948_v55 }
 0x56c   : > { %v1839_v48 = vmul.f32 %v18426_v47, %v20014_v9 }
 0x56d   : > { %v1808_v22 = vpop.xlane.xlu0 %1807 }
 0x56e   : > { %18433 = vrcp.f32 %v1808_v22  ;;  %17214 = vmatprep.mubr.msk.f32.mxu0 %vm1685_vm2, %v1839_v48  ;;  %v23426_v22 = vld [vmem:[#allocation50_spill] sm:$0xff] }
 0x56f   : > { %17215 = vmatmul.mubr.msk.f32.vlgmr.msra.gmra.mxu0 %vm1685_vm2, %v1841_v44  ;;  %v18428_v21 = vpop.eup %18427 }
 0x570   : > { %17225 = vmatpush3.msra.mxu0 %v19936_v0  ;;  %v1845_v26 = vmul.f32 %v18428_v21, %v20019_v54 }
 0x571   : > { %17226 = vmatprep.subr.mxu0 %v19940_v17  ;;  %v1817_v20 = vpop.xlane.xlu1 %1816 }
 0x572   : > { %17227 = vmatpush3.msra.mxu0 %v19940_v17  ;;  %18435 = vrcp.f32 %v1817_v20 }
 0x573   : > { %v18430_v12 = vpop.eup %18429  ;;  %17238 = vmatprep.subr.mxu0 %v19946_v10 }
 0x574   : > { %v1843_v9 = vmul.f32 %v18430_v12, %v20024_v57 }
 0x575   : > { %v1814_v58 = vpop.xlane.xlu1 %1813 }
 0x576   : > { %18437 = vrcp.f32 %v1814_v58  ;;  %17221 = vmatprep.mubr.msk.f32.mxu1 %vm1685_vm2, %v1843_v9 }
 0x577   : > { %17222 = vmatmul.mubr.msk.f32.vlgmr.msra.gmra.mxu1 %vm1685_vm2, %v1845_v26  ;;  %v18432_v17 = vpop.eup %18431 }
 0x578   : > { %17232 = vmatpush3.msra.mxu1 %v19948_v55  ;;  %v1849_v36 = vmul.f32 %v18432_v17, %v20029_v37 }
 0x579   : > { %17233 = vmatprep.subr.mxu1 %v19954_v35  ;;  %v1823_v0 = vpop.xlane.xlu0 %1822  ;;  %v2927_v20 = vpop.permute.xlu1 %2926 }
 0x57a   : > { %17234 = vmatpush3.msra.mxu1 %v19954_v35  ;;  %18439 = vrcp.f32 %v1823_v0 }
 0x57b   : > { %v18434_v3 = vpop.eup %18433  ;;  %17245 = vmatprep.subr.mxu1 %v19960_v1 }
 0x57c   : > { %v1847_v57 = vmul.f32 %v18434_v3, %v20034_v39 }
 0x57d   : > { %v1820_v54 = vpop.xlane.xlu0 %1819 }
 0x57e   : > { %18441 = vrcp.f32 %v1820_v54  ;;  %17228 = vmatprep.mubr.msk.f32.mxu0 %vm1685_vm2, %v1847_v57  ;;  %v23427_v54 = vld [vmem:[#allocation48_spill] sm:$0xff] }
 0x57f   : > { %17229 = vmatmul.mubr.msk.f32.vlgmr.msra.gmra.mxu0 %vm1685_vm2, %v1849_v36  ;;  %v18436_v55 = vpop.eup %18435  ;;  %v23428_v36 = vld [vmem:[#allocation46_spill] sm:$0xff] }
 0x580   : > { %17239 = vmatpush3.msra.mxu0 %v19946_v10  ;;  %v1853_v37 = vmul.f32 %v18436_v55, %v20039_v24  ;;  %v23420_v10 = vld [vmem:[#allocation51_spill] sm:$0xff] }
 0x581   : > { %17240 = vmatprep.subr.mxu0 %v19950_v63  ;;  %v1829_v43 = vpop.xlane.xlu0 %1828 }
 0x582   : > { %17241 = vmatpush3.msra.mxu0 %v19950_v63  ;;  %18443 = vrcp.f32 %v1829_v43 }
 0x583   : > { %v18438_v35 = vpop.eup %18437  ;;  %17252 = vmatprep.subr.msk.mxu0 %vm962_vm1, %v23419_v14 }
 0x584   : > { %v1851_v39 = vmul.f32 %v18438_v35, %v20043_v25  ;;  %v23429_v35 = vld [vmem:[#allocation49_spill] sm:$0xff] }
 0x585   : > { %v2834_v47 = vpop.permute.xlu0 %2833 }
 0x586   : > { %17235 = vmatprep.mubr.msk.f32.mxu1 %vm1685_vm2, %v1851_v39 }
 0x587   : > { %17236 = vmatmul.mubr.msk.f32.vlgmr.msra.gmra.mxu1 %vm1685_vm2, %v1853_v37  ;;  %v18440_v49 = vpop.eup %18439 }
 0x588   : > { %17246 = vmatpush3.msra.mxu1 %v19960_v1  ;;  %v1857_v24 = vmul.f32 %v18440_v49, %v20047_v19  ;;  %v23422_v1 = vld [vmem:[#allocation44_spill] sm:$0xff]  ;;  %v23425_v19 = vld [vmem:[#allocation45_spill] sm:$0xff] }
 0x589   : > { %17247 = vmatprep.subr.mxu1 %v23420_v10  ;;  %v3020_v48 = vpop.permute.xlu0 %3019 }
 0x58a   : > { %17248 = vmatpush3.msra.mxu1 %v23420_v10 }
 0x58b   : > { %v18442_v63 = vpop.eup %18441  ;;  %17259 = vmatprep.subr.msk.mxu1 %vm962_vm1, %v23421_v23 }
 0x58c   : > { %v1855_v25 = vmul.f32 %v18442_v63, %v20051_v29  ;;  %v23424_v29 = vld [vmem:[#allocation47_spill] sm:$0xff] }
 0x58d   : > { %v2925_v44 = vpop.permute.xlu0 %2924 }
 0x58e   : > { %17242 = vmatprep.mubr.msk.f32.mxu0 %vm1685_vm2, %v1855_v25 }
 0x58f   : > { %17243 = vmatmul.mubr.msk.f32.vlgmr.msra.gmra.mxu0 %vm1685_vm2, %v1857_v24  ;;  %v18444_v58 = vpop.eup %18443 }
 0x590   : > { %17253 = vmatpush3.xpose.msk.msra.mxu0 %vm962_vm1, %v23419_v14  ;;  %17256 = vmatprep.mubr.msk.f32.mxu0 %vm962_vm1, %v23422_v1  ;;  %v1861_v57 = vmul.f32 %v18444_v58, %v20055_v33 }
 0x591   : > { %17254 = vmatprep.subr.msk.mxu0 %vm962_vm1, %v23423_v46 }
 0x594   : > { %17255 = vmatpush3.xpose.msk.msra.mxu0 %vm962_vm1, %v23423_v46 }
 0x595   : > { %17266 = vmatprep.subr.msk.mxu0 %vm962_vm1, %v23424_v29 }
 0x597   : > { %17257 = vmatmul.mubr.msk.f32.vlgmr.msra.gmra.mxu0 %vm962_vm1, %v23425_v19 }
 0x598   : > { %17267 = vmatpush3.xpose.msk.msra.mxu0 %vm962_vm1, %v23424_v29  ;;  %17270 = vmatprep.mubr.msk.f32.mxu0 %vm962_vm1, %v20061_v27  ;;  %v3111_v27 = vpop.permute.xlu0 %3110 }
 0x599   : > { %17268 = vmatprep.subr.msk.mxu0 %vm962_vm1, %v23426_v22 }
 0x59c   : > { %17269 = vmatpush3.xpose.msk.msra.mxu0 %vm962_vm1, %v23426_v22  ;;  %v3016_v9 = vpop.permute.xlu0 %3015 }
 0x59d   : > { %17280 = vmatprep.subr.msk.mxu0 %vm962_vm1, %v20104_v5 }
 0x59f   : > { %17271 = vmatmul.mubr.msk.f32.vlgmr.msra.gmra.mxu0 %vm962_vm1, %v20100_v30 }
 0x5a0   : > { %17281 = vmatpush3.xpose.msk.msra.mxu0 %vm962_vm1, %v20104_v5  ;;  %v3202_v0 = vpop.permute.xlu0 %3201 }
 0x5a1   : > { %17282 = vmatprep.subr.msk.mxu0 %vm962_vm1, %v2927_v20 }
 0x5a4   : > { %17283 = vmatpush3.xpose.msk.msra.mxu0 %vm962_vm1, %v2927_v20  ;;  %v3107_v55 = vpop.permute.xlu0 %3106 }
 0x5a5   : > { %17294 = vmatprep.subr.msk.mxu0 %vm962_vm1, %v3111_v27 }
 0x5a8   : > { %v3196_v39 = vpop.permute.xlu0 %3195 }
 0x5ac   : > { %v3463_v10 = vpop.permute.xlu0 %3462 }
 0x5ae   : > { %v1826_v21 = vpop.xlane.xlu1 %1825 }
 0x5af   : > { %18445 = vrcp.f32 %v1826_v21 }
 0x5b2   : > { %v2923_v12 = vpop.permute.xlu1 %2922 }
 0x5b3   : > { %17284 = vmatprep.mubr.msk.f32.mxu0 %vm962_vm1, %v2923_v12 }
 0x5b4   : > { %17285 = vmatmul.mubr.msk.f32.vlgmr.msra.gmra.mxu0 %vm962_vm1, %v2925_v44 }
 0x5b5   : > { %17295 = vmatpush3.xpose.msk.msra.mxu0 %vm962_vm1, %v3111_v27 }
 0x5b6   : > { %v3018_v30 = vpop.permute.xlu1 %3017 }
 0x5ba   : > { %v3014_v5 = vpop.permute.xlu1 %3013 }
 0x5bc   : > { %v18446_v26 = vpop.eup %18445 }
 0x5bd   : > { %v1859_v17 = vmul.f32 %v18446_v26, %v20078_v28 }
 0x5be   : > { %v3109_v3 = vpop.permute.xlu1 %3108 }
 0x5bf   : > { %17249 = vmatprep.mubr.msk.f32.mxu1 %vm1685_vm2, %v1859_v17  ;;  %17296 = vmatprep.subr.msk.mxu0 %vm962_vm1, %v3109_v3 }
 0x5c0   : > { %17250 = vmatmul.mubr.msk.f32.vlgmr.msra.gmra.mxu1 %vm1685_vm2, %v1861_v57  ;;  %17297 = vmatpush3.xpose.msk.msra.mxu0 %vm962_vm1, %v3109_v3 }
 0x5c1   : > { %17260 = vmatpush3.xpose.msk.msra.mxu1 %vm962_vm1, %v23421_v23  ;;  %17263 = vmatprep.mubr.msk.f32.mxu1 %vm962_vm1, %v23427_v54 }
 0x5c2   : > { %17261 = vmatprep.subr.msk.mxu1 %vm962_vm1, %v23428_v36  ;;  %v3105_v28 = vpop.permute.xlu1 %3104 }
 0x5c3   : > { %17298 = vmatprep.mubr.msk.f32.mxu0 %vm962_vm1, %v3105_v28 }
 0x5c4   : > { %17299 = vmatmul.mubr.msk.f32.vlgmr.msra.gmra.mxu0 %vm962_vm1, %v3107_v55 }
 0x5c5   : > { %17262 = vmatpush3.xpose.msk.msra.mxu1 %vm962_vm1, %v23428_v36 }
 0x5c6   : > { %17273 = vmatprep.subr.msk.mxu1 %vm962_vm1, %v20094_v15  ;;  %v3200_v33 = vpop.permute.xlu1 %3199 }
 0x5c8   : > { %17264 = vmatmul.mubr.msk.f32.vlgmr.msra.gmra.mxu1 %vm962_vm1, %v23429_v35 }
 0x5c9   : > { %17274 = vmatpush3.xpose.msk.msra.mxu1 %vm962_vm1, %v20094_v15  ;;  %17277 = vmatprep.mubr.msk.f32.mxu1 %vm962_vm1, %v20108_v34  ;;  %v3550_v34 = vpop.permute.xlu0 %3549 }
 0x5ca   : > { %17275 = vmatprep.subr.msk.mxu1 %vm962_vm1, %v20063_v59  ;;  %v3198_v14 = vpop.permute.xlu1 %3197 }
 0x5cd   : > { %17276 = vmatpush3.xpose.msk.msra.mxu1 %vm962_vm1, %v20063_v59  ;;  %v20254_v49 = vpop.permute.xlu0 %3725 }
 0x5ce   : > { %17287 = vmatprep.subr.msk.mxu1 %vm962_vm1, %v3020_v48  ;;  %v3465_v37 = vpop.permute.xlu1 %3464 }
 0x5cf   : > { %17308 = vmatprep.subr.mxu0 %v3465_v37 }
 0x5d0   : > { %17278 = vmatmul.mubr.msk.f32.vlgmr.msra.gmra.mxu1 %vm962_vm1, %v2834_v47  ;;  %17309 = vmatpush3.msra.mxu0 %v3465_v37 }
 0x5d1   : > { %17288 = vmatpush3.xpose.msk.msra.mxu1 %vm962_vm1, %v3020_v48  ;;  %17291 = vmatprep.mubr.msk.f32.mxu1 %vm962_vm1, %v3014_v5 }
 0x5d2   : > { %17289 = vmatprep.subr.msk.mxu1 %vm962_vm1, %v3018_v30  ;;  %17310 = vmatprep.subr.mxu0 %v3463_v10  ;;  %v3552_v15 = vpop.permute.xlu1 %3551 }
 0x5d3   : > { %17311 = vmatpush3.msra.mxu0 %v3463_v10 }
 0x5d5   : > { %17290 = vmatpush3.xpose.msk.msra.mxu1 %vm962_vm1, %v3018_v30 }
 0x5d6   : > { %17301 = vmatprep.subr.msk.mxu1 %vm962_vm1, %v3202_v0  ;;  %v20245_v59 = vpop.permute.xlu1 %3638 }
 0x5d7   : > { %17322 = vmatprep.subr.mxu0 %v20245_v59 }
 0x5d8   : > { %17292 = vmatmul.mubr.msk.f32.vlgmr.msra.gmra.mxu1 %vm962_vm1, %v3016_v9 }
 0x5d9   : > { %17302 = vmatpush3.xpose.msk.msra.mxu1 %vm962_vm1, %v3202_v0  ;;  %17305 = vmatprep.mubr.msk.f32.mxu1 %vm962_vm1, %v3196_v39 }
 0x5da   : > { %17303 = vmatprep.subr.msk.mxu1 %vm962_vm1, %v3200_v33 }
 0x5dd   : > { %17304 = vmatpush3.xpose.msk.msra.mxu1 %vm962_vm1, %v3200_v33 }
 0x5de   : > { %17315 = vmatprep.subr.mxu1 %v3552_v15 }
 0x5e0   : > { %17306 = vmatmul.mubr.msk.f32.vlgmr.msra.gmra.mxu1 %vm962_vm1, %v3198_v14 }
 0x5e1   : > { %17316 = vmatpush3.msra.mxu1 %v3552_v15 }
 0x5e2   : > { %17317 = vmatprep.subr.mxu1 %v3550_v34 }
 0x5e3   : > { %17318 = vmatpush3.msra.mxu1 %v3550_v34 }
 0x5e4   : > { %17329 = vmatprep.subr.mxu1 %v20254_v49 }
 0x61d   : > { %v20257_v63 = vpop.f32.mrf.mxu0 }
 0x61f   : > { %v20259_v23 = vpop.f32.mrf.mxu0 }
 0x627   : > { %v20283_v44 = vpop.f32.mrf.mxu1 }
 0x628   : > { %23436 = vst [vmem:[#allocation45_spill] sm:$0xff] %v20283_v44 }
 0x629   : > { %v20285_v20 = vpop.f32.mrf.mxu1 }
 0x62f   : > { %v20261_v43 = vpop.f32.mrf.mxu0 }
 0x630   : > { %23430 = vst [vmem:[#allocation41_spill] sm:$0xff] %v20261_v43 }
 0x631   : > { %v20263_v25 = vpop.f32.mrf.mxu0 }
 0x632   : > { %23431 = vst [vmem:[#allocation51_spill] sm:$0xff] %v20263_v25 }
 0x637   : > { %v20287_v27 = vpop.f32.mrf.mxu1 }
 0x638   : > { %23437 = vst [vmem:[#allocation50_spill] sm:$0xff] %v20287_v27 }
 0x639   : > { %v20289_v21 = vpop.f32.mrf.mxu1 }
 0x63a   : > { %23438 = vst [vmem:[#allocation48_spill] sm:$0xff] %v20289_v21 }
 0x63f   : > { %v20265_v24 = vpop.f32.mrf.mxu0 }
 0x640   : > { %23432 = vst [vmem:[#allocation43_spill] sm:$0xff] %v20265_v24 }
 0x641   : > { %v20267_v1 = vpop.f32.mrf.mxu0 }
 0x642   : > { %23433 = vst [vmem:[#allocation44_spill] sm:$0xff] %v20267_v1 }
 0x647   : > { %v20291_v12 = vpop.f32.mrf.mxu1 }
 0x648   : > { %23439 = vst [vmem:[#allocation46_spill] sm:$0xff] %v20291_v12 }
 0x649   : > { %v20293_v30 = vpop.f32.mrf.mxu1 }
 0x64a   : > { %23440 = vst [vmem:[#allocation49_spill] sm:$0xff] %v20293_v30 }
 0x64f   : > { %v20269_v46 = vpop.f32.mrf.mxu0 }
 0x650   : > { %23434 = vst [vmem:[#allocation42_spill] sm:$0xff] %v20269_v46 }
 0x651   : > { %v20271_v47 = vpop.f32.mrf.mxu0 }
 0x652   : > { %23435 = vst [vmem:[#allocation47_spill] sm:$0xff] %v20271_v47 }
 0x657   : > { %v20273_v29 = vpop.f32.mrf.mxu0 }
 0x658   : > { %v3289_v19 = vsel %vm1685_vm2, %v20273_v29, -inf }
 0x659   : > { %3290 = vmax.xlane.f32.xlu1 %v3289_v19  ;;  %v20277_v48 = vpop.f32.mrf.mxu0 }
 0x65a   : > { %v3286_v22 = vsel %vm1685_vm2, %v20277_v48, -inf }
 0x65b   : > { %3287 = vmax.xlane.f32.xlu0 %v3286_v22 }
 0x65f   : > { %v20297_v5 = vpop.f32.mrf.mxu0 }
 0x660   : > { %v3301_v57 = vsel %vm1685_vm2, %v20297_v5, -inf }
 0x661   : > { %v20305_v17 = vpop.f32.mrf.mxu0 }
 0x662   : > { %v3298_v3 = vsel %vm1685_vm2, %v20305_v17, -inf }
 0x66a   : > { %3810 = vrot.lane.b32.xlu1 %v19689_v60, %s19117_s29 }
 0x674   : > { %v20313_v36 = vpop.f32.mrf.mxu0 }
 0x676   : > { %v20323_v14 = vpop.f32.mrf.mxu0 }
 0x677   : > { %v3310_v39 = vsel %vm1685_vm2, %v20323_v14, -inf }
 0x680   : > { %v20295_v9 = vpop.f32.mrf.mxu1 }
 0x681   : > { %23441 = vst [vmem:[#allocation52_spill] sm:$0xff] %v20295_v9 }
 0x682   : > { %v20299_v58 = vpop.f32.mrf.mxu1 }
 0x683   : > { %23442 = vst [vmem:[#allocation53_spill] sm:$0xff] %v20299_v58 }
 0x684   : > { %v20327_v37 = vpop.f32.mrf.mxu0 }
 0x686   : > { %v20335_v19 = vpop.f32.mrf.mxu0 }
 0x687   : > { %v3322_v22 = vsel %vm1685_vm2, %v20335_v19, -inf }
 0x688   : > { %v20301_v26 = vpop.f32.mrf.mxu1 }
 0x689   : > { %v3295_v0 = vsel %vm1685_vm2, %v20301_v26, -inf }
 0x68a   : > { %3296 = vmax.xlane.f32.xlu0 %v3295_v0  ;;  %v20311_v54 = vpop.f32.mrf.mxu1  ;;  %v23443_v0 = vld [vmem:[#allocation33_spill] sm:$0xff] }
 0x68b   : > { %v3292_v55 = vsel %vm1685_vm2, %v20311_v54, -inf }
 0x68e   : > { %3299 = vmax.xlane.f32.xlu1 %v3298_v3  ;;  %3302 = vmax.xlane.f32.xlu0 %v3301_v57  ;;  %v3313_v57 = vsel %vm1685_vm2, %v20313_v36, -inf }
 0x690   : > { %v20315_v28 = vpop.f32.mrf.mxu1 }
 0x691   : > { %v3307_v3 = vsel %vm1685_vm2, %v20315_v28, -inf }
 0x692   : > { %3293 = vmax.xlane.f32.xlu0 %v3292_v55  ;;  %v20319_v33 = vpop.f32.mrf.mxu1 }
 0x693   : > { %v3304_v35 = vsel %vm1685_vm2, %v20319_v33, -inf }
 0x694   : > { %3305 = vmax.xlane.f32.xlu1 %v3304_v35 }
 0x698   : > { %3311 = vmax.xlane.f32.xlu1 %v3310_v39  ;;  %v20329_v10 = vpop.f32.mrf.mxu1 }
 0x699   : > { %v3319_v35 = vsel %vm1685_vm2, %v20329_v10, -inf }
 0x69a   : > { %v20331_v15 = vpop.f32.mrf.mxu1 }
 0x69b   : > { %v3316_v34 = vsel %vm1685_vm2, %v20331_v15, -inf }
 0x69c   : > { %3317 = vmax.xlane.f32.xlu1 %v3316_v34  ;;  %v3325_v34 = vsel %vm1685_vm2, %v20327_v37, -inf }
 0x6a0   : > { %3323 = vmax.xlane.f32.xlu1 %v3322_v22  ;;  %v20347_v55 = vpop.f32.mrf.mxu1 }
 0x6a2   : > { %v20351_v39 = vpop.f32.mrf.mxu1 }
 0x6a3   : > { %v3328_v22 = vsel %vm1685_vm2, %v20351_v39, -inf }
 0x6a8   : > { %3812 = vrot.lane.b32.xlu0 %v23443_v0, %s19117_s29 }
 0x6b1   : > { %3897 = vrot.lane.b32.xlu1 %v19702_v52, %s19117_s29 }
 0x6c7   : > { %3308 = vmax.xlane.f32.xlu0 %v3307_v3  ;;  %v3331_v3 = vsel %vm1685_vm2, %v20347_v55, -inf }
 0x6cb   : > { %3314 = vmax.xlane.f32.xlu0 %v3313_v57  ;;  %v20361_v57 = vpop.permute.xlu1 %3636 }
 0x6cf   : > { %3320 = vmax.xlane.f32.xlu0 %v3319_v35  ;;  %v20365_v9 = vpop.permute.xlu1 %3723 }
 0x6d3   : > { %3326 = vmax.xlane.f32.xlu0 %v3325_v34 }
 0x6d5   : > { %3329 = vmax.xlane.f32.xlu1 %v3328_v22 }
 0x6d7   : > { %3332 = vmax.xlane.f32.xlu0 %v3331_v3 }
 0x6e2   : > { %v3291_v22 = vpop.xlane.xlu1 %3290 }
 0x6e3   : > { %v3335_v3 = vsub.f32 %v20273_v29, %v3291_v22 }
 0x6e4   : > { %v3288_v35 = vpop.xlane.xlu0 %3287 }
 0x6e5   : > { %v3334_v34 = vsub.f32 %v20277_v48, %v3288_v35  ;;  %v3352_v46 = vmul.f32 1.442695, %v3335_v3 }
 0x6e6   : > { %3984 = vrot.lane.b32.xlu1 %v19710_v6, %s19117_s29  ;;  %v20379_v35 = vpop.permute.xlu1 %3810 }
 0x6e7   : > { %v3350_v58 = vmul.f32 1.442695, %v3334_v34 }
 0x6e9   : > { %18447 = vpow2.f32 %v3350_v58 }
 0x6ea   : > { %18449 = vpow2.f32 %v3352_v46 }
 0x6ed   : > { %3899 = vrot.lane.b32.xlu0 %v19700_v18, %s19117_s29 }
 0x6f1   : > { %3986 = vrot.lane.b32.xlu0 %v19708_v4, %s19117_s29 }
 0x6f6   : > { %v20371_v47 = vpop.eup %18447 }
 0x6f7   : > { %v3382_v12 = vsel %vm1685_vm2, %v20371_v47, 0.0  ;;  %v20375_v30 = vpop.eup %18449 }
 0x6f8   : > { %v3385_v48 = vsel %vm1685_vm2, %v20375_v30, 0.0 }
 0x70a   : > { %3383 = vadd.xlane.f32.xlu1 %v3382_v12 }
 0x710   : > { %3386 = vadd.xlane.f32.xlu0 %v3385_v48 }
 0x713   : > { %v3297_v34 = vpop.xlane.xlu0 %3296 }
 0x714   : > { %v3337_v29 = vsub.f32 %v20301_v26, %v3297_v34 }
 0x716   : > { %v3356_v58 = vmul.f32 1.442695, %v3337_v29 }
 0x717   : > { %v3300_v22 = vpop.xlane.xlu1 %3299  ;;  %v3303_v46 = vpop.xlane.xlu0 %3302 }
 0x718   : > { %18451 = vpow2.f32 %v3356_v58  ;;  %v3339_v3 = vsub.f32 %v20297_v5, %v3303_v46  ;;  %v3338_v24 = vsub.f32 %v20305_v17, %v3300_v22 }
 0x71a   : > { %v3360_v12 = vmul.f32 1.442695, %v3339_v3  ;;  %v3358_v48 = vmul.f32 1.442695, %v3338_v24 }
 0x71b   : > { %v3294_v1 = vpop.xlane.xlu0 %3293 }
 0x71c   : > { %v3336_v27 = vsub.f32 %v20311_v54, %v3294_v1  ;;  %18453 = vpow2.f32 %v3360_v12 }
 0x71d   : > { %v3306_v21 = vpop.xlane.xlu1 %3305 }
 0x71e   : > { %v3354_v43 = vmul.f32 1.442695, %v3336_v27  ;;  %v3340_v25 = vsub.f32 %v20319_v33, %v3306_v21 }
 0x720   : > { %18455 = vpow2.f32 %v3354_v43  ;;  %v3362_v34 = vmul.f32 1.442695, %v3340_v25 }
 0x721   : > { %v3312_v26 = vpop.xlane.xlu1 %3311  ;;  %18457 = vpow2.f32 %v3358_v48 }
 0x722   : > { %v3342_v29 = vsub.f32 %v20323_v14, %v3312_v26  ;;  %18459 = vpow2.f32 %v3362_v34 }
 0x724   : > { %v3366_v17 = vmul.f32 1.442695, %v3342_v29 }
 0x725   : > { %v20387_v58 = vpop.eup %18451  ;;  %v3318_v5 = vpop.xlane.xlu1 %3317 }
 0x726   : > { %v3344_v22 = vsub.f32 %v20331_v15, %v3318_v5  ;;  %v3391_v1 = vsel %vm1685_vm2, %v20387_v58, 0.0  ;;  %18461 = vpow2.f32 %v3366_v17  ;;  %v20421_v17 = vpop.permute.xlu0 %3812 }
 0x727   : > { %3392 = vadd.xlane.f32.xlu0 %v3391_v1 }
 0x728   : > { %v3370_v43 = vmul.f32 1.442695, %v3344_v22 }
 0x729   : > { %v3324_v24 = vpop.xlane.xlu1 %3323  ;;  %v20392_v27 = vpop.eup %18453 }
 0x72a   : > { %v3346_v25 = vsub.f32 %v20335_v19, %v3324_v24  ;;  %v3397_v21 = vsel %vm1685_vm2, %v20392_v27, 0.0  ;;  %18463 = vpow2.f32 %v3370_v43 }
 0x72b   : > { %3398 = vadd.xlane.f32.xlu0 %v3397_v21 }
 0x72c   : > { %v3374_v33 = vmul.f32 1.442695, %v3346_v25 }
 0x72d   : > { %v20397_v54 = vpop.eup %18455 }
 0x72e   : > { %v3388_v14 = vsel %vm1685_vm2, %v20397_v54, 0.0  ;;  %v20401_v15 = vpop.eup %18457  ;;  %18465 = vpow2.f32 %v3374_v33 }
 0x72f   : > { %3389 = vadd.xlane.f32.xlu1 %v3388_v14  ;;  %v3394_v46 = vsel %vm1685_vm2, %v20401_v15, 0.0  ;;  %v20405_v3 = vpop.eup %18459 }
 0x730   : > { %v3400_v19 = vsel %vm1685_vm2, %v20405_v3, 0.0 }
 0x733   : > { %3395 = vadd.xlane.f32.xlu1 %v3394_v46  ;;  %v20409_v12 = vpop.eup %18461  ;;  %v20426_v46 = vpop.permute.xlu1 %3897 }
 0x734   : > { %v3406_v48 = vsel %vm1685_vm2, %v20409_v12, 0.0 }
 0x737   : > { %3401 = vadd.xlane.f32.xlu1 %v3400_v19  ;;  %v20413_v26 = vpop.eup %18463 }
 0x738   : > { %v3412_v34 = vsel %vm1685_vm2, %v20413_v26, 0.0 }
 0x73b   : > { %3407 = vadd.xlane.f32.xlu1 %v3406_v48  ;;  %v20417_v29 = vpop.eup %18465 }
 0x73c   : > { %v3418_v5 = vsel %vm1685_vm2, %v20417_v29, 0.0 }
 0x73f   : > { %3413 = vadd.xlane.f32.xlu1 %v3412_v34 }
 0x743   : > { %3419 = vadd.xlane.f32.xlu1 %v3418_v5 }
 0x750   : > { %v3309_v22 = vpop.xlane.xlu0 %3308 }
 0x751   : > { %v3341_v1 = vsub.f32 %v20315_v28, %v3309_v22 }
 0x753   : > { %v3364_v24 = vmul.f32 1.442695, %v3341_v1 }
 0x754   : > { %v3315_v43 = vpop.xlane.xlu0 %3314 }
 0x755   : > { %18467 = vpow2.f32 %v3364_v24  ;;  %v3343_v25 = vsub.f32 %v20313_v36, %v3315_v43 }
 0x757   : > { %v3368_v21 = vmul.f32 1.442695, %v3343_v25 }
 0x758   : > { %v3321_v33 = vpop.xlane.xlu0 %3320 }
 0x759   : > { %18469 = vpow2.f32 %v3368_v21  ;;  %v3345_v14 = vsub.f32 %v20329_v10, %v3321_v33 }
 0x75b   : > { %v3372_v19 = vmul.f32 1.442695, %v3345_v14 }
 0x75c   : > { %v3327_v48 = vpop.xlane.xlu0 %3326 }
 0x75d   : > { %18471 = vpow2.f32 %v3372_v19  ;;  %v3347_v34 = vsub.f32 %v20327_v37, %v3327_v48 }
 0x75e   : > { %v3330_v5 = vpop.xlane.xlu1 %3329 }
 0x75f   : > { %v3376_v44 = vmul.f32 1.442695, %v3347_v34  ;;  %v3348_v28 = vsub.f32 %v20351_v39, %v3330_v5  ;;  %v23444_v34 = vld [vmem:[#allocation32_spill] sm:$0xff] }
 0x760   : > { %v3333_v22 = vpop.xlane.xlu0 %3332 }
 0x761   : > { %18473 = vpow2.f32 %v3376_v44  ;;  %v3378_v1 = vmul.f32 1.442695, %v3348_v28  ;;  %v3349_v36 = vsub.f32 %v20347_v55, %v3333_v22 }
 0x762   : > { %v20431_v24 = vpop.eup %18467  ;;  %v20465_v5 = vpop.permute.xlu1 %3984 }
 0x763   : > { %18475 = vpow2.f32 %v3378_v1  ;;  %v3380_v10 = vmul.f32 1.442695, %v3349_v36  ;;  %v3403_v43 = vsel %vm1685_vm2, %v20431_v24, 0.0  ;;  %v23445_v1 = vld [vmem:[#allocation36_spill] sm:$0xff] }
 0x764   : > { %3404 = vadd.xlane.f32.xlu0 %v3403_v43  ;;  %v20467_v28 = vpop.permute.xlu0 %3899 }
 0x765   : > { %18477 = vpow2.f32 %v3380_v10  ;;  %v23446_v10 = vld [vmem:[#allocation34_spill] sm:$0xff] }
 0x766   : > { %v20435_v25 = vpop.eup %18469 }
 0x767   : > { %v3409_v37 = vsel %vm1685_vm2, %v20435_v25, 0.0 }
 0x768   : > { %3410 = vadd.xlane.f32.xlu0 %v3409_v37  ;;  %v20475_v36 = vpop.permute.xlu0 %3986  ;;  %v23447_v37 = vld [vmem:[#allocation37_spill] sm:$0xff] }
 0x76a   : > { %v20439_v39 = vpop.eup %18471 }
 0x76b   : > { %v3415_v44 = vsel %vm1685_vm2, %v20439_v39, 0.0 }
 0x76c   : > { %3416 = vadd.xlane.f32.xlu0 %v3415_v44  ;;  %v23448_v44 = vld [vmem:[#allocation35_spill] sm:$0xff] }
 0x76e   : > { %v20443_v55 = vpop.eup %18473 }
 0x76f   : > { %v3421_v21 = vsel %vm1685_vm2, %v20443_v55, 0.0 }
 0x770   : > { %v20447_v33 = vpop.eup %18475  ;;  %3422 = vadd.xlane.f32.xlu0 %v3421_v21 }
 0x771   : > { %v3424_v14 = vsel %vm1685_vm2, %v20447_v33, 0.0 }
 0x772   : > { %v20451_v19 = vpop.eup %18477  ;;  %3425 = vadd.xlane.f32.xlu1 %v3424_v14 }
 0x773   : > { %v3427_v48 = vsel %vm1685_vm2, %v20451_v19, 0.0 }
 0x774   : > { %3428 = vadd.xlane.f32.xlu0 %v3427_v48  ;;  %v23449_v48 = vld [vmem:[#allocation39_spill] sm:$0xff] }
 0x783   : > { %4071 = vrot.lane.b32.xlu1 %v19718_v11, %s19117_s29 }
 0x787   : > { %4555 = vrot.lane.b32.xlu1 %v19652_v16, %s19118_s28 }
 0x78a   : > { %4073 = vrot.lane.b32.xlu0 %v19716_v7, %s19117_s29  ;;  %s19129_s29 = smov 44  }
 0x78b   : > { %4551 = vrot.lane.b32.xlu1 %v23444_v34, %s19119_s1 }
 0x78e   : > { %4557 = vrot.lane.b32.xlu0 %v19650_v31, %s19118_s28 }
 0x78f   : > { %4646 = vrot.lane.b32.xlu1 %v19667_v45, %s19118_s28 }
 0x792   : > { %4648 = vrot.lane.b32.xlu0 %v19663_v40, %s19118_s28 }
 0x793   : > { %v3384_v22 = vpop.xlane.xlu1 %3383  ;;  %4642 = vrot.lane.b32.xlu1 %v23445_v1, %s19119_s1 }
 0x794   : > { %18479 = vrcp.f32 %v3384_v22  ;;  %v23450_v22 = vld [vmem:[#allocation38_spill] sm:$0xff] }
 0x796   : > { %4553 = vrot.lane.b32.xlu0 %v23446_v10, %s19119_s1 }
 0x797   : > { %4737 = vrot.lane.b32.xlu1 %v19673_v50, %s19118_s28 }
 0x799   : > { %v3387_v43 = vpop.xlane.xlu0 %3386 }
 0x79a   : > { %18481 = vrcp.f32 %v3387_v43  ;;  %4739 = vrot.lane.b32.xlu0 %v19671_v42, %s19118_s28 }
 0x79b   : > { %4733 = vrot.lane.b32.xlu1 %v23447_v37, %s19119_s1 }
 0x79e   : > { %4644 = vrot.lane.b32.xlu0 %v23448_v44, %s19119_s1 }
 0x79f   : > { %4828 = vrot.lane.b32.xlu1 %v19681_v13, %s19118_s28 }
 0x7a1   : > { %v18480_v21 = vpop.eup %18479 }
 0x7a2   : > { %4830 = vrot.lane.b32.xlu0 %v19679_v53, %s19118_s28  ;;  %v3431_v14 = vmul.f32 %v18480_v21, %v20371_v47 }
 0x7a3   : > { %4824 = vrot.lane.b32.xlu1 %v23449_v48, %s19119_s1 }
 0x7a4   : > { %17312 = vmatprep.mubr.msk.f32.mxu0 %vm1685_vm2, %v3431_v14 }
 0x7a6   : > { %4735 = vrot.lane.b32.xlu0 %v23450_v22, %s19119_s1 }
 0x7a7   : > { %v18482_v43 = vpop.eup %18481  ;;  %4919 = vrot.lane.b32.xlu1 %v19689_v60, %s19118_s28 }
 0x7a8   : > { %v3433_v37 = vmul.f32 %v18482_v43, %v20375_v30 }
 0x7aa   : > { %4921 = vrot.lane.b32.xlu0 %v23443_v0, %s19118_s28  ;;  %17313 = vmatmul.mubr.msk.f32.vlgmr.msra.gmra.mxu0 %vm1685_vm2, %v3433_v37 }
 0x7ab   : > { %17323 = vmatpush3.msra.mxu0 %v20245_v59  ;;  %4915 = vrot.lane.b32.xlu1 %v19696_v61, %s19119_s1 }
 0x7ac   : > { %17324 = vmatprep.subr.mxu0 %v20361_v57 }
 0x7ad   : > { %17325 = vmatpush3.msra.mxu0 %v20361_v57 }
 0x7ae   : > { %17336 = vmatprep.subr.mxu0 %v20421_v17  ;;  %4826 = vrot.lane.b32.xlu0 %v19807_v38, %s19119_s1 }
 0x7af   : > { %5010 = vrot.lane.b32.xlu1 %v19702_v52, %s19118_s28 }
 0x7b0   : > { %v3393_v47 = vpop.xlane.xlu0 %3392 }
 0x7b1   : > { %18483 = vrcp.f32 %v3393_v47 }
 0x7b2   : > { %5012 = vrot.lane.b32.xlu0 %v19700_v18, %s19118_s28 }
 0x7b3   : > { %5006 = vrot.lane.b32.xlu1 %v19810_v41, %s19119_s1 }
 0x7b4   : > { %v3399_v30 = vpop.xlane.xlu0 %3398 }
 0x7b6   : > { %4917 = vrot.lane.b32.xlu0 %v19821_v8, %s19119_s1 }
 0x7b7   : > { %5101 = vrot.lane.b32.xlu1 %v19710_v6, %s19118_s28 }
 0x7b8   : > { %v3390_v59 = vpop.xlane.xlu1 %3389 }
 0x7b9   : > { %18485 = vrcp.f32 %v3390_v59 }
 0x7ba   : > { %5103 = vrot.lane.b32.xlu0 %v19708_v4, %s19118_s28  ;;  %18487 = vrcp.f32 %v3399_v30 }
 0x7bb   : > { %5097 = vrot.lane.b32.xlu1 %v19824_v51, %s19119_s1 }
 0x7bc   : > { %v3396_v57 = vpop.xlane.xlu1 %3395 }
 0x7bd   : > { %18489 = vrcp.f32 %v3396_v57 }
 0x7be   : > { %5008 = vrot.lane.b32.xlu0 %v19835_v56, %s19119_s1  ;;  %v18484_v14 = vpop.eup %18483 }
 0x7bf   : > { %5192 = vrot.lane.b32.xlu1 %v19718_v11, %s19118_s28  ;;  %v3437_v59 = vmul.f32 %v18484_v14, %v20387_v58 }
 0x7c0   : > { %v3402_v37 = vpop.xlane.xlu1 %3401 }
 0x7c1   : > { %18491 = vrcp.f32 %v3402_v37 }
 0x7c2   : > { %5194 = vrot.lane.b32.xlu0 %v19716_v7, %s19118_s28  ;;  %s19130_s28 = smov 72  }
 0x7c3   : > { %5190 = vrot.lane.b32.xlu1 %v19858_v62, %s19119_s1 }
 0x7c4   : > { %v3408_v21 = vpop.xlane.xlu1 %3407 }
 0x7c5   : > { %18493 = vrcp.f32 %v3408_v21 }
 0x7c6   : > { %v18486_v43 = vpop.eup %18485  ;;  %5099 = vrot.lane.b32.xlu0 %v19849_v2, %s19119_s1 }
 0x7c7   : > { %5457 = vrot.lane.b32.xlu1 %v19650_v31, %s19120_s19  ;;  %v3435_v47 = vmul.f32 %v18486_v43, %v20397_v54  ;;  %v18488_v30 = vpop.eup %18487 }
 0x7c8   : > { %v3441_v58 = vmul.f32 %v18488_v30, %v20392_v27 }
 0x7c9   : > { %17319 = vmatprep.mubr.msk.f32.mxu1 %vm1685_vm2, %v3435_v47 }
 0x7ca   : > { %v18490_v57 = vpop.eup %18489  ;;  %5188 = vrot.lane.b32.xlu0 %v19838_v32, %s19119_s1  ;;  %17320 = vmatmul.mubr.msk.f32.vlgmr.msra.gmra.mxu1 %vm1685_vm2, %v3437_v59  ;;  %s19131_s1 = smov 104  }
 0x7cb   : > { %17330 = vmatpush3.msra.mxu1 %v20254_v49  ;;  %5544 = vrot.lane.b32.xlu1 %v19663_v40, %s19120_s19  ;;  %v3439_v37 = vmul.f32 %v18490_v57, %v20401_v15 }
 0x7cc   : > { %17331 = vmatprep.subr.mxu1 %v20365_v9 }
 0x7cd   : > { %17332 = vmatpush3.msra.mxu1 %v20365_v9  ;;  %17326 = vmatprep.mubr.msk.f32.mxu0 %vm1685_vm2, %v3439_v37 }
 0x7ce   : > { %v18492_v54 = vpop.eup %18491  ;;  %17343 = vmatprep.subr.mxu1 %v20467_v28  ;;  %5455 = vrot.lane.b32.xlu0 %v19652_v16, %s19120_s19 }
 0x7cf   : > { %17327 = vmatmul.mubr.msk.f32.vlgmr.msra.gmra.mxu0 %vm1685_vm2, %v3441_v58  ;;  %5631 = vrot.lane.b32.xlu1 %v19671_v42, %s19120_s19  ;;  %v3443_v49 = vmul.f32 %v18492_v54, %v20405_v3 }
 0x7d0   : > { %17337 = vmatpush3.msra.mxu0 %v20421_v17 }
 0x7d1   : > { %17338 = vmatprep.subr.mxu0 %v20379_v35  ;;  %17333 = vmatprep.mubr.msk.f32.mxu1 %vm1685_vm2, %v3443_v49  ;;  %v936_v49 = vld [vmem:[#allocation8] sm:$0xff] }
 0x7d2   : > { %v18494_v9 = vpop.eup %18493  ;;  %17339 = vmatpush3.msra.mxu0 %v20379_v35  ;;  %5542 = vrot.lane.b32.xlu0 %v19667_v45, %s19120_s19  ;;  %v3414_v35 = vpop.xlane.xlu1 %3413 }
 0x7d3   : > { %17350 = vmatprep.subr.mxu0 %v20475_v36  ;;  %5629 = vrot.lane.b32.xlu1 %v19673_v50, %s19120_s19  ;;  %v3447_v27 = vmul.f32 %v18494_v9, %v20409_v12  ;;  %18495 = vrcp.f32 %v3414_v35 }
 0x7d5   : > { %17340 = vmatprep.mubr.msk.f32.mxu0 %vm1685_vm2, %v3447_v27  ;;  %v4159_v27 = vrot.slane %v936_v49, 4 }
 0x7d6   : > { %5718 = vrot.lane.b32.xlu0 %v19679_v53, %s19120_s19  ;;  %v3420_v3 = vpop.xlane.xlu1 %3419 }
 0x7d7   : > { %5716 = vrot.lane.b32.xlu1 %v19681_v13, %s19120_s19 }
 0x7da   : > { %5805 = vrot.lane.b32.xlu0 %v23443_v0, %s19120_s19 }
 0x7db   : > { %5803 = vrot.lane.b32.xlu1 %v19689_v60, %s19120_s19 }
 0x7e0   : > { %v18496_v14 = vpop.eup %18495 }
 0x7e1   : > { %v3451_v57 = vmul.f32 %v18496_v14, %v20413_v26 }
 0x7ed   : > { %v3405_v15 = vpop.xlane.xlu0 %3404 }
 0x7ee   : > { %18497 = vrcp.f32 %v3405_v15 }
 0x7ef   : > { %18499 = vrcp.f32 %v3420_v3 }
 0x7f1   : > { %v3411_v12 = vpop.xlane.xlu0 %3410 }
 0x7f2   : > { %18501 = vrcp.f32 %v3411_v12 }
 0x7f5   : > { %v3417_v17 = vpop.xlane.xlu0 %3416 }
 0x7f6   : > { %18503 = vrcp.f32 %v3417_v17 }
 0x7f9   : > { %v3423_v21 = vpop.xlane.xlu0 %3422 }
 0x7fa   : > { %18505 = vrcp.f32 %v3423_v21 }
 0x7fb   : > { %v18498_v43 = vpop.eup %18497  ;;  %v3426_v47 = vpop.xlane.xlu1 %3425 }
 0x7fc   : > { %18507 = vrcp.f32 %v3426_v47  ;;  %v3445_v59 = vmul.f32 %v18498_v43, %v20431_v24  ;;  %v18500_v37 = vpop.eup %18499  ;;  %v23451_v47 = vld [vmem:[#allocation45_spill] sm:$0xff] }
 0x7fd   : > { %v3429_v30 = vpop.xlane.xlu0 %3428  ;;  %v3455_v26 = vmul.f32 %v18500_v37, %v20417_v29 }
 0x7fe   : > { %18509 = vrcp.f32 %v3429_v30  ;;  %17334 = vmatmul.mubr.msk.f32.vlgmr.msra.gmra.mxu1 %vm1685_vm2, %v3445_v59  ;;  %v23452_v59 = vld [vmem:[#allocation51_spill] sm:$0xff]  ;;  %v23453_v30 = vld [vmem:[#allocation41_spill] sm:$0xff] }
 0x7ff   : > { %v18502_v58 = vpop.eup %18501  ;;  %17344 = vmatpush3.msra.mxu1 %v20467_v28  ;;  %v4072_v54 = vpop.permute.xlu1 %4071  ;;  %17347 = vmatprep.mubr.msk.f32.mxu1 %vm1685_vm2, %v3451_v57  ;;  %v23454_v57 = vld [vmem:[#allocation48_spill] sm:$0xff] }
 0x800   : > { %17345 = vmatprep.subr.mxu1 %v20426_v46  ;;  %v3449_v9 = vmul.f32 %v18502_v58, %v20435_v25  ;;  %v23455_v58 = vld [vmem:[#allocation50_spill] sm:$0xff] }
 0x801   : > { %17346 = vmatpush3.msra.mxu1 %v20426_v46  ;;  %v4074_v24 = vpop.permute.xlu0 %4073 }
 0x802   : > { %17341 = vmatmul.mubr.msk.f32.vlgmr.msra.gmra.mxu0 %vm1685_vm2, %v3449_v9  ;;  %17357 = vmatprep.subr.mxu1 %v4074_v24 }
 0x803   : > { %v18504_v35 = vpop.eup %18503  ;;  %17351 = vmatpush3.msra.mxu0 %v20475_v36  ;;  %v20588_v28 = vpop.permute.xlu1 %4555  ;;  %17354 = vmatprep.mubr.msk.f32.mxu0 %vm1685_vm2, %v3455_v26 }
 0x804   : > { %17352 = vmatprep.subr.mxu0 %v20465_v5  ;;  %v3453_v25 = vmul.f32 %v18504_v35, %v20439_v39 }
 0x805   : > { %17353 = vmatpush3.msra.mxu0 %v20465_v5  ;;  %v20594_v46 = vpop.permute.xlu0 %4557 }
 0x806   : > { %17348 = vmatmul.mubr.msk.f32.vlgmr.msra.gmra.mxu1 %vm1685_vm2, %v3453_v25  ;;  %17364 = vmatprep.subr.msk.mxu0 %vm4208_vm3, %v4159_v27  ;;  %v23459_v25 = vld [vmem:[#allocation46_spill] sm:$0xff] }
 0x807   : > { %v18506_v29 = vpop.eup %18505  ;;  %17358 = vmatpush3.msra.mxu1 %v4074_v24  ;;  %v20598_v36 = vpop.permute.xlu1 %4551  ;;  %v23457_v24 = vld [vmem:[#allocation43_spill] sm:$0xff] }
 0x808   : > { %17359 = vmatprep.subr.mxu1 %v4072_v54  ;;  %v3457_v15 = vmul.f32 %v18506_v29, %v20443_v55 }
 0x809   : > { %v18508_v3 = vpop.eup %18507  ;;  %17360 = vmatpush3.msra.mxu1 %v4072_v54  ;;  %v4649_v12 = vpop.permute.xlu0 %4648 }
 0x80a   : > { %17355 = vmatmul.mubr.msk.f32.vlgmr.msra.gmra.mxu0 %vm1685_vm2, %v3457_v15  ;;  %v3459_v39 = vmul.f32 %v18508_v3, %v20447_v33  ;;  %17390 = vmatprep.subr.msk.mxu1 %vm4208_vm3, %v936_v49  ;;  %v23460_v15 = vld [vmem:[#allocation47_spill] sm:$0xff] }
 0x80b   : > { %v18510_v5 = vpop.eup %18509  ;;  %17365 = vmatpush3.msk.msra.mxu0 %vm4208_vm3, %v4159_v27  ;;  %v4647_v17 = vpop.permute.xlu1 %4646  ;;  %v23458_v27 = vld [vmem:[#allocation49_spill] sm:$0xff] }
 0x80c   : > { %17416 = vmatprep.subr.msk.mxu0 %vm962_vm1, %v20594_v46  ;;  %17361 = vmatprep.mubr.msk.f32.mxu1 %vm1685_vm2, %v3459_v39  ;;  %v3461_v55 = vmul.f32 %v18510_v5, %v20451_v19  ;;  %v23462_v5 = vld [vmem:[#allocation53_spill] sm:$0xff] }
 0x80d   : > { %v20609_v21 = vpop.permute.xlu0 %4553 }
 0x80e   : > { %17362 = vmatmul.mubr.msk.f32.vlgmr.msra.gmra.mxu1 %vm1685_vm2, %v3461_v55  ;;  %v23463_v55 = vld [vmem:[#allocation52_spill] sm:$0xff] }
 0x80f   : > { %17391 = vmatpush3.msk.msra.mxu1 %vm4208_vm3, %v936_v49  ;;  %v4643_v33 = vpop.permute.xlu1 %4642  ;;  %17392 = vmatprep.mubr.msk.f32.mxu1 %vm962_vm1, %v20259_v23  ;;  %v23456_v49 = vld [vmem:[#allocation44_spill] sm:$0xff] }
 0x810   : > { %17423 = vmatprep.subr.msk.mxu1 %vm962_vm1, %v4649_v12 }
 0x811   : > { %v20616_v14 = vpop.permute.xlu0 %4739 }
 0x812   : > { %17393 = vmatmul.mubr.msk.f32.vlgmr.msra.gmra.mxu1 %vm962_vm1, %v20257_v63 }
 0x813   : > { %17424 = vmatpush3.xpose.msk.msra.mxu1 %vm962_vm1, %v4649_v12  ;;  %v20621_v19 = vpop.permute.xlu1 %4737  ;;  %17395 = vmatprep.mubr.msk.f32.mxu1 %vm962_vm1, %v20285_v20  ;;  %v23461_v12 = vld [vmem:[#allocation42_spill] sm:$0xff] }
 0x814   : > { %17425 = vmatprep.subr.msk.mxu1 %vm962_vm1, %v4647_v17 }
 0x815   : > { %v4645_v43 = vpop.permute.xlu0 %4644 }
 0x816   : > { %17396 = vmatmul.mubr.msk.f32.gmra.mxu1 %vm962_vm1, %v23451_v47 }
 0x817   : > { %17426 = vmatpush3.xpose.msk.msra.mxu1 %vm962_vm1, %v4647_v17  ;;  %v20629_v23 = vpop.permute.xlu1 %4733  ;;  %17398 = vmatprep.mubr.msk.f32.mxu1 %vm962_vm1, %v23452_v59 }
 0x819   : > { %v4831_v63 = vpop.permute.xlu0 %4830 }
 0x81a   : > { %17399 = vmatmul.mubr.msk.f32.gmra.mxu1 %vm962_vm1, %v23453_v30  ;;  %17437 = vmatprep.subr.msk.mxu1 %vm962_vm1, %v4831_v63 }
 0x81b   : > { %v4829_v20 = vpop.permute.xlu1 %4828  ;;  %17401 = vmatprep.mubr.msk.f32.mxu1 %vm962_vm1, %v23454_v57 }
 0x81d   : > { %v20638_v37 = vpop.permute.xlu0 %4735 }
 0x81e   : > { %17402 = vmatmul.mubr.msk.f32.gmra.mxu1 %vm962_vm1, %v23455_v58 }
 0x81f   : > { %v4825_v54 = vpop.permute.xlu1 %4824  ;;  %17404 = vmatprep.mubr.msk.f32.mxu1 %vm962_vm1, %v23456_v49 }
 0x821   : > { %v20644_v9 = vpop.permute.xlu0 %4921 }
 0x822   : > { %17405 = vmatmul.mubr.msk.f32.gmra.mxu1 %vm962_vm1, %v23457_v24 }
 0x823   : > { %v20648_v26 = vpop.permute.xlu1 %4919  ;;  %17407 = vmatprep.mubr.msk.f32.mxu1 %vm962_vm1, %v23458_v27 }
 0x825   : > { %v4827_v35 = vpop.permute.xlu0 %4826 }
 0x826   : > { %17408 = vmatmul.mubr.msk.f32.gmra.mxu1 %vm962_vm1, %v23459_v25 }
 0x827   : > { %v20654_v29 = vpop.permute.xlu1 %4915  ;;  %17410 = vmatprep.mubr.msk.f32.mxu1 %vm962_vm1, %v23460_v15 }
 0x829   : > { %v5013_v3 = vpop.permute.xlu0 %5012 }
 0x82a   : > { %17411 = vmatmul.mubr.msk.f32.gmra.mxu1 %vm962_vm1, %v23461_v12 }
 0x82b   : > { %v5011_v39 = vpop.permute.xlu1 %5010  ;;  %17413 = vmatprep.mubr.msk.f32.mxu1 %vm962_vm1, %v23462_v5 }
 0x82d   : > { %v20662_v17 = vpop.permute.xlu0 %4917 }
 0x82e   : > { %17414 = vmatmul.mubr.msk.f32.gmra.mxu1 %vm962_vm1, %v23463_v55 }
 0x82f   : > { %v5007_v47 = vpop.permute.xlu1 %5006  ;;  %17427 = vmatprep.mubr.msk.f32.mxu1 %vm962_vm1, %v4643_v33 }
 0x831   : > { %v20667_v59 = vpop.permute.xlu0 %5103 }
 0x832   : > { %17428 = vmatmul.mubr.msk.f32.vlgmr.msra.gmra.mxu1 %vm962_vm1, %v4645_v43 }
 0x833   : > { %17438 = vmatpush3.xpose.msk.msra.mxu1 %vm962_vm1, %v4831_v63  ;;  %v20671_v30 = vpop.permute.xlu1 %5101  ;;  %17441 = vmatprep.mubr.msk.f32.mxu1 %vm962_vm1, %v4825_v54 }
 0x834   : > { %17439 = vmatprep.subr.msk.mxu1 %vm962_vm1, %v4829_v20 }
 0x835   : > { %v5009_v57 = vpop.permute.xlu0 %5008 }
 0x837   : > { %17440 = vmatpush3.xpose.msk.msra.mxu1 %vm962_vm1, %v4829_v20  ;;  %v20676_v58 = vpop.permute.xlu1 %5097 }
 0x838   : > { %17451 = vmatprep.subr.msk.mxu1 %vm962_vm1, %v5013_v3 }
 0x839   : > { %v5195_v33 = vpop.permute.xlu0 %5194 }
 0x83a   : > { %17442 = vmatmul.mubr.msk.f32.vlgmr.msra.gmra.mxu1 %vm962_vm1, %v4827_v35 }
 0x83b   : > { %17452 = vmatpush3.xpose.msk.msra.mxu1 %vm962_vm1, %v5013_v3  ;;  %17455 = vmatprep.mubr.msk.f32.mxu1 %vm962_vm1, %v5007_v47  ;;  %v5193_v43 = vpop.permute.xlu1 %5192 }
 0x83c   : > { %17453 = vmatprep.subr.msk.mxu1 %vm962_vm1, %v5011_v39 }
 0x83d   : > { %v20683_v63 = vpop.permute.xlu0 %5099 }
 0x83f   : > { %17454 = vmatpush3.xpose.msk.msra.mxu1 %vm962_vm1, %v5011_v39  ;;  %v5191_v54 = vpop.permute.xlu1 %5190 }
 0x840   : > { %17465 = vmatprep.subr.msk.mxu1 %vm962_vm1, %v5195_v33 }
 0x841   : > { %v5189_v20 = vpop.permute.xlu0 %5188 }
 0x842   : > { %17456 = vmatmul.mubr.msk.f32.vlgmr.msra.gmra.mxu1 %vm962_vm1, %v5009_v57 }
 0x843   : > { %17466 = vmatpush3.xpose.msk.msra.mxu1 %vm962_vm1, %v5195_v33  ;;  %17469 = vmatprep.mubr.msk.f32.mxu1 %vm962_vm1, %v5189_v20  ;;  %v20690_v49 = vpop.permute.xlu1 %5457 }
 0x844   : > { %17467 = vmatprep.subr.msk.mxu1 %vm962_vm1, %v5193_v43 }
 0x845   : > { %v20693_v24 = vpop.permute.xlu0 %5455 }
 0x847   : > { %17468 = vmatpush3.xpose.msk.msra.mxu1 %vm962_vm1, %v5193_v43  ;;  %v5545_v27 = vpop.permute.xlu1 %5544 }
 0x848   : > { %17479 = vmatprep.subr.mxu1 %v5545_v27 }
 0x849   : > { %v5543_v35 = vpop.permute.xlu0 %5542 }
 0x84a   : > { %17470 = vmatmul.mubr.msk.f32.vlgmr.msra.gmra.mxu1 %vm962_vm1, %v5191_v54 }
 0x84b   : > { %17480 = vmatpush3.msra.mxu1 %v5545_v27 }
 0x84c   : > { %17481 = vmatprep.subr.mxu1 %v5543_v35 }
 0x84d   : > { %17482 = vmatpush3.msra.mxu1 %v5543_v35  ;;  %v20697_v25 = vpop.permute.xlu0 %5718 }
 0x84e   : > { %17493 = vmatprep.subr.mxu1 %v20697_v25 }
 0x86a   : > { %v17314_v15 = vpop.f32.mrf.mxu0 }
 0x86c   : > { %v3540_v3 = vpop.f32.mrf.mxu0 }
 0x86d   : > { %17366 = vmatprep.mubr.msk.f32.mxu0 %vm962_vm1, %v3540_v3 }
 0x86e   : > { %17367 = vmatmul.mubr.msk.f32.vlgmr.msra.gmra.mxu0 %vm962_vm1, %v17314_v15 }
 0x86f   : > { %17417 = vmatpush3.xpose.msk.msra.mxu0 %vm962_vm1, %v20594_v46 }
 0x870   : > { %17418 = vmatprep.subr.msk.mxu0 %vm962_vm1, %v20588_v28 }
 0x873   : > { %17419 = vmatpush3.xpose.msk.msra.mxu0 %vm962_vm1, %v20588_v28 }
 0x874   : > { %17430 = vmatprep.subr.msk.mxu0 %vm962_vm1, %v20616_v14 }
 0x88a   : > { %v17321_v12 = vpop.f32.mrf.mxu1 }
 0x88c   : > { %v3627_v39 = vpop.f32.mrf.mxu1 }
 0x88d   : > { %17369 = vmatprep.mubr.msk.f32.mxu0 %vm962_vm1, %v3627_v39 }
 0x88e   : > { %17370 = vmatmul.mubr.msk.f32.gmra.mxu0 %vm962_vm1, %v17321_v12 }
 0x88f   : > { %v17328_v5 = vpop.f32.mrf.mxu0 }
 0x891   : > { %v3714_v55 = vpop.f32.mrf.mxu0 }
 0x892   : > { %17372 = vmatprep.mubr.msk.f32.mxu0 %vm962_vm1, %v3714_v55 }
 0x893   : > { %17373 = vmatmul.mubr.msk.f32.gmra.mxu0 %vm962_vm1, %v17328_v5 }
 0x8be   : > { %v17335_v46 = vpop.f32.mrf.mxu1 }
 0x8c0   : > { %v3801_v47 = vpop.f32.mrf.mxu1 }
 0x8c1   : > { %17375 = vmatprep.mubr.msk.f32.mxu0 %vm962_vm1, %v3801_v47 }
 0x8c2   : > { %v17342_v28 = vpop.f32.mrf.mxu0  ;;  %17376 = vmatmul.mubr.msk.f32.gmra.mxu0 %vm962_vm1, %v17335_v46 }
 0x8c4   : > { %v3888_v57 = vpop.f32.mrf.mxu0 }
 0x8c5   : > { %17378 = vmatprep.mubr.msk.f32.mxu0 %vm962_vm1, %v3888_v57 }
 0x8c6   : > { %v17349_v33 = vpop.f32.mrf.mxu1  ;;  %17379 = vmatmul.mubr.msk.f32.gmra.mxu0 %vm962_vm1, %v17342_v28 }
 0x8c8   : > { %v3975_v43 = vpop.f32.mrf.mxu1 }
 0x8c9   : > { %17381 = vmatprep.mubr.msk.f32.mxu0 %vm962_vm1, %v3975_v43 }
 0x8ca   : > { %v17356_v54 = vpop.f32.mrf.mxu0  ;;  %17382 = vmatmul.mubr.msk.f32.gmra.mxu0 %vm962_vm1, %v17349_v33 }
 0x8cc   : > { %v4062_v20 = vpop.f32.mrf.mxu0 }
 0x8cd   : > { %17384 = vmatprep.mubr.msk.f32.mxu0 %vm962_vm1, %v4062_v20 }
 0x8ce   : > { %v17363_v27 = vpop.f32.mrf.mxu1  ;;  %17385 = vmatmul.mubr.msk.f32.gmra.mxu0 %vm962_vm1, %v17356_v54 }
 0x8d0   : > { %v4149_v35 = vpop.f32.mrf.mxu1 }
 0x8d1   : > { %17387 = vmatprep.mubr.msk.f32.mxu0 %vm962_vm1, %v4149_v35 }
 0x8d2   : > { %17388 = vmatmul.mubr.msk.f32.gmra.mxu0 %vm962_vm1, %v17363_v27  ;;  %v20724_v15 = vpop.f32.mrf.mxu1 }
 0x8d3   : > { %23464 = vst [vmem:[#allocation33_spill] sm:$0xff] %v20724_v15  ;;  %17420 = vmatprep.mubr.msk.f32.mxu0 %vm962_vm1, %v20598_v36 }
 0x8d4   : > { %v20728_v3 = vpop.f32.mrf.mxu1 }
 0x8d5   : > { %23465 = vst [vmem:[#allocation32_spill] sm:$0xff] %v20728_v3 }
 0x8d6   : > { %v20730_v12 = vpop.f32.mrf.mxu1  ;;  %17421 = vmatmul.mubr.msk.f32.vlgmr.msra.gmra.mxu0 %vm962_vm1, %v20609_v21 }
 0x8d7   : > { %23466 = vst [vmem:[#allocation36_spill] sm:$0xff] %v20730_v12  ;;  %17431 = vmatpush3.xpose.msk.msra.mxu0 %vm962_vm1, %v20616_v14  ;;  %17434 = vmatprep.mubr.msk.f32.mxu0 %vm962_vm1, %v20629_v23 }
 0x8d8   : > { %17432 = vmatprep.subr.msk.mxu0 %vm962_vm1, %v20621_v19  ;;  %v20740_v39 = vpop.f32.mrf.mxu1 }
 0x8d9   : > { %23467 = vst [vmem:[#allocation34_spill] sm:$0xff] %v20740_v39 }
 0x8da   : > { %v20742_v5 = vpop.f32.mrf.mxu1 }
 0x8db   : > { %23468 = vst [vmem:[#allocation35_spill] sm:$0xff] %v20742_v5  ;;  %17433 = vmatpush3.xpose.msk.msra.mxu0 %vm962_vm1, %v20621_v19 }
 0x8dc   : > { %17444 = vmatprep.subr.msk.mxu0 %vm962_vm1, %v20644_v9  ;;  %v20748_v36 = vpop.f32.mrf.mxu1 }
 0x8dd   : > { %23469 = vst [vmem:[#allocation39_spill] sm:$0xff] %v20748_v36 }
 0x8de   : > { %17435 = vmatmul.mubr.msk.f32.vlgmr.msra.gmra.mxu0 %vm962_vm1, %v20638_v37  ;;  %v20752_v21 = vpop.f32.mrf.mxu1 }
 0x8df   : > { %23470 = vst [vmem:[#allocation38_spill] sm:$0xff] %v20752_v21  ;;  %17445 = vmatpush3.xpose.msk.msra.mxu0 %vm962_vm1, %v20644_v9  ;;  %17448 = vmatprep.mubr.msk.f32.mxu0 %vm962_vm1, %v20654_v29 }
 0x8e0   : > { %17446 = vmatprep.subr.msk.mxu0 %vm962_vm1, %v20648_v26  ;;  %v20760_v14 = vpop.f32.mrf.mxu1 }
 0x8e1   : > { %23471 = vst [vmem:[#allocation45_spill] sm:$0xff] %v20760_v14 }
 0x8e2   : > { %v20762_v19 = vpop.f32.mrf.mxu1 }
 0x8e3   : > { %23472 = vst [vmem:[#allocation51_spill] sm:$0xff] %v20762_v19  ;;  %17447 = vmatpush3.xpose.msk.msra.mxu0 %vm962_vm1, %v20648_v26 }
 0x8e4   : > { %17458 = vmatprep.subr.msk.mxu0 %vm962_vm1, %v20667_v59  ;;  %v20768_v23 = vpop.f32.mrf.mxu1 }
 0x8e5   : > { %23473 = vst [vmem:[#allocation41_spill] sm:$0xff] %v20768_v23 }
 0x8e6   : > { %17449 = vmatmul.mubr.msk.f32.vlgmr.msra.gmra.mxu0 %vm962_vm1, %v20662_v17  ;;  %v20772_v37 = vpop.f32.mrf.mxu1 }
 0x8e7   : > { %23474 = vst [vmem:[#allocation48_spill] sm:$0xff] %v20772_v37  ;;  %17459 = vmatpush3.xpose.msk.msra.mxu0 %vm962_vm1, %v20667_v59  ;;  %17462 = vmatprep.mubr.msk.f32.mxu0 %vm962_vm1, %v20676_v58  ;;  %v20797_v58 = vpop.permute.xlu1 %5631 }
 0x8e8   : > { %17460 = vmatprep.subr.msk.mxu0 %vm962_vm1, %v20671_v30  ;;  %v20780_v9 = vpop.f32.mrf.mxu1  ;;  %23480 = vst [vmem:[#allocation47_spill] sm:$0xff] %v20797_v58 }
 0x8e9   : > { %23475 = vst [vmem:[#allocation50_spill] sm:$0xff] %v20780_v9 }
 0x8ea   : > { %v20782_v26 = vpop.f32.mrf.mxu1 }
 0x8eb   : > { %23476 = vst [vmem:[#allocation44_spill] sm:$0xff] %v20782_v26  ;;  %17461 = vmatpush3.xpose.msk.msra.mxu0 %vm962_vm1, %v20671_v30 }
 0x8ec   : > { %17472 = vmatprep.subr.mxu0 %v20690_v49  ;;  %v20787_v29 = vpop.f32.mrf.mxu1 }
 0x8ed   : > { %23477 = vst [vmem:[#allocation43_spill] sm:$0xff] %v20787_v29 }
 0x8ee   : > { %17463 = vmatmul.mubr.msk.f32.vlgmr.msra.gmra.mxu0 %vm962_vm1, %v20683_v63  ;;  %v20791_v17 = vpop.f32.mrf.mxu1 }
 0x8ef   : > { %23478 = vst [vmem:[#allocation49_spill] sm:$0xff] %v20791_v17  ;;  %17473 = vmatpush3.msra.mxu0 %v20690_v49 }
 0x8f0   : > { %17474 = vmatprep.subr.mxu0 %v20693_v24  ;;  %v20795_v59 = vpop.f32.mrf.mxu1 }
 0x8f1   : > { %23479 = vst [vmem:[#allocation46_spill] sm:$0xff] %v20795_v59  ;;  %17475 = vmatpush3.msra.mxu0 %v20693_v24 }
 0x8f2   : > { %17486 = vmatprep.subr.mxu0 %v20797_v58  ;;  %v17429_v30 = vpop.f32.mrf.mxu1 }
 0x8f3   : > { %v5288_v55 = vsel %vm1685_vm2, %v17429_v30, -inf }
 0x8f4   : > { %5289 = vmax.xlane.f32.xlu0 %v5288_v55  ;;  %v4724_v46 = vpop.f32.mrf.mxu1 }
 0x8f5   : > { %v5285_v63 = vsel %vm1685_vm2, %v4724_v46, -inf }
 0x8f8   : > { %5286 = vmax.xlane.f32.xlu0 %v5285_v63 }
 0x8fa   : > { %v17443_v47 = vpop.f32.mrf.mxu1 }
 0x8fb   : > { %v5300_v49 = vsel %vm1685_vm2, %v17443_v47, -inf }
 0x8fc   : > { %v4906_v28 = vpop.f32.mrf.mxu1  ;;  %5301 = vmax.xlane.f32.xlu0 %v5300_v49 }
 0x8fd   : > { %v5297_v57 = vsel %vm1685_vm2, %v4906_v28, -inf }
 0x8fe   : > { %5298 = vmax.xlane.f32.xlu1 %v5297_v57 }
 0x902   : > { %v17457_v33 = vpop.f32.mrf.mxu1 }
 0x903   : > { %v5312_v24 = vsel %vm1685_vm2, %v17457_v33, -inf }
 0x904   : > { %5313 = vmax.xlane.f32.xlu0 %v5312_v24  ;;  %v5088_v43 = vpop.f32.mrf.mxu1  ;;  %v20818_v24 = vpop.permute.xlu1 %5629 }
 0x905   : > { %v5309_v54 = vsel %vm1685_vm2, %v5088_v43, -inf  ;;  %23484 = vst [vmem:[#allocation54_spill] sm:$0xff] %v20818_v24 }
 0x906   : > { %5310 = vmax.xlane.f32.xlu1 %v5309_v54  ;;  %v20822_v54 = vpop.permute.xlu0 %5805 }
 0x907   : > { %23486 = vst [vmem:[#allocation56_spill] sm:$0xff] %v20822_v54 }
 0x90a   : > { %v17471_v20 = vpop.f32.mrf.mxu1 }
 0x90b   : > { %v5324_v27 = vsel %vm1685_vm2, %v17471_v20, -inf }
 0x90c   : > { %5325 = vmax.xlane.f32.xlu0 %v5324_v27  ;;  %v20808_v35 = vpop.f32.mrf.mxu1  ;;  %v20826_v27 = vpop.permute.xlu1 %5716 }
 0x90d   : > { %v5321_v55 = vsel %vm1685_vm2, %v20808_v35, -inf }
 0x90e   : > { %5322 = vmax.xlane.f32.xlu1 %v5321_v55 }
 0x92e   : > { %v20812_v63 = vpop.f32.mrf.mxu0 }
 0x92f   : > { %23481 = vst [vmem:[#allocation42_spill] sm:$0xff] %v20812_v63 }
 0x930   : > { %v20814_v49 = vpop.f32.mrf.mxu0 }
 0x931   : > { %23482 = vst [vmem:[#allocation53_spill] sm:$0xff] %v20814_v49  ;;  %v20832_v49 = vpop.permute.xlu1 %5803 }
 0x932   : > { %23490 = vst [vmem:[#allocation60_spill] sm:$0xff] %v20832_v49 }
 0x94e   : > { %v20816_v57 = vpop.f32.mrf.mxu0 }
 0x94f   : > { %23483 = vst [vmem:[#allocation52_spill] sm:$0xff] %v20816_v57 }
 0x950   : > { %v20820_v14 = vpop.f32.mrf.mxu0 }
 0x951   : > { %23485 = vst [vmem:[#allocation55_spill] sm:$0xff] %v20820_v14 }
 0x953   : > { %v20824_v59 = vpop.f32.mrf.mxu0 }
 0x954   : > { %23487 = vst [vmem:[#allocation57_spill] sm:$0xff] %v20824_v59 }
 0x955   : > { %v20828_v23 = vpop.f32.mrf.mxu0 }
 0x956   : > { %23488 = vst [vmem:[#allocation58_spill] sm:$0xff] %v20828_v23 }
 0x97d   : > { %v5290_v29 = vpop.xlane.xlu0 %5289 }
 0x97e   : > { %v5330_v9 = vsub.f32 %v17429_v30, %v5290_v29 }
 0x980   : > { %v5349_v55 = vmul.f32 1.442695, %v5330_v9 }
 0x981   : > { %v5287_v36 = vpop.xlane.xlu0 %5286 }
 0x982   : > { %18511 = vpow2.f32 %v5349_v55  ;;  %v5329_v39 = vsub.f32 %v4724_v46, %v5287_v36  ;;  %v20830_v3 = vpop.f32.mrf.mxu0 }
 0x983   : > { %23489 = vst [vmem:[#allocation59_spill] sm:$0xff] %v20830_v3 }
 0x984   : > { %v5347_v17 = vmul.f32 1.442695, %v5329_v39  ;;  %v20834_v14 = vpop.f32.mrf.mxu0 }
 0x985   : > { %23491 = vst [vmem:[#allocation61_spill] sm:$0xff] %v20834_v14  ;;  %v5302_v26 = vpop.xlane.xlu0 %5301 }
 0x986   : > { %18513 = vpow2.f32 %v5347_v17  ;;  %v5334_v37 = vsub.f32 %v17443_v47, %v5302_v26  ;;  %v20836_v19 = vpop.f32.mrf.mxu0 }
 0x987   : > { %23492 = vst [vmem:[#allocation62_spill] sm:$0xff] %v20836_v19  ;;  %v5299_v21 = vpop.xlane.xlu1 %5298 }
 0x988   : > { %v5357_v29 = vmul.f32 1.442695, %v5334_v37  ;;  %v5333_v30 = vsub.f32 %v4906_v28, %v5299_v21  ;;  %v20838_v23 = vpop.f32.mrf.mxu0 }
 0x989   : > { %23493 = vst [vmem:[#allocation63_spill] sm:$0xff] %v20838_v23 }
 0x98a   : > { %18515 = vpow2.f32 %v5357_v29  ;;  %v5355_v9 = vmul.f32 1.442695, %v5333_v30  ;;  %v20840_v36 = vpop.f32.mrf.mxu0 }
 0x98b   : > { %23494 = vst [vmem:[#allocation64_spill] sm:$0xff] %v20840_v36 }
 0x98c   : > { %18517 = vpow2.f32 %v5355_v9  ;;  %v20842_v46 = vpop.f32.mrf.mxu0 }
 0x98d   : > { %23495 = vst [vmem:[#allocation65_spill] sm:$0xff] %v20842_v46  ;;  %v5314_v39 = vpop.xlane.xlu0 %5313 }
 0x98e   : > { %v5338_v55 = vsub.f32 %v17457_v33, %v5314_v39  ;;  %v20844_v14 = vpop.f32.mrf.mxu0 }
 0x98f   : > { %23496 = vst [vmem:[#allocation66_spill] sm:$0xff] %v20844_v14  ;;  %v20846_v17 = vpop.eup %18511  ;;  %v5311_v26 = vpop.xlane.xlu1 %5310 }
 0x990   : > { %v5365_v47 = vmul.f32 1.442695, %v5338_v55  ;;  %v5337_v19 = vsub.f32 %v5088_v43, %v5311_v26  ;;  %v20848_v37 = vpop.f32.mrf.mxu0  ;;  %v5384_v21 = vsel %vm1685_vm2, %v20846_v17, 0.0 }
 0x991   : > { %23497 = vst [vmem:[#allocation67_spill] sm:$0xff] %v20848_v37  ;;  %5385 = vadd.xlane.f32.xlu0 %v5384_v21 }
 0x992   : > { %v5363_v28 = vmul.f32 1.442695, %v5337_v19  ;;  %v20852_v29 = vpop.f32.mrf.mxu0  ;;  %18519 = vpow2.f32 %v5365_v47 }
 0x993   : > { %23498 = vst [vmem:[#allocation68_spill] sm:$0xff] %v20852_v29  ;;  %v20854_v30 = vpop.eup %18513 }
 0x994   : > { %v20856_v33 = vpop.f32.mrf.mxu0  ;;  %v5381_v9 = vsel %vm1685_vm2, %v20854_v30, 0.0  ;;  %18521 = vpow2.f32 %v5363_v28 }
 0x995   : > { %23499 = vst [vmem:[#allocation69_spill] sm:$0xff] %v20856_v33  ;;  %v5326_v39 = vpop.xlane.xlu0 %5325  ;;  %5382 = vadd.xlane.f32.xlu1 %v5381_v9 }
 0x996   : > { %v5342_v43 = vsub.f32 %v17471_v20, %v5326_v39  ;;  %v17422_v55 = vpop.f32.mrf.mxu0 }
 0x997   : > { %v20860_v26 = vpop.eup %18515  ;;  %v5323_v37 = vpop.xlane.xlu1 %5322  ;;  %v5282_v19 = vsel %vm1685_vm2, %v17422_v55, -inf }
 0x998   : > { %v5373_v21 = vmul.f32 1.442695, %v5342_v43  ;;  %v5341_v46 = vsub.f32 %v20808_v35, %v5323_v37  ;;  %v5396_v47 = vsel %vm1685_vm2, %v20860_v26, 0.0  ;;  %v4633_v23 = vpop.f32.mrf.mxu0 }
 0x999   : > { %v20866_v33 = vpop.eup %18517  ;;  %5283 = vmax.xlane.f32.xlu1 %v5282_v19  ;;  %5397 = vadd.xlane.f32.xlu0 %v5396_v47  ;;  %v5279_v9 = vsel %vm1685_vm2, %v4633_v23, -inf }
 0x99a   : > { %v5371_v28 = vmul.f32 1.442695, %v5341_v46  ;;  %18523 = vpow2.f32 %v5373_v21  ;;  %v5393_v20 = vsel %vm1685_vm2, %v20866_v33, 0.0 }
 0x99c   : > { %18525 = vpow2.f32 %v5371_v28 }
 0x99d   : > { %5394 = vadd.xlane.f32.xlu1 %v5393_v20  ;;  %5280 = vmax.xlane.f32.xlu0 %v5279_v9 }
 0x99e   : > { %v17436_v39 = vpop.f32.mrf.mxu0 }
 0x99f   : > { %v5294_v37 = vsel %vm1685_vm2, %v17436_v39, -inf  ;;  %v20872_v43 = vpop.eup %18519 }
 0x9a0   : > { %v4815_v35 = vpop.f32.mrf.mxu0  ;;  %v5408_v46 = vsel %vm1685_vm2, %v20872_v43, 0.0 }
 0x9a1   : > { %v5291_v29 = vsel %vm1685_vm2, %v4815_v35, -inf  ;;  %5295 = vmax.xlane.f32.xlu0 %v5294_v37  ;;  %v20875_v19 = vpop.eup %18521 }
 0x9a2   : > { %5292 = vmax.xlane.f32.xlu1 %v5291_v29  ;;  %v5405_v21 = vsel %vm1685_vm2, %v20875_v19, 0.0 }
 0x9a5   : > { %5409 = vadd.xlane.f32.xlu0 %v5408_v46 }
 0x9a6   : > { %v20881_v47 = vpop.f32.mrf.mxu0  ;;  %5406 = vadd.xlane.f32.xlu1 %v5405_v21 }
 0x9a7   : > { %v5306_v20 = vsel %vm1685_vm2, %v20881_v47, -inf  ;;  %v20887_v9 = vpop.eup %18523 }
 0x9a8   : > { %v20883_v28 = vpop.f32.mrf.mxu0  ;;  %23500 = vst [vmem:[#allocation70_spill] sm:$0xff] %v20887_v9  ;;  %v5420_v46 = vsel %vm1685_vm2, %v20887_v9, 0.0 }
 0x9a9   : > { %v5303_v29 = vsel %vm1685_vm2, %v20883_v28, -inf  ;;  %5307 = vmax.xlane.f32.xlu0 %v5306_v20  ;;  %v20891_v37 = vpop.eup %18525 }
 0x9aa   : > { %5304 = vmax.xlane.f32.xlu1 %v5303_v29  ;;  %v5417_v21 = vsel %vm1685_vm2, %v20891_v37, 0.0 }
 0x9ad   : > { %5421 = vadd.xlane.f32.xlu0 %v5420_v46 }
 0x9ae   : > { %v20897_v14 = vpop.f32.mrf.mxu0  ;;  %5418 = vadd.xlane.f32.xlu1 %v5417_v21 }
 0x9af   : > { %v5318_v3 = vsel %vm1685_vm2, %v20897_v14, -inf }
 0x9b0   : > { %v20899_v36 = vpop.f32.mrf.mxu0 }
 0x9b1   : > { %v5315_v20 = vsel %vm1685_vm2, %v20899_v36, -inf  ;;  %5319 = vmax.xlane.f32.xlu0 %v5318_v3 }
 0x9b2   : > { %5316 = vmax.xlane.f32.xlu1 %v5315_v20 }
 0x9c3   : > { %5890 = vrot.lane.b32.xlu1 %v19702_v52, %s19120_s19 }
 0x9c7   : > { %5892 = vrot.lane.b32.xlu0 %v19700_v18, %s19120_s19 }
 0xa1a   : > { %v5386_v29 = vpop.xlane.xlu0 %5385 }
 0xa1b   : > { %18527 = vrcp.f32 %v5386_v29 }
 0xa1e   : > { %v5383_v46 = vpop.xlane.xlu1 %5382 }
 0xa1f   : > { %18529 = vrcp.f32 %v5383_v46 }
 0xa22   : > { %v5284_v21 = vpop.xlane.xlu1 %5283  ;;  %v5398_v5 = vpop.xlane.xlu0 %5397 }
 0xa23   : > { %v5328_v59 = vsub.f32 %v17422_v55, %v5284_v21  ;;  %18531 = vrcp.f32 %v5398_v5 }
 0xa25   : > { %v5345_v12 = vmul.f32 1.442695, %v5328_v59 }
 0xa26   : > { %v5395_v57 = vpop.xlane.xlu1 %5394  ;;  %v5281_v15 = vpop.xlane.xlu0 %5280 }
 0xa27   : > { %18533 = vpow2.f32 %v5345_v12  ;;  %v5327_v3 = vsub.f32 %v4633_v23, %v5281_v15 }
 0xa28   : > { %18535 = vrcp.f32 %v5395_v57  ;;  %v18528_v9 = vpop.eup %18527 }
 0xa29   : > { %v5343_v20 = vmul.f32 1.442695, %v5327_v3  ;;  %v5430_v5 = vmul.f32 %v18528_v9, %v20846_v17 }
 0xa2a   : > { %v5296_v63 = vpop.xlane.xlu0 %5295 }
 0xa2b   : > { %18537 = vpow2.f32 %v5343_v20  ;;  %v5293_v49 = vpop.xlane.xlu1 %5292  ;;  %v5332_v54 = vsub.f32 %v17436_v39, %v5296_v63 }
 0xa2c   : > { %v18530_v24 = vpop.eup %18529  ;;  %v5331_v29 = vsub.f32 %v4815_v35, %v5293_v49 }
 0xa2d   : > { %v5353_v58 = vmul.f32 1.442695, %v5332_v54  ;;  %v5428_v46 = vmul.f32 %v18530_v24, %v20854_v30 }
 0xa2e   : > { %v5351_v32 = vmul.f32 1.442695, %v5331_v29  ;;  %v5410_v55 = vpop.xlane.xlu0 %5409 }
 0xa2f   : > { %18539 = vpow2.f32 %v5353_v58  ;;  %v5407_v59 = vpop.xlane.xlu1 %5406  ;;  %17483 = vmatprep.mubr.msk.f32.mxu1 %vm1685_vm2, %v5428_v46 }
 0xa30   : > { %18541 = vpow2.f32 %v5351_v32  ;;  %17484 = vmatmul.mubr.msk.f32.vlgmr.msra.gmra.mxu1 %vm1685_vm2, %v5430_v5  ;;  %v18532_v12 = vpop.eup %18531 }
 0xa31   : > { %18543 = vrcp.f32 %v5407_v59  ;;  %17494 = vmatpush3.msra.mxu1 %v20697_v25  ;;  %v5438_v17 = vmul.f32 %v18532_v12, %v20860_v26 }
 0xa32   : > { %18545 = vrcp.f32 %v5410_v55  ;;  %17495 = vmatprep.subr.mxu1 %v20826_v27  ;;  %v5308_v15 = vpop.xlane.xlu0 %5307 }
 0xa33   : > { %v5305_v23 = vpop.xlane.xlu1 %5304  ;;  %17496 = vmatpush3.msra.mxu1 %v20826_v27  ;;  %v5336_v63 = vsub.f32 %v20881_v47, %v5308_v15 }
 0xa34   : > { %v20917_v58 = vpop.eup %18533 }
 0xa35   : > { %v18536_v49 = vpop.eup %18535  ;;  %v5361_v57 = vmul.f32 1.442695, %v5336_v63  ;;  %v5378_v32 = vsel %vm1685_vm2, %v20917_v58, 0.0 }
 0xa36   : > { %5379 = vadd.xlane.f32.xlu0 %v5378_v32  ;;  %v20921_v24 = vpop.xlane.xlu0 %5421  ;;  %v5436_v25 = vmul.f32 %v18536_v49, %v20866_v33 }
 0xa37   : > { %18547 = vpow2.f32 %v5361_v57  ;;  %v5419_v54 = vpop.xlane.xlu1 %5418 }
 0xa38   : > { %v20925_v30 = vpop.eup %18537  ;;  %17497 = vmatprep.mubr.msk.f32.mxu1 %vm1685_vm2, %v5436_v25  ;;  %18549 = vrcp.f32 %v5419_v54 }
 0xa39   : > { %17498 = vmatmul.mubr.msk.f32.vlgmr.msra.gmra.mxu1 %vm1685_vm2, %v5438_v17  ;;  %v5375_v27 = vsel %vm1685_vm2, %v20925_v30, 0.0 }
 0xa3a   : > { %5376 = vadd.xlane.f32.xlu1 %v5375_v27  ;;  %v5320_v39 = vpop.xlane.xlu0 %5319 }
 0xa3b   : > { %v5317_v35 = vpop.xlane.xlu1 %5316  ;;  %v5340_v49 = vsub.f32 %v20897_v14, %v5320_v39 }
 0xa3c   : > { %v20931_v47 = vpop.eup %18539  ;;  %v5339_v63 = vsub.f32 %v20899_v36, %v5317_v35 }
 0xa3d   : > { %v20933_v33 = vpop.eup %18541  ;;  %v5390_v26 = vsel %vm1685_vm2, %v20931_v47, 0.0  ;;  %v5369_v32 = vmul.f32 1.442695, %v5340_v49 }
 0xa3e   : > { %v18544_v9 = vpop.eup %18543  ;;  %v5387_v21 = vsel %vm1685_vm2, %v20933_v33, 0.0  ;;  %5391 = vadd.xlane.f32.xlu0 %v5390_v26  ;;  %v5893_v3 = vpop.permute.xlu0 %5892  ;;  %v5367_v57 = vmul.f32 1.442695, %v5339_v63 }
 0xa3f   : > { %v18546_v20 = vpop.eup %18545  ;;  %5388 = vadd.xlane.f32.xlu1 %v5387_v21  ;;  %17507 = vmatprep.subr.mxu1 %v5893_v3  ;;  %v5444_v29 = vmul.f32 %v18544_v9, %v20875_v19  ;;  %v5891_v46 = vpop.permute.xlu1 %5890  ;;  %v5335_v19 = vsub.f32 %v20883_v28, %v5305_v23  ;;  %v23501_v23 = vld [vmem:[#allocation37_spill] sm:$0xff]  ;;  %v23502_v21 = vld [vmem:[#allocation40_spill] sm:$0xff] }
 0xa40   : > { %17508 = vmatpush3.msra.mxu1 %v5893_v3  ;;  %v5446_v55 = vmul.f32 %v18546_v20, %v20872_v43 }
 0xa41   : > { %17511 = vmatprep.mubr.msk.f32.mxu1 %vm1685_vm2, %v5444_v29  ;;  %17509 = vmatprep.subr.mxu1 %v5891_v46  ;;  %v5359_v43 = vmul.f32 1.442695, %v5335_v19  ;;  %v23506_v19 = vld [vmem:[#allocation60_spill] sm:$0xff] }
 0xa42   : > { %17510 = vmatpush3.msra.mxu1 %v5891_v46 }
 0xa43   : > { %17512 = vmatmul.mubr.msk.f32.vlgmr.msra.gmra.mxu1 %vm1685_vm2, %v5446_v55  ;;  %18551 = vpow2.f32 %v5359_v43  ;;  %v23503_v55 = vld [vmem:[#allocation47_spill] sm:$0xff] }
 0xa44   : > { %v20943_v5 = vpop.eup %18547  ;;  %18553 = vpow2.f32 %v5367_v57 }
 0xa45   : > { %v5402_v59 = vsel %vm1685_vm2, %v20943_v5, 0.0  ;;  %v18550_v15 = vpop.eup %18549  ;;  %18555 = vpow2.f32 %v5369_v32 }
 0xa46   : > { %5403 = vadd.xlane.f32.xlu0 %v5402_v59  ;;  %v5452_v12 = vmul.f32 %v18550_v15, %v20891_v37 }
 0xa48   : > { %17525 = vmatprep.mubr.msk.f32.mxu1 %vm1685_vm2, %v5452_v12  ;;  %v23504_v12 = vld [vmem:[#allocation54_spill] sm:$0xff] }
 0xa50   : > { %5977 = vrot.lane.b32.xlu1 %v19710_v6, %s19120_s19  ;;  %v20956_v37 = vpop.eup %18551 }
 0xa51   : > { %v5399_v25 = vsel %vm1685_vm2, %v20956_v37, 0.0  ;;  %v20960_v54 = vpop.eup %18553 }
 0xa52   : > { %v20962_v28 = vpop.eup %18555  ;;  %v5411_v36 = vsel %vm1685_vm2, %v20960_v54, 0.0 }
 0xa53   : > { %v5414_v14 = vsel %vm1685_vm2, %v20962_v28, 0.0 }
 0xa5c   : > { %5979 = vrot.lane.b32.xlu0 %v19708_v4, %s19120_s19 }
 0xa74   : > { %5400 = vadd.xlane.f32.xlu1 %v5399_v25 }
 0xa78   : > { %5412 = vadd.xlane.f32.xlu1 %v5411_v36 }
 0xa7b   : > { %5415 = vadd.xlane.f32.xlu0 %v5414_v14 }
 0xa89   : > { %6064 = vrot.lane.b32.xlu1 %v19718_v11, %s19120_s19 }
 0xa8d   : > { %6367 = vrot.lane.b32.xlu1 %v19652_v16, %s19121_s21 }
 0xa91   : > { %6460 = vrot.lane.b32.xlu1 %v19663_v40, %s19121_s21  ;;  %6066 = vrot.lane.b32.xlu0 %v19716_v7, %s19120_s19  ;;  %s19132_s19 = smov 40  }
 0xa95   : > { %6458 = vrot.lane.b32.xlu1 %v19667_v45, %s19121_s21  ;;  %6369 = vrot.lane.b32.xlu0 %v19650_v31, %s19121_s21 }
 0xa99   : > { %6551 = vrot.lane.b32.xlu1 %v19671_v42, %s19121_s21  ;;  %6363 = vrot.lane.b32.xlu0 %v23444_v34, %s19122_s30 }
 0xa9d   : > { %6549 = vrot.lane.b32.xlu1 %v19673_v50, %s19121_s21  ;;  %6365 = vrot.lane.b32.xlu0 %v23446_v10, %s19122_s30 }
 0xaa1   : > { %6642 = vrot.lane.b32.xlu1 %v19679_v53, %s19121_s21  ;;  %6454 = vrot.lane.b32.xlu0 %v23445_v1, %s19122_s30 }
 0xaa5   : > { %6640 = vrot.lane.b32.xlu1 %v19681_v13, %s19121_s21  ;;  %6456 = vrot.lane.b32.xlu0 %v23448_v44, %s19122_s30 }
 0xaa9   : > { %6638 = vrot.lane.b32.xlu1 %v19807_v38, %s19122_s30  ;;  %6545 = vrot.lane.b32.xlu0 %v23501_v23, %s19122_s30 }
 0xaad   : > { %6731 = vrot.lane.b32.xlu1 %v19689_v60, %s19121_s21  ;;  %6547 = vrot.lane.b32.xlu0 %v23450_v22, %s19122_s30 }
 0xab1   : > { %6727 = vrot.lane.b32.xlu1 %v19696_v61, %s19122_s30  ;;  %6636 = vrot.lane.b32.xlu0 %v23449_v48, %s19122_s30 }
 0xab5   : > { %6822 = vrot.lane.b32.xlu1 %v19702_v52, %s19121_s21  ;;  %6733 = vrot.lane.b32.xlu0 %v23443_v0, %s19121_s21 }
 0xab9   : > { %6818 = vrot.lane.b32.xlu1 %v19810_v41, %s19122_s30  ;;  %6824 = vrot.lane.b32.xlu0 %v19700_v18, %s19121_s21 }
 0xabd   : > { %6913 = vrot.lane.b32.xlu1 %v19710_v6, %s19121_s21  ;;  %6729 = vrot.lane.b32.xlu0 %v19821_v8, %s19122_s30 }
 0xabf   : > { %v5380_v17 = vpop.xlane.xlu0 %5379 }
 0xac0   : > { %18557 = vrcp.f32 %v5380_v17 }
 0xac1   : > { %6909 = vrot.lane.b32.xlu1 %v19824_v51, %s19122_s30  ;;  %6915 = vrot.lane.b32.xlu0 %v19708_v4, %s19121_s21 }
 0xac3   : > { %v5377_v27 = vpop.xlane.xlu1 %5376 }
 0xac4   : > { %18559 = vrcp.f32 %v5377_v27  ;;  %v23507_v27 = vld [vmem:[#allocation70_spill] sm:$0xff] }
 0xac5   : > { %7004 = vrot.lane.b32.xlu1 %v19718_v11, %s19121_s21  ;;  %6820 = vrot.lane.b32.xlu0 %v19835_v56, %s19122_s30 }
 0xac7   : > { %v5392_v39 = vpop.xlane.xlu0 %5391 }
 0xac8   : > { %v5389_v35 = vpop.xlane.xlu1 %5388  ;;  %18561 = vrcp.f32 %v5392_v39 }
 0xac9   : > { %18563 = vrcp.f32 %v5389_v35  ;;  %7002 = vrot.lane.b32.xlu1 %v19858_v62, %s19122_s30  ;;  %7006 = vrot.lane.b32.xlu0 %v19716_v7, %s19121_s21  ;;  %s19133_s21 = smov 68  }
 0xaca   : > { %18565 = vrcp.f32 %v20921_v24 }
 0xacd   : > { %7269 = vrot.lane.b32.xlu1 %v19650_v31, %s19123_s18  ;;  %6911 = vrot.lane.b32.xlu0 %v19849_v2, %s19122_s30  ;;  %v18558_v26 = vpop.eup %18557 }
 0xace   : > { %v5426_v20 = vmul.f32 %v18558_v26, %v20917_v58  ;;  %v23505_v58 = vld [vmem:[#allocation56_spill] sm:$0xff] }
 0xacf   : > { %v5404_v15 = vpop.xlane.xlu0 %5403 }
 0xad0   : > { %18567 = vrcp.f32 %v5404_v15 }
 0xad1   : > { %v18560_v9 = vpop.eup %18559  ;;  %7000 = vrot.lane.b32.xlu0 %v23502_v21, %s19122_s30  ;;  %s19134_s30 = smov 100  }
 0xad2   : > { %v5424_v3 = vmul.f32 %v18560_v9, %v20925_v30 }
 0xad3   : > { %v5980_v43 = vpop.permute.xlu0 %5979 }
 0xad4   : > { %17476 = vmatprep.mubr.msk.f32.mxu0 %vm1685_vm2, %v5424_v3 }
 0xad5   : > { %v18562_v29 = vpop.eup %18561  ;;  %7267 = vrot.lane.b32.xlu0 %v19652_v16, %s19123_s18  ;;  %17477 = vmatmul.mubr.msk.f32.vlgmr.msra.gmra.mxu0 %vm1685_vm2, %v5426_v20 }
 0xad6   : > { %v18564_v46 = vpop.eup %18563  ;;  %17487 = vmatpush3.msra.mxu0 %v23503_v55  ;;  %v5434_v59 = vmul.f32 %v18562_v29, %v20931_v47  ;;  %v5978_v47 = vpop.permute.xlu1 %5977  ;;  %v21066_v29 = vld [vmem:[#allocation8 + $0x8] sm:$0xff] }
 0xad7   : > { %17488 = vmatprep.subr.mxu0 %v23504_v12  ;;  %v5432_v30 = vmul.f32 %v18564_v46, %v20933_v33  ;;  %v18566_v32 = vpop.eup %18565 }
 0xad8   : > { %17489 = vmatpush3.msra.mxu0 %v23504_v12  ;;  %v5454_v39 = vmul.f32 %v18566_v32, %v23507_v27 }
 0xad9   : > { %17490 = vmatprep.mubr.msk.f32.mxu0 %vm1685_vm2, %v5432_v30  ;;  %17500 = vmatprep.subr.mxu0 %v23505_v58 }
 0xada   : > { %17491 = vmatmul.mubr.msk.f32.vlgmr.msra.gmra.mxu0 %vm1685_vm2, %v5434_v59 }
 0xadb   : > { %17501 = vmatpush3.msra.mxu0 %v23505_v58 }
 0xadc   : > { %17502 = vmatprep.subr.mxu0 %v23506_v19 }
 0xadd   : > { %17503 = vmatpush3.msra.mxu0 %v23506_v19  ;;  %v18568_v14 = vpop.eup %18567 }
 0xade   : > { %17514 = vmatprep.subr.mxu0 %v5980_v43  ;;  %v5442_v9 = vmul.f32 %v18568_v14, %v20943_v5 }
 0xafd   : > { %v5401_v33 = vpop.xlane.xlu1 %5400 }
 0xafe   : > { %18569 = vrcp.f32 %v5401_v33 }
 0xb01   : > { %v5413_v63 = vpop.xlane.xlu1 %5412 }
 0xb02   : > { %18571 = vrcp.f32 %v5413_v63 }
 0xb04   : > { %v5416_v49 = vpop.xlane.xlu0 %5415 }
 0xb05   : > { %v6065_v57 = vpop.permute.xlu1 %6064  ;;  %18573 = vrcp.f32 %v5416_v49 }
 0xb08   : > { %v6067_v25 = vpop.permute.xlu0 %6066 }
 0xb09   : > { %v6368_v36 = vpop.permute.xlu1 %6367  ;;  %17521 = vmatprep.subr.mxu1 %v6067_v25 }
 0xb0a   : > { %17522 = vmatpush3.msra.mxu1 %v6067_v25 }
 0xb0b   : > { %v18570_v17 = vpop.eup %18569  ;;  %17523 = vmatprep.subr.mxu1 %v6065_v57 }
 0xb0c   : > { %17524 = vmatpush3.msra.mxu1 %v6065_v57  ;;  %v6370_v24 = vpop.permute.xlu0 %6369  ;;  %v5440_v35 = vmul.f32 %v18570_v17, %v20956_v37 }
 0xb0d   : > { %v6461_v26 = vpop.permute.xlu1 %6460  ;;  %17526 = vmatmul.mubr.msk.f32.vlgmr.msra.gmra.mxu1 %vm1685_vm2, %v5454_v39  ;;  %17554 = vmatprep.subr.msk.mxu1 %vm962_vm1, %v6370_v24 }
 0xb0e   : > { %17504 = vmatprep.mubr.msk.f32.mxu0 %vm1685_vm2, %v5440_v35  ;;  %17555 = vmatpush3.xpose.msk.msra.mxu1 %vm962_vm1, %v6370_v24 }
 0xb0f   : > { %v18572_v3 = vpop.eup %18571  ;;  %17505 = vmatmul.mubr.msk.f32.vlgmr.msra.gmra.mxu0 %vm1685_vm2, %v5442_v9  ;;  %17556 = vmatprep.subr.msk.mxu1 %vm962_vm1, %v6368_v36 }
 0xb10   : > { %17515 = vmatpush3.msra.mxu0 %v5980_v43  ;;  %v6364_v20 = vpop.permute.xlu0 %6363  ;;  %v5448_v37 = vmul.f32 %v18572_v3, %v20960_v54 }
 0xb11   : > { %17516 = vmatprep.subr.mxu0 %v5978_v47  ;;  %v6459_v46 = vpop.permute.xlu1 %6458  ;;  %17558 = vmatprep.mubr.msk.f32.mxu1 %vm962_vm1, %v6364_v20 }
 0xb12   : > { %v18574_v5 = vpop.eup %18573  ;;  %17517 = vmatpush3.msra.mxu0 %v5978_v47  ;;  %17518 = vmatprep.mubr.msk.f32.mxu0 %vm1685_vm2, %v5448_v37  ;;  %v17485_v37 = vpop.f32.mrf.mxu1 }
 0xb13   : > { %17557 = vmatpush3.xpose.msk.msra.mxu1 %vm962_vm1, %v6368_v36  ;;  %v5450_v55 = vmul.f32 %v18574_v5, %v20962_v28  ;;  %17528 = vmatprep.subr.msk.mxu0 %vm4208_vm3, %v21066_v29 }
 0xb14   : > { %17561 = vmatprep.subr.msk.mxu1 %vm962_vm1, %v6461_v26  ;;  %v6366_v54 = vpop.permute.xlu0 %6365 }
 0xb15   : > { %v6552_v59 = vpop.permute.xlu1 %6551  ;;  %17519 = vmatmul.mubr.msk.f32.vlgmr.msra.gmra.mxu0 %vm1685_vm2, %v5450_v55  ;;  %v5620_v55 = vpop.f32.mrf.mxu1 }
 0xb16   : > { %17559 = vmatmul.mubr.msk.f32.vlgmr.msra.gmra.mxu1 %vm962_vm1, %v6366_v54  ;;  %17529 = vmatpush3.msk.msra.mxu0 %vm4208_vm3, %v21066_v29 }
 0xb17   : > { %17562 = vmatpush3.xpose.msk.msra.mxu1 %vm962_vm1, %v6461_v26 }
 0xb18   : > { %17563 = vmatprep.subr.msk.mxu1 %vm962_vm1, %v6459_v46  ;;  %v6455_v15 = vpop.permute.xlu0 %6454 }
 0xb19   : > { %v6550_v28 = vpop.permute.xlu1 %6549  ;;  %17565 = vmatprep.mubr.msk.f32.mxu1 %vm962_vm1, %v6455_v15 }
 0xb1b   : > { %17564 = vmatpush3.xpose.msk.msra.mxu1 %vm962_vm1, %v6459_v46 }
 0xb1c   : > { %17568 = vmatprep.subr.msk.mxu1 %vm962_vm1, %v6552_v59  ;;  %v6457_v12 = vpop.permute.xlu0 %6456 }
 0xb1d   : > { %v6643_v30 = vpop.permute.xlu1 %6642 }
 0xb1e   : > { %17566 = vmatmul.mubr.msk.f32.vlgmr.msra.gmra.mxu1 %vm962_vm1, %v6457_v12 }
 0xb1f   : > { %17569 = vmatpush3.xpose.msk.msra.mxu1 %vm962_vm1, %v6552_v59  ;;  %v17499_v59 = vpop.f32.mrf.mxu1 }
 0xb20   : > { %17570 = vmatprep.subr.msk.mxu1 %vm962_vm1, %v6550_v28  ;;  %v6546_v58 = vpop.permute.xlu0 %6545 }
 0xb21   : > { %v6641_v19 = vpop.permute.xlu1 %6640  ;;  %17572 = vmatprep.mubr.msk.f32.mxu1 %vm962_vm1, %v6546_v58 }
 0xb23   : > { %17571 = vmatpush3.xpose.msk.msra.mxu1 %vm962_vm1, %v6550_v28  ;;  %v5794_v28 = vpop.f32.mrf.mxu1 }
 0xb24   : > { %17575 = vmatprep.subr.msk.mxu1 %vm962_vm1, %v6643_v30  ;;  %v6548_v43 = vpop.permute.xlu0 %6547 }
 0xb25   : > { %v6639_v47 = vpop.permute.xlu1 %6638  ;;  %v17513_v12 = vpop.f32.mrf.mxu1 }
 0xb26   : > { %17573 = vmatmul.mubr.msk.f32.vlgmr.msra.gmra.mxu1 %vm962_vm1, %v6548_v43 }
 0xb27   : > { %17576 = vmatpush3.xpose.msk.msra.mxu1 %vm962_vm1, %v6643_v30  ;;  %v5968_v30 = vpop.f32.mrf.mxu1 }
 0xb28   : > { %17577 = vmatprep.subr.msk.mxu1 %vm962_vm1, %v6641_v19  ;;  %v6637_v33 = vpop.permute.xlu0 %6636 }
 0xb29   : > { %v6732_v63 = vpop.permute.xlu1 %6731  ;;  %17579 = vmatprep.mubr.msk.f32.mxu1 %vm962_vm1, %v6637_v33 }
 0xb2b   : > { %17578 = vmatpush3.xpose.msk.msra.mxu1 %vm962_vm1, %v6641_v19 }
 0xb2c   : > { %v6734_v49 = vpop.permute.xlu0 %6733 }
 0xb2d   : > { %v21095_v57 = vpop.permute.xlu1 %6727  ;;  %17582 = vmatprep.subr.msk.mxu0 %vm962_vm1, %v6734_v49 }
 0xb2e   : > { %17580 = vmatmul.mubr.msk.f32.vlgmr.msra.gmra.mxu1 %vm962_vm1, %v6639_v47 }
 0xb30   : > { %v6825_v32 = vpop.permute.xlu0 %6824 }
 0xb31   : > { %v6823_v25 = vpop.permute.xlu1 %6822  ;;  %17589 = vmatprep.subr.msk.mxu1 %vm962_vm1, %v6825_v32 }
 0xb32   : > { %17590 = vmatpush3.xpose.msk.msra.mxu1 %vm962_vm1, %v6825_v32 }
 0xb33   : > { %17591 = vmatprep.subr.msk.mxu1 %vm962_vm1, %v6823_v25 }
 0xb34   : > { %v21102_v36 = vpop.permute.xlu0 %6729 }
 0xb35   : > { %v6819_v14 = vpop.permute.xlu1 %6818 }
 0xb36   : > { %17593 = vmatprep.mubr.msk.f32.mxu1 %vm962_vm1, %v6819_v14  ;;  %17592 = vmatpush3.xpose.msk.msra.mxu1 %vm962_vm1, %v6823_v25 }
 0xb38   : > { %v21106_v17 = vpop.permute.xlu0 %6915 }
 0xb39   : > { %v21108_v27 = vpop.permute.xlu1 %6913 }
 0xb3c   : > { %v6821_v39 = vpop.permute.xlu0 %6820 }
 0xb3d   : > { %v21110_v24 = vpop.permute.xlu1 %6909  ;;  %17594 = vmatmul.mubr.msk.f32.vlgmr.msra.gmra.mxu1 %vm962_vm1, %v6821_v39 }
 0xb40   : > { %v7007_v35 = vpop.permute.xlu0 %7006 }
 0xb41   : > { %17603 = vmatprep.subr.msk.mxu1 %vm962_vm1, %v7007_v35  ;;  %v7005_v26 = vpop.permute.xlu1 %7004 }
 0xb42   : > { %17604 = vmatpush3.xpose.msk.msra.mxu1 %vm962_vm1, %v7007_v35 }
 0xb43   : > { %17605 = vmatprep.subr.msk.mxu1 %vm962_vm1, %v7005_v26 }
 0xb44   : > { %v21116_v9 = vpop.permute.xlu0 %6911 }
 0xb45   : > { %v7003_v20 = vpop.permute.xlu1 %7002 }
 0xb46   : > { %17606 = vmatpush3.xpose.msk.msra.mxu1 %vm962_vm1, %v7005_v26 }
 0xb48   : > { %v7001_v3 = vpop.permute.xlu0 %7000 }
 0xb49   : > { %17607 = vmatprep.mubr.msk.f32.mxu1 %vm962_vm1, %v7001_v3 }
 0xb4a   : > { %17608 = vmatmul.mubr.msk.f32.vlgmr.msra.gmra.mxu1 %vm962_vm1, %v7003_v20 }
 0xb95   : > { %v17478_v46 = vpop.f32.mrf.mxu0 }
 0xb97   : > { %v5533_v5 = vpop.f32.mrf.mxu0 }
 0xb98   : > { %17530 = vmatprep.mubr.msk.f32.mxu0 %vm962_vm1, %v5533_v5 }
 0xb99   : > { %17531 = vmatmul.mubr.msk.f32.vlgmr.msra.gmra.mxu0 %vm962_vm1, %v17478_v46 }
 0xb9a   : > { %v17492_v54 = vpop.f32.mrf.mxu0  ;;  %17583 = vmatpush3.xpose.msk.msra.mxu0 %vm962_vm1, %v6734_v49  ;;  %17533 = vmatprep.mubr.msk.f32.mxu0 %vm962_vm1, %v5620_v55 }
 0xb9b   : > { %17584 = vmatprep.subr.msk.mxu0 %vm962_vm1, %v6732_v63 }
 0xb9c   : > { %v5707_v15 = vpop.f32.mrf.mxu0 }
 0xb9d   : > { %17534 = vmatmul.mubr.msk.f32.gmra.mxu0 %vm962_vm1, %v17485_v37  ;;  %v7270_v37 = vpop.permute.xlu1 %7269 }
 0xb9e   : > { %17585 = vmatpush3.xpose.msk.msra.mxu0 %vm962_vm1, %v6732_v63  ;;  %17536 = vmatprep.mubr.msk.f32.mxu0 %vm962_vm1, %v5707_v15 }
 0xb9f   : > { %17596 = vmatprep.subr.msk.mxu0 %vm962_vm1, %v21106_v17 }
 0xba1   : > { %17537 = vmatmul.mubr.msk.f32.gmra.mxu0 %vm962_vm1, %v17492_v54 }
 0xba2   : > { %17539 = vmatprep.mubr.msk.f32.mxu0 %vm962_vm1, %v5794_v28 }
 0xba5   : > { %17540 = vmatmul.mubr.msk.f32.gmra.mxu0 %vm962_vm1, %v17499_v59 }
 0xbcd   : > { %v17527_v19 = vpop.f32.mrf.mxu1 }
 0xbcf   : > { %v17506_v58 = vpop.f32.mrf.mxu0  ;;  %v6142_v47 = vpop.f32.mrf.mxu1 }
 0xbd1   : > { %v5881_v43 = vpop.f32.mrf.mxu0 }
 0xbd2   : > { %17542 = vmatprep.mubr.msk.f32.mxu0 %vm962_vm1, %v5881_v43  ;;  %v23509_v43 = vld [vmem:[#allocation33_spill] sm:$0xff] }
 0xbd3   : > { %17543 = vmatmul.mubr.msk.f32.gmra.mxu0 %vm962_vm1, %v17506_v58 }
 0xbd4   : > { %17545 = vmatprep.mubr.msk.f32.mxu0 %vm962_vm1, %v5968_v30 }
 0xbd5   : > { %v17520_v33 = vpop.f32.mrf.mxu0 }
 0xbd6   : > { %v21137_v63 = vpop.f32.mrf.mxu1 }
 0xbd7   : > { %17546 = vmatmul.mubr.msk.f32.gmra.mxu0 %vm962_vm1, %v17513_v12  ;;  %v6055_v49 = vpop.f32.mrf.mxu0  ;;  %v7094_v32 = vsel %vm1685_vm2, %v21137_v63, -inf }
 0xbd8   : > { %7095 = vmax.xlane.f32.xlu1 %v7094_v32  ;;  %v21142_v25 = vpop.f32.mrf.mxu1  ;;  %17548 = vmatprep.mubr.msk.f32.mxu0 %vm962_vm1, %v6055_v49 }
 0xbd9   : > { %v7091_v14 = vsel %vm1685_vm2, %v21142_v25, -inf }
 0xbda   : > { %7092 = vmax.xlane.f32.xlu0 %v7091_v14  ;;  %v23511_v14 = vld [vmem:[#allocation52_spill] sm:$0xff] }
 0xbdb   : > { %17549 = vmatmul.mubr.msk.f32.gmra.mxu0 %vm962_vm1, %v17520_v33 }
 0xbdc   : > { %17551 = vmatprep.mubr.msk.f32.mxu0 %vm962_vm1, %v6142_v47 }
 0xbde   : > { %v21149_v39 = vpop.f32.mrf.mxu1 }
 0xbdf   : > { %17552 = vmatmul.mubr.msk.f32.gmra.mxu0 %vm962_vm1, %v17527_v19  ;;  %v7100_v35 = vsel %vm1685_vm2, %v21149_v39, -inf  ;;  %v23508_v19 = vld [vmem:[#allocation42_spill] sm:$0xff] }
 0xbe0   : > { %17586 = vmatprep.mubr.msk.f32.mxu0 %vm962_vm1, %v21095_v57  ;;  %7101 = vmax.xlane.f32.xlu0 %v7100_v35  ;;  %v21156_v26 = vpop.f32.mrf.mxu1  ;;  %v4478_v47 = vadd.f32 %v23509_v43, %v23508_v19  ;;  %v23512_v35 = vld [vmem:[#allocation36_spill] sm:$0xff] }
 0xbe1   : > { %v7097_v3 = vsel %vm1685_vm2, %v21156_v26, -inf }
 0xbe3   : > { %17587 = vmatmul.mubr.msk.f32.vlgmr.msra.gmra.mxu0 %vm962_vm1, %v21102_v36 }
 0xbe4   : > { %17597 = vmatpush3.xpose.msk.msra.mxu0 %vm962_vm1, %v21106_v17  ;;  %7098 = vmax.xlane.f32.xlu0 %v7097_v3  ;;  %v4488_v3 = vadd.f32 %v23512_v35, %v23511_v14 }
 0xbe5   : > { %17598 = vmatprep.subr.msk.mxu0 %vm962_vm1, %v21108_v27  ;;  %17600 = vmatprep.mubr.msk.f32.mxu0 %vm962_vm1, %v21110_v24  ;;  %v7268_v24 = vpop.permute.xlu0 %7267 }
 0xbe6   : > { %v21168_v57 = vpop.f32.mrf.mxu1 }
 0xbe7   : > { %v7106_v20 = vsel %vm1685_vm2, %v21168_v57, -inf }
 0xbe8   : > { %17599 = vmatpush3.xpose.msk.msra.mxu0 %vm962_vm1, %v21108_v27  ;;  %7107 = vmax.xlane.f32.xlu0 %v7106_v20  ;;  %v21174_v36 = vpop.f32.mrf.mxu1 }
 0xbe9   : > { %17610 = vmatprep.subr.mxu0 %v7270_v37  ;;  %v7103_v17 = vsel %vm1685_vm2, %v21174_v36, -inf }
 0xbea   : > { %7104 = vmax.xlane.f32.xlu1 %v7103_v17 }
 0xbeb   : > { %17601 = vmatmul.mubr.msk.f32.vlgmr.msra.gmra.mxu0 %vm962_vm1, %v21116_v9 }
 0xbec   : > { %17611 = vmatpush3.msra.mxu0 %v7270_v37 }
 0xbed   : > { %17612 = vmatprep.subr.mxu0 %v7268_v24 }
 0xbee   : > { %17613 = vmatpush3.msra.mxu0 %v7268_v24  ;;  %v21180_v46 = vpop.f32.mrf.mxu1  ;;  %v23515_v24 = vld [vmem:[#allocation57_spill] sm:$0xff] }
 0xbef   : > { %v7112_v27 = vsel %vm1685_vm2, %v21180_v46, -inf }
 0xbf0   : > { %7113 = vmax.xlane.f32.xlu0 %v7112_v27  ;;  %v21184_v5 = vpop.f32.mrf.mxu1  ;;  %v23516_v27 = vld [vmem:[#allocation35_spill] sm:$0xff] }
 0xbf1   : > { %v7109_v55 = vsel %vm1685_vm2, %v21184_v5, -inf }
 0xbf2   : > { %7110 = vmax.xlane.f32.xlu1 %v7109_v55  ;;  %v4498_v55 = vadd.f32 %v23516_v27, %v23515_v24 }
 0xbfd   : > { %v21188_v54 = vpop.f32.mrf.mxu1 }
 0xbfe   : > { %v7124_v9 = vsel %vm1685_vm2, %v21188_v54, -inf }
 0xbff   : > { %7125 = vmax.xlane.f32.xlu0 %v7124_v9  ;;  %v21192_v59 = vpop.f32.mrf.mxu1 }
 0xc00   : > { %v7121_v15 = vsel %vm1685_vm2, %v21192_v59, -inf }
 0xc01   : > { %7122 = vmax.xlane.f32.xlu1 %v7121_v15 }
 0xc0a   : > { %v21196_v28 = vpop.f32.mrf.mxu1 }
 0xc0b   : > { %v7136_v12 = vsel %vm1685_vm2, %v21196_v28, -inf }
 0xc0c   : > { %7137 = vmax.xlane.f32.xlu0 %v7136_v12  ;;  %v21200_v30 = vpop.f32.mrf.mxu1 }
 0xc0d   : > { %v7133_v58 = vsel %vm1685_vm2, %v21200_v30, -inf }
 0xc0e   : > { %7134 = vmax.xlane.f32.xlu1 %v7133_v58 }
 0xc59   : > { %v17532_v33 = vpop.f32.mrf.mxu0 }
 0xc5a   : > { %v21206_v49 = vadd.f32 %v17532_v33, %v4478_v47  ;;  %v23519_v47 = vld [vmem:[#allocation59_spill] sm:$0xff]  ;;  %v23520_v33 = vld [vmem:[#allocation38_spill] sm:$0xff] }
 0xc5b   : > { %v21208_v32 = vpop.f32.mrf.mxu0  ;;  %v4508_v14 = vadd.f32 %v23520_v33, %v23519_v47 }
 0xc5c   : > { %23510 = vst [vmem:[#allocation37_spill] sm:$0xff] %v21208_v32 }
 0xc5d   : > { %v17535_v20 = vpop.f32.mrf.mxu0 }
 0xc5e   : > { %v21212_v37 = vadd.f32 %v17535_v20, %v4488_v3 }
 0xc5f   : > { %v21214_v17 = vpop.f32.mrf.mxu0 }
 0xc60   : > { %23513 = vst [vmem:[#allocation40_spill] sm:$0xff] %v21212_v37  ;;  %23514 = vst [vmem:[#allocation47_spill] sm:$0xff] %v21214_v17 }
 0xc61   : > { %v7096_v9 = vpop.xlane.xlu1 %7095  ;;  %v17538_v15 = vpop.f32.mrf.mxu0 }
 0xc62   : > { %v7140_v12 = vsub.f32 %v21137_v63, %v7096_v9  ;;  %v21219_v58 = vadd.f32 %v17538_v15, %v4498_v55 }
 0xc63   : > { %v7093_v19 = vpop.xlane.xlu0 %7092  ;;  %v21221_v43 = vpop.f32.mrf.mxu0 }
 0xc64   : > { %23517 = vst [vmem:[#allocation54_spill] sm:$0xff] %v21219_v58  ;;  %23518 = vst [vmem:[#allocation56_spill] sm:$0xff] %v21221_v43  ;;  %v7157_v35 = vmul.f32 1.442695, %v7140_v12  ;;  %v7139_v3 = vsub.f32 %v21142_v25, %v7093_v19 }
 0xc65   : > { %v17541_v20 = vpop.f32.mrf.mxu0 }
 0xc66   : > { %18575 = vpow2.f32 %v7157_v35  ;;  %v7155_v17 = vmul.f32 1.442695, %v7139_v3  ;;  %v21226_v32 = vadd.f32 %v17541_v20, %v4508_v14 }
 0xc68   : > { %23521 = vst [vmem:[#allocation60_spill] sm:$0xff] %v21226_v32  ;;  %18577 = vpow2.f32 %v7155_v17 }
 0xc69   : > { %v7102_v24 = vpop.xlane.xlu0 %7101 }
 0xc6a   : > { %v7142_v63 = vsub.f32 %v21149_v39, %v7102_v24 }
 0xc6c   : > { %v7161_v27 = vmul.f32 1.442695, %v7142_v63 }
 0xc6d   : > { %v7099_v55 = vpop.xlane.xlu0 %7098 }
 0xc6e   : > { %18579 = vpow2.f32 %v7161_v27  ;;  %v7141_v9 = vsub.f32 %v21156_v26, %v7099_v55 }
 0xc70   : > { %v7159_v15 = vmul.f32 1.442695, %v7141_v9 }
 0xc71   : > { %v7108_v43 = vpop.xlane.xlu0 %7107 }
 0xc72   : > { %18581 = vpow2.f32 %v7159_v15  ;;  %v7144_v12 = vsub.f32 %v21168_v57, %v7108_v43 }
 0xc73   : > { %v21231_v25 = vpop.eup %18575  ;;  %v7105_v19 = vpop.xlane.xlu1 %7104 }
 0xc74   : > { %v7165_v47 = vmul.f32 1.442695, %v7144_v12  ;;  %v7143_v33 = vsub.f32 %v21174_v36, %v7105_v19  ;;  %v7190_v17 = vsel %vm1685_vm2, %v21231_v25, 0.0 }
 0xc75   : > { %v21236_v39 = vpop.eup %18577  ;;  %7191 = vadd.xlane.f32.xlu0 %v7190_v17  ;;  %v21266_v17 = vpop.f32.mrf.mxu0 }
 0xc76   : > { %18583 = vpow2.f32 %v7165_v47  ;;  %v7163_v14 = vmul.f32 1.442695, %v7143_v33  ;;  %v7187_v26 = vsel %vm1685_vm2, %v21236_v39, 0.0  ;;  %23522 = vst [vmem:[#allocation70_spill] sm:$0xff] %v21266_v17 }
 0xc77   : > { %7188 = vadd.xlane.f32.xlu1 %v7187_v26  ;;  %v23524_v26 = vld [vmem:[#allocation51_spill] sm:$0xff] }
 0xc78   : > { %18585 = vpow2.f32 %v7163_v14  ;;  %v23523_v14 = vld [vmem:[#allocation62_spill] sm:$0xff] }
 0xc79   : > { %v7114_v57 = vpop.xlane.xlu0 %7113 }
 0xc7a   : > { %v7146_v43 = vsub.f32 %v21180_v46, %v7114_v57  ;;  %v4518_v57 = vadd.f32 %v23524_v26, %v23523_v14  ;;  %v23535_v26 = vld [vmem:[#allocation68_spill] sm:$0xff] }
 0xc7b   : > { %v21241_v35 = vpop.eup %18579  ;;  %v7111_v3 = vpop.xlane.xlu1 %7110 }
 0xc7c   : > { %v7169_v36 = vmul.f32 1.442695, %v7146_v43  ;;  %v7145_v20 = vsub.f32 %v21184_v5, %v7111_v3  ;;  %v7196_v24 = vsel %vm1685_vm2, %v21241_v35, 0.0 }
 0xc7d   : > { %7197 = vadd.xlane.f32.xlu0 %v7196_v24  ;;  %v23528_v24 = vld [vmem:[#allocation48_spill] sm:$0xff] }
 0xc7e   : > { %18587 = vpow2.f32 %v7169_v36  ;;  %v7167_v63 = vmul.f32 1.442695, %v7145_v20  ;;  %v23527_v20 = vld [vmem:[#allocation64_spill] sm:$0xff] }
 0xc7f   : > { %v21246_v27 = vpop.eup %18581 }
 0xc80   : > { %18589 = vpow2.f32 %v7167_v63  ;;  %v7193_v55 = vsel %vm1685_vm2, %v21246_v27, 0.0  ;;  %v4528_v63 = vadd.f32 %v23528_v24, %v23527_v20 }
 0xc81   : > { %7194 = vadd.xlane.f32.xlu1 %v7193_v55 }
 0xc83   : > { %v21250_v46 = vpop.eup %18583 }
 0xc84   : > { %v7202_v9 = vsel %vm1685_vm2, %v21250_v46, 0.0 }
 0xc85   : > { %v21254_v15 = vpop.eup %18585  ;;  %7203 = vadd.xlane.f32.xlu0 %v7202_v9 }
 0xc86   : > { %v7199_v5 = vsel %vm1685_vm2, %v21254_v15, 0.0 }
 0xc87   : > { %7200 = vadd.xlane.f32.xlu1 %v7199_v5 }
 0xc8b   : > { %v21258_v12 = vpop.eup %18587 }
 0xc8c   : > { %v7208_v19 = vsel %vm1685_vm2, %v21258_v12, 0.0 }
 0xc8d   : > { %v21262_v47 = vpop.eup %18589  ;;  %7209 = vadd.xlane.f32.xlu0 %v7208_v19  ;;  %v23531_v19 = vld [vmem:[#allocation66_spill] sm:$0xff] }
 0xc8e   : > { %v7205_v33 = vsel %vm1685_vm2, %v21262_v47, 0.0 }
 0xc8f   : > { %7206 = vadd.xlane.f32.xlu1 %v7205_v33  ;;  %v23532_v33 = vld [vmem:[#allocation44_spill] sm:$0xff] }
 0xc90   : > { %v4538_v32 = vadd.f32 %v23532_v33, %v23531_v19  ;;  %v7126_v19 = vpop.xlane.xlu0 %7125 }
 0xc91   : > { %v7150_v33 = vsub.f32 %v21188_v54, %v7126_v19 }
 0xc93   : > { %v17544_v43 = vpop.f32.mrf.mxu0 }
 0xc94   : > { %v21270_v3 = vadd.f32 %v17544_v43, %v4518_v57  ;;  %v23536_v57 = vld [vmem:[#allocation49_spill] sm:$0xff] }
 0xc95   : > { %v21272_v36 = vpop.f32.mrf.mxu0  ;;  %v4548_v43 = vadd.f32 %v23536_v57, %v23535_v26  ;;  %v7177_v57 = vmul.f32 1.442695, %v7150_v33 }
 0xc96   : > { %23525 = vst [vmem:[#allocation42_spill] sm:$0xff] %v21270_v3  ;;  %23526 = vst [vmem:[#allocation33_spill] sm:$0xff] %v21272_v36 }
 0xc97   : > { %v17547_v55 = vpop.f32.mrf.mxu0 }
 0xc98   : > { %v21276_v9 = vadd.f32 %v17547_v55, %v4528_v63 }
 0xc99   : > { %v21278_v5 = vpop.f32.mrf.mxu0 }
 0xc9a   : > { %23529 = vst [vmem:[#allocation52_spill] sm:$0xff] %v21276_v9  ;;  %23530 = vst [vmem:[#allocation36_spill] sm:$0xff] %v21278_v5 }
 0xc9b   : > { %v17550_v17 = vpop.f32.mrf.mxu0 }
 0xc9c   : > { %v21282_v58 = vadd.f32 %v17550_v17, %v4538_v32  ;;  %v7123_v17 = vpop.xlane.xlu1 %7122 }
 0xc9d   : > { %v21284_v14 = vpop.f32.mrf.mxu0 }
 0xc9e   : > { %23533 = vst [vmem:[#allocation57_spill] sm:$0xff] %v21282_v58  ;;  %23534 = vst [vmem:[#allocation35_spill] sm:$0xff] %v21284_v14 }
 0xc9f   : > { %v17553_v36 = vpop.f32.mrf.mxu0 }
 0xca0   : > { %v21288_v3 = vadd.f32 %v17553_v36, %v4548_v43  ;;  %v7149_v36 = vsub.f32 %v21192_v59, %v7123_v17  ;;  %v7135_v19 = vpop.xlane.xlu1 %7134 }
 0xca1   : > { %v21290_v20 = vpop.f32.mrf.mxu0 }
 0xca2   : > { %23537 = vst [vmem:[#allocation59_spill] sm:$0xff] %v21288_v3  ;;  %23538 = vst [vmem:[#allocation38_spill] sm:$0xff] %v21290_v20  ;;  %v7175_v26 = vmul.f32 1.442695, %v7149_v36  ;;  %v7138_v36 = vpop.xlane.xlu0 %7137 }
 0xca3   : > { %v21292_v24 = vpop.f32.mrf.mxu0 }
 0xca4   : > { %v7118_v63 = vsel %vm1685_vm2, %v21292_v24, -inf  ;;  %18591 = vpow2.f32 %v7175_v26  ;;  %v7153_v26 = vsub.f32 %v21200_v30, %v7135_v19 }
 0xca5   : > { %v21296_v55 = vpop.f32.mrf.mxu0  ;;  %7119 = vmax.xlane.f32.xlu0 %v7118_v63  ;;  %18593 = vpow2.f32 %v7177_v57  ;;  %v7154_v57 = vsub.f32 %v21196_v28, %v7138_v36 }
 0xca6   : > { %v7115_v32 = vsel %vm1685_vm2, %v21296_v55, -inf }
 0xca7   : > { %7116 = vmax.xlane.f32.xlu1 %v7115_v32 }
 0xcab   : > { %v21310_v43 = vpop.f32.mrf.mxu0 }
 0xcac   : > { %v7130_v63 = vsel %vm1685_vm2, %v21310_v43, -inf }
 0xcad   : > { %v21320_v59 = vpop.f32.mrf.mxu0 }
 0xcae   : > { %v7127_v17 = vsel %vm1685_vm2, %v21320_v59, -inf }
 0xcb1   : > { %v21314_v32 = vpop.eup %18591 }
 0xcb2   : > { %v7217_v20 = vsel %vm1685_vm2, %v21314_v32, 0.0  ;;  %v21318_v14 = vpop.eup %18593 }
 0xcb3   : > { %v7220_v54 = vsel %vm1685_vm2, %v21318_v14, 0.0 }
 0xcb8   : > { %7354 = vrot.lane.b32.xlu1 %v19667_v45, %s19123_s18 }
 0xcbb   : > { %7356 = vrot.lane.b32.xlu0 %v19663_v40, %s19123_s18 }
 0xcbc   : > { %7530 = vrot.lane.b32.xlu1 %v19679_v53, %s19123_s18 }
 0xcc0   : > { %7528 = vrot.lane.b32.xlu1 %v19681_v13, %s19123_s18 }
 0xcda   : > { %7131 = vmax.xlane.f32.xlu0 %v7130_v63  ;;  %v7183_v63 = vmul.f32 1.442695, %v7153_v26 }
 0xcde   : > { %7218 = vadd.xlane.f32.xlu0 %v7217_v20 }
 0xce2   : > { %7221 = vadd.xlane.f32.xlu0 %v7220_v54  ;;  %v7185_v54 = vmul.f32 1.442695, %v7154_v57 }
 0xce4   : > { %7128 = vmax.xlane.f32.xlu1 %v7127_v17 }
 0xcf5   : > { %7617 = vrot.lane.b32.xlu1 %v23443_v0, %s19123_s18 }
 0xcf8   : > { %7443 = vrot.lane.b32.xlu0 %v19671_v42, %s19123_s18 }
 0xcfc   : > { %7441 = vrot.lane.b32.xlu0 %v19673_v50, %s19123_s18 }
 0xcfe   : > { %v7192_v20 = vpop.xlane.xlu0 %7191 }
 0xcff   : > { %18595 = vrcp.f32 %v7192_v20 }
 0xd00   : > { %v7189_v33 = vpop.xlane.xlu1 %7188 }
 0xd01   : > { %18597 = vrcp.f32 %v7189_v33 }
 0xd02   : > { %18599 = vpow2.f32 %v7183_v63 }
 0xd0a   : > { %v7195_v17 = vpop.xlane.xlu1 %7194 }
 0xd0b   : > { %18601 = vrcp.f32 %v7195_v17 }
 0xd0c   : > { %v18596_v5 = vpop.eup %18595  ;;  %18603 = vpow2.f32 %v7185_v54 }
 0xd0d   : > { %v7238_v37 = vmul.f32 %v18596_v5, %v21231_v25 }
 0xd0e   : > { %v18598_v3 = vpop.eup %18597 }
 0xd0f   : > { %v7236_v58 = vmul.f32 %v18598_v3, %v21236_v39  ;;  %v21338_v30 = vpop.eup %18599 }
 0xd10   : > { %v7201_v9 = vpop.xlane.xlu1 %7200  ;;  %v7229_v19 = vsel %vm1685_vm2, %v21338_v30, 0.0 }
 0xd11   : > { %18605 = vrcp.f32 %v7201_v9  ;;  %17614 = vmatprep.mubr.msk.f32.mxu0 %vm1685_vm2, %v7236_v58  ;;  %v7198_v58 = vpop.xlane.xlu0 %7197 }
 0xd12   : > { %17615 = vmatmul.mubr.msk.f32.vlgmr.msra.gmra.mxu0 %vm1685_vm2, %v7238_v37  ;;  %18607 = vrcp.f32 %v7198_v58 }
 0xd18   : > { %v18602_v28 = vpop.eup %18601  ;;  %v7207_v3 = vpop.xlane.xlu1 %7206 }
 0xd19   : > { %v7240_v36 = vmul.f32 %v18602_v28, %v21246_v27  ;;  %v21343_v20 = vpop.eup %18603  ;;  %v7204_v27 = vpop.xlane.xlu0 %7203  ;;  %18609 = vrcp.f32 %v7207_v3 }
 0xd1a   : > { %v7232_v25 = vsel %vm1685_vm2, %v21343_v20, 0.0 }
 0xd1b   : > { %7230 = vadd.xlane.f32.xlu0 %v7229_v19  ;;  %17621 = vmatprep.mubr.msk.f32.mxu0 %vm1685_vm2, %v7240_v36 }
 0xd1d   : > { %v7210_v9 = vpop.xlane.xlu0 %7209 }
 0xd1e   : > { %v18606_v39 = vpop.eup %18605  ;;  %18611 = vrcp.f32 %v7210_v9 }
 0xd1f   : > { %7233 = vadd.xlane.f32.xlu0 %v7232_v25  ;;  %v7244_v37 = vmul.f32 %v18606_v39, %v21254_v15  ;;  %v18608_v54 = vpop.eup %18607 }
 0xd20   : > { %v7242_v19 = vmul.f32 %v18608_v54, %v21241_v35 }
 0xd21   : > { %17628 = vmatprep.mubr.msk.f32.mxu1 %vm1685_vm2, %v7244_v37 }
 0xd26   : > { %v18610_v28 = vpop.eup %18609 }
 0xd27   : > { %v7248_v39 = vmul.f32 %v18610_v28, %v21262_v47 }
 0xd2e   : > { %v7120_v5 = vpop.xlane.xlu0 %7119 }
 0xd2f   : > { %v7148_v33 = vsub.f32 %v21292_v24, %v7120_v5 }
 0xd30   : > { %v7117_v26 = vpop.xlane.xlu1 %7116 }
 0xd31   : > { %v7173_v57 = vmul.f32 1.442695, %v7148_v33  ;;  %v7147_v63 = vsub.f32 %v21296_v55, %v7117_v26  ;;  %v18612_v55 = vpop.eup %18611 }
 0xd32   : > { %v7357_v17 = vpop.permute.xlu0 %7356  ;;  %v7250_v37 = vmul.f32 %v18612_v55, %v21258_v12 }
 0xd33   : > { %18613 = vpow2.f32 %v7173_v57  ;;  %v7171_v15 = vmul.f32 1.442695, %v7147_v63  ;;  %17617 = vmatprep.subr.mxu0 %v7357_v17 }
 0xd34   : > { %v7355_v36 = vpop.permute.xlu1 %7354  ;;  %17618 = vmatpush3.msra.mxu0 %v7357_v17 }
 0xd35   : > { %18615 = vpow2.f32 %v7171_v15  ;;  %17619 = vmatprep.subr.mxu0 %v7355_v36 }
 0xd36   : > { %17620 = vmatpush3.msra.mxu0 %v7355_v36  ;;  %18617 = vrcp.f32 %v7204_v27 }
 0xd37   : > { %17622 = vmatmul.mubr.msk.f32.vlgmr.msra.gmra.mxu0 %vm1685_vm2, %v7242_v19 }
 0xd38   : > { %v7531_v24 = vpop.permute.xlu1 %7530  ;;  %17635 = vmatprep.mubr.msk.f32.mxu0 %vm1685_vm2, %v7248_v39 }
 0xd39   : > { %17631 = vmatprep.subr.mxu0 %v7531_v24 }
 0xd3a   : > { %17632 = vmatpush3.msra.mxu0 %v7531_v24 }
 0xd3c   : > { %v7529_v25 = vpop.permute.xlu1 %7528 }
 0xd3d   : > { %17633 = vmatprep.subr.mxu0 %v7529_v25 }
 0xd3e   : > { %17634 = vmatpush3.msra.mxu0 %v7529_v25 }
 0xd3f   : > { %17636 = vmatmul.mubr.msk.f32.vlgmr.msra.gmra.mxu0 %vm1685_vm2, %v7250_v37 }
 0xd40   : > { %v21358_v58 = vpop.eup %18613 }
 0xd41   : > { %v7214_v35 = vsel %vm1685_vm2, %v21358_v58, 0.0 }
 0xd42   : > { %v21362_v47 = vpop.eup %18615  ;;  %7215 = vadd.xlane.f32.xlu1 %v7214_v35 }
 0xd43   : > { %v7211_v3 = vsel %vm1685_vm2, %v21362_v47, 0.0  ;;  %v18618_v17 = vpop.eup %18617 }
 0xd44   : > { %7212 = vadd.xlane.f32.xlu0 %v7211_v3  ;;  %v7246_v36 = vmul.f32 %v18618_v17, %v21250_v46 }
 0xd53   : > { %7704 = vrot.lane.b32.xlu1 %v19700_v18, %s19123_s18 }
 0xd57   : > { %7702 = vrot.lane.b32.xlu1 %v19702_v52, %s19123_s18 }
 0xd5b   : > { %7791 = vrot.lane.b32.xlu1 %v19708_v4, %s19123_s18 }
 0xd5f   : > { %7789 = vrot.lane.b32.xlu1 %v19710_v6, %s19123_s18 }
 0xd63   : > { %7878 = vrot.lane.b32.xlu1 %v19716_v7, %s19123_s18  ;;  %v7132_v12 = vpop.xlane.xlu0 %7131 }
 0xd64   : > { %v7152_v9 = vsub.f32 %v21310_v43, %v7132_v12 }
 0xd66   : > { %v7181_v5 = vmul.f32 1.442695, %v7152_v9 }
 0xd67   : > { %v7219_v33 = vpop.xlane.xlu0 %7218 }
 0xd68   : > { %18619 = vpow2.f32 %v7181_v5 }
 0xd69   : > { %18621 = vrcp.f32 %v7219_v33 }
 0xd6b   : > { %v7222_v26 = vpop.xlane.xlu0 %7221 }
 0xd6d   : > { %v7129_v57 = vpop.xlane.xlu1 %7128 }
 0xd6e   : > { %v7151_v63 = vsub.f32 %v21320_v59, %v7129_v57 }
 0xd6f   : > { %v7444_v54 = vpop.permute.xlu0 %7443 }
 0xd70   : > { %17624 = vmatprep.subr.mxu1 %v7444_v54  ;;  %v7179_v28 = vmul.f32 1.442695, %v7151_v63 }
 0xd71   : > { %17625 = vmatpush3.msra.mxu1 %v7444_v54  ;;  %v7618_v43 = vpop.permute.xlu1 %7617 }
 0xd72   : > { %18623 = vpow2.f32 %v7179_v28 }
 0xd73   : > { %v7442_v15 = vpop.permute.xlu0 %7441  ;;  %18625 = vrcp.f32 %v7222_v26 }
 0xd74   : > { %17626 = vmatprep.subr.mxu1 %v7442_v15 }
 0xd75   : > { %v21379_v27 = vpop.eup %18619  ;;  %17627 = vmatpush3.msra.mxu1 %v7442_v15 }
 0xd76   : > { %v18622_v19 = vpop.eup %18621  ;;  %17629 = vmatmul.mubr.msk.f32.vlgmr.msra.gmra.mxu1 %vm1685_vm2, %v7246_v36  ;;  %17638 = vmatprep.subr.mxu1 %v7618_v43  ;;  %v7226_v59 = vsel %vm1685_vm2, %v21379_v27, 0.0 }
 0xd77   : > { %7227 = vadd.xlane.f32.xlu0 %v7226_v59  ;;  %17639 = vmatpush3.msra.mxu1 %v7618_v43  ;;  %v7256_v39 = vmul.f32 %v18622_v19, %v21314_v32 }
 0xd79   : > { %17649 = vmatprep.mubr.msk.f32.mxu0 %vm1685_vm2, %v7256_v39 }
 0xd7f   : > { %v21386_v24 = vpop.eup %18623 }
 0xd80   : > { %v7223_v46 = vsel %vm1685_vm2, %v21386_v24, 0.0  ;;  %v18626_v3 = vpop.eup %18625 }
 0xd81   : > { %v7258_v5 = vmul.f32 %v18626_v3, %v21318_v14 }
 0xd87   : > { %7224 = vadd.xlane.f32.xlu1 %v7223_v46 }
 0xd8d   : > { %7615 = vrot.lane.b32.xlu0 %v19689_v60, %s19123_s18 }
 0xd91   : > { %8181 = vrot.lane.b32.xlu0 %v19650_v31, %s19124_s12 }
 0xd95   : > { %8175 = vrot.lane.b32.xlu0 %v23444_v34, %s19125_s24 }
 0xd98   : > { %7876 = vrot.lane.b32.xlu1 %v19718_v11, %s19123_s18  ;;  %s19135_s18 = smov 36  }
 0xd99   : > { %8177 = vrot.lane.b32.xlu0 %v23446_v10, %s19125_s24 }
 0xd9c   : > { %8179 = vrot.lane.b32.xlu1 %v19652_v16, %s19124_s12 }
 0xd9d   : > { %8266 = vrot.lane.b32.xlu0 %v23445_v1, %s19125_s24 }
 0xda0   : > { %8272 = vrot.lane.b32.xlu1 %v19663_v40, %s19124_s12 }
 0xda1   : > { %8268 = vrot.lane.b32.xlu0 %v23448_v44, %s19125_s24 }
 0xda4   : > { %8270 = vrot.lane.b32.xlu1 %v19667_v45, %s19124_s12  ;;  %v7231_v32 = vpop.xlane.xlu0 %7230 }
 0xda5   : > { %8357 = vrot.lane.b32.xlu0 %v23501_v23, %s19125_s24  ;;  %18627 = vrcp.f32 %v7231_v32 }
 0xda8   : > { %8363 = vrot.lane.b32.xlu1 %v19671_v42, %s19124_s12  ;;  %v7234_v55 = vpop.xlane.xlu0 %7233 }
 0xda9   : > { %8359 = vrot.lane.b32.xlu0 %v23450_v22, %s19125_s24 }
 0xdac   : > { %8361 = vrot.lane.b32.xlu1 %v19673_v50, %s19124_s12 }
 0xdad   : > { %8545 = vrot.lane.b32.xlu0 %v23443_v0, %s19124_s12 }
 0xdb0   : > { %8454 = vrot.lane.b32.xlu1 %v19679_v53, %s19124_s12 }
 0xdb1   : > { %8450 = vrot.lane.b32.xlu0 %v19807_v38, %s19125_s24 }
 0xdb2   : > { %v18628_v12 = vpop.eup %18627 }
 0xdb3   : > { %v7264_v33 = vmul.f32 %v18628_v12, %v21338_v30 }
 0xdb4   : > { %8452 = vrot.lane.b32.xlu1 %v19681_v13, %s19124_s12 }
 0xdb5   : > { %8636 = vrot.lane.b32.xlu0 %v19700_v18, %s19124_s12 }
 0xdb8   : > { %8448 = vrot.lane.b32.xlu1 %v23449_v48, %s19125_s24 }
 0xdb9   : > { %8541 = vrot.lane.b32.xlu0 %v19821_v8, %s19125_s24 }
 0xdbc   : > { %8543 = vrot.lane.b32.xlu1 %v19689_v60, %s19124_s12 }
 0xdbd   : > { %8727 = vrot.lane.b32.xlu0 %v19708_v4, %s19124_s12 }
 0xdc0   : > { %8539 = vrot.lane.b32.xlu1 %v19696_v61, %s19125_s24 }
 0xdc1   : > { %8632 = vrot.lane.b32.xlu0 %v19835_v56, %s19125_s24 }
 0xdc4   : > { %8634 = vrot.lane.b32.xlu1 %v19702_v52, %s19124_s12 }
 0xdc5   : > { %8818 = vrot.lane.b32.xlu0 %v19716_v7, %s19124_s12 }
 0xdc8   : > { %8630 = vrot.lane.b32.xlu1 %v19810_v41, %s19125_s24 }
 0xdc9   : > { %8723 = vrot.lane.b32.xlu0 %v19849_v2, %s19125_s24 }
 0xdcb   : > { %v7216_v25 = vpop.xlane.xlu1 %7215 }
 0xdcc   : > { %8725 = vrot.lane.b32.xlu1 %v19710_v6, %s19124_s12 }
 0xdcd   : > { %8812 = vrot.lane.b32.xlu0 %v23502_v21, %s19125_s24  ;;  %v7213_v37 = vpop.xlane.xlu0 %7212 }
 0xdce   : > { %18629 = vrcp.f32 %v7213_v37 }
 0xdcf   : > { %v7705_v35 = vpop.permute.xlu1 %7704  ;;  %18631 = vrcp.f32 %v7216_v25 }
 0xdd0   : > { %8721 = vrot.lane.b32.xlu1 %v19824_v51, %s19125_s24  ;;  %17645 = vmatprep.subr.mxu0 %v7705_v35  ;;  %18633 = vrcp.f32 %v7234_v55 }
 0xdd1   : > { %17646 = vmatpush3.msra.mxu0 %v7705_v35 }
 0xdd2   : > { %v17616_v39 = vpop.f32.mrf.mxu0 }
 0xdd3   : > { %v7703_v9 = vpop.permute.xlu1 %7702 }
 0xdd4   : > { %8816 = vrot.lane.b32.xlu1 %v19718_v11, %s19124_s12  ;;  %17647 = vmatprep.subr.mxu0 %v7703_v9  ;;  %v7345_v55 = vpop.f32.mrf.mxu0 }
 0xdd5   : > { %17648 = vmatpush3.msra.mxu0 %v7703_v9 }
 0xdd6   : > { %17650 = vmatmul.mubr.msk.f32.vlgmr.msra.gmra.mxu0 %vm1685_vm2, %v7258_v5 }
 0xdd7   : > { %v7792_v26 = vpop.permute.xlu1 %7791  ;;  %17663 = vmatprep.mubr.msk.f32.mxu0 %vm1685_vm2, %v7264_v33 }
 0xdd8   : > { %8814 = vrot.lane.b32.xlu1 %v19858_v62, %s19125_s24 }
 0xddb   : > { %v18630_v57 = vpop.eup %18629  ;;  %v7790_v63 = vpop.permute.xlu1 %7789 }
 0xddc   : > { %v7252_v54 = vmul.f32 %v18630_v57, %v21362_v47  ;;  %v18632_v30 = vpop.eup %18631  ;;  %v7963_v47 = vrot.slane %v21066_v29, 4 }
 0xddd   : > { %v7254_v15 = vmul.f32 %v18632_v30, %v21358_v58  ;;  %v18634_v46 = vpop.eup %18633 }
 0xdde   : > { %17642 = vmatprep.mubr.msk.f32.mxu1 %vm1685_vm2, %v7252_v54  ;;  %v7266_v25 = vmul.f32 %v18634_v46, %v21343_v20 }
 0xddf   : > { %v7879_v17 = vpop.permute.xlu1 %7878 }
 0xde0   : > { %17659 = vmatprep.subr.mxu0 %v7879_v17 }
 0xde1   : > { %17660 = vmatpush3.msra.mxu0 %v7879_v17 }
 0xdf7   : > { %v17623_v37 = vpop.f32.mrf.mxu0 }
 0xdf9   : > { %v7432_v3 = vpop.f32.mrf.mxu0 }
 0xe00   : > { %v7228_v14 = vpop.xlane.xlu0 %7227 }
 0xe01   : > { %18635 = vrcp.f32 %v7228_v14 }
 0xe04   : > { %v7616_v28 = vpop.permute.xlu0 %7615 }
 0xe05   : > { %17640 = vmatprep.subr.mxu1 %v7616_v28 }
 0xe06   : > { %17641 = vmatpush3.msra.mxu1 %v7616_v28  ;;  %v17637_v28 = vpop.f32.mrf.mxu0 }
 0xe07   : > { %17643 = vmatmul.mubr.msk.f32.vlgmr.msra.gmra.mxu1 %vm1685_vm2, %v7254_v15  ;;  %17652 = vmatprep.subr.mxu1 %v7792_v26 }
 0xe08   : > { %17653 = vmatpush3.msra.mxu1 %v7792_v26  ;;  %v8182_v36 = vpop.permute.xlu0 %8181 }
 0xe09   : > { %17654 = vmatprep.subr.mxu1 %v7790_v63 }
 0xe0a   : > { %17655 = vmatpush3.msra.mxu1 %v7790_v63 }
 0xe0b   : > { %18244 = vmatprep.subr.msk.mxu1 %vm4208_vm3, %v7963_v47 }
 0xe0c   : > { %v8176_v43 = vpop.permute.xlu0 %8175 }
 0xe0e   : > { %v18636_v9 = vpop.eup %18635 }
 0xe0f   : > { %v7262_v63 = vmul.f32 %v18636_v9, %v21379_v27 }
 0xe10   : > { %v7225_v19 = vpop.xlane.xlu1 %7224  ;;  %v8178_v59 = vpop.permute.xlu0 %8177 }
 0xe11   : > { %18637 = vrcp.f32 %v7225_v19 }
 0xe14   : > { %v7877_v58 = vpop.permute.xlu1 %7876  ;;  %v8267_v32 = vpop.permute.xlu0 %8266 }
 0xe15   : > { %17661 = vmatprep.subr.mxu0 %v7877_v58 }
 0xe16   : > { %17662 = vmatpush3.msra.mxu0 %v7877_v58 }
 0xe17   : > { %17664 = vmatmul.mubr.msk.f32.vlgmr.msra.gmra.mxu0 %vm1685_vm2, %v7266_v25  ;;  %17666 = vmatprep.subr.msk.mxu0 %vm4208_vm3, %v7963_v47 }
 0xe18   : > { %v8180_v29 = vpop.permute.xlu1 %8179  ;;  %17667 = vmatpush3.msk.msra.mxu0 %vm4208_vm3, %v7963_v47  ;;  %17668 = vmatprep.mubr.msk.f32.mxu0 %vm962_vm1, %v7345_v55  ;;  %v8269_v35 = vpop.permute.xlu0 %8268 }
 0xe19   : > { %17692 = vmatprep.subr.msk.mxu0 %vm962_vm1, %v8182_v36 }
 0xe1b   : > { %17669 = vmatmul.mubr.msk.f32.vlgmr.msra.gmra.mxu0 %vm962_vm1, %v17616_v39  ;;  %v7606_v39 = vpop.f32.mrf.mxu0 }
 0xe1c   : > { %17693 = vmatpush3.xpose.msk.msra.mxu0 %vm962_vm1, %v8182_v36  ;;  %v8273_v20 = vpop.permute.xlu1 %8272  ;;  %17671 = vmatprep.mubr.msk.f32.mxu0 %vm962_vm1, %v7432_v3  ;;  %v8358_v12 = vpop.permute.xlu0 %8357 }
 0xe1d   : > { %17694 = vmatprep.subr.msk.mxu0 %vm962_vm1, %v8180_v29 }
 0xe1e   : > { %v18638_v5 = vpop.eup %18637 }
 0xe1f   : > { %17672 = vmatmul.mubr.msk.f32.gmra.mxu0 %vm962_vm1, %v17623_v37  ;;  %v7260_v33 = vmul.f32 %v18638_v5, %v21386_v24 }
 0xe20   : > { %17695 = vmatpush3.xpose.msk.msra.mxu0 %vm962_vm1, %v8180_v29  ;;  %v8271_v26 = vpop.permute.xlu1 %8270  ;;  %v8360_v57 = vpop.permute.xlu0 %8359 }
 0xe21   : > { %17699 = vmatprep.subr.msk.mxu0 %vm962_vm1, %v8273_v20  ;;  %17656 = vmatprep.mubr.msk.f32.mxu1 %vm1685_vm2, %v7260_v33 }
 0xe22   : > { %17657 = vmatmul.mubr.msk.f32.vlgmr.msra.gmra.mxu1 %vm1685_vm2, %v7262_v63 }
 0xe23   : > { %18245 = vmatpush3.msk.msra.mxu1 %vm4208_vm3, %v7963_v47 }
 0xe24   : > { %v8364_v54 = vpop.permute.xlu1 %8363  ;;  %v21486_v17 = vpop.permute.xlu0 %8545 }
 0xe25   : > { %17720 = vmatprep.subr.msk.mxu1 %vm962_vm1, %v21486_v17 }
 0xe28   : > { %v8362_v24 = vpop.permute.xlu1 %8361  ;;  %v8451_v27 = vpop.permute.xlu0 %8450 }
 0xe2c   : > { %v8455_v14 = vpop.permute.xlu1 %8454  ;;  %v8637_v47 = vpop.permute.xlu0 %8636 }
 0xe30   : > { %v8453_v30 = vpop.permute.xlu1 %8452  ;;  %v21498_v58 = vpop.permute.xlu0 %8541 }
 0xe34   : > { %v8449_v19 = vpop.permute.xlu1 %8448  ;;  %v8728_v25 = vpop.permute.xlu0 %8727 }
 0xe36   : > { %v17630_v15 = vpop.f32.mrf.mxu1 }
 0xe38   : > { %v7519_v36 = vpop.f32.mrf.mxu1  ;;  %v8544_v46 = vpop.permute.xlu1 %8543 }
 0xe39   : > { %17674 = vmatprep.mubr.msk.f32.mxu0 %vm962_vm1, %v7519_v36 }
 0xe3a   : > { %17675 = vmatmul.mubr.msk.f32.gmra.mxu0 %vm962_vm1, %v17630_v15 }
 0xe3b   : > { %17677 = vmatprep.mubr.msk.f32.mxu0 %vm962_vm1, %v7606_v39  ;;  %v23544_v39 = vld [vmem:[#allocation54_spill] sm:$0xff] }
 0xe3c   : > { %v21501_v55 = vpop.permute.xlu1 %8539 }
 0xe3e   : > { %17678 = vmatmul.mubr.msk.f32.gmra.mxu0 %vm962_vm1, %v17637_v28 }
 0xe3f   : > { %17696 = vmatprep.mubr.msk.f32.mxu0 %vm962_vm1, %v8176_v43 }
 0xe40   : > { %v8635_v43 = vpop.permute.xlu1 %8634 }
 0xe42   : > { %17697 = vmatmul.mubr.msk.f32.vlgmr.msra.gmra.mxu0 %vm962_vm1, %v8178_v59  ;;  %v8633_v59 = vpop.permute.xlu0 %8632 }
 0xe43   : > { %17700 = vmatpush3.xpose.msk.msra.mxu0 %vm962_vm1, %v8273_v20  ;;  %17703 = vmatprep.mubr.msk.f32.mxu0 %vm962_vm1, %v8267_v32 }
 0xe44   : > { %17701 = vmatprep.subr.msk.mxu0 %vm962_vm1, %v8271_v26  ;;  %v8631_v32 = vpop.permute.xlu1 %8630 }
 0xe46   : > { %v8819_v37 = vpop.permute.xlu0 %8818 }
 0xe47   : > { %17702 = vmatpush3.xpose.msk.msra.mxu0 %vm962_vm1, %v8271_v26 }
 0xe48   : > { %17706 = vmatprep.subr.msk.mxu0 %vm962_vm1, %v8364_v54  ;;  %v8726_v29 = vpop.permute.xlu1 %8725 }
 0xe4a   : > { %17704 = vmatmul.mubr.msk.f32.vlgmr.msra.gmra.mxu0 %vm962_vm1, %v8269_v35  ;;  %v8724_v35 = vpop.permute.xlu0 %8723 }
 0xe4b   : > { %17707 = vmatpush3.xpose.msk.msra.mxu0 %vm962_vm1, %v8364_v54  ;;  %17710 = vmatprep.mubr.msk.f32.mxu0 %vm962_vm1, %v8358_v12 }
 0xe4c   : > { %17708 = vmatprep.subr.msk.mxu0 %vm962_vm1, %v8362_v24  ;;  %v8722_v3 = vpop.permute.xlu1 %8721 }
 0xe4e   : > { %v8813_v20 = vpop.permute.xlu0 %8812 }
 0xe4f   : > { %17709 = vmatpush3.xpose.msk.msra.mxu0 %vm962_vm1, %v8362_v24 }
 0xe50   : > { %17713 = vmatprep.subr.msk.mxu0 %vm962_vm1, %v8455_v14  ;;  %v8817_v12 = vpop.permute.xlu1 %8816 }
 0xe52   : > { %17711 = vmatmul.mubr.msk.f32.vlgmr.msra.gmra.mxu0 %vm962_vm1, %v8360_v57 }
 0xe53   : > { %17714 = vmatpush3.xpose.msk.msra.mxu0 %vm962_vm1, %v8455_v14  ;;  %17717 = vmatprep.mubr.msk.f32.mxu0 %vm962_vm1, %v8449_v19 }
 0xe54   : > { %17715 = vmatprep.subr.msk.mxu0 %vm962_vm1, %v8453_v30  ;;  %v8815_v9 = vpop.permute.xlu1 %8814 }
 0xe57   : > { %17716 = vmatpush3.xpose.msk.msra.mxu0 %vm962_vm1, %v8453_v30 }
 0xe58   : > { %17727 = vmatprep.subr.msk.mxu0 %vm962_vm1, %v8637_v47 }
 0xe5a   : > { %17718 = vmatmul.mubr.msk.f32.vlgmr.msra.gmra.mxu0 %vm962_vm1, %v8451_v27 }
 0xe5b   : > { %17728 = vmatpush3.xpose.msk.msra.mxu0 %vm962_vm1, %v8637_v47  ;;  %17731 = vmatprep.mubr.msk.f32.mxu0 %vm962_vm1, %v8631_v32 }
 0xe5c   : > { %17729 = vmatprep.subr.msk.mxu0 %vm962_vm1, %v8635_v43 }
 0xe5f   : > { %17730 = vmatpush3.xpose.msk.msra.mxu0 %vm962_vm1, %v8635_v43 }
 0xe60   : > { %17741 = vmatprep.subr.msk.mxu0 %vm962_vm1, %v8819_v37 }
 0xe62   : > { %17732 = vmatmul.mubr.msk.f32.vlgmr.msra.gmra.mxu0 %vm962_vm1, %v8633_v59 }
 0xe63   : > { %17742 = vmatpush3.xpose.msk.msra.mxu0 %vm962_vm1, %v8819_v37  ;;  %17745 = vmatprep.mubr.msk.f32.mxu0 %vm962_vm1, %v8813_v20 }
 0xe64   : > { %17743 = vmatprep.subr.msk.mxu0 %vm962_vm1, %v8817_v12 }
 0xe67   : > { %17744 = vmatpush3.xpose.msk.msra.mxu0 %vm962_vm1, %v8817_v12 }
 0xe6a   : > { %17746 = vmatmul.mubr.msk.f32.vlgmr.msra.gmra.mxu0 %vm962_vm1, %v8815_v9 }
 0xe96   : > { %v17651_v5 = vpop.f32.mrf.mxu0 }
 0xe98   : > { %v7780_v57 = vpop.f32.mrf.mxu0 }
 0xec7   : > { %v17644_v33 = vpop.f32.mrf.mxu1 }
 0xec9   : > { %v7693_v26 = vpop.f32.mrf.mxu1 }
 0xeca   : > { %17680 = vmatprep.mubr.msk.f32.mxu1 %vm962_vm1, %v7693_v26 }
 0xecb   : > { %17681 = vmatmul.mubr.msk.f32.vlgmr.msra.gmra.mxu1 %vm962_vm1, %v17644_v33 }
 0xecc   : > { %17721 = vmatpush3.xpose.msk.msra.mxu1 %vm962_vm1, %v21486_v17  ;;  %17683 = vmatprep.mubr.msk.f32.mxu1 %vm962_vm1, %v7780_v57  ;;  %v23541_v17 = vld [vmem:[#allocation40_spill] sm:$0xff] }
 0xecd   : > { %17722 = vmatprep.subr.msk.mxu1 %vm962_vm1, %v8544_v46 }
 0xecf   : > { %17684 = vmatmul.mubr.msk.f32.gmra.mxu1 %vm962_vm1, %v17651_v5 }
 0xed0   : > { %17723 = vmatpush3.xpose.msk.msra.mxu1 %vm962_vm1, %v8544_v46 }
 0xed1   : > { %17734 = vmatprep.subr.msk.mxu1 %vm962_vm1, %v8728_v25 }
 0xed7   : > { %v17665_v63 = vpop.f32.mrf.mxu0 }
 0xed9   : > { %v7954_v54 = vpop.f32.mrf.mxu0 }
 0xedb   : > { %v17670_v24 = vpop.f32.mrf.mxu0 }
 0xedc   : > { %v21539_v14 = vadd.f32 %v17670_v24, %v21206_v49 }
 0xedd   : > { %v21541_v30 = vpop.f32.mrf.mxu0 }
 0xede   : > { %23539 = vst [vmem:[#allocation62_spill] sm:$0xff] %v21539_v14  ;;  %23540 = vst [vmem:[#allocation51_spill] sm:$0xff] %v21541_v30 }
 0xedf   : > { %v17673_v28 = vpop.f32.mrf.mxu0 }
 0xee0   : > { %v21544_v15 = vadd.f32 %v17673_v28, %v23541_v17 }
 0xee1   : > { %v21559_v49 = vpop.f32.mrf.mxu0 }
 0xee2   : > { %23542 = vst [vmem:[#allocation64_spill] sm:$0xff] %v21544_v15  ;;  %v17658_v27 = vpop.f32.mrf.mxu1  ;;  %23543 = vst [vmem:[#allocation48_spill] sm:$0xff] %v21559_v49 }
 0xee4   : > { %v7867_v36 = vpop.f32.mrf.mxu1 }
 0xee5   : > { %17686 = vmatprep.mubr.msk.f32.mxu1 %vm962_vm1, %v7867_v36 }
 0xee6   : > { %17687 = vmatmul.mubr.msk.f32.gmra.mxu1 %vm962_vm1, %v17658_v27 }
 0xee7   : > { %17689 = vmatprep.mubr.msk.f32.mxu1 %vm962_vm1, %v7954_v54 }
 0xeea   : > { %17690 = vmatmul.mubr.msk.f32.gmra.mxu1 %vm962_vm1, %v17665_v63 }
 0xeeb   : > { %17724 = vmatprep.mubr.msk.f32.mxu1 %vm962_vm1, %v21501_v55 }
 0xeee   : > { %17725 = vmatmul.mubr.msk.f32.vlgmr.msra.gmra.mxu1 %vm962_vm1, %v21498_v58  ;;  %v23547_v58 = vld [vmem:[#allocation60_spill] sm:$0xff] }
 0xeef   : > { %17735 = vmatpush3.xpose.msk.msra.mxu1 %vm962_vm1, %v8728_v25  ;;  %17738 = vmatprep.mubr.msk.f32.mxu1 %vm962_vm1, %v8722_v3 }
 0xef0   : > { %17736 = vmatprep.subr.msk.mxu1 %vm962_vm1, %v8726_v29 }
 0xef3   : > { %17737 = vmatpush3.xpose.msk.msra.mxu1 %vm962_vm1, %v8726_v29 }
 0xef6   : > { %17739 = vmatmul.mubr.msk.f32.vlgmr.msra.gmra.mxu1 %vm962_vm1, %v8724_v35 }
 0xefa   : > { %v17676_v19 = vpop.f32.mrf.mxu0 }
 0xefb   : > { %v21562_v47 = vadd.f32 %v17676_v19, %v23544_v39 }
 0xefc   : > { %v21564_v46 = vpop.f32.mrf.mxu0 }
 0xefd   : > { %23545 = vst [vmem:[#allocation66_spill] sm:$0xff] %v21562_v47  ;;  %23546 = vst [vmem:[#allocation44_spill] sm:$0xff] %v21564_v46 }
 0xefe   : > { %v17679_v55 = vpop.f32.mrf.mxu0 }
 0xeff   : > { %v21567_v43 = vadd.f32 %v17679_v55, %v23547_v58 }
 0xf00   : > { %v21569_v25 = vpop.f32.mrf.mxu0 }
 0xf01   : > { %23548 = vst [vmem:[#allocation68_spill] sm:$0xff] %v21567_v43  ;;  %23549 = vst [vmem:[#allocation49_spill] sm:$0xff] %v21569_v25 }
 0xf02   : > { %v17698_v59 = vpop.f32.mrf.mxu0 }
 0xf03   : > { %v8906_v32 = vsel %vm1685_vm2, %v17698_v59, -inf }
 0xf04   : > { %8907 = vmax.xlane.f32.xlu1 %v8906_v32  ;;  %v8257_v37 = vpop.f32.mrf.mxu0 }
 0xf05   : > { %v8903_v29 = vsel %vm1685_vm2, %v8257_v37, -inf }
 0xf06   : > { %8904 = vmax.xlane.f32.xlu0 %v8903_v29  ;;  %v23550_v29 = vld [vmem:[#allocation42_spill] sm:$0xff] }
 0xf0a   : > { %v17705_v35 = vpop.f32.mrf.mxu0 }
 0xf0b   : > { %v8912_v3 = vsel %vm1685_vm2, %v17705_v35, -inf }
 0xf0c   : > { %8913 = vmax.xlane.f32.xlu0 %v8912_v3  ;;  %v8348_v20 = vpop.f32.mrf.mxu0 }
 0xf0d   : > { %v8909_v12 = vsel %vm1685_vm2, %v8348_v20, -inf }
 0xf10   : > { %8910 = vmax.xlane.f32.xlu0 %v8909_v12 }
 0xf12   : > { %v17712_v9 = vpop.f32.mrf.mxu0 }
 0xf13   : > { %v8918_v5 = vsel %vm1685_vm2, %v17712_v9, -inf }
 0xf14   : > { %8919 = vmax.xlane.f32.xlu0 %v8918_v5  ;;  %v8439_v33 = vpop.f32.mrf.mxu0 }
 0xf15   : > { %v8915_v26 = vsel %vm1685_vm2, %v8439_v33, -inf }
 0xf16   : > { %8916 = vmax.xlane.f32.xlu1 %v8915_v26 }
 0xf1a   : > { %v17719_v57 = vpop.f32.mrf.mxu0 }
 0xf1b   : > { %v8924_v63 = vsel %vm1685_vm2, %v17719_v57, -inf }
 0xf1c   : > { %8925 = vmax.xlane.f32.xlu0 %v8924_v63  ;;  %v21578_v54 = vpop.f32.mrf.mxu0 }
 0xf1d   : > { %v8921_v24 = vsel %vm1685_vm2, %v21578_v54, -inf }
 0xf1e   : > { %8922 = vmax.xlane.f32.xlu1 %v8921_v24 }
 0xf22   : > { %v21582_v28 = vpop.f32.mrf.mxu0 }
 0xf23   : > { %v8936_v17 = vsel %vm1685_vm2, %v21582_v28, -inf }
 0xf24   : > { %8937 = vmax.xlane.f32.xlu0 %v8936_v17  ;;  %v21586_v27 = vpop.f32.mrf.mxu0 }
 0xf25   : > { %v8933_v36 = vsel %vm1685_vm2, %v21586_v27, -inf }
 0xf26   : > { %8934 = vmax.xlane.f32.xlu1 %v8933_v36  ;;  %v23553_v36 = vld [vmem:[#allocation52_spill] sm:$0xff] }
 0xf2a   : > { %v21590_v19 = vpop.f32.mrf.mxu0 }
 0xf2b   : > { %v8948_v39 = vsel %vm1685_vm2, %v21590_v19, -inf }
 0xf2c   : > { %8949 = vmax.xlane.f32.xlu0 %v8948_v39  ;;  %v21594_v55 = vpop.f32.mrf.mxu0 }
 0xf2d   : > { %v8945_v58 = vsel %vm1685_vm2, %v21594_v55, -inf }
 0xf2e   : > { %8946 = vmax.xlane.f32.xlu1 %v8945_v58 }
 0xf8b   : > { %v17682_v32 = vpop.f32.mrf.mxu1 }
 0xf8c   : > { %v21599_v3 = vadd.f32 %v17682_v32, %v23550_v29 }
 0xf8d   : > { %v21601_v12 = vpop.f32.mrf.mxu1  ;;  %v8908_v5 = vpop.xlane.xlu1 %8907 }
 0xf8e   : > { %23551 = vst [vmem:[#allocation40_spill] sm:$0xff] %v21599_v3  ;;  %23552 = vst [vmem:[#allocation54_spill] sm:$0xff] %v21601_v12  ;;  %v8952_v26 = vsub.f32 %v17698_v59, %v8908_v5 }
 0xf8f   : > { %v17685_v63 = vpop.f32.mrf.mxu1  ;;  %v8905_v24 = vpop.xlane.xlu0 %8904 }
 0xf90   : > { %v8969_v17 = vmul.f32 1.442695, %v8952_v26  ;;  %v21604_v25 = vadd.f32 %v17685_v63, %v23553_v36  ;;  %v8951_v39 = vsub.f32 %v8257_v37, %v8905_v24 }
 0xf92   : > { %23554 = vst [vmem:[#allocation60_spill] sm:$0xff] %v21604_v25  ;;  %18639 = vpow2.f32 %v8969_v17  ;;  %v8967_v43 = vmul.f32 1.442695, %v8951_v39 }
 0xf94   : > { %18641 = vpow2.f32 %v8967_v43 }
 0xf95   : > { %v8914_v47 = vpop.xlane.xlu0 %8913 }
 0xf96   : > { %v8954_v58 = vsub.f32 %v17705_v35, %v8914_v47 }
 0xf98   : > { %v8973_v46 = vmul.f32 1.442695, %v8954_v58 }
 0xf99   : > { %v8911_v15 = vpop.xlane.xlu0 %8910 }
 0xf9a   : > { %18643 = vpow2.f32 %v8973_v46  ;;  %v8953_v32 = vsub.f32 %v8348_v20, %v8911_v15  ;;  %v21614_v46 = vpop.f32.mrf.mxu1 }
 0xf9b   : > { %23555 = vst [vmem:[#allocation42_spill] sm:$0xff] %v21614_v46 }
 0xf9c   : > { %v8971_v29 = vmul.f32 1.442695, %v8953_v32 }
 0xf9d   : > { %v8920_v3 = vpop.xlane.xlu0 %8919 }
 0xf9e   : > { %18645 = vpow2.f32 %v8971_v29  ;;  %v8956_v59 = vsub.f32 %v17712_v9, %v8920_v3 }
 0xf9f   : > { %v21606_v5 = vpop.eup %18639  ;;  %v8917_v26 = vpop.xlane.xlu1 %8916 }
 0xfa0   : > { %v8977_v12 = vmul.f32 1.442695, %v8956_v59  ;;  %v8955_v63 = vsub.f32 %v8439_v33, %v8917_v26  ;;  %v9002_v37 = vsel %vm1685_vm2, %v21606_v5, 0.0  ;;  %v23556_v33 = vld [vmem:[#allocation57_spill] sm:$0xff]  ;;  %v23559_v59 = vld [vmem:[#allocation59_spill] sm:$0xff] }
 0xfa1   : > { %v21610_v24 = vpop.eup %18641  ;;  %9003 = vadd.xlane.f32.xlu0 %v9002_v37 }
 0xfa2   : > { %18647 = vpow2.f32 %v8977_v12  ;;  %v8975_v47 = vmul.f32 1.442695, %v8955_v63  ;;  %v8999_v15 = vsel %vm1685_vm2, %v21610_v24, 0.0 }
 0xfa3   : > { %9000 = vadd.xlane.f32.xlu1 %v8999_v15 }
 0xfa4   : > { %18649 = vpow2.f32 %v8975_v47 }
 0xfa5   : > { %v8926_v43 = vpop.xlane.xlu0 %8925 }
 0xfa6   : > { %v8958_v35 = vsub.f32 %v17719_v57, %v8926_v43  ;;  %v17688_v20 = vpop.f32.mrf.mxu1 }
 0xfa7   : > { %v21616_v9 = vpop.eup %18643  ;;  %v21619_v3 = vadd.f32 %v17688_v20, %v23556_v33  ;;  %v8923_v17 = vpop.xlane.xlu1 %8922 }
 0xfa8   : > { %v8981_v36 = vmul.f32 1.442695, %v8958_v35  ;;  %v8957_v12 = vsub.f32 %v21578_v54, %v8923_v17  ;;  %v21622_v39 = vpop.f32.mrf.mxu1  ;;  %v9008_v58 = vsel %vm1685_vm2, %v21616_v9, 0.0 }
 0xfa9   : > { %23557 = vst [vmem:[#allocation52_spill] sm:$0xff] %v21619_v3  ;;  %23558 = vst [vmem:[#allocation57_spill] sm:$0xff] %v21622_v39  ;;  %9009 = vadd.xlane.f32.xlu0 %v9008_v58 }
 0xfaa   : > { %18651 = vpow2.f32 %v8981_v36  ;;  %v8979_v32 = vmul.f32 1.442695, %v8957_v12  ;;  %v17691_v29 = vpop.f32.mrf.mxu1 }
 0xfab   : > { %v21626_v57 = vpop.eup %18645  ;;  %v21629_v26 = vadd.f32 %v17691_v29, %v23559_v59 }
 0xfac   : > { %18653 = vpow2.f32 %v8979_v32  ;;  %v9005_v63 = vsel %vm1685_vm2, %v21626_v57, 0.0  ;;  %v21651_v32 = vpop.f32.mrf.mxu1 }
 0xfad   : > { %23560 = vst [vmem:[#allocation59_spill] sm:$0xff] %v21629_v26  ;;  %9006 = vadd.xlane.f32.xlu1 %v9005_v63  ;;  %v8938_v54 = vpop.xlane.xlu0 %8937  ;;  %23561 = vst [vmem:[#allocation71_spill] sm:$0xff] %v21651_v32 }
 0xfae   : > { %v8962_v37 = vsub.f32 %v21582_v28, %v8938_v54  ;;  %v21655_v59 = vpop.f32.mrf.mxu1 }
 0xfaf   : > { %v21634_v47 = vpop.eup %18647  ;;  %v8935_v15 = vpop.xlane.xlu1 %8934 }
 0xfb0   : > { %v8989_v43 = vmul.f32 1.442695, %v8962_v37  ;;  %v8961_v35 = vsub.f32 %v21586_v27, %v8935_v15  ;;  %v9014_v20 = vsel %vm1685_vm2, %v21634_v47, 0.0  ;;  %v21663_v15 = vpop.f32.mrf.mxu1 }
 0xfb1   : > { %v21639_v33 = vpop.eup %18649  ;;  %9015 = vadd.xlane.f32.xlu0 %v9014_v20 }
 0xfb2   : > { %18655 = vpow2.f32 %v8989_v43  ;;  %v8987_v17 = vmul.f32 1.442695, %v8961_v35  ;;  %v9011_v36 = vsel %vm1685_vm2, %v21639_v33, 0.0  ;;  %v8930_v43 = vsel %vm1685_vm2, %v21655_v59, -inf }
 0xfb3   : > { %9012 = vadd.xlane.f32.xlu1 %v9011_v36  ;;  %v8927_v35 = vsel %vm1685_vm2, %v21663_v15, -inf }
 0xfb4   : > { %18657 = vpow2.f32 %v8987_v17 }
 0xfb5   : > { %v8950_v20 = vpop.xlane.xlu0 %8949 }
 0xfb6   : > { %v8966_v36 = vsub.f32 %v21590_v19, %v8950_v20 }
 0xfb7   : > { %v21643_v28 = vpop.eup %18651  ;;  %v8947_v17 = vpop.xlane.xlu1 %8946 }
 0xfb8   : > { %v9020_v12 = vsel %vm1685_vm2, %v21643_v28, 0.0 }
 0xfb9   : > { %v21647_v58 = vpop.eup %18653  ;;  %9021 = vadd.xlane.f32.xlu0 %v9020_v12  ;;  %v8965_v12 = vsub.f32 %v21594_v55, %v8947_v17 }
 0xfba   : > { %v9017_v27 = vsel %vm1685_vm2, %v21647_v58, 0.0 }
 0xfbb   : > { %9018 = vadd.xlane.f32.xlu1 %v9017_v27  ;;  %v8997_v27 = vmul.f32 1.442695, %v8966_v36 }
 0xfbd   : > { %18659 = vpow2.f32 %v8997_v27 }
 0xfbf   : > { %v21653_v29 = vpop.eup %18655 }
 0xfc0   : > { %v9032_v63 = vsel %vm1685_vm2, %v21653_v29, 0.0 }
 0xfc1   : > { %v21659_v54 = vpop.eup %18657  ;;  %9033 = vadd.xlane.f32.xlu0 %v9032_v63  ;;  %v8995_v63 = vmul.f32 1.442695, %v8965_v12 }
 0xfc2   : > { %v9029_v37 = vsel %vm1685_vm2, %v21659_v54, 0.0 }
 0xfc3   : > { %9030 = vadd.xlane.f32.xlu1 %v9029_v37  ;;  %18661 = vpow2.f32 %v8995_v63  ;;  %v21675_v37 = vpop.f32.mrf.mxu1 }
 0xfc5   : > { %8931 = vmax.xlane.f32.xlu0 %v8930_v43  ;;  %v21677_v43 = vpop.f32.mrf.mxu1 }
 0xfc6   : > { %v8939_v32 = vsel %vm1685_vm2, %v21677_v43, -inf }
 0xfc7   : > { %8928 = vmax.xlane.f32.xlu1 %v8927_v35  ;;  %v8942_v35 = vsel %vm1685_vm2, %v21675_v37, -inf }
 0xfca   : > { %v21681_v26 = vpop.eup %18659 }
 0xfcb   : > { %23562 = vst [vmem:[#allocation72_spill] sm:$0xff] %v21681_v26  ;;  %v9044_v55 = vsel %vm1685_vm2, %v21681_v26, 0.0 }
 0xfd0   : > { %v21685_v19 = vpop.eup %18661 }
 0xfd1   : > { %v9041_v20 = vsel %vm1685_vm2, %v21685_v19, 0.0 }
 0xfd8   : > { %9081 = vrot.lane.b32.xlu1 %v19650_v31, %s19126_s27 }
 0xfdb   : > { %9079 = vrot.lane.b32.xlu0 %v19652_v16, %s19126_s27 }
 0xffa   : > { %8943 = vmax.xlane.f32.xlu0 %v8942_v35 }
 0xffc   : > { %8940 = vmax.xlane.f32.xlu1 %v8939_v32 }
 0xffe   : > { %9045 = vadd.xlane.f32.xlu0 %v9044_v55 }
0x1000   : > { %9042 = vadd.xlane.f32.xlu1 %v9041_v20 }
0x1011   : > { %9168 = vrot.lane.b32.xlu1 %v19663_v40, %s19126_s27 }
0x1014   : > { %9166 = vrot.lane.b32.xlu0 %v19667_v45, %s19126_s27 }
0x1015   : > { %9255 = vrot.lane.b32.xlu1 %v19671_v42, %s19126_s27 }
0x1018   : > { %9342 = vrot.lane.b32.xlu0 %v19679_v53, %s19126_s27 }
0x1019   : > { %9253 = vrot.lane.b32.xlu1 %v19673_v50, %s19126_s27 }
0x101c   : > { %9429 = vrot.lane.b32.xlu0 %v23443_v0, %s19126_s27 }
0x101d   : > { %9340 = vrot.lane.b32.xlu1 %v19681_v13, %s19126_s27 }
0x1020   : > { %9516 = vrot.lane.b32.xlu0 %v19700_v18, %s19126_s27 }
0x1021   : > { %9427 = vrot.lane.b32.xlu1 %v19689_v60, %s19126_s27 }
0x1025   : > { %9514 = vrot.lane.b32.xlu1 %v19702_v52, %s19126_s27 }
0x1029   : > { %9601 = vrot.lane.b32.xlu1 %v19710_v6, %s19126_s27 }
0x102a   : > { %v9004_v12 = vpop.xlane.xlu0 %9003 }
0x102c   : > { %v9001_v32 = vpop.xlane.xlu1 %9000 }
0x102d   : > { %18663 = vrcp.f32 %v9001_v32 }
0x1032   : > { %v9010_v35 = vpop.xlane.xlu0 %9009 }
0x1036   : > { %v9007_v17 = vpop.xlane.xlu1 %9006 }
0x103a   : > { %v18664_v36 = vpop.eup %18663  ;;  %v9016_v55 = vpop.xlane.xlu0 %9015 }
0x103b   : > { %v9048_v27 = vmul.f32 %v18664_v36, %v21610_v24 }
0x103c   : > { %v9013_v63 = vpop.xlane.xlu1 %9012 }
0x103d   : > { %18665 = vrcp.f32 %v9013_v63  ;;  %17752 = vmatprep.mubr.msk.f32.mxu1 %vm1685_vm2, %v9048_v27 }
0x103e   : > { %18667 = vrcp.f32 %v9004_v12 }
0x103f   : > { %18669 = vrcp.f32 %v9007_v17 }
0x1042   : > { %v9022_v20 = vpop.xlane.xlu0 %9021 }
0x1044   : > { %v9019_v3 = vpop.xlane.xlu1 %9018 }
0x104a   : > { %v18666_v39 = vpop.eup %18665  ;;  %v9034_v25 = vpop.xlane.xlu0 %9033 }
0x104b   : > { %v9056_v46 = vmul.f32 %v18666_v39, %v21639_v33  ;;  %v18668_v30 = vpop.eup %18667 }
0x104c   : > { %v9031_v32 = vpop.xlane.xlu1 %9030  ;;  %v18670_v17 = vpop.eup %18669  ;;  %v9050_v39 = vmul.f32 %v18668_v30, %v21606_v5 }
0x104d   : > { %17766 = vmatprep.mubr.msk.f32.mxu0 %vm1685_vm2, %v9056_v46  ;;  %v9052_v46 = vmul.f32 %v18670_v17, %v21626_v57 }
0x104e   : > { %v8932_v49 = vpop.xlane.xlu0 %8931 }
0x104f   : > { %v8960_v24 = vsub.f32 %v21655_v59, %v8932_v49 }
0x1050   : > { %v8929_v36 = vpop.xlane.xlu1 %8928 }
0x1051   : > { %v8985_v63 = vmul.f32 1.442695, %v8960_v24  ;;  %v8959_v27 = vsub.f32 %v21663_v15, %v8929_v36 }
0x1052   : > { %v9080_v26 = vpop.permute.xlu0 %9079 }
0x1053   : > { %18671 = vpow2.f32 %v8985_v63  ;;  %v8983_v14 = vmul.f32 1.442695, %v8959_v27 }
0x1054   : > { %v9082_v12 = vpop.permute.xlu1 %9081 }
0x1055   : > { %18673 = vpow2.f32 %v8983_v14  ;;  %17748 = vmatprep.subr.mxu1 %v9082_v12 }
0x1056   : > { %17749 = vmatpush3.msra.mxu1 %v9082_v12  ;;  %18675 = vrcp.f32 %v9010_v35 }
0x1057   : > { %17750 = vmatprep.subr.mxu1 %v9080_v26  ;;  %18677 = vrcp.f32 %v9019_v3 }
0x1058   : > { %17751 = vmatpush3.msra.mxu1 %v9080_v26  ;;  %18679 = vrcp.f32 %v9016_v55 }
0x1059   : > { %17753 = vmatmul.mubr.msk.f32.vlgmr.msra.gmra.mxu1 %vm1685_vm2, %v9050_v39 }
0x105a   : > { %17759 = vmatprep.mubr.msk.f32.mxu1 %vm1685_vm2, %v9052_v46 }
0x1060   : > { %v21723_v49 = vpop.eup %18671 }
0x1061   : > { %v9026_v33 = vsel %vm1685_vm2, %v21723_v49, 0.0 }
0x1062   : > { %v21727_v59 = vpop.eup %18673  ;;  %9027 = vadd.xlane.f32.xlu0 %v9026_v33 }
0x1063   : > { %v9023_v14 = vsel %vm1685_vm2, %v21727_v59, 0.0  ;;  %v18676_v12 = vpop.eup %18675 }
0x1064   : > { %9024 = vadd.xlane.f32.xlu1 %v9023_v14  ;;  %v18678_v3 = vpop.eup %18677  ;;  %v9054_v55 = vmul.f32 %v18676_v12, %v21616_v9 }
0x1078   : > { %9603 = vrot.lane.b32.xlu0 %v19708_v4, %s19126_s27 }
0x1083   : > { %v8944_v30 = vpop.xlane.xlu0 %8943 }
0x1084   : > { %v8964_v5 = vsub.f32 %v21675_v37, %v8944_v30 }
0x1085   : > { %v8941_v57 = vpop.xlane.xlu1 %8940 }
0x1086   : > { %v8993_v26 = vmul.f32 1.442695, %v8964_v5  ;;  %v8963_v15 = vsub.f32 %v21677_v43, %v8941_v57  ;;  %v9060_v43 = vmul.f32 %v18678_v3, %v21647_v58 }
0x1087   : > { %v21735_v24 = vpop.xlane.xlu0 %9045 }
0x1088   : > { %18681 = vpow2.f32 %v8993_v26  ;;  %v8991_v36 = vmul.f32 1.442695, %v8963_v15 }
0x1089   : > { %18683 = vrcp.f32 %v9022_v20  ;;  %v9043_v63 = vpop.xlane.xlu1 %9042  ;;  %v18680_v20 = vpop.eup %18679 }
0x108a   : > { %18685 = vpow2.f32 %v8991_v36  ;;  %v9058_v33 = vmul.f32 %v18680_v20, %v21634_v47 }
0x108b   : > { %18687 = vrcp.f32 %v9031_v32  ;;  %v9167_v27 = vpop.permute.xlu0 %9166 }
0x108c   : > { %18689 = vrcp.f32 %v9034_v25 }
0x108d   : > { %v9169_v35 = vpop.permute.xlu1 %9168  ;;  %18691 = vrcp.f32 %v9043_v63 }
0x108e   : > { %17755 = vmatprep.subr.mxu1 %v9169_v35 }
0x108f   : > { %17756 = vmatpush3.msra.mxu1 %v9169_v35  ;;  %v9343_v37 = vpop.permute.xlu0 %9342 }
0x1090   : > { %17757 = vmatprep.subr.mxu1 %v9167_v27 }
0x1091   : > { %v9256_v17 = vpop.permute.xlu1 %9255  ;;  %17758 = vmatpush3.msra.mxu1 %v9167_v27 }
0x1092   : > { %17760 = vmatmul.mubr.msk.f32.vlgmr.msra.gmra.mxu1 %vm1685_vm2, %v9054_v55  ;;  %17762 = vmatprep.subr.mxu0 %v9256_v17 }
0x1093   : > { %17769 = vmatprep.subr.mxu1 %v9343_v37  ;;  %17763 = vmatpush3.msra.mxu0 %v9256_v17  ;;  %v9430_v39 = vpop.permute.xlu0 %9429 }
0x1094   : > { %17770 = vmatpush3.msra.mxu1 %v9343_v37  ;;  %17773 = vmatprep.mubr.msk.f32.mxu1 %vm1685_vm2, %v9060_v43  ;;  %v21815_v43 = vld [vmem:[#allocation8 + $0x10] sm:$0xff] }
0x1095   : > { %v21741_v32 = vpop.eup %18681  ;;  %v9254_v46 = vpop.permute.xlu1 %9253 }
0x1096   : > { %v18684_v9 = vpop.eup %18683  ;;  %17764 = vmatprep.subr.mxu0 %v9254_v46  ;;  %v9038_v25 = vsel %vm1685_vm2, %v21741_v32, 0.0 }
0x1097   : > { %v21746_v14 = vpop.eup %18685  ;;  %17765 = vmatpush3.msra.mxu0 %v9254_v46  ;;  %9039 = vadd.xlane.f32.xlu0 %v9038_v25  ;;  %v9062_v47 = vmul.f32 %v18684_v9, %v21643_v28  ;;  %v9517_v57 = vpop.permute.xlu0 %9516  ;;  %v23563_v9 = vld [vmem:[#allocation72_spill] sm:$0xff] }
0x1098   : > { %v18688_v58 = vpop.eup %18687  ;;  %17767 = vmatmul.mubr.msk.f32.vlgmr.msra.gmra.mxu0 %vm1685_vm2, %v9058_v33  ;;  %17776 = vmatprep.subr.mxu0 %v9430_v39  ;;  %v9035_v30 = vsel %vm1685_vm2, %v21746_v14, 0.0 }
0x1099   : > { %9036 = vadd.xlane.f32.xlu1 %v9035_v30  ;;  %v9341_v5 = vpop.permute.xlu1 %9340  ;;  %17777 = vmatpush3.msra.mxu0 %v9430_v39  ;;  %v9068_v26 = vmul.f32 %v18688_v58, %v21659_v54  ;;  %v18690_v36 = vpop.eup %18689 }
0x109a   : > { %17771 = vmatprep.subr.mxu1 %v9341_v5  ;;  %v18692_v63 = vpop.eup %18691  ;;  %v9070_v12 = vmul.f32 %v18690_v36, %v21653_v29 }
0x109b   : > { %17772 = vmatpush3.msra.mxu1 %v9341_v5  ;;  %v9076_v28 = vmul.f32 %v18692_v63, %v21685_v19 }
0x109c   : > { %17774 = vmatmul.mubr.msk.f32.vlgmr.msra.gmra.mxu1 %vm1685_vm2, %v9062_v47  ;;  %17783 = vmatprep.subr.mxu1 %v9517_v57 }
0x109d   : > { %v9428_v15 = vpop.permute.xlu1 %9427  ;;  %17784 = vmatpush3.msra.mxu1 %v9517_v57  ;;  %17787 = vmatprep.mubr.msk.f32.mxu1 %vm1685_vm2, %v9068_v26 }
0x109e   : > { %17778 = vmatprep.subr.mxu0 %v9428_v15 }
0x109f   : > { %17779 = vmatpush3.msra.mxu0 %v9428_v15 }
0x10a1   : > { %v9515_v27 = vpop.permute.xlu1 %9514 }
0x10a2   : > { %17785 = vmatprep.subr.mxu1 %v9515_v27 }
0x10a3   : > { %17786 = vmatpush3.msra.mxu1 %v9515_v27 }
0x10a4   : > { %17788 = vmatmul.mubr.msk.f32.vlgmr.msra.gmra.mxu1 %vm1685_vm2, %v9070_v12 }
0x10a5   : > { %17801 = vmatprep.mubr.msk.f32.mxu1 %vm1685_vm2, %v9076_v28  ;;  %v9602_v29 = vpop.permute.xlu1 %9601 }
0x10aa   : > { %9688 = vrot.lane.b32.xlu1 %v19718_v11, %s19126_s27 }
0x10ad   : > { %9690 = vrot.lane.b32.xlu0 %v19716_v7, %s19126_s27 }
0x10ae   : > { %9991 = vrot.lane.b32.xlu1 %v19652_v16, %s19127_s23 }
0x10b1   : > { %9993 = vrot.lane.b32.xlu0 %v19650_v31, %s19127_s23 }
0x10b2   : > { %10084 = vrot.lane.b32.xlu1 %v19663_v40, %s19127_s23 }
0x10b5   : > { %9987 = vrot.lane.b32.xlu0 %v23444_v34, %s19128_s4 }
0x10b6   : > { %10082 = vrot.lane.b32.xlu1 %v19667_v45, %s19127_s23 }
0x10b9   : > { %9989 = vrot.lane.b32.xlu0 %v23446_v10, %s19128_s4 }
0x10ba   : > { %10175 = vrot.lane.b32.xlu1 %v19671_v42, %s19127_s23 }
0x10bd   : > { %10078 = vrot.lane.b32.xlu0 %v23445_v1, %s19128_s4 }
0x10be   : > { %10173 = vrot.lane.b32.xlu1 %v19673_v50, %s19127_s23 }
0x10c1   : > { %10080 = vrot.lane.b32.xlu0 %v23448_v44, %s19128_s4 }
0x10c2   : > { %10266 = vrot.lane.b32.xlu1 %v19679_v53, %s19127_s23 }
0x10c5   : > { %10169 = vrot.lane.b32.xlu0 %v23501_v23, %s19128_s4 }
0x10c6   : > { %10264 = vrot.lane.b32.xlu1 %v19681_v13, %s19127_s23 }
0x10c9   : > { %10171 = vrot.lane.b32.xlu0 %v23450_v22, %s19128_s4 }
0x10ca   : > { %10260 = vrot.lane.b32.xlu1 %v23449_v48, %s19128_s4 }
0x10cd   : > { %10357 = vrot.lane.b32.xlu0 %v23443_v0, %s19127_s23 }
0x10ce   : > { %10355 = vrot.lane.b32.xlu1 %v19689_v60, %s19127_s23 }
0x10d1   : > { %10262 = vrot.lane.b32.xlu0 %v19807_v38, %s19128_s4 }
0x10d2   : > { %10351 = vrot.lane.b32.xlu1 %v19696_v61, %s19128_s4 }
0x10d5   : > { %10448 = vrot.lane.b32.xlu0 %v19700_v18, %s19127_s23 }
0x10d6   : > { %10446 = vrot.lane.b32.xlu1 %v19702_v52, %s19127_s23 }
0x10d9   : > { %10353 = vrot.lane.b32.xlu0 %v19821_v8, %s19128_s4 }
0x10da   : > { %10442 = vrot.lane.b32.xlu1 %v19810_v41, %s19128_s4 }
0x10dd   : > { %10539 = vrot.lane.b32.xlu0 %v19708_v4, %s19127_s23 }
0x10de   : > { %10537 = vrot.lane.b32.xlu1 %v19710_v6, %s19127_s23 }
0x10e1   : > { %10444 = vrot.lane.b32.xlu0 %v19835_v56, %s19128_s4 }
0x10e2   : > { %10533 = vrot.lane.b32.xlu1 %v19824_v51, %s19128_s4 }
0x10e5   : > { %10630 = vrot.lane.b32.xlu0 %v19716_v7, %s19127_s23 }
0x10e6   : > { %10628 = vrot.lane.b32.xlu1 %v19718_v11, %s19127_s23 }
0x10e9   : > { %10535 = vrot.lane.b32.xlu0 %v19849_v2, %s19128_s4 }
0x10ea   : > { %10626 = vrot.lane.b32.xlu1 %v19858_v62, %s19128_s4 }
0x10eb   : > { %v9028_v54 = vpop.xlane.xlu0 %9027 }
0x10ec   : > { %18693 = vrcp.f32 %v9028_v54 }
0x10ed   : > { %v9025_v19 = vpop.xlane.xlu1 %9024  ;;  %10624 = vrot.lane.b32.xlu0 %v23502_v21, %s19128_s4 }
0x10ee   : > { %18695 = vrcp.f32 %v9025_v19 }
0x10ef   : > { %v9604_v35 = vpop.permute.xlu0 %9603  ;;  %18697 = vrcp.f32 %v21735_v24 }
0x10f0   : > { %17790 = vmatprep.subr.mxu0 %v9604_v35 }
0x10f9   : > { %v18694_v3 = vpop.eup %18693 }
0x10fa   : > { %v9066_v17 = vmul.f32 %v18694_v3, %v21723_v49 }
0x10fb   : > { %v18696_v37 = vpop.eup %18695 }
0x10fc   : > { %v9064_v55 = vmul.f32 %v18696_v37, %v21727_v59  ;;  %v18698_v59 = vpop.eup %18697 }
0x10fd   : > { %v9078_v33 = vmul.f32 %v18698_v59, %v23563_v9 }
0x10fe   : > { %17780 = vmatprep.mubr.msk.f32.mxu0 %vm1685_vm2, %v9064_v55 }
0x10ff   : > { %17781 = vmatmul.mubr.msk.f32.vlgmr.msra.gmra.mxu0 %vm1685_vm2, %v9066_v17 }
0x1100   : > { %17791 = vmatpush3.msra.mxu0 %v9604_v35 }
0x1101   : > { %17792 = vmatprep.subr.mxu0 %v9602_v29 }
0x1102   : > { %17793 = vmatpush3.msra.mxu0 %v9602_v29 }
0x1103   : > { %17804 = vmatprep.subr.msk.mxu0 %vm4208_vm3, %v21815_v43 }
0x1119   : > { %v17754_v57 = vpop.f32.mrf.mxu1 }
0x111b   : > { %v9157_v27 = vpop.f32.mrf.mxu1 }
0x1120   : > { %v9040_v20 = vpop.xlane.xlu0 %9039 }
0x1121   : > { %18699 = vrcp.f32 %v9040_v20 }
0x1122   : > { %v9037_v39 = vpop.xlane.xlu1 %9036 }
0x1123   : > { %18701 = vrcp.f32 %v9037_v39 }
0x1124   : > { %v9691_v49 = vpop.permute.xlu0 %9690 }
0x1125   : > { %17797 = vmatprep.subr.mxu1 %v9691_v49 }
0x1126   : > { %v9689_v46 = vpop.permute.xlu1 %9688  ;;  %17798 = vmatpush3.msra.mxu1 %v9691_v49 }
0x1127   : > { %17799 = vmatprep.subr.mxu1 %v9689_v46 }
0x1128   : > { %17800 = vmatpush3.msra.mxu1 %v9689_v46  ;;  %v9994_v25 = vpop.permute.xlu0 %9993 }
0x1129   : > { %17802 = vmatmul.mubr.msk.f32.vlgmr.msra.gmra.mxu1 %vm1685_vm2, %v9078_v33  ;;  %17830 = vmatprep.subr.msk.mxu1 %vm962_vm1, %v9994_v25 }
0x112a   : > { %v9992_v58 = vpop.permute.xlu1 %9991  ;;  %17831 = vmatpush3.xpose.msk.msra.mxu1 %vm962_vm1, %v9994_v25 }
0x112b   : > { %17832 = vmatprep.subr.msk.mxu1 %vm962_vm1, %v9992_v58 }
0x112c   : > { %v9988_v24 = vpop.permute.xlu0 %9987 }
0x112d   : > { %17834 = vmatprep.mubr.msk.f32.mxu1 %vm962_vm1, %v9988_v24 }
0x112e   : > { %v10085_v30 = vpop.permute.xlu1 %10084  ;;  %17833 = vmatpush3.xpose.msk.msra.mxu1 %vm962_vm1, %v9992_v58  ;;  %v18700_v5 = vpop.eup %18699 }
0x112f   : > { %17837 = vmatprep.subr.msk.mxu1 %vm962_vm1, %v10085_v30  ;;  %v9074_v36 = vmul.f32 %v18700_v5, %v21741_v32 }
0x1130   : > { %v18702_v47 = vpop.eup %18701  ;;  %v9990_v26 = vpop.permute.xlu0 %9989 }
0x1131   : > { %17835 = vmatmul.mubr.msk.f32.vlgmr.msra.gmra.mxu1 %vm962_vm1, %v9990_v26  ;;  %v9072_v15 = vmul.f32 %v18702_v47, %v21746_v14 }
0x1132   : > { %v10083_v63 = vpop.permute.xlu1 %10082  ;;  %17838 = vmatpush3.xpose.msk.msra.mxu1 %vm962_vm1, %v10085_v30 }
0x1133   : > { %17794 = vmatprep.mubr.msk.f32.mxu0 %vm1685_vm2, %v9072_v15  ;;  %17839 = vmatprep.subr.msk.mxu1 %vm962_vm1, %v10083_v63 }
0x1134   : > { %17795 = vmatmul.mubr.msk.f32.vlgmr.msra.gmra.mxu0 %vm1685_vm2, %v9074_v36  ;;  %v10079_v12 = vpop.permute.xlu0 %10078 }
0x1135   : > { %17806 = vmatprep.mubr.msk.f32.mxu0 %vm962_vm1, %v9157_v27  ;;  %17841 = vmatprep.mubr.msk.f32.mxu1 %vm962_vm1, %v10079_v12 }
0x1136   : > { %v10176_v28 = vpop.permute.xlu1 %10175  ;;  %17840 = vmatpush3.xpose.msk.msra.mxu1 %vm962_vm1, %v10083_v63  ;;  %17805 = vmatpush3.msk.msra.mxu0 %vm4208_vm3, %v21815_v43 }
0x1137   : > { %17844 = vmatprep.subr.msk.mxu1 %vm962_vm1, %v10176_v28 }
0x1138   : > { %17807 = vmatmul.mubr.msk.f32.vlgmr.msra.gmra.mxu0 %vm962_vm1, %v17754_v57  ;;  %v10081_v32 = vpop.permute.xlu0 %10080 }
0x1139   : > { %17842 = vmatmul.mubr.msk.f32.vlgmr.msra.gmra.mxu1 %vm962_vm1, %v10081_v32 }
0x113a   : > { %v10174_v14 = vpop.permute.xlu1 %10173  ;;  %17845 = vmatpush3.xpose.msk.msra.mxu1 %vm962_vm1, %v10176_v28 }
0x113b   : > { %17846 = vmatprep.subr.msk.mxu1 %vm962_vm1, %v10174_v14 }
0x113c   : > { %v10170_v29 = vpop.permute.xlu0 %10169 }
0x113d   : > { %17848 = vmatprep.mubr.msk.f32.mxu1 %vm962_vm1, %v10170_v29 }
0x113e   : > { %v10267_v54 = vpop.permute.xlu1 %10266  ;;  %17847 = vmatpush3.xpose.msk.msra.mxu1 %vm962_vm1, %v10174_v14 }
0x113f   : > { %17851 = vmatprep.subr.msk.mxu1 %vm962_vm1, %v10267_v54 }
0x1140   : > { %v10172_v19 = vpop.permute.xlu0 %10171 }
0x1141   : > { %17849 = vmatmul.mubr.msk.f32.vlgmr.msra.gmra.mxu1 %vm962_vm1, %v10172_v19 }
0x1142   : > { %v10265_v35 = vpop.permute.xlu1 %10264  ;;  %17852 = vmatpush3.xpose.msk.msra.mxu1 %vm962_vm1, %v10267_v54 }
0x1143   : > { %17853 = vmatprep.subr.msk.mxu1 %vm962_vm1, %v10265_v35 }
0x1144   : > { %v10358_v3 = vpop.permute.xlu0 %10357 }
0x1145   : > { %17858 = vmatprep.subr.msk.mxu0 %vm962_vm1, %v10358_v3 }
0x1146   : > { %v10261_v37 = vpop.permute.xlu1 %10260  ;;  %17854 = vmatpush3.xpose.msk.msra.mxu1 %vm962_vm1, %v10265_v35  ;;  %17859 = vmatpush3.xpose.msk.msra.mxu0 %vm962_vm1, %v10358_v3 }
0x1147   : > { %17855 = vmatprep.mubr.msk.f32.mxu1 %vm962_vm1, %v10261_v37 }
0x1148   : > { %v10263_v55 = vpop.permute.xlu0 %10262 }
0x1149   : > { %17856 = vmatmul.mubr.msk.f32.vlgmr.msra.gmra.mxu1 %vm962_vm1, %v10263_v55 }
0x114a   : > { %v10356_v17 = vpop.permute.xlu1 %10355 }
0x114b   : > { %17860 = vmatprep.subr.msk.mxu0 %vm962_vm1, %v10356_v17 }
0x114c   : > { %17861 = vmatpush3.xpose.msk.msra.mxu0 %vm962_vm1, %v10356_v17  ;;  %v10449_v20 = vpop.permute.xlu0 %10448 }
0x114d   : > { %17865 = vmatprep.subr.msk.mxu1 %vm962_vm1, %v10449_v20 }
0x114e   : > { %v21859_v39 = vpop.permute.xlu1 %10351  ;;  %17866 = vmatpush3.xpose.msk.msra.mxu1 %vm962_vm1, %v10449_v20  ;;  %v23564_v20 = vld [vmem:[#allocation53_spill] sm:$0xff] }
0x1150   : > { %v21862_v59 = vpop.permute.xlu0 %10353 }
0x1152   : > { %v10447_v49 = vpop.permute.xlu1 %10446  ;;  %v17761_v46 = vpop.f32.mrf.mxu1 }
0x1153   : > { %17867 = vmatprep.subr.msk.mxu1 %vm962_vm1, %v10447_v49 }
0x1154   : > { %v9244_v9 = vpop.f32.mrf.mxu1  ;;  %17868 = vmatpush3.xpose.msk.msra.mxu1 %vm962_vm1, %v10447_v49  ;;  %v21866_v33 = vpop.permute.xlu0 %10539  ;;  %v23565_v49 = vld [vmem:[#allocation32_spill] sm:$0xff] }
0x1155   : > { %17809 = vmatprep.mubr.msk.f32.mxu0 %vm962_vm1, %v9244_v9  ;;  %17872 = vmatprep.subr.msk.mxu0 %vm962_vm1, %v21866_v33 }
0x1156   : > { %v10443_v25 = vpop.permute.xlu1 %10442  ;;  %17810 = vmatmul.mubr.msk.f32.gmra.mxu0 %vm962_vm1, %v17761_v46  ;;  %v4473_v46 = vadd.f32 %v23565_v49, %v23564_v20  ;;  %v23573_v49 = vld [vmem:[#allocation47_spill] sm:$0xff] }
0x1157   : > { %17869 = vmatprep.mubr.msk.f32.mxu1 %vm962_vm1, %v10443_v25  ;;  %v23566_v25 = vld [vmem:[#allocation37_spill] sm:$0xff] }
0x1158   : > { %v17768_v58 = vpop.f32.mrf.mxu0  ;;  %v10445_v24 = vpop.permute.xlu0 %10444 }
0x1159   : > { %17870 = vmatmul.mubr.msk.f32.vlgmr.msra.gmra.mxu1 %vm962_vm1, %v10445_v24 }
0x115a   : > { %v21874_v30 = vpop.permute.xlu1 %10537  ;;  %v9331_v5 = vpop.f32.mrf.mxu0 }
0x115b   : > { %17812 = vmatprep.mubr.msk.f32.mxu0 %vm962_vm1, %v9331_v5  ;;  %v23567_v5 = vld [vmem:[#allocation51_spill] sm:$0xff] }
0x115c   : > { %v17775_v47 = vpop.f32.mrf.mxu1  ;;  %17813 = vmatmul.mubr.msk.f32.gmra.mxu0 %vm962_vm1, %v17768_v58  ;;  %v10631_v57 = vpop.permute.xlu0 %10630  ;;  %v6347_v58 = vadd.f32 %v23566_v25, %v4473_v46  ;;  %v23575_v25 = vld [vmem:[#allocation64_spill] sm:$0xff] }
0x115d   : > { %17879 = vmatprep.subr.msk.mxu1 %vm962_vm1, %v10631_v57 }
0x115e   : > { %v10534_v26 = vpop.permute.xlu1 %10533  ;;  %v9418_v15 = vpop.f32.mrf.mxu1  ;;  %17880 = vmatpush3.xpose.msk.msra.mxu1 %vm962_vm1, %v10631_v57  ;;  %v23568_v57 = vld [vmem:[#allocation62_spill] sm:$0xff] }
0x115f   : > { %17815 = vmatprep.mubr.msk.f32.mxu0 %vm962_vm1, %v9418_v15 }
0x1160   : > { %17816 = vmatmul.mubr.msk.f32.gmra.mxu0 %vm962_vm1, %v17775_v47  ;;  %v10536_v36 = vpop.permute.xlu0 %10535  ;;  %v8159_v47 = vadd.f32 %v23567_v5, %v6347_v58  ;;  %v23577_v5 = vld [vmem:[#allocation58_spill] sm:$0xff] }
0x1162   : > { %v10629_v63 = vpop.permute.xlu1 %10628 }
0x1163   : > { %17881 = vmatprep.subr.msk.mxu1 %vm962_vm1, %v10629_v63 }
0x1164   : > { %17882 = vmatpush3.xpose.msk.msra.mxu1 %vm962_vm1, %v10629_v63  ;;  %v10625_v27 = vpop.permute.xlu0 %10624  ;;  %v17789_v28 = vpop.f32.mrf.mxu1 }
0x1165   : > { %17883 = vmatprep.mubr.msk.f32.mxu1 %vm962_vm1, %v10625_v27 }
0x1166   : > { %v10627_v12 = vpop.permute.xlu1 %10626  ;;  %v9592_v29 = vpop.f32.mrf.mxu1 }
0x1167   : > { %17884 = vmatmul.mubr.msk.f32.vlgmr.msra.gmra.mxu1 %vm962_vm1, %v10627_v12 }
0x11bf   : > { %v17782_v32 = vpop.f32.mrf.mxu0 }
0x11c1   : > { %v9505_v14 = vpop.f32.mrf.mxu0 }
0x11c2   : > { %17818 = vmatprep.mubr.msk.f32.mxu0 %vm962_vm1, %v9505_v14 }
0x11c3   : > { %17819 = vmatmul.mubr.msk.f32.gmra.mxu0 %vm962_vm1, %v17782_v32 }
0x11c4   : > { %17821 = vmatprep.mubr.msk.f32.mxu0 %vm962_vm1, %v9592_v29 }
0x11c7   : > { %17822 = vmatmul.mubr.msk.f32.gmra.mxu0 %vm962_vm1, %v17789_v28 }
0x11e9   : > { %v17803_v54 = vpop.f32.mrf.mxu1 }
0x11eb   : > { %v9766_v19 = vpop.f32.mrf.mxu1 }
0x11f1   : > { %v21890_v35 = vpop.f32.mrf.mxu1 }
0x11f2   : > { %v10718_v3 = vsel %vm1685_vm2, %v21890_v35, -inf }
0x11f3   : > { %10719 = vmax.xlane.f32.xlu1 %v10718_v3  ;;  %v21894_v37 = vpop.f32.mrf.mxu1 }
0x11f4   : > { %v17796_v55 = vpop.f32.mrf.mxu0  ;;  %v10715_v17 = vsel %vm1685_vm2, %v21894_v37, -inf }
0x11f5   : > { %10716 = vmax.xlane.f32.xlu0 %v10715_v17  ;;  %v23572_v17 = vld [vmem:[#allocation34_spill] sm:$0xff] }
0x11f6   : > { %v9679_v9 = vpop.f32.mrf.mxu0 }
0x11f7   : > { %17824 = vmatprep.mubr.msk.f32.mxu0 %vm962_vm1, %v9679_v9  ;;  %v23574_v9 = vld [vmem:[#allocation48_spill] sm:$0xff] }
0x11f8   : > { %v17808_v24 = vpop.f32.mrf.mxu0  ;;  %17825 = vmatmul.mubr.msk.f32.gmra.mxu0 %vm962_vm1, %v17796_v55  ;;  %v23571_v55 = vld [vmem:[#allocation55_spill] sm:$0xff] }
0x11f9   : > { %v21905_v15 = vadd.f32 %v17808_v24, %v23568_v57  ;;  %17827 = vmatprep.mubr.msk.f32.mxu0 %vm962_vm1, %v9766_v19  ;;  %v21908_v63 = vpop.f32.mrf.mxu1  ;;  %v4483_v20 = vadd.f32 %v23572_v17, %v23571_v55  ;;  %v23581_v17 = vld [vmem:[#allocation44_spill] sm:$0xff] }
0x11fa   : > { %v9892_v27 = vpop.f32.mrf.mxu0  ;;  %v10724_v12 = vsel %vm1685_vm2, %v21908_v63, -inf }
0x11fb   : > { %23569 = vst [vmem:[#allocation72_spill] sm:$0xff] %v21905_v15  ;;  %v21912_v28 = vadd.f32 %v9892_v27, %v8159_v47  ;;  %10725 = vmax.xlane.f32.xlu0 %v10724_v12  ;;  %v21914_v32 = vpop.f32.mrf.mxu1  ;;  %v23578_v47 = vld [vmem:[#allocation39_spill] sm:$0xff] }
0x11fc   : > { %17828 = vmatmul.mubr.msk.f32.gmra.mxu0 %vm962_vm1, %v17803_v54  ;;  %v10721_v14 = vsel %vm1685_vm2, %v21914_v32, -inf  ;;  %v4493_v57 = vadd.f32 %v23578_v47, %v23577_v5 }
0x11fd   : > { %23570 = vst [vmem:[#allocation53_spill] sm:$0xff] %v21912_v28  ;;  %17862 = vmatprep.mubr.msk.f32.mxu0 %vm962_vm1, %v21859_v39  ;;  %v23599_v28 = vld [vmem:[#allocation60_spill] sm:$0xff] }
0x11ff   : > { %10722 = vmax.xlane.f32.xlu0 %v10721_v14 }
0x1200   : > { %17863 = vmatmul.mubr.msk.f32.vlgmr.msra.gmra.mxu0 %vm962_vm1, %v21862_v59 }
0x1201   : > { %17873 = vmatpush3.xpose.msk.msra.mxu0 %vm962_vm1, %v21866_v33  ;;  %v21925_v29 = vpop.f32.mrf.mxu1  ;;  %17876 = vmatprep.mubr.msk.f32.mxu0 %vm962_vm1, %v10534_v26 }
0x1202   : > { %17874 = vmatprep.subr.msk.mxu0 %vm962_vm1, %v21874_v30  ;;  %v10730_v39 = vsel %vm1685_vm2, %v21925_v29, -inf }
0x1203   : > { %10731 = vmax.xlane.f32.xlu0 %v10730_v39  ;;  %v21932_v54 = vpop.f32.mrf.mxu1  ;;  %v23580_v39 = vld [vmem:[#allocation56_spill] sm:$0xff] }
0x1204   : > { %v10727_v19 = vsel %vm1685_vm2, %v21932_v54, -inf }
0x1205   : > { %17875 = vmatpush3.xpose.msk.msra.mxu0 %vm962_vm1, %v21874_v30  ;;  %10728 = vmax.xlane.f32.xlu1 %v10727_v19  ;;  %v6349_v30 = vadd.f32 %v23573_v49, %v4483_v20  ;;  %v6351_v19 = vadd.f32 %v23580_v39, %v4493_v57  ;;  %v23582_v49 = vld [vmem:[#allocation66_spill] sm:$0xff] }
0x1207   : > { %v8163_v20 = vadd.f32 %v23581_v17, %v6351_v19 }
0x1208   : > { %17877 = vmatmul.mubr.msk.f32.vlgmr.msra.gmra.mxu0 %vm962_vm1, %v10536_v36  ;;  %v8161_v36 = vadd.f32 %v23574_v9, %v6349_v30 }
0x1209   : > { %v21939_v59 = vpop.f32.mrf.mxu1 }
0x120a   : > { %v10736_v33 = vsel %vm1685_vm2, %v21939_v59, -inf }
0x120b   : > { %10737 = vmax.xlane.f32.xlu0 %v10736_v33  ;;  %v21943_v26 = vpop.f32.mrf.mxu1 }
0x120c   : > { %v10733_v3 = vsel %vm1685_vm2, %v21943_v26, -inf }
0x120d   : > { %10734 = vmax.xlane.f32.xlu1 %v10733_v3 }
0x1216   : > { %v17811_v46 = vpop.f32.mrf.mxu0 }
0x1217   : > { %v21952_v58 = vadd.f32 %v17811_v46, %v23575_v25  ;;  %v23585_v25 = vld [vmem:[#allocation68_spill] sm:$0xff] }
0x1218   : > { %v9902_v24 = vpop.f32.mrf.mxu0 }
0x1219   : > { %23576 = vst [vmem:[#allocation32_spill] sm:$0xff] %v21952_v58  ;;  %v21956_v27 = vadd.f32 %v9902_v24, %v8161_v36  ;;  %v21958_v12 = vpop.f32.mrf.mxu1  ;;  %v23593_v58 = vld [vmem:[#allocation54_spill] sm:$0xff] }
0x121a   : > { %v10748_v14 = vsel %vm1685_vm2, %v21958_v12, -inf }
0x121b   : > { %23579 = vst [vmem:[#allocation37_spill] sm:$0xff] %v21956_v27  ;;  %10749 = vmax.xlane.f32.xlu0 %v10748_v14  ;;  %v21963_v33 = vpop.f32.mrf.mxu1 }
0x121c   : > { %v17814_v3 = vpop.f32.mrf.mxu0  ;;  %v10745_v55 = vsel %vm1685_vm2, %v21963_v33, -inf }
0x121d   : > { %v21969_v30 = vadd.f32 %v17814_v3, %v23582_v49  ;;  %10746 = vmax.xlane.f32.xlu1 %v10745_v55  ;;  %v23588_v49 = vld [vmem:[#allocation41_spill] sm:$0xff] }
0x121e   : > { %v9912_v46 = vpop.f32.mrf.mxu0 }
0x121f   : > { %23583 = vst [vmem:[#allocation51_spill] sm:$0xff] %v21969_v30  ;;  %v21971_v9 = vadd.f32 %v9912_v46, %v8163_v20  ;;  %v23587_v20 = vld [vmem:[#allocation63_spill] sm:$0xff]  ;;  %v23591_v30 = vld [vmem:[#allocation65_spill] sm:$0xff] }
0x1220   : > { %v17817_v36 = vpop.f32.mrf.mxu0  ;;  %v4513_v46 = vadd.f32 %v23588_v49, %v23587_v20  ;;  %v23596_v49 = vld [vmem:[#allocation36_spill] sm:$0xff] }
0x1221   : > { %23584 = vst [vmem:[#allocation62_spill] sm:$0xff] %v21971_v9  ;;  %v21974_v24 = vadd.f32 %v17817_v36, %v23585_v25 }
0x1222   : > { %v21988_v36 = vpop.f32.mrf.mxu0 }
0x1223   : > { %23586 = vst [vmem:[#allocation55_spill] sm:$0xff] %v21974_v24  ;;  %23589 = vst [vmem:[#allocation34_spill] sm:$0xff] %v21988_v36 }
0x1227   : > { %v21976_v5 = vpop.f32.mrf.mxu1 }
0x1228   : > { %v10760_v47 = vsel %vm1685_vm2, %v21976_v5, -inf }
0x1229   : > { %10761 = vmax.xlane.f32.xlu0 %v10760_v47  ;;  %v21980_v57 = vpop.f32.mrf.mxu1  ;;  %v23590_v47 = vld [vmem:[#allocation33_spill] sm:$0xff] }
0x122a   : > { %v10757_v14 = vsel %vm1685_vm2, %v21980_v57, -inf  ;;  %v6355_v24 = vadd.f32 %v23590_v47, %v4513_v46 }
0x122b   : > { %10758 = vmax.xlane.f32.xlu1 %v10757_v14  ;;  %v23592_v14 = vld [vmem:[#allocation50_spill] sm:$0xff] }
0x122c   : > { %v4523_v27 = vadd.f32 %v23592_v14, %v23591_v30 }
0x122e   : > { %v6357_v36 = vadd.f32 %v23596_v49, %v4523_v27 }
0x127c   : > { %v10720_v39 = vpop.xlane.xlu1 %10719 }
0x127d   : > { %v10764_v19 = vsub.f32 %v21890_v35, %v10720_v39  ;;  %v8167_v35 = vadd.f32 %v23593_v58, %v6355_v24  ;;  %v23594_v39 = vld [vmem:[#allocation40_spill] sm:$0xff] }
0x127e   : > { %v10717_v3 = vpop.xlane.xlu0 %10716 }
0x127f   : > { %v10781_v55 = vmul.f32 1.442695, %v10764_v19  ;;  %v10763_v17 = vsub.f32 %v21894_v37, %v10717_v3 }
0x1281   : > { %18703 = vpow2.f32 %v10781_v55  ;;  %v10779_v25 = vmul.f32 1.442695, %v10763_v17 }
0x1283   : > { %18705 = vpow2.f32 %v10779_v25  ;;  %v17820_v9 = vpop.f32.mrf.mxu0  ;;  %v23598_v25 = vld [vmem:[#allocation42_spill] sm:$0xff] }
0x1284   : > { %v21995_v19 = vadd.f32 %v17820_v9, %v23594_v39  ;;  %v10726_v37 = vpop.xlane.xlu0 %10725  ;;  %v8169_v47 = vadd.f32 %v23598_v25, %v6357_v36 }
0x1285   : > { %v10766_v3 = vsub.f32 %v21908_v63, %v10726_v37  ;;  %v9932_v20 = vpop.f32.mrf.mxu0 }
0x1286   : > { %23595 = vst [vmem:[#allocation47_spill] sm:$0xff] %v21995_v19  ;;  %v21999_v55 = vadd.f32 %v9932_v20, %v8167_v35 }
0x1287   : > { %v10785_v17 = vmul.f32 1.442695, %v10766_v3  ;;  %v17823_v46 = vpop.f32.mrf.mxu0 }
0x1288   : > { %23597 = vst [vmem:[#allocation48_spill] sm:$0xff] %v21999_v55  ;;  %v22003_v15 = vadd.f32 %v17823_v46, %v23599_v28  ;;  %v10723_v30 = vpop.xlane.xlu0 %10722  ;;  %v23613_v55 = vld [vmem:[#allocation59_spill] sm:$0xff] }
0x1289   : > { %18707 = vpow2.f32 %v10785_v17  ;;  %v10765_v58 = vsub.f32 %v21914_v32, %v10723_v30  ;;  %v9942_v9 = vpop.f32.mrf.mxu0 }
0x128a   : > { %23600 = vst [vmem:[#allocation64_spill] sm:$0xff] %v22003_v15  ;;  %v22006_v24 = vadd.f32 %v9942_v9, %v8169_v47  ;;  %v23612_v15 = vld [vmem:[#allocation71_spill] sm:$0xff] }
0x128b   : > { %v10783_v63 = vmul.f32 1.442695, %v10765_v58 }
0x128c   : > { %23601 = vst [vmem:[#allocation58_spill] sm:$0xff] %v22006_v24  ;;  %v10732_v14 = vpop.xlane.xlu0 %10731 }
0x128d   : > { %18709 = vpow2.f32 %v10783_v63  ;;  %v10768_v27 = vsub.f32 %v21925_v29, %v10732_v14 }
0x128e   : > { %v22009_v35 = vpop.eup %18703  ;;  %v10729_v39 = vpop.xlane.xlu1 %10728 }
0x128f   : > { %v10789_v37 = vmul.f32 1.442695, %v10768_v27  ;;  %v10767_v36 = vsub.f32 %v21932_v54, %v10729_v39  ;;  %v10814_v28 = vsel %vm1685_vm2, %v22009_v35, 0.0 }
0x1290   : > { %v22014_v3 = vpop.eup %18705  ;;  %10815 = vadd.xlane.f32.xlu0 %v10814_v28 }
0x1291   : > { %18711 = vpow2.f32 %v10789_v37  ;;  %v10787_v32 = vmul.f32 1.442695, %v10767_v36  ;;  %v10811_v20 = vsel %vm1685_vm2, %v22014_v3, 0.0 }
0x1292   : > { %10812 = vadd.xlane.f32.xlu1 %v10811_v20 }
0x1293   : > { %18713 = vpow2.f32 %v10787_v32 }
0x1294   : > { %v10738_v29 = vpop.xlane.xlu0 %10737 }
0x1295   : > { %v10770_v49 = vsub.f32 %v21939_v59, %v10738_v29 }
0x1296   : > { %v22019_v17 = vpop.eup %18707  ;;  %v10735_v46 = vpop.xlane.xlu1 %10734 }
0x1297   : > { %v10793_v54 = vmul.f32 1.442695, %v10770_v49  ;;  %v10769_v25 = vsub.f32 %v21943_v26, %v10735_v46  ;;  %v10820_v47 = vsel %vm1685_vm2, %v22019_v17, 0.0 }
0x1298   : > { %10821 = vadd.xlane.f32.xlu0 %v10820_v47 }
0x1299   : > { %18715 = vpow2.f32 %v10793_v54  ;;  %v10791_v30 = vmul.f32 1.442695, %v10769_v25  ;;  %v23603_v54 = vld [vmem:[#allocation43_spill] sm:$0xff] }
0x129a   : > { %v22024_v58 = vpop.eup %18709 }
0x129b   : > { %18717 = vpow2.f32 %v10791_v30  ;;  %v10817_v9 = vsel %vm1685_vm2, %v22024_v58, 0.0  ;;  %v23604_v30 = vld [vmem:[#allocation35_spill] sm:$0xff] }
0x129c   : > { %10818 = vadd.xlane.f32.xlu1 %v10817_v9 }
0x129e   : > { %v22028_v59 = vpop.eup %18711 }
0x129f   : > { %v10826_v63 = vsel %vm1685_vm2, %v22028_v59, 0.0 }
0x12a0   : > { %v22032_v14 = vpop.eup %18713  ;;  %10827 = vadd.xlane.f32.xlu0 %v10826_v63 }
0x12a1   : > { %v10823_v26 = vsel %vm1685_vm2, %v22032_v14, 0.0 }
0x12a2   : > { %10824 = vadd.xlane.f32.xlu1 %v10823_v26 }
0x12a4   : > { %v10750_v27 = vpop.xlane.xlu0 %10749 }
0x12a5   : > { %v10774_v39 = vsub.f32 %v21958_v12, %v10750_v27  ;;  %v23602_v12 = vld [vmem:[#allocation67_spill] sm:$0xff]  ;;  %v23605_v27 = vld [vmem:[#allocation69_spill] sm:$0xff] }
0x12a6   : > { %v22037_v37 = vpop.eup %18715  ;;  %v10747_v36 = vpop.xlane.xlu1 %10746  ;;  %v4533_v25 = vadd.f32 %v23603_v54, %v23602_v12  ;;  %v23610_v54 = vld [vmem:[#allocation38_spill] sm:$0xff] }
0x12a7   : > { %v10801_v28 = vmul.f32 1.442695, %v10774_v39  ;;  %v10773_v32 = vsub.f32 %v21963_v33, %v10747_v36  ;;  %v10832_v20 = vsel %vm1685_vm2, %v22037_v37, 0.0  ;;  %v23606_v39 = vld [vmem:[#allocation46_spill] sm:$0xff] }
0x12a8   : > { %v22042_v29 = vpop.eup %18717  ;;  %10833 = vadd.xlane.f32.xlu0 %v10832_v20  ;;  %v6359_v33 = vadd.f32 %v23604_v30, %v4533_v25  ;;  %v4543_v36 = vadd.f32 %v23606_v39, %v23605_v27  ;;  %v23608_v20 = vld [vmem:[#allocation52_spill] sm:$0xff] }
0x12a9   : > { %18719 = vpow2.f32 %v10801_v28  ;;  %v10799_v49 = vmul.f32 1.442695, %v10773_v32  ;;  %v10829_v46 = vsel %vm1685_vm2, %v22042_v29, 0.0  ;;  %v23607_v28 = vld [vmem:[#allocation57_spill] sm:$0xff] }
0x12aa   : > { %10830 = vadd.xlane.f32.xlu1 %v10829_v46  ;;  %v8171_v32 = vadd.f32 %v23607_v28, %v6359_v33  ;;  %v6361_v25 = vadd.f32 %v23610_v54, %v4543_v36 }
0x12ab   : > { %18721 = vpow2.f32 %v10799_v49 }
0x12b6   : > { %v22048_v47 = vpop.eup %18719 }
0x12b7   : > { %v10844_v9 = vsel %vm1685_vm2, %v22048_v47, 0.0 }
0x12b8   : > { %v22053_v63 = vpop.eup %18721  ;;  %v17826_v26 = vpop.f32.mrf.mxu0  ;;  %10845 = vadd.xlane.f32.xlu0 %v10844_v9  ;;  %v8173_v9 = vadd.f32 %v23612_v15, %v6361_v25 }
0x12b9   : > { %v22059_v49 = vadd.f32 %v17826_v26, %v23608_v20  ;;  %v10841_v46 = vsel %vm1685_vm2, %v22053_v63, 0.0  ;;  %v10762_v15 = vpop.xlane.xlu0 %10761 }
0x12ba   : > { %v9952_v12 = vpop.f32.mrf.mxu0  ;;  %10842 = vadd.xlane.f32.xlu1 %v10841_v46 }
0x12bb   : > { %23609 = vst [vmem:[#allocation39_spill] sm:$0xff] %v22059_v49  ;;  %v22064_v30 = vadd.f32 %v9952_v12, %v8171_v32 }
0x12bc   : > { %v17829_v24 = vpop.f32.mrf.mxu0 }
0x12bd   : > { %23611 = vst [vmem:[#allocation56_spill] sm:$0xff] %v22064_v30  ;;  %v22068_v19 = vadd.f32 %v17829_v24, %v23613_v55  ;;  %v10759_v55 = vpop.xlane.xlu1 %10758  ;;  %v10778_v24 = vsub.f32 %v21976_v5, %v10762_v15 }
0x12be   : > { %v9962_v27 = vpop.f32.mrf.mxu0  ;;  %v10777_v32 = vsub.f32 %v21980_v57, %v10759_v55 }
0x12bf   : > { %23614 = vst [vmem:[#allocation44_spill] sm:$0xff] %v22068_v19  ;;  %v22070_v33 = vadd.f32 %v9962_v27, %v8173_v9  ;;  %v10809_v20 = vmul.f32 1.442695, %v10778_v24 }
0x12c0   : > { %v22072_v26 = vpop.f32.mrf.mxu0  ;;  %v10807_v46 = vmul.f32 1.442695, %v10777_v32 }
0x12c1   : > { %23615 = vst [vmem:[#allocation66_spill] sm:$0xff] %v22070_v33  ;;  %v10742_v39 = vsel %vm1685_vm2, %v22072_v26, -inf  ;;  %18723 = vpow2.f32 %v10809_v20 }
0x12c2   : > { %v22076_v28 = vpop.f32.mrf.mxu0  ;;  %10743 = vmax.xlane.f32.xlu0 %v10742_v39  ;;  %18725 = vpow2.f32 %v10807_v46 }
0x12c3   : > { %v10739_v36 = vsel %vm1685_vm2, %v22076_v28, -inf }
0x12c4   : > { %10740 = vmax.xlane.f32.xlu1 %v10739_v36 }
0x12c8   : > { %v22086_v12 = vpop.f32.mrf.mxu0 }
0x12c9   : > { %v10754_v25 = vsel %vm1685_vm2, %v22086_v12, -inf }
0x12ca   : > { %v22088_v54 = vpop.f32.mrf.mxu0 }
0x12cb   : > { %v10751_v27 = vsel %vm1685_vm2, %v22088_v54, -inf }
0x12ce   : > { %v22092_v9 = vpop.eup %18723 }
0x12cf   : > { %23616 = vst [vmem:[#allocation68_spill] sm:$0xff] %v22092_v9  ;;  %v22096_v5 = vpop.eup %18725  ;;  %v10856_v57 = vsel %vm1685_vm2, %v22092_v9, 0.0 }
0x12d0   : > { %v10853_v39 = vsel %vm1685_vm2, %v22096_v5, 0.0 }
0x12d5   : > { %10893 = vrot.lane.b32.xlu1 %v19650_v31, %s19129_s29 }
0x12d8   : > { %10891 = vrot.lane.b32.xlu0 %v19652_v16, %s19129_s29 }
0x12f7   : > { %10755 = vmax.xlane.f32.xlu0 %v10754_v25 }
0x12f9   : > { %10752 = vmax.xlane.f32.xlu1 %v10751_v27 }
0x12fb   : > { %10857 = vadd.xlane.f32.xlu0 %v10856_v57 }
0x12fd   : > { %10854 = vadd.xlane.f32.xlu1 %v10853_v39 }
0x130e   : > { %10980 = vrot.lane.b32.xlu1 %v19663_v40, %s19129_s29 }
0x1311   : > { %10978 = vrot.lane.b32.xlu0 %v19667_v45, %s19129_s29 }
0x1312   : > { %11067 = vrot.lane.b32.xlu1 %v19671_v42, %s19129_s29 }
0x1315   : > { %11154 = vrot.lane.b32.xlu0 %v19679_v53, %s19129_s29 }
0x1316   : > { %11065 = vrot.lane.b32.xlu1 %v19673_v50, %s19129_s29 }
0x1319   : > { %11241 = vrot.lane.b32.xlu0 %v23443_v0, %s19129_s29  ;;  %v10816_v20 = vpop.xlane.xlu0 %10815 }
0x131a   : > { %11152 = vrot.lane.b32.xlu1 %v19681_v13, %s19129_s29 }
0x131b   : > { %v10813_v36 = vpop.xlane.xlu1 %10812 }
0x131c   : > { %18727 = vrcp.f32 %v10813_v36 }
0x131d   : > { %11328 = vrot.lane.b32.xlu0 %v19700_v18, %s19129_s29 }
0x131e   : > { %11239 = vrot.lane.b32.xlu1 %v19689_v60, %s19129_s29 }
0x1321   : > { %v10822_v27 = vpop.xlane.xlu0 %10821 }
0x1322   : > { %11326 = vrot.lane.b32.xlu1 %v19702_v52, %s19129_s29 }
0x1325   : > { %v10819_v15 = vpop.xlane.xlu1 %10818 }
0x1326   : > { %11413 = vrot.lane.b32.xlu1 %v19710_v6, %s19129_s29 }
0x1329   : > { %v18728_v55 = vpop.eup %18727  ;;  %v10828_v57 = vpop.xlane.xlu0 %10827 }
0x132a   : > { %v10860_v24 = vmul.f32 %v18728_v55, %v22014_v3 }
0x132b   : > { %v10825_v32 = vpop.xlane.xlu1 %10824 }
0x132c   : > { %18729 = vrcp.f32 %v10825_v32  ;;  %17890 = vmatprep.mubr.msk.f32.mxu0 %vm1685_vm2, %v10860_v24 }
0x132d   : > { %18731 = vrcp.f32 %v10816_v20 }
0x132e   : > { %18733 = vrcp.f32 %v10819_v15 }
0x1331   : > { %v10834_v39 = vpop.xlane.xlu0 %10833 }
0x1333   : > { %v10831_v36 = vpop.xlane.xlu1 %10830 }
0x1339   : > { %v18730_v46 = vpop.eup %18729 }
0x133a   : > { %v10868_v25 = vmul.f32 %v18730_v46, %v22032_v14  ;;  %v18732_v14 = vpop.eup %18731 }
0x133b   : > { %v18734_v9 = vpop.eup %18733  ;;  %v10862_v15 = vmul.f32 %v18732_v14, %v22009_v35 }
0x133c   : > { %17904 = vmatprep.mubr.msk.f32.mxu1 %vm1685_vm2, %v10868_v25  ;;  %v10864_v20 = vmul.f32 %v18734_v9, %v22024_v58 }
0x1341   : > { %v10846_v33 = vpop.xlane.xlu0 %10845 }
0x1343   : > { %v10843_v19 = vpop.xlane.xlu1 %10842 }
0x134b   : > { %v10744_v30 = vpop.xlane.xlu0 %10743 }
0x134c   : > { %v10772_v3 = vsub.f32 %v22072_v26, %v10744_v30 }
0x134d   : > { %v10741_v55 = vpop.xlane.xlu1 %10740 }
0x134e   : > { %v10797_v32 = vmul.f32 1.442695, %v10772_v3  ;;  %v10771_v24 = vsub.f32 %v22076_v28, %v10741_v55 }
0x134f   : > { %v10892_v25 = vpop.permute.xlu0 %10891 }
0x1350   : > { %18735 = vpow2.f32 %v10797_v32  ;;  %v10795_v49 = vmul.f32 1.442695, %v10771_v24 }
0x1351   : > { %v10894_v46 = vpop.permute.xlu1 %10893 }
0x1352   : > { %18737 = vpow2.f32 %v10795_v49  ;;  %17886 = vmatprep.subr.mxu0 %v10894_v46 }
0x1353   : > { %17887 = vmatpush3.msra.mxu0 %v10894_v46  ;;  %18739 = vrcp.f32 %v10822_v27 }
0x1354   : > { %17888 = vmatprep.subr.mxu0 %v10892_v25  ;;  %18741 = vrcp.f32 %v10831_v36 }
0x1355   : > { %17889 = vmatpush3.msra.mxu0 %v10892_v25  ;;  %18743 = vrcp.f32 %v10828_v57 }
0x1356   : > { %17891 = vmatmul.mubr.msk.f32.vlgmr.msra.gmra.mxu0 %vm1685_vm2, %v10862_v15 }
0x1357   : > { %17897 = vmatprep.mubr.msk.f32.mxu0 %vm1685_vm2, %v10864_v20 }
0x135d   : > { %v22134_v30 = vpop.eup %18735 }
0x135e   : > { %v10838_v26 = vsel %vm1685_vm2, %v22134_v30, 0.0 }
0x135f   : > { %v22138_v28 = vpop.eup %18737  ;;  %10839 = vadd.xlane.f32.xlu0 %v10838_v26 }
0x1360   : > { %v10835_v49 = vsel %vm1685_vm2, %v22138_v28, 0.0  ;;  %v18740_v25 = vpop.eup %18739 }
0x1361   : > { %10836 = vadd.xlane.f32.xlu1 %v10835_v49  ;;  %v18742_v36 = vpop.eup %18741  ;;  %v10866_v57 = vmul.f32 %v18740_v25, %v22019_v17 }
0x1375   : > { %11415 = vrot.lane.b32.xlu0 %v19708_v4, %s19129_s29 }
0x1380   : > { %v10756_v35 = vpop.xlane.xlu0 %10755 }
0x1381   : > { %v10776_v58 = vsub.f32 %v22086_v12, %v10756_v35 }
0x1382   : > { %v10753_v9 = vpop.xlane.xlu1 %10752 }
0x1383   : > { %v10805_v3 = vmul.f32 1.442695, %v10776_v58  ;;  %v10775_v55 = vsub.f32 %v22088_v54, %v10753_v9  ;;  %v10872_v54 = vmul.f32 %v18742_v36, %v22042_v29 }
0x1384   : > { %v22146_v32 = vpop.xlane.xlu0 %10857 }
0x1385   : > { %18745 = vpow2.f32 %v10805_v3  ;;  %v10803_v24 = vmul.f32 1.442695, %v10775_v55 }
0x1386   : > { %18747 = vrcp.f32 %v10834_v39  ;;  %v10855_v14 = vpop.xlane.xlu1 %10854  ;;  %v18744_v39 = vpop.eup %18743 }
0x1387   : > { %18749 = vpow2.f32 %v10803_v24  ;;  %v10870_v49 = vmul.f32 %v18744_v39, %v22028_v59  ;;  %v11587_v39 = vrot.slane %v21815_v43, 4 }
0x1388   : > { %18751 = vrcp.f32 %v10843_v19  ;;  %v10979_v46 = vpop.permute.xlu0 %10978 }
0x1389   : > { %18753 = vrcp.f32 %v10846_v33 }
0x138a   : > { %v10981_v27 = vpop.permute.xlu1 %10980  ;;  %18755 = vrcp.f32 %v10855_v14 }
0x138b   : > { %17893 = vmatprep.subr.mxu0 %v10981_v27 }
0x138c   : > { %17894 = vmatpush3.msra.mxu0 %v10981_v27  ;;  %v11155_v12 = vpop.permute.xlu0 %11154 }
0x138d   : > { %17895 = vmatprep.subr.mxu0 %v10979_v46 }
0x138e   : > { %v11068_v15 = vpop.permute.xlu1 %11067  ;;  %17896 = vmatpush3.msra.mxu0 %v10979_v46 }
0x138f   : > { %17898 = vmatmul.mubr.msk.f32.vlgmr.msra.gmra.mxu0 %vm1685_vm2, %v10866_v57  ;;  %17900 = vmatprep.subr.mxu1 %v11068_v15 }
0x1390   : > { %17907 = vmatprep.subr.mxu0 %v11155_v12  ;;  %17901 = vmatpush3.msra.mxu1 %v11068_v15  ;;  %v11242_v20 = vpop.permute.xlu0 %11241 }
0x1391   : > { %17908 = vmatpush3.msra.mxu0 %v11155_v12  ;;  %17911 = vmatprep.mubr.msk.f32.mxu0 %vm1685_vm2, %v10872_v54 }
0x1392   : > { %v22152_v19 = vpop.eup %18745  ;;  %v11066_v17 = vpop.permute.xlu1 %11065 }
0x1393   : > { %v18748_v26 = vpop.eup %18747  ;;  %17902 = vmatprep.subr.mxu1 %v11066_v17  ;;  %v10850_v33 = vsel %vm1685_vm2, %v22152_v19, 0.0 }
0x1394   : > { %v22157_v35 = vpop.eup %18749  ;;  %17903 = vmatpush3.msra.mxu1 %v11066_v17  ;;  %10851 = vadd.xlane.f32.xlu0 %v10850_v33  ;;  %v10874_v59 = vmul.f32 %v18748_v26, %v22037_v37  ;;  %v11329_v3 = vpop.permute.xlu0 %11328 }
0x1395   : > { %v18752_v29 = vpop.eup %18751  ;;  %17905 = vmatmul.mubr.msk.f32.vlgmr.msra.gmra.mxu1 %vm1685_vm2, %v10870_v49  ;;  %17914 = vmatprep.subr.mxu1 %v11242_v20  ;;  %v10847_v58 = vsel %vm1685_vm2, %v22157_v35, 0.0  ;;  %v23617_v49 = vld [vmem:[#allocation68_spill] sm:$0xff] }
0x1396   : > { %10848 = vadd.xlane.f32.xlu1 %v10847_v58  ;;  %v11153_v9 = vpop.permute.xlu1 %11152  ;;  %17915 = vmatpush3.msra.mxu1 %v11242_v20  ;;  %v10880_v55 = vmul.f32 %v18752_v29, %v22053_v63  ;;  %v18754_v14 = vpop.eup %18753 }
0x1397   : > { %17909 = vmatprep.subr.mxu0 %v11153_v9  ;;  %v18756_v46 = vpop.eup %18755  ;;  %v10882_v27 = vmul.f32 %v18754_v14, %v22048_v47 }
0x1398   : > { %17910 = vmatpush3.msra.mxu0 %v11153_v9  ;;  %v10888_v37 = vmul.f32 %v18756_v46, %v22096_v5 }
0x1399   : > { %17912 = vmatmul.mubr.msk.f32.vlgmr.msra.gmra.mxu0 %vm1685_vm2, %v10874_v59  ;;  %17921 = vmatprep.subr.mxu0 %v11329_v3 }
0x139a   : > { %v11240_v24 = vpop.permute.xlu1 %11239  ;;  %17922 = vmatpush3.msra.mxu0 %v11329_v3  ;;  %17925 = vmatprep.mubr.msk.f32.mxu0 %vm1685_vm2, %v10880_v55 }
0x139b   : > { %17916 = vmatprep.subr.mxu1 %v11240_v24 }
0x139c   : > { %17917 = vmatpush3.msra.mxu1 %v11240_v24 }
0x139e   : > { %v11327_v25 = vpop.permute.xlu1 %11326 }
0x139f   : > { %17923 = vmatprep.subr.mxu0 %v11327_v25 }
0x13a0   : > { %17924 = vmatpush3.msra.mxu0 %v11327_v25 }
0x13a1   : > { %17926 = vmatmul.mubr.msk.f32.vlgmr.msra.gmra.mxu0 %vm1685_vm2, %v10882_v27 }
0x13a2   : > { %17939 = vmatprep.mubr.msk.f32.mxu0 %vm1685_vm2, %v10888_v37  ;;  %v11414_v47 = vpop.permute.xlu1 %11413 }
0x13a7   : > { %11500 = vrot.lane.b32.xlu1 %v19718_v11, %s19129_s29 }
0x13aa   : > { %11502 = vrot.lane.b32.xlu0 %v19716_v7, %s19129_s29 }
0x13ab   : > { %11803 = vrot.lane.b32.xlu1 %v19652_v16, %s19130_s28 }
0x13ae   : > { %11805 = vrot.lane.b32.xlu0 %v19650_v31, %s19130_s28 }
0x13af   : > { %11896 = vrot.lane.b32.xlu1 %v19663_v40, %s19130_s28 }
0x13b2   : > { %11799 = vrot.lane.b32.xlu0 %v23444_v34, %s19131_s1 }
0x13b3   : > { %11894 = vrot.lane.b32.xlu1 %v19667_v45, %s19130_s28 }
0x13b6   : > { %11801 = vrot.lane.b32.xlu0 %v23446_v10, %s19131_s1 }
0x13b7   : > { %11987 = vrot.lane.b32.xlu1 %v19671_v42, %s19130_s28 }
0x13ba   : > { %11890 = vrot.lane.b32.xlu0 %v23445_v1, %s19131_s1 }
0x13bb   : > { %11985 = vrot.lane.b32.xlu1 %v19673_v50, %s19130_s28 }
0x13be   : > { %11892 = vrot.lane.b32.xlu0 %v23448_v44, %s19131_s1 }
0x13bf   : > { %12078 = vrot.lane.b32.xlu1 %v19679_v53, %s19130_s28 }
0x13c2   : > { %11981 = vrot.lane.b32.xlu0 %v23501_v23, %s19131_s1 }
0x13c3   : > { %12076 = vrot.lane.b32.xlu1 %v19681_v13, %s19130_s28 }
0x13c6   : > { %11983 = vrot.lane.b32.xlu0 %v23450_v22, %s19131_s1 }
0x13c7   : > { %12072 = vrot.lane.b32.xlu1 %v23449_v48, %s19131_s1 }
0x13ca   : > { %12169 = vrot.lane.b32.xlu0 %v23443_v0, %s19130_s28 }
0x13cb   : > { %12167 = vrot.lane.b32.xlu1 %v19689_v60, %s19130_s28 }
0x13ce   : > { %12074 = vrot.lane.b32.xlu0 %v19807_v38, %s19131_s1 }
0x13cf   : > { %12163 = vrot.lane.b32.xlu1 %v19696_v61, %s19131_s1 }
0x13d2   : > { %12260 = vrot.lane.b32.xlu0 %v19700_v18, %s19130_s28 }
0x13d3   : > { %12258 = vrot.lane.b32.xlu1 %v19702_v52, %s19130_s28 }
0x13d6   : > { %12165 = vrot.lane.b32.xlu0 %v19821_v8, %s19131_s1 }
0x13d7   : > { %12254 = vrot.lane.b32.xlu1 %v19810_v41, %s19131_s1 }
0x13da   : > { %12351 = vrot.lane.b32.xlu0 %v19708_v4, %s19130_s28 }
0x13db   : > { %12349 = vrot.lane.b32.xlu1 %v19710_v6, %s19130_s28 }
0x13de   : > { %12256 = vrot.lane.b32.xlu0 %v19835_v56, %s19131_s1 }
0x13df   : > { %12345 = vrot.lane.b32.xlu1 %v19824_v51, %s19131_s1 }
0x13e2   : > { %12442 = vrot.lane.b32.xlu0 %v19716_v7, %s19130_s28 }
0x13e3   : > { %12440 = vrot.lane.b32.xlu1 %v19718_v11, %s19130_s28  ;;  %s421_s28 = scalar_lea.vmem [#allocation10], %s15886_s22 }
0x13e6   : > { %12347 = vrot.lane.b32.xlu0 %v19849_v2, %s19131_s1 }
0x13e7   : > { %12438 = vrot.lane.b32.xlu1 %v19858_v62, %s19131_s1 }
0x13e8   : > { %v10840_v63 = vpop.xlane.xlu0 %10839 }
0x13e9   : > { %18757 = vrcp.f32 %v10840_v63 }
0x13ea   : > { %v10837_v5 = vpop.xlane.xlu1 %10836  ;;  %12436 = vrot.lane.b32.xlu0 %v23502_v21, %s19131_s1  ;;  %s15774_s1 = sshll.u32 %s421_s28, 4  ;;  %s23249_s1 = int_to_ptr.vmem [resolvable:$true] %s15774_s1 }
0x13eb   : > { %18759 = vrcp.f32 %v10837_v5  ;;  %s19033_s12 = scalar_lea.vmem %s23249_s1, 512 }
0x13ec   : > { %v11416_v36 = vpop.permute.xlu0 %11415  ;;  %18761 = vrcp.f32 %v22146_v32  ;;  %p19034_p7 = scmp.ne.s32.totalorder %s23249_s1, %s19033_s12 }
0x13ed   : > { %17928 = vmatprep.subr.mxu1 %v11416_v36 }
0x13ee   : > { %p19035_p12 = pnand %p19034_p7, %p23686_p1 }
0x13f0   : > { %p19036_p9 = pneg %p19035_p12 }
0x13f6   : > { %v18758_v12 = vpop.eup %18757 }
0x13f7   : > { %v10878_v54 = vmul.f32 %v18758_v12, %v22134_v30 }
0x13f8   : > { %v18760_v57 = vpop.eup %18759 }
0x13f9   : > { %v10876_v15 = vmul.f32 %v18760_v57, %v22138_v28  ;;  %v18762_v28 = vpop.eup %18761 }
0x13fa   : > { %v10890_v43 = vmul.f32 %v18762_v28, %v23617_v49 }
0x13fb   : > { %17918 = vmatprep.mubr.msk.f32.mxu1 %vm1685_vm2, %v10876_v15 }
0x13fc   : > { %17919 = vmatmul.mubr.msk.f32.vlgmr.msra.gmra.mxu1 %vm1685_vm2, %v10878_v54 }
0x13fd   : > { %17929 = vmatpush3.msra.mxu1 %v11416_v36 }
0x13fe   : > { %17930 = vmatprep.subr.mxu1 %v11414_v47 }
0x13ff   : > { %17931 = vmatpush3.msra.mxu1 %v11414_v47 }
0x1400   : > { %17942 = vmatprep.subr.msk.mxu1 %vm4208_vm3, %v11587_v39 }
0x1416   : > { %v17892_v3 = vpop.f32.mrf.mxu0 }
0x1418   : > { %v10969_v25 = vpop.f32.mrf.mxu0 }
0x141d   : > { %v10852_v20 = vpop.xlane.xlu0 %10851 }
0x141e   : > { %18763 = vrcp.f32 %v10852_v20 }
0x141f   : > { %v10849_v17 = vpop.xlane.xlu1 %10848 }
0x1420   : > { %18765 = vrcp.f32 %v10849_v17 }
0x1421   : > { %v11503_v26 = vpop.permute.xlu0 %11502 }
0x1422   : > { %17935 = vmatprep.subr.mxu0 %v11503_v26 }
0x1423   : > { %v11501_v30 = vpop.permute.xlu1 %11500  ;;  %17936 = vmatpush3.msra.mxu0 %v11503_v26 }
0x1424   : > { %17937 = vmatprep.subr.mxu0 %v11501_v30 }
0x1425   : > { %17938 = vmatpush3.msra.mxu0 %v11501_v30  ;;  %v11806_v33 = vpop.permute.xlu0 %11805 }
0x1426   : > { %17940 = vmatmul.mubr.msk.f32.vlgmr.msra.gmra.mxu0 %vm1685_vm2, %v10890_v43  ;;  %17968 = vmatprep.subr.msk.mxu0 %vm962_vm1, %v11806_v33 }
0x1427   : > { %v11804_v29 = vpop.permute.xlu1 %11803  ;;  %17969 = vmatpush3.xpose.msk.msra.mxu0 %vm962_vm1, %v11806_v33 }
0x1428   : > { %17970 = vmatprep.subr.msk.mxu0 %vm962_vm1, %v11804_v29 }
0x1429   : > { %v11800_v32 = vpop.permute.xlu0 %11799 }
0x142a   : > { %17972 = vmatprep.mubr.msk.f32.mxu0 %vm962_vm1, %v11800_v32 }
0x142b   : > { %v11897_v58 = vpop.permute.xlu1 %11896  ;;  %17971 = vmatpush3.xpose.msk.msra.mxu0 %vm962_vm1, %v11804_v29  ;;  %v18764_v9 = vpop.eup %18763 }
0x142c   : > { %17975 = vmatprep.subr.msk.mxu0 %vm962_vm1, %v11897_v58  ;;  %v10886_v14 = vmul.f32 %v18764_v9, %v22152_v19 }
0x142d   : > { %v18766_v59 = vpop.eup %18765  ;;  %v11802_v55 = vpop.permute.xlu0 %11801 }
0x142e   : > { %17973 = vmatmul.mubr.msk.f32.vlgmr.msra.gmra.mxu0 %vm962_vm1, %v11802_v55  ;;  %v10884_v24 = vmul.f32 %v18766_v59, %v22157_v35 }
0x142f   : > { %v11895_v46 = vpop.permute.xlu1 %11894  ;;  %17976 = vmatpush3.xpose.msk.msra.mxu0 %vm962_vm1, %v11897_v58 }
0x1430   : > { %17932 = vmatprep.mubr.msk.f32.mxu1 %vm1685_vm2, %v10884_v24  ;;  %17977 = vmatprep.subr.msk.mxu0 %vm962_vm1, %v11895_v46 }
0x1431   : > { %17933 = vmatmul.mubr.msk.f32.vlgmr.msra.gmra.mxu1 %vm1685_vm2, %v10886_v14  ;;  %v11891_v27 = vpop.permute.xlu0 %11890 }
0x1432   : > { %17944 = vmatprep.mubr.msk.f32.mxu1 %vm962_vm1, %v10969_v25  ;;  %17979 = vmatprep.mubr.msk.f32.mxu0 %vm962_vm1, %v11891_v27 }
0x1433   : > { %v11988_v37 = vpop.permute.xlu1 %11987  ;;  %17978 = vmatpush3.xpose.msk.msra.mxu0 %vm962_vm1, %v11895_v46  ;;  %17943 = vmatpush3.msk.msra.mxu1 %vm4208_vm3, %v11587_v39 }
0x1434   : > { %17982 = vmatprep.subr.msk.mxu0 %vm962_vm1, %v11988_v37 }
0x1435   : > { %17945 = vmatmul.mubr.msk.f32.vlgmr.msra.gmra.mxu1 %vm962_vm1, %v17892_v3  ;;  %v11893_v19 = vpop.permute.xlu0 %11892 }
0x1436   : > { %17980 = vmatmul.mubr.msk.f32.vlgmr.msra.gmra.mxu0 %vm962_vm1, %v11893_v19 }
0x1437   : > { %v11986_v35 = vpop.permute.xlu1 %11985  ;;  %17983 = vmatpush3.xpose.msk.msra.mxu0 %vm962_vm1, %v11988_v37 }
0x1438   : > { %17984 = vmatprep.subr.msk.mxu0 %vm962_vm1, %v11986_v35 }
0x1439   : > { %v11982_v47 = vpop.permute.xlu0 %11981 }
0x143a   : > { %17986 = vmatprep.mubr.msk.f32.mxu0 %vm962_vm1, %v11982_v47 }
0x143b   : > { %v12079_v63 = vpop.permute.xlu1 %12078  ;;  %17985 = vmatpush3.xpose.msk.msra.mxu0 %vm962_vm1, %v11986_v35 }
0x143c   : > { %17989 = vmatprep.subr.msk.mxu0 %vm962_vm1, %v12079_v63 }
0x143d   : > { %v11984_v5 = vpop.permute.xlu0 %11983 }
0x143e   : > { %17987 = vmatmul.mubr.msk.f32.vlgmr.msra.gmra.mxu0 %vm962_vm1, %v11984_v5 }
0x143f   : > { %v12077_v36 = vpop.permute.xlu1 %12076  ;;  %17990 = vmatpush3.xpose.msk.msra.mxu0 %vm962_vm1, %v12079_v63 }
0x1440   : > { %17991 = vmatprep.subr.msk.mxu0 %vm962_vm1, %v12077_v36 }
0x1441   : > { %v12170_v12 = vpop.permute.xlu0 %12169 }
0x1442   : > { %17996 = vmatprep.subr.msk.mxu1 %vm962_vm1, %v12170_v12 }
0x1443   : > { %v12073_v57 = vpop.permute.xlu1 %12072  ;;  %17992 = vmatpush3.xpose.msk.msra.mxu0 %vm962_vm1, %v12077_v36  ;;  %17997 = vmatpush3.xpose.msk.msra.mxu1 %vm962_vm1, %v12170_v12 }
0x1444   : > { %17993 = vmatprep.mubr.msk.f32.mxu0 %vm962_vm1, %v12073_v57 }
0x1445   : > { %v12075_v15 = vpop.permute.xlu0 %12074 }
0x1446   : > { %17994 = vmatmul.mubr.msk.f32.vlgmr.msra.gmra.mxu0 %vm962_vm1, %v12075_v15 }
0x1447   : > { %v12168_v54 = vpop.permute.xlu1 %12167 }
0x1448   : > { %17998 = vmatprep.subr.msk.mxu1 %vm962_vm1, %v12168_v54 }
0x1449   : > { %17999 = vmatpush3.xpose.msk.msra.mxu1 %vm962_vm1, %v12168_v54  ;;  %v12261_v39 = vpop.permute.xlu0 %12260 }
0x144a   : > { %18003 = vmatprep.subr.msk.mxu0 %vm962_vm1, %v12261_v39 }
0x144b   : > { %v22267_v20 = vpop.permute.xlu1 %12163  ;;  %18004 = vmatpush3.xpose.msk.msra.mxu0 %vm962_vm1, %v12261_v39 }
0x144d   : > { %v22270_v17 = vpop.permute.xlu0 %12165 }
0x144f   : > { %v12259_v28 = vpop.permute.xlu1 %12258  ;;  %v17899_v26 = vpop.f32.mrf.mxu0 }
0x1450   : > { %18005 = vmatprep.subr.msk.mxu0 %vm962_vm1, %v12259_v28 }
0x1451   : > { %v11056_v30 = vpop.f32.mrf.mxu0  ;;  %18006 = vmatpush3.xpose.msk.msra.mxu0 %vm962_vm1, %v12259_v28  ;;  %v12352_v49 = vpop.permute.xlu0 %12351  ;;  %v23618_v28 = vld [vmem:[#allocation72_spill] sm:$0xff] }
0x1452   : > { %17947 = vmatprep.mubr.msk.f32.mxu1 %vm962_vm1, %v11056_v30  ;;  %18010 = vmatprep.subr.msk.mxu1 %vm962_vm1, %v12352_v49 }
0x1453   : > { %v12255_v43 = vpop.permute.xlu1 %12254  ;;  %17948 = vmatmul.mubr.msk.f32.gmra.mxu1 %vm962_vm1, %v17899_v26 }
0x1454   : > { %18007 = vmatprep.mubr.msk.f32.mxu0 %vm962_vm1, %v12255_v43 }
0x1455   : > { %v17906_v33 = vpop.f32.mrf.mxu1  ;;  %v12257_v29 = vpop.permute.xlu0 %12256 }
0x1456   : > { %18008 = vmatmul.mubr.msk.f32.vlgmr.msra.gmra.mxu0 %vm962_vm1, %v12257_v29 }
0x1457   : > { %v12350_v32 = vpop.permute.xlu1 %12349  ;;  %v11143_v58 = vpop.f32.mrf.mxu1 }
0x1458   : > { %17950 = vmatprep.mubr.msk.f32.mxu1 %vm962_vm1, %v11143_v58 }
0x1459   : > { %v17913_v9 = vpop.f32.mrf.mxu0  ;;  %17951 = vmatmul.mubr.msk.f32.gmra.mxu1 %vm962_vm1, %v17906_v33  ;;  %v12443_v59 = vpop.permute.xlu0 %12442  ;;  %v23620_v33 = vld [vmem:[#allocation53_spill] sm:$0xff] }
0x145a   : > { %18017 = vmatprep.subr.msk.mxu0 %vm962_vm1, %v12443_v59 }
0x145b   : > { %v12346_v3 = vpop.permute.xlu1 %12345  ;;  %v11230_v55 = vpop.f32.mrf.mxu0  ;;  %18018 = vmatpush3.xpose.msk.msra.mxu0 %vm962_vm1, %v12443_v59 }
0x145c   : > { %17953 = vmatprep.mubr.msk.f32.mxu1 %vm962_vm1, %v11230_v55 }
0x145d   : > { %17954 = vmatmul.mubr.msk.f32.gmra.mxu1 %vm962_vm1, %v17913_v9  ;;  %v12348_v24 = vpop.permute.xlu0 %12347 }
0x145f   : > { %v12441_v14 = vpop.permute.xlu1 %12440 }
0x1460   : > { %18019 = vmatprep.subr.msk.mxu0 %vm962_vm1, %v12441_v14 }
0x1461   : > { %18020 = vmatpush3.xpose.msk.msra.mxu0 %vm962_vm1, %v12441_v14  ;;  %v12437_v46 = vpop.permute.xlu0 %12436  ;;  %v17927_v27 = vpop.f32.mrf.mxu0 }
0x1462   : > { %18021 = vmatprep.mubr.msk.f32.mxu0 %vm962_vm1, %v12437_v46 }
0x1463   : > { %v12439_v25 = vpop.permute.xlu1 %12438  ;;  %v11404_v35 = vpop.f32.mrf.mxu0 }
0x1464   : > { %18022 = vmatmul.mubr.msk.f32.vlgmr.msra.gmra.mxu0 %vm962_vm1, %v12439_v25 }
0x14bc   : > { %v17920_v37 = vpop.f32.mrf.mxu1 }
0x14be   : > { %v11317_v19 = vpop.f32.mrf.mxu1 }
0x14bf   : > { %17956 = vmatprep.mubr.msk.f32.mxu1 %vm962_vm1, %v11317_v19 }
0x14c0   : > { %17957 = vmatmul.mubr.msk.f32.gmra.mxu1 %vm962_vm1, %v17920_v37  ;;  %v23622_v37 = vld [vmem:[#allocation32_spill] sm:$0xff] }
0x14c1   : > { %17959 = vmatprep.mubr.msk.f32.mxu1 %vm962_vm1, %v11404_v35  ;;  %v23624_v35 = vld [vmem:[#allocation37_spill] sm:$0xff] }
0x14c4   : > { %17960 = vmatmul.mubr.msk.f32.gmra.mxu1 %vm962_vm1, %v17927_v27 }
0x14e6   : > { %v17941_v47 = vpop.f32.mrf.mxu0 }
0x14e8   : > { %v11578_v63 = vpop.f32.mrf.mxu0 }
0x14ee   : > { %v22293_v5 = vpop.f32.mrf.mxu0 }
0x14ef   : > { %v12530_v36 = vsel %vm1685_vm2, %v22293_v5, -inf }
0x14f0   : > { %12531 = vmax.xlane.f32.xlu1 %v12530_v36  ;;  %v22297_v12 = vpop.f32.mrf.mxu0 }
0x14f1   : > { %v17934_v57 = vpop.f32.mrf.mxu1  ;;  %v12527_v15 = vsel %vm1685_vm2, %v22297_v12, -inf }
0x14f2   : > { %12528 = vmax.xlane.f32.xlu0 %v12527_v15 }
0x14f3   : > { %v11491_v54 = vpop.f32.mrf.mxu1 }
0x14f4   : > { %17962 = vmatprep.mubr.msk.f32.mxu1 %vm962_vm1, %v11491_v54  ;;  %v23626_v54 = vld [vmem:[#allocation51_spill] sm:$0xff] }
0x14f5   : > { %v17946_v39 = vpop.f32.mrf.mxu1  ;;  %17963 = vmatmul.mubr.msk.f32.gmra.mxu1 %vm962_vm1, %v17934_v57 }
0x14f6   : > { %v22304_v26 = vadd.f32 %v17946_v39, %v23618_v28  ;;  %17965 = vmatprep.mubr.msk.f32.mxu1 %vm962_vm1, %v11578_v63  ;;  %v22307_v30 = vpop.f32.mrf.mxu0 }
0x14f7   : > { %v11704_v43 = vpop.f32.mrf.mxu1  ;;  %v12536_v59 = vsel %vm1685_vm2, %v22307_v30, -inf }
0x14f8   : > { %23619 = vst [vmem:[#allocation63_spill] sm:$0xff] %v22304_v26  ;;  %v22310_v29 = vadd.f32 %v11704_v43, %v23620_v33  ;;  %v22312_v58 = vpop.f32.mrf.mxu0  ;;  %v23628_v43 = vld [vmem:[#allocation62_spill] sm:$0xff] }
0x14f9   : > { %17966 = vmatmul.mubr.msk.f32.gmra.mxu1 %vm962_vm1, %v17941_v47  ;;  %v12533_v9 = vsel %vm1685_vm2, %v22312_v58, -inf }
0x14fa   : > { %23621 = vst [vmem:[#allocation41_spill] sm:$0xff] %v22310_v29  ;;  %18000 = vmatprep.mubr.msk.f32.mxu1 %vm962_vm1, %v22267_v20  ;;  %12534 = vmax.xlane.f32.xlu0 %v12533_v9 }
0x14fd   : > { %18001 = vmatmul.mubr.msk.f32.vlgmr.msra.gmra.mxu1 %vm962_vm1, %v22270_v17 }
0x14fe   : > { %18011 = vmatpush3.xpose.msk.msra.mxu1 %vm962_vm1, %v12352_v49  ;;  %12537 = vmax.xlane.f32.xlu0 %v12536_v59  ;;  %v22324_v55 = vpop.f32.mrf.mxu0  ;;  %v23630_v59 = vld [vmem:[#allocation55_spill] sm:$0xff] }
0x14ff   : > { %18012 = vmatprep.subr.msk.mxu1 %vm962_vm1, %v12350_v32  ;;  %18014 = vmatprep.mubr.msk.f32.mxu1 %vm962_vm1, %v12346_v3  ;;  %v12542_v20 = vsel %vm1685_vm2, %v22324_v55, -inf }
0x1500   : > { %v22328_v14 = vpop.f32.mrf.mxu0 }
0x1501   : > { %v12539_v17 = vsel %vm1685_vm2, %v22328_v14, -inf }
0x1502   : > { %18013 = vmatpush3.xpose.msk.msra.mxu1 %vm962_vm1, %v12350_v32  ;;  %12543 = vmax.xlane.f32.xlu0 %v12542_v20 }
0x1503   : > { %12540 = vmax.xlane.f32.xlu1 %v12539_v17 }
0x1505   : > { %18015 = vmatmul.mubr.msk.f32.vlgmr.msra.gmra.mxu1 %vm962_vm1, %v12348_v24 }
0x1506   : > { %v22336_v49 = vpop.f32.mrf.mxu0 }
0x1507   : > { %v12548_v46 = vsel %vm1685_vm2, %v22336_v49, -inf }
0x1508   : > { %12549 = vmax.xlane.f32.xlu0 %v12548_v46  ;;  %v22340_v3 = vpop.f32.mrf.mxu0 }
0x1509   : > { %v12545_v25 = vsel %vm1685_vm2, %v22340_v3, -inf }
0x150a   : > { %12546 = vmax.xlane.f32.xlu1 %v12545_v25 }
0x1513   : > { %v17949_v27 = vpop.f32.mrf.mxu1 }
0x1514   : > { %v22345_v19 = vadd.f32 %v17949_v27, %v23622_v37 }
0x1515   : > { %v11714_v32 = vpop.f32.mrf.mxu1 }
0x1516   : > { %23623 = vst [vmem:[#allocation33_spill] sm:$0xff] %v22345_v19  ;;  %v22348_v47 = vadd.f32 %v11714_v32, %v23624_v35  ;;  %v22350_v24 = vpop.f32.mrf.mxu0 }
0x1517   : > { %v12560_v63 = vsel %vm1685_vm2, %v22350_v24, -inf }
0x1518   : > { %23625 = vst [vmem:[#allocation65_spill] sm:$0xff] %v22348_v47  ;;  %12561 = vmax.xlane.f32.xlu0 %v12560_v63  ;;  %v22354_v36 = vpop.f32.mrf.mxu0 }
0x1519   : > { %v17952_v57 = vpop.f32.mrf.mxu1  ;;  %v12557_v15 = vsel %vm1685_vm2, %v22354_v36, -inf }
0x151a   : > { %v22359_v39 = vadd.f32 %v17952_v57, %v23626_v54  ;;  %12558 = vmax.xlane.f32.xlu1 %v12557_v15 }
0x151b   : > { %v11724_v28 = vpop.f32.mrf.mxu1 }
0x151c   : > { %23627 = vst [vmem:[#allocation50_spill] sm:$0xff] %v22359_v39  ;;  %v22362_v33 = vadd.f32 %v11724_v28, %v23628_v43  ;;  %v23633_v43 = vld [vmem:[#allocation47_spill] sm:$0xff] }
0x151d   : > { %v17955_v9 = vpop.f32.mrf.mxu1 }
0x151e   : > { %23629 = vst [vmem:[#allocation54_spill] sm:$0xff] %v22362_v33  ;;  %v22365_v20 = vadd.f32 %v17955_v9, %v23630_v59 }
0x151f   : > { %v22377_v15 = vpop.f32.mrf.mxu1 }
0x1520   : > { %23631 = vst [vmem:[#allocation40_spill] sm:$0xff] %v22365_v20  ;;  %23632 = vst [vmem:[#allocation36_spill] sm:$0xff] %v22377_v15 }
0x1524   : > { %v22367_v17 = vpop.f32.mrf.mxu0 }
0x1525   : > { %v12572_v46 = vsel %vm1685_vm2, %v22367_v17, -inf }
0x1526   : > { %12573 = vmax.xlane.f32.xlu0 %v12572_v46  ;;  %v22371_v25 = vpop.f32.mrf.mxu0  ;;  %v23635_v46 = vld [vmem:[#allocation48_spill] sm:$0xff] }
0x1527   : > { %v12569_v27 = vsel %vm1685_vm2, %v22371_v25, -inf }
0x1528   : > { %12570 = vmax.xlane.f32.xlu1 %v12569_v27 }
0x1579   : > { %v12532_v37 = vpop.xlane.xlu1 %12531 }
0x157a   : > { %v12576_v32 = vsub.f32 %v22293_v5, %v12532_v37 }
0x157b   : > { %v12529_v35 = vpop.xlane.xlu0 %12528 }
0x157c   : > { %v12593_v63 = vmul.f32 1.442695, %v12576_v32  ;;  %v12575_v57 = vsub.f32 %v22297_v12, %v12529_v35  ;;  %v23637_v32 = vld [vmem:[#allocation64_spill] sm:$0xff] }
0x157e   : > { %18767 = vpow2.f32 %v12593_v63  ;;  %v12591_v54 = vmul.f32 1.442695, %v12575_v57  ;;  %v23639_v63 = vld [vmem:[#allocation58_spill] sm:$0xff] }
0x1580   : > { %18769 = vpow2.f32 %v12591_v54  ;;  %v17958_v28 = vpop.f32.mrf.mxu1 }
0x1581   : > { %v22380_v9 = vadd.f32 %v17958_v28, %v23633_v43 }
0x1582   : > { %v11744_v59 = vpop.f32.mrf.mxu1 }
0x1583   : > { %23634 = vst [vmem:[#allocation42_spill] sm:$0xff] %v22380_v9  ;;  %v22383_v20 = vadd.f32 %v11744_v59, %v23635_v46  ;;  %v12535_v27 = vpop.xlane.xlu0 %12534 }
0x1584   : > { %v12577_v5 = vsub.f32 %v22312_v58, %v12535_v27  ;;  %v17961_v37 = vpop.f32.mrf.mxu1 }
0x1585   : > { %23636 = vst [vmem:[#allocation60_spill] sm:$0xff] %v22383_v20  ;;  %v22387_v33 = vadd.f32 %v17961_v37, %v23637_v32 }
0x1586   : > { %v12595_v12 = vmul.f32 1.442695, %v12577_v5  ;;  %v11754_v35 = vpop.f32.mrf.mxu1 }
0x1587   : > { %23638 = vst [vmem:[#allocation67_spill] sm:$0xff] %v22387_v33  ;;  %v22390_v57 = vadd.f32 %v11754_v35, %v23639_v63  ;;  %v12538_v54 = vpop.xlane.xlu0 %12537  ;;  %v23647_v33 = vld [vmem:[#allocation66_spill] sm:$0xff] }
0x1588   : > { %18771 = vpow2.f32 %v12595_v12  ;;  %v12578_v28 = vsub.f32 %v22307_v30, %v12538_v54 }
0x1589   : > { %23640 = vst [vmem:[#allocation43_spill] sm:$0xff] %v22390_v57 }
0x158a   : > { %v12597_v43 = vmul.f32 1.442695, %v12578_v28 }
0x158b   : > { %v22393_v15 = vpop.eup %18767  ;;  %v12544_v59 = vpop.xlane.xlu0 %12543 }
0x158c   : > { %18773 = vpow2.f32 %v12597_v43  ;;  %v12541_v46 = vpop.xlane.xlu1 %12540  ;;  %v12580_v58 = vsub.f32 %v22324_v55, %v12544_v59  ;;  %v12626_v27 = vsel %vm1685_vm2, %v22393_v15, 0.0 }
0x158d   : > { %v22398_v5 = vpop.eup %18769  ;;  %v12579_v37 = vsub.f32 %v22328_v14, %v12541_v46  ;;  %12627 = vadd.xlane.f32.xlu0 %v12626_v27 }
0x158e   : > { %v12601_v32 = vmul.f32 1.442695, %v12580_v58  ;;  %v12623_v30 = vsel %vm1685_vm2, %v22398_v5, 0.0 }
0x158f   : > { %v12599_v12 = vmul.f32 1.442695, %v12579_v37  ;;  %12624 = vadd.xlane.f32.xlu1 %v12623_v30 }
0x1590   : > { %18775 = vpow2.f32 %v12601_v32 }
0x1591   : > { %18777 = vpow2.f32 %v12599_v12  ;;  %v12550_v35 = vpop.xlane.xlu0 %12549 }
0x1592   : > { %v12582_v63 = vsub.f32 %v22336_v49, %v12550_v35 }
0x1593   : > { %v12547_v55 = vpop.xlane.xlu1 %12546 }
0x1594   : > { %v12605_v54 = vmul.f32 1.442695, %v12582_v63  ;;  %v12581_v28 = vsub.f32 %v22340_v3, %v12547_v55 }
0x1595   : > { %v22405_v43 = vpop.eup %18771 }
0x1596   : > { %18779 = vpow2.f32 %v12605_v54  ;;  %v12603_v14 = vmul.f32 1.442695, %v12581_v28  ;;  %v12629_v59 = vsel %vm1685_vm2, %v22405_v43, 0.0 }
0x1597   : > { %12630 = vadd.xlane.f32.xlu1 %v12629_v59 }
0x1598   : > { %18781 = vpow2.f32 %v12603_v14 }
0x1599   : > { %v22409_v46 = vpop.eup %18773 }
0x159a   : > { %v12632_v58 = vsel %vm1685_vm2, %v22409_v46, 0.0 }
0x159b   : > { %12633 = vadd.xlane.f32.xlu0 %v12632_v58 }
0x159d   : > { %v22413_v49 = vpop.eup %18775 }
0x159e   : > { %v22415_v27 = vpop.eup %18777  ;;  %v12638_v3 = vsel %vm1685_vm2, %v22413_v49, 0.0 }
0x159f   : > { %v12635_v37 = vsel %vm1685_vm2, %v22415_v27, 0.0  ;;  %12639 = vadd.xlane.f32.xlu0 %v12638_v3 }
0x15a0   : > { %12636 = vadd.xlane.f32.xlu1 %v12635_v37  ;;  %v23641_v37 = vld [vmem:[#allocation39_spill] sm:$0xff] }
0x15a1   : > { %v12562_v32 = vpop.xlane.xlu0 %12561 }
0x15a2   : > { %v12586_v30 = vsub.f32 %v22350_v24, %v12562_v32 }
0x15a3   : > { %v22422_v12 = vpop.eup %18779  ;;  %v12559_v35 = vpop.xlane.xlu1 %12558 }
0x15a4   : > { %v12613_v63 = vmul.f32 1.442695, %v12586_v30  ;;  %v12585_v55 = vsub.f32 %v22354_v36, %v12559_v35  ;;  %v12644_v54 = vsel %vm1685_vm2, %v22422_v12, 0.0 }
0x15a5   : > { %v22427_v28 = vpop.eup %18781  ;;  %12645 = vadd.xlane.f32.xlu0 %v12644_v54 }
0x15a6   : > { %18783 = vpow2.f32 %v12613_v63  ;;  %v12611_v14 = vmul.f32 1.442695, %v12585_v55  ;;  %v12641_v59 = vsel %vm1685_vm2, %v22427_v28, 0.0  ;;  %v23643_v63 = vld [vmem:[#allocation56_spill] sm:$0xff] }
0x15a7   : > { %12642 = vadd.xlane.f32.xlu1 %v12641_v59 }
0x15a8   : > { %18785 = vpow2.f32 %v12611_v14  ;;  %v23645_v14 = vld [vmem:[#allocation44_spill] sm:$0xff] }
0x15b3   : > { %v22431_v24 = vpop.eup %18783 }
0x15b4   : > { %v12656_v58 = vsel %vm1685_vm2, %v22431_v24, 0.0 }
0x15b5   : > { %v22435_v3 = vpop.eup %18785  ;;  %v17964_v36 = vpop.f32.mrf.mxu1  ;;  %12657 = vadd.xlane.f32.xlu0 %v12656_v58 }
0x15b6   : > { %v22438_v32 = vadd.f32 %v17964_v36, %v23641_v37  ;;  %v12653_v30 = vsel %vm1685_vm2, %v22435_v3, 0.0 }
0x15b7   : > { %v11764_v35 = vpop.f32.mrf.mxu1  ;;  %12654 = vadd.xlane.f32.xlu1 %v12653_v30 }
0x15b8   : > { %23642 = vst [vmem:[#allocation35_spill] sm:$0xff] %v22438_v32  ;;  %v22443_v55 = vadd.f32 %v11764_v35, %v23643_v63 }
0x15b9   : > { %v17967_v54 = vpop.f32.mrf.mxu1 }
0x15ba   : > { %23644 = vst [vmem:[#allocation69_spill] sm:$0xff] %v22443_v55  ;;  %v22446_v59 = vadd.f32 %v17967_v54, %v23645_v14 }
0x15bb   : > { %v11774_v57 = vpop.f32.mrf.mxu1 }
0x15bc   : > { %23646 = vst [vmem:[#allocation46_spill] sm:$0xff] %v22446_v59  ;;  %v22449_v20 = vadd.f32 %v11774_v57, %v23647_v33  ;;  %v12574_v33 = vpop.xlane.xlu0 %12573  ;;  %v12571_v57 = vpop.xlane.xlu1 %12570 }
0x15bd   : > { %v22451_v58 = vpop.f32.mrf.mxu1  ;;  %v12590_v35 = vsub.f32 %v22367_v17, %v12574_v33  ;;  %v12589_v63 = vsub.f32 %v22371_v25, %v12571_v57 }
0x15be   : > { %23648 = vst [vmem:[#allocation57_spill] sm:$0xff] %v22449_v20  ;;  %v12554_v36 = vsel %vm1685_vm2, %v22451_v58, -inf }
0x15bf   : > { %v22455_v37 = vpop.f32.mrf.mxu1  ;;  %12555 = vmax.xlane.f32.xlu0 %v12554_v36  ;;  %v12621_v54 = vmul.f32 1.442695, %v12590_v35  ;;  %v12619_v14 = vmul.f32 1.442695, %v12589_v63 }
0x15c0   : > { %v12551_v30 = vsel %vm1685_vm2, %v22455_v37, -inf }
0x15c1   : > { %12552 = vmax.xlane.f32.xlu1 %v12551_v30  ;;  %18787 = vpow2.f32 %v12621_v54 }
0x15c2   : > { %18789 = vpow2.f32 %v12619_v14 }
0x15c5   : > { %v22465_v36 = vpop.f32.mrf.mxu1 }
0x15c6   : > { %v12566_v20 = vsel %vm1685_vm2, %v22465_v36, -inf }
0x15c7   : > { %v22467_v30 = vpop.f32.mrf.mxu1 }
0x15c8   : > { %v12563_v55 = vsel %vm1685_vm2, %v22467_v30, -inf }
0x15ce   : > { %v22471_v59 = vpop.eup %18787 }
0x15cf   : > { %v22475_v17 = vpop.eup %18789  ;;  %v12668_v25 = vsel %vm1685_vm2, %v22471_v59, 0.0 }
0x15d0   : > { %v12665_v33 = vsel %vm1685_vm2, %v22475_v17, 0.0 }
0x15d2   : > { %12705 = vrot.lane.b32.xlu1 %v19650_v31, %s19132_s19 }
0x15d5   : > { %12703 = vrot.lane.b32.xlu0 %v19652_v16, %s19132_s19 }
0x15f4   : > { %12567 = vmax.xlane.f32.xlu0 %v12566_v20 }
0x15f6   : > { %12564 = vmax.xlane.f32.xlu1 %v12563_v55 }
0x15f8   : > { %12669 = vadd.xlane.f32.xlu0 %v12668_v25 }
0x15fa   : > { %12666 = vadd.xlane.f32.xlu1 %v12665_v33 }
0x160b   : > { %12792 = vrot.lane.b32.xlu1 %v19663_v40, %s19132_s19 }
0x160e   : > { %12790 = vrot.lane.b32.xlu0 %v19667_v45, %s19132_s19 }
0x160f   : > { %12879 = vrot.lane.b32.xlu1 %v19671_v42, %s19132_s19 }
0x1612   : > { %12966 = vrot.lane.b32.xlu0 %v19679_v53, %s19132_s19 }
0x1613   : > { %12877 = vrot.lane.b32.xlu1 %v19673_v50, %s19132_s19 }
0x1616   : > { %13053 = vrot.lane.b32.xlu0 %v23443_v0, %s19132_s19  ;;  %v12628_v54 = vpop.xlane.xlu0 %12627 }
0x1617   : > { %12964 = vrot.lane.b32.xlu1 %v19681_v13, %s19132_s19 }
0x1618   : > { %v12625_v20 = vpop.xlane.xlu1 %12624 }
0x1619   : > { %18791 = vrcp.f32 %v12625_v20 }
0x161a   : > { %13140 = vrot.lane.b32.xlu0 %v19700_v18, %s19132_s19 }
0x161b   : > { %13051 = vrot.lane.b32.xlu1 %v19689_v60, %s19132_s19 }
0x161f   : > { %13138 = vrot.lane.b32.xlu1 %v19702_v52, %s19132_s19 }
0x1620   : > { %v12631_v55 = vpop.xlane.xlu1 %12630 }
0x1623   : > { %13225 = vrot.lane.b32.xlu1 %v19710_v6, %s19132_s19 }
0x1624   : > { %v12634_v14 = vpop.xlane.xlu0 %12633 }
0x1626   : > { %v18792_v57 = vpop.eup %18791 }
0x1627   : > { %v12672_v35 = vmul.f32 %v18792_v57, %v22398_v5 }
0x1628   : > { %v12640_v20 = vpop.xlane.xlu0 %12639 }
0x1629   : > { %v12637_v63 = vpop.xlane.xlu1 %12636  ;;  %18028 = vmatprep.mubr.msk.f32.mxu1 %vm1685_vm2, %v12672_v35 }
0x162a   : > { %18793 = vrcp.f32 %v12637_v63 }
0x162b   : > { %18795 = vrcp.f32 %v12628_v54 }
0x162c   : > { %18797 = vrcp.f32 %v12631_v55 }
0x162e   : > { %v12646_v32 = vpop.xlane.xlu0 %12645 }
0x1630   : > { %v12643_v9 = vpop.xlane.xlu1 %12642 }
0x1637   : > { %v18794_v25 = vpop.eup %18793 }
0x1638   : > { %v12680_v33 = vmul.f32 %v18794_v25, %v22415_v27  ;;  %v18796_v26 = vpop.eup %18795 }
0x1639   : > { %v18798_v25 = vpop.eup %18797  ;;  %v12674_v55 = vmul.f32 %v18796_v26, %v22393_v15 }
0x163a   : > { %18042 = vmatprep.mubr.msk.f32.mxu0 %vm1685_vm2, %v12680_v33  ;;  %v12676_v54 = vmul.f32 %v18798_v25, %v22405_v43 }
0x163e   : > { %v12658_v39 = vpop.xlane.xlu0 %12657 }
0x1640   : > { %v12655_v47 = vpop.xlane.xlu1 %12654 }
0x1648   : > { %v12556_v19 = vpop.xlane.xlu0 %12555 }
0x1649   : > { %v12584_v5 = vsub.f32 %v22451_v58, %v12556_v19 }
0x164a   : > { %v12553_v57 = vpop.xlane.xlu1 %12552 }
0x164b   : > { %v12609_v35 = vmul.f32 1.442695, %v12584_v5  ;;  %v12583_v63 = vsub.f32 %v22455_v37, %v12553_v57 }
0x164c   : > { %v12704_v33 = vpop.permute.xlu0 %12703 }
0x164d   : > { %18799 = vpow2.f32 %v12609_v35  ;;  %v12607_v29 = vmul.f32 1.442695, %v12583_v63 }
0x164e   : > { %v12706_v27 = vpop.permute.xlu1 %12705 }
0x164f   : > { %18801 = vpow2.f32 %v12607_v29  ;;  %18024 = vmatprep.subr.mxu1 %v12706_v27 }
0x1650   : > { %18025 = vmatpush3.msra.mxu1 %v12706_v27  ;;  %18803 = vrcp.f32 %v12634_v14 }
0x1651   : > { %18026 = vmatprep.subr.mxu1 %v12704_v33  ;;  %18805 = vrcp.f32 %v12643_v9 }
0x1652   : > { %18027 = vmatpush3.msra.mxu1 %v12704_v33  ;;  %18807 = vrcp.f32 %v12640_v20 }
0x1653   : > { %18029 = vmatmul.mubr.msk.f32.vlgmr.msra.gmra.mxu1 %vm1685_vm2, %v12674_v55 }
0x1654   : > { %18035 = vmatprep.mubr.msk.f32.mxu1 %vm1685_vm2, %v12676_v54 }
0x165a   : > { %v22513_v19 = vpop.eup %18799 }
0x165b   : > { %v12650_v58 = vsel %vm1685_vm2, %v22513_v19, 0.0 }
0x165c   : > { %v22517_v37 = vpop.eup %18801  ;;  %12651 = vadd.xlane.f32.xlu0 %v12650_v58 }
0x165d   : > { %v12647_v29 = vsel %vm1685_vm2, %v22517_v37, 0.0  ;;  %v18804_v33 = vpop.eup %18803 }
0x165e   : > { %12648 = vadd.xlane.f32.xlu1 %v12647_v29  ;;  %v18806_v9 = vpop.eup %18805  ;;  %v12678_v20 = vmul.f32 %v18804_v33, %v22409_v46 }
0x1672   : > { %13227 = vrot.lane.b32.xlu0 %v19708_v4, %s19132_s19 }
0x167d   : > { %v12568_v26 = vpop.xlane.xlu0 %12567 }
0x167e   : > { %v12588_v15 = vsub.f32 %v22465_v36, %v12568_v26 }
0x167f   : > { %v12565_v43 = vpop.xlane.xlu1 %12564 }
0x1680   : > { %v12617_v5 = vmul.f32 1.442695, %v12588_v15  ;;  %v12587_v57 = vsub.f32 %v22467_v30, %v12565_v43  ;;  %v18808_v30 = vpop.eup %18807 }
0x1681   : > { %v22525_v35 = vpop.xlane.xlu0 %12669  ;;  %v12682_v29 = vmul.f32 %v18808_v30, %v22413_v49 }
0x1682   : > { %18809 = vpow2.f32 %v12617_v5  ;;  %v12615_v63 = vmul.f32 1.442695, %v12587_v57 }
0x1683   : > { %18811 = vrcp.f32 %v12646_v32  ;;  %v12667_v27 = vpop.xlane.xlu1 %12666  ;;  %v12684_v32 = vmul.f32 %v18806_v9, %v22427_v28 }
0x1684   : > { %18813 = vpow2.f32 %v12615_v63 }
0x1685   : > { %18815 = vrcp.f32 %v12655_v47  ;;  %v12791_v25 = vpop.permute.xlu0 %12790 }
0x1686   : > { %18817 = vrcp.f32 %v12658_v39 }
0x1687   : > { %v12793_v14 = vpop.permute.xlu1 %12792  ;;  %18819 = vrcp.f32 %v12667_v27 }
0x1688   : > { %18031 = vmatprep.subr.mxu1 %v12793_v14 }
0x1689   : > { %18032 = vmatpush3.msra.mxu1 %v12793_v14  ;;  %v12967_v36 = vpop.permute.xlu0 %12966 }
0x168a   : > { %18033 = vmatprep.subr.mxu1 %v12791_v25 }
0x168b   : > { %v12880_v55 = vpop.permute.xlu1 %12879  ;;  %18034 = vmatpush3.msra.mxu1 %v12791_v25 }
0x168c   : > { %18036 = vmatmul.mubr.msk.f32.vlgmr.msra.gmra.mxu1 %vm1685_vm2, %v12678_v20  ;;  %18038 = vmatprep.subr.mxu0 %v12880_v55 }
0x168d   : > { %18045 = vmatprep.subr.mxu1 %v12967_v36  ;;  %18039 = vmatpush3.msra.mxu0 %v12880_v55  ;;  %v13054_v54 = vpop.permute.xlu0 %13053 }
0x168e   : > { %18046 = vmatpush3.msra.mxu1 %v12967_v36  ;;  %18049 = vmatprep.mubr.msk.f32.mxu1 %vm1685_vm2, %v12684_v32 }
0x168f   : > { %v22531_v47 = vpop.eup %18809  ;;  %v12878_v46 = vpop.permute.xlu1 %12877 }
0x1690   : > { %v18812_v58 = vpop.eup %18811  ;;  %18040 = vmatprep.subr.mxu0 %v12878_v46  ;;  %v12662_v39 = vsel %vm1685_vm2, %v22531_v47, 0.0 }
0x1691   : > { %v22536_v26 = vpop.eup %18813  ;;  %18041 = vmatpush3.msra.mxu0 %v12878_v46  ;;  %12663 = vadd.xlane.f32.xlu0 %v12662_v39  ;;  %v12686_v49 = vmul.f32 %v18812_v58, %v22422_v12  ;;  %v13141_v5 = vpop.permute.xlu0 %13140 }
0x1692   : > { %v18816_v28 = vpop.eup %18815  ;;  %18043 = vmatmul.mubr.msk.f32.vlgmr.msra.gmra.mxu0 %vm1685_vm2, %v12682_v29  ;;  %18052 = vmatprep.subr.mxu0 %v13054_v54  ;;  %v12659_v15 = vsel %vm1685_vm2, %v22536_v26, 0.0 }
0x1693   : > { %12660 = vadd.xlane.f32.xlu1 %v12659_v15  ;;  %v12965_v43 = vpop.permute.xlu1 %12964  ;;  %18053 = vmatpush3.msra.mxu0 %v13054_v54  ;;  %v12692_v57 = vmul.f32 %v18816_v28, %v22435_v3  ;;  %v18818_v27 = vpop.eup %18817 }
0x1694   : > { %18047 = vmatprep.subr.mxu1 %v12965_v43  ;;  %v18820_v25 = vpop.eup %18819  ;;  %v12694_v14 = vmul.f32 %v18818_v27, %v22431_v24 }
0x1695   : > { %18048 = vmatpush3.msra.mxu1 %v12965_v43  ;;  %v12700_v12 = vmul.f32 %v18820_v25, %v22475_v17 }
0x1696   : > { %18050 = vmatmul.mubr.msk.f32.vlgmr.msra.gmra.mxu1 %vm1685_vm2, %v12686_v49  ;;  %18059 = vmatprep.subr.mxu1 %v13141_v5 }
0x1697   : > { %v13052_v63 = vpop.permute.xlu1 %13051  ;;  %18060 = vmatpush3.msra.mxu1 %v13141_v5  ;;  %18063 = vmatprep.mubr.msk.f32.mxu1 %vm1685_vm2, %v12692_v57 }
0x1698   : > { %18054 = vmatprep.subr.mxu0 %v13052_v63 }
0x1699   : > { %18055 = vmatpush3.msra.mxu0 %v13052_v63 }
0x169b   : > { %v13139_v33 = vpop.permute.xlu1 %13138 }
0x169c   : > { %18061 = vmatprep.subr.mxu1 %v13139_v33 }
0x169d   : > { %18062 = vmatpush3.msra.mxu1 %v13139_v33 }
0x169e   : > { %18064 = vmatmul.mubr.msk.f32.vlgmr.msra.gmra.mxu1 %vm1685_vm2, %v12694_v14 }
0x169f   : > { %18077 = vmatprep.mubr.msk.f32.mxu1 %vm1685_vm2, %v12700_v12 }
0x16a4   : > { %13312 = vrot.lane.b32.xlu1 %v19718_v11, %s19132_s19 }
0x16a7   : > { %13314 = vrot.lane.b32.xlu0 %v19716_v7, %s19132_s19  ;;  %s16439_s19 = sshll.u32 %s19215_s17, 9  ;;  %s19136_s17 = smov [#allocation10]  }
0x16a8   : > { %13615 = vrot.lane.b32.xlu1 %v19652_v16, %s19133_s21 }
0x16ab   : > { %13617 = vrot.lane.b32.xlu0 %v19650_v31, %s19133_s21 }
0x16ac   : > { %13708 = vrot.lane.b32.xlu1 %v19663_v40, %s19133_s21 }
0x16af   : > { %13611 = vrot.lane.b32.xlu0 %v23444_v34, %s19134_s30 }
0x16b0   : > { %13706 = vrot.lane.b32.xlu1 %v19667_v45, %s19133_s21 }
0x16b3   : > { %13613 = vrot.lane.b32.xlu0 %v23446_v10, %s19134_s30 }
0x16b4   : > { %13799 = vrot.lane.b32.xlu1 %v19671_v42, %s19133_s21 }
0x16b7   : > { %13702 = vrot.lane.b32.xlu0 %v23445_v1, %s19134_s30 }
0x16b8   : > { %13797 = vrot.lane.b32.xlu1 %v19673_v50, %s19133_s21 }
0x16bb   : > { %13704 = vrot.lane.b32.xlu0 %v23448_v44, %s19134_s30 }
0x16bc   : > { %13890 = vrot.lane.b32.xlu1 %v19679_v53, %s19133_s21 }
0x16bf   : > { %13793 = vrot.lane.b32.xlu0 %v23501_v23, %s19134_s30 }
0x16c0   : > { %13888 = vrot.lane.b32.xlu1 %v19681_v13, %s19133_s21 }
0x16c3   : > { %13795 = vrot.lane.b32.xlu0 %v23450_v22, %s19134_s30 }
0x16c4   : > { %13884 = vrot.lane.b32.xlu1 %v23449_v48, %s19134_s30 }
0x16c7   : > { %13981 = vrot.lane.b32.xlu0 %v23443_v0, %s19133_s21 }
0x16c8   : > { %13979 = vrot.lane.b32.xlu1 %v19689_v60, %s19133_s21 }
0x16cb   : > { %13886 = vrot.lane.b32.xlu0 %v19807_v38, %s19134_s30 }
0x16cc   : > { %13975 = vrot.lane.b32.xlu1 %v19696_v61, %s19134_s30  ;;  %v13226_v61 = vpop.permute.xlu1 %13225 }
0x16cf   : > { %14072 = vrot.lane.b32.xlu0 %v19700_v18, %s19133_s21 }
0x16d0   : > { %14070 = vrot.lane.b32.xlu1 %v19702_v52, %s19133_s21 }
0x16d3   : > { %13977 = vrot.lane.b32.xlu0 %v19821_v8, %s19134_s30 }
0x16d4   : > { %14066 = vrot.lane.b32.xlu1 %v19810_v41, %s19134_s30 }
0x16d7   : > { %14163 = vrot.lane.b32.xlu0 %v19708_v4, %s19133_s21 }
0x16d8   : > { %14161 = vrot.lane.b32.xlu1 %v19710_v6, %s19133_s21 }
0x16db   : > { %14068 = vrot.lane.b32.xlu0 %v19835_v56, %s19134_s30 }
0x16dc   : > { %14157 = vrot.lane.b32.xlu1 %v19824_v51, %s19134_s30 }
0x16df   : > { %14254 = vrot.lane.b32.xlu0 %v19716_v7, %s19133_s21 }
0x16e0   : > { %14252 = vrot.lane.b32.xlu1 %v19718_v11, %s19133_s21 }
0x16e3   : > { %14159 = vrot.lane.b32.xlu0 %v19849_v2, %s19134_s30  ;;  %v22605_v2 = vld [vmem:[#allocation8 + $0x18] sm:$0xff] }
0x16e4   : > { %14250 = vrot.lane.b32.xlu1 %v19858_v62, %s19134_s30 }
0x16e5   : > { %v12652_v38 = vpop.xlane.xlu0 %12651 }
0x16e6   : > { %18821 = vrcp.f32 %v12652_v38 }
0x16e7   : > { %v12649_v41 = vpop.xlane.xlu1 %12648  ;;  %14248 = vrot.lane.b32.xlu0 %v23502_v21, %s19134_s30  ;;  %s23254_s30 = scalar_lea.hbm %s23307_s10, %s16439_s19 }
0x16e8   : > { %18823 = vrcp.f32 %v12649_v41 }
0x16e9   : > { %v13228_v8 = vpop.permute.xlu0 %13227  ;;  %18825 = vrcp.f32 %v22525_v35 }
0x16ea   : > { %18066 = vmatprep.subr.mxu0 %v13228_v8 }
0x16f3   : > { %v18822_v51 = vpop.eup %18821 }
0x16f4   : > { %v12690_v1 = vmul.f32 %v18822_v51, %v22513_v19 }
0x16f5   : > { %v18824_v56 = vpop.eup %18823 }
0x16f6   : > { %v12688_v34 = vmul.f32 %v18824_v56, %v22517_v37  ;;  %v18826_v44 = vpop.eup %18825 }
0x16f7   : > { %v12702_v23 = vmul.f32 %v18826_v44, %v22471_v59 }
0x16f8   : > { %18056 = vmatprep.mubr.msk.f32.mxu0 %vm1685_vm2, %v12688_v34 }
0x16f9   : > { %18057 = vmatmul.mubr.msk.f32.vlgmr.msra.gmra.mxu0 %vm1685_vm2, %v12690_v1 }
0x16fa   : > { %18067 = vmatpush3.msra.mxu0 %v13228_v8 }
0x16fb   : > { %18068 = vmatprep.subr.mxu0 %v13226_v61 }
0x16fc   : > { %18069 = vmatpush3.msra.mxu0 %v13226_v61 }
0x16fd   : > { %18080 = vmatprep.subr.msk.mxu0 %vm4208_vm3, %v22605_v2 }
0x1713   : > { %v18030_v37 = vpop.f32.mrf.mxu1 }
0x1715   : > { %v12781_v55 = vpop.f32.mrf.mxu1 }
0x171a   : > { %v12664_v62 = vpop.xlane.xlu0 %12663 }
0x171b   : > { %18827 = vrcp.f32 %v12664_v62 }
0x171c   : > { %v12661_v10 = vpop.xlane.xlu1 %12660 }
0x171d   : > { %18829 = vrcp.f32 %v12661_v10 }
0x171e   : > { %v13315_v48 = vpop.permute.xlu0 %13314 }
0x171f   : > { %18073 = vmatprep.subr.mxu1 %v13315_v48 }
0x1720   : > { %v13313_v22 = vpop.permute.xlu1 %13312  ;;  %18074 = vmatpush3.msra.mxu1 %v13315_v48 }
0x1721   : > { %18075 = vmatprep.subr.mxu1 %v13313_v22 }
0x1722   : > { %18076 = vmatpush3.msra.mxu1 %v13313_v22  ;;  %v13618_v21 = vpop.permute.xlu0 %13617 }
0x1723   : > { %18078 = vmatmul.mubr.msk.f32.vlgmr.msra.gmra.mxu1 %vm1685_vm2, %v12702_v23  ;;  %18106 = vmatprep.subr.msk.mxu1 %vm962_vm1, %v13618_v21 }
0x1724   : > { %v13616_v24 = vpop.permute.xlu1 %13615  ;;  %18107 = vmatpush3.xpose.msk.msra.mxu1 %vm962_vm1, %v13618_v21 }
0x1725   : > { %18108 = vmatprep.subr.msk.mxu1 %vm962_vm1, %v13616_v24 }
0x1726   : > { %v13612_v3 = vpop.permute.xlu0 %13611 }
0x1727   : > { %18110 = vmatprep.mubr.msk.f32.mxu1 %vm962_vm1, %v13612_v3 }
0x1728   : > { %v13709_v17 = vpop.permute.xlu1 %13708  ;;  %18109 = vmatpush3.xpose.msk.msra.mxu1 %vm962_vm1, %v13616_v24  ;;  %v18828_v19 = vpop.eup %18827 }
0x1729   : > { %18113 = vmatprep.subr.msk.mxu1 %vm962_vm1, %v13709_v17  ;;  %v12698_v36 = vmul.f32 %v18828_v19, %v22531_v47 }
0x172a   : > { %v18830_v59 = vpop.eup %18829  ;;  %v13614_v35 = vpop.permute.xlu0 %13613 }
0x172b   : > { %18111 = vmatmul.mubr.msk.f32.vlgmr.msra.gmra.mxu1 %vm962_vm1, %v13614_v35  ;;  %v12696_v9 = vmul.f32 %v18830_v59, %v22536_v26 }
0x172c   : > { %v13707_v20 = vpop.permute.xlu1 %13706  ;;  %18114 = vmatpush3.xpose.msk.msra.mxu1 %vm962_vm1, %v13709_v17 }
0x172d   : > { %18070 = vmatprep.mubr.msk.f32.mxu0 %vm1685_vm2, %v12696_v9  ;;  %18115 = vmatprep.subr.msk.mxu1 %vm962_vm1, %v13707_v20 }
0x172e   : > { %18071 = vmatmul.mubr.msk.f32.vlgmr.msra.gmra.mxu0 %vm1685_vm2, %v12698_v36  ;;  %v13703_v32 = vpop.permute.xlu0 %13702 }
0x172f   : > { %18082 = vmatprep.mubr.msk.f32.mxu0 %vm962_vm1, %v12781_v55  ;;  %18117 = vmatprep.mubr.msk.f32.mxu1 %vm962_vm1, %v13703_v32 }
0x1730   : > { %v13800_v30 = vpop.permute.xlu1 %13799  ;;  %18116 = vmatpush3.xpose.msk.msra.mxu1 %vm962_vm1, %v13707_v20  ;;  %18081 = vmatpush3.msk.msra.mxu0 %vm4208_vm3, %v22605_v2  ;;  %v23649_v20 = vld [vmem:[#allocation63_spill] sm:$0xff] }
0x1731   : > { %18120 = vmatprep.subr.msk.mxu1 %vm962_vm1, %v13800_v30 }
0x1732   : > { %18083 = vmatmul.mubr.msk.f32.vlgmr.msra.gmra.mxu0 %vm962_vm1, %v18030_v37  ;;  %v13705_v47 = vpop.permute.xlu0 %13704 }
0x1733   : > { %18118 = vmatmul.mubr.msk.f32.vlgmr.msra.gmra.mxu1 %vm962_vm1, %v13705_v47  ;;  %v23650_v47 = vld [vmem:[#allocation41_spill] sm:$0xff] }
0x1734   : > { %v13798_v54 = vpop.permute.xlu1 %13797  ;;  %18121 = vmatpush3.xpose.msk.msra.mxu1 %vm962_vm1, %v13800_v30 }
0x1735   : > { %18122 = vmatprep.subr.msk.mxu1 %vm962_vm1, %v13798_v54 }
0x1736   : > { %v13794_v46 = vpop.permute.xlu0 %13793 }
0x1737   : > { %18124 = vmatprep.mubr.msk.f32.mxu1 %vm962_vm1, %v13794_v46 }
0x1738   : > { %v13891_v58 = vpop.permute.xlu1 %13890  ;;  %18123 = vmatpush3.xpose.msk.msra.mxu1 %vm962_vm1, %v13798_v54 }
0x1739   : > { %18127 = vmatprep.subr.msk.mxu1 %vm962_vm1, %v13891_v58 }
0x173a   : > { %v13796_v29 = vpop.permute.xlu0 %13795 }
0x173b   : > { %18125 = vmatmul.mubr.msk.f32.vlgmr.msra.gmra.mxu1 %vm962_vm1, %v13796_v29 }
0x173c   : > { %v13889_v39 = vpop.permute.xlu1 %13888  ;;  %18128 = vmatpush3.xpose.msk.msra.mxu1 %vm962_vm1, %v13891_v58 }
0x173d   : > { %18129 = vmatprep.subr.msk.mxu1 %vm962_vm1, %v13889_v39 }
0x173e   : > { %v13982_v26 = vpop.permute.xlu0 %13981 }
0x173f   : > { %18134 = vmatprep.subr.msk.mxu0 %vm962_vm1, %v13982_v26 }
0x1740   : > { %v13885_v28 = vpop.permute.xlu1 %13884  ;;  %18130 = vmatpush3.xpose.msk.msra.mxu1 %vm962_vm1, %v13889_v39  ;;  %18135 = vmatpush3.xpose.msk.msra.mxu0 %vm962_vm1, %v13982_v26 }
0x1741   : > { %18131 = vmatprep.mubr.msk.f32.mxu1 %vm962_vm1, %v13885_v28 }
0x1742   : > { %v13887_v15 = vpop.permute.xlu0 %13886 }
0x1743   : > { %18132 = vmatmul.mubr.msk.f32.vlgmr.msra.gmra.mxu1 %vm962_vm1, %v13887_v15 }
0x1744   : > { %v13980_v43 = vpop.permute.xlu1 %13979 }
0x1745   : > { %18136 = vmatprep.subr.msk.mxu0 %vm962_vm1, %v13980_v43 }
0x1746   : > { %18137 = vmatpush3.xpose.msk.msra.mxu0 %vm962_vm1, %v13980_v43  ;;  %v14073_v49 = vpop.permute.xlu0 %14072 }
0x1747   : > { %18141 = vmatprep.subr.msk.mxu1 %vm962_vm1, %v14073_v49 }
0x1748   : > { %v22649_v5 = vpop.permute.xlu1 %13975  ;;  %18142 = vmatpush3.xpose.msk.msra.mxu1 %vm962_vm1, %v14073_v49 }
0x174a   : > { %v22652_v57 = vpop.permute.xlu0 %13977 }
0x174c   : > { %v14071_v63 = vpop.permute.xlu1 %14070  ;;  %v18037_v27 = vpop.f32.mrf.mxu1 }
0x174d   : > { %18143 = vmatprep.subr.msk.mxu1 %vm962_vm1, %v14071_v63 }
0x174e   : > { %v12868_v25 = vpop.f32.mrf.mxu1  ;;  %18144 = vmatpush3.xpose.msk.msra.mxu1 %vm962_vm1, %v14071_v63  ;;  %v14164_v33 = vpop.permute.xlu0 %14163 }
0x174f   : > { %18085 = vmatprep.mubr.msk.f32.mxu0 %vm962_vm1, %v12868_v25  ;;  %18148 = vmatprep.subr.msk.mxu0 %vm962_vm1, %v14164_v33 }
0x1750   : > { %v14067_v14 = vpop.permute.xlu1 %14066  ;;  %18086 = vmatmul.mubr.msk.f32.gmra.mxu0 %vm962_vm1, %v18037_v27  ;;  %v23651_v27 = vld [vmem:[#allocation33_spill] sm:$0xff] }
0x1751   : > { %18145 = vmatprep.mubr.msk.f32.mxu1 %vm962_vm1, %v14067_v14  ;;  %v23652_v14 = vld [vmem:[#allocation65_spill] sm:$0xff] }
0x1752   : > { %v18044_v12 = vpop.f32.mrf.mxu0  ;;  %v14069_v61 = vpop.permute.xlu0 %14068 }
0x1753   : > { %18146 = vmatmul.mubr.msk.f32.vlgmr.msra.gmra.mxu1 %vm962_vm1, %v14069_v61 }
0x1754   : > { %v14162_v38 = vpop.permute.xlu1 %14161  ;;  %v12955_v41 = vpop.f32.mrf.mxu0 }
0x1755   : > { %18088 = vmatprep.mubr.msk.f32.mxu0 %vm962_vm1, %v12955_v41 }
0x1756   : > { %v18051_v8 = vpop.f32.mrf.mxu1  ;;  %18089 = vmatmul.mubr.msk.f32.gmra.mxu0 %vm962_vm1, %v18044_v12  ;;  %v14255_v51 = vpop.permute.xlu0 %14254 }
0x1757   : > { %18155 = vmatprep.subr.msk.mxu1 %vm962_vm1, %v14255_v51 }
0x1758   : > { %v14158_v56 = vpop.permute.xlu1 %14157  ;;  %v13042_v34 = vpop.f32.mrf.mxu1  ;;  %18156 = vmatpush3.xpose.msk.msra.mxu1 %vm962_vm1, %v14255_v51 }
0x1759   : > { %18091 = vmatprep.mubr.msk.f32.mxu0 %vm962_vm1, %v13042_v34 }
0x175a   : > { %18092 = vmatmul.mubr.msk.f32.gmra.mxu0 %vm962_vm1, %v18051_v8  ;;  %v14160_v1 = vpop.permute.xlu0 %14159 }
0x175c   : > { %v14253_v62 = vpop.permute.xlu1 %14252 }
0x175d   : > { %18157 = vmatprep.subr.msk.mxu1 %vm962_vm1, %v14253_v62 }
0x175e   : > { %18158 = vmatpush3.xpose.msk.msra.mxu1 %vm962_vm1, %v14253_v62  ;;  %v14249_v10 = vpop.permute.xlu0 %14248  ;;  %v18065_v48 = vpop.f32.mrf.mxu1  ;;  %v23654_v62 = vld [vmem:[#allocation54_spill] sm:$0xff] }
0x175f   : > { %18159 = vmatprep.mubr.msk.f32.mxu1 %vm962_vm1, %v14249_v10 }
0x1760   : > { %v14251_v44 = vpop.permute.xlu1 %14250  ;;  %v13216_v21 = vpop.f32.mrf.mxu1 }
0x1761   : > { %18160 = vmatmul.mubr.msk.f32.vlgmr.msra.gmra.mxu1 %vm962_vm1, %v14251_v44 }
0x17b9   : > { %v18058_v22 = vpop.f32.mrf.mxu0 }
0x17bb   : > { %v13129_v23 = vpop.f32.mrf.mxu0 }
0x17bc   : > { %18094 = vmatprep.mubr.msk.f32.mxu0 %vm962_vm1, %v13129_v23 }
0x17bd   : > { %18095 = vmatmul.mubr.msk.f32.gmra.mxu0 %vm962_vm1, %v18058_v22 }
0x17be   : > { %18097 = vmatprep.mubr.msk.f32.mxu0 %vm962_vm1, %v13216_v21 }
0x17c1   : > { %18098 = vmatmul.mubr.msk.f32.gmra.mxu0 %vm962_vm1, %v18065_v48  ;;  %v23655_v48 = vld [vmem:[#allocation40_spill] sm:$0xff] }
0x17e3   : > { %v18079_v24 = vpop.f32.mrf.mxu1 }
0x17e5   : > { %v13390_v3 = vpop.f32.mrf.mxu1 }
0x17eb   : > { %v22675_v17 = vpop.f32.mrf.mxu1 }
0x17ec   : > { %v14342_v19 = vsel %vm1685_vm2, %v22675_v17, -inf }
0x17ed   : > { %14343 = vmax.xlane.f32.xlu1 %v14342_v19  ;;  %v22679_v59 = vpop.f32.mrf.mxu1 }
0x17ee   : > { %v18072_v37 = vpop.f32.mrf.mxu0  ;;  %v14339_v35 = vsel %vm1685_vm2, %v22679_v59, -inf }
0x17ef   : > { %14340 = vmax.xlane.f32.xlu0 %v14339_v35 }
0x17f0   : > { %v13303_v9 = vpop.f32.mrf.mxu0 }
0x17f1   : > { %18100 = vmatprep.mubr.msk.f32.mxu0 %vm962_vm1, %v13303_v9 }
0x17f2   : > { %v18084_v36 = vpop.f32.mrf.mxu0  ;;  %18101 = vmatmul.mubr.msk.f32.gmra.mxu0 %vm962_vm1, %v18072_v37 }
0x17f3   : > { %v22686_v55 = vadd.f32 %v18084_v36, %v23649_v20  ;;  %18103 = vmatprep.mubr.msk.f32.mxu0 %vm962_vm1, %v13390_v3  ;;  %v22689_v32 = vpop.f32.mrf.mxu1 }
0x17f4   : > { %v13516_v30 = vpop.f32.mrf.mxu0  ;;  %v14348_v29 = vsel %vm1685_vm2, %v22689_v32, -inf }
0x17f5   : > { %v22692_v54 = vadd.f32 %v13516_v30, %v23650_v47  ;;  %v22694_v46 = vpop.f32.mrf.mxu1 }
0x17f6   : > { %18104 = vmatmul.mubr.msk.f32.gmra.mxu0 %vm962_vm1, %v18079_v24  ;;  %v14345_v58 = vsel %vm1685_vm2, %v22694_v46, -inf }
0x17f7   : > { %18138 = vmatprep.mubr.msk.f32.mxu0 %vm962_vm1, %v22649_v5  ;;  %14346 = vmax.xlane.f32.xlu0 %v14345_v58  ;;  %v23656_v58 = vld [vmem:[#allocation42_spill] sm:$0xff] }
0x17fa   : > { %18139 = vmatmul.mubr.msk.f32.vlgmr.msra.gmra.mxu0 %vm962_vm1, %v22652_v57 }
0x17fb   : > { %18149 = vmatpush3.xpose.msk.msra.mxu0 %vm962_vm1, %v14164_v33  ;;  %14349 = vmax.xlane.f32.xlu0 %v14348_v29  ;;  %v22706_v39 = vpop.f32.mrf.mxu1 }
0x17fc   : > { %18150 = vmatprep.subr.msk.mxu0 %vm962_vm1, %v14162_v38  ;;  %18152 = vmatprep.mubr.msk.f32.mxu0 %vm962_vm1, %v14158_v56  ;;  %v14354_v28 = vsel %vm1685_vm2, %v22706_v39, -inf  ;;  %v23653_v56 = vld [vmem:[#allocation50_spill] sm:$0xff] }
0x17fd   : > { %v22710_v26 = vpop.f32.mrf.mxu1 }
0x17fe   : > { %v14351_v15 = vsel %vm1685_vm2, %v22710_v26, -inf }
0x17ff   : > { %18151 = vmatpush3.xpose.msk.msra.mxu0 %vm962_vm1, %v14162_v38  ;;  %14355 = vmax.xlane.f32.xlu0 %v14354_v28 }
0x1800   : > { %14352 = vmax.xlane.f32.xlu1 %v14351_v15  ;;  %v23657_v15 = vld [vmem:[#allocation60_spill] sm:$0xff] }
0x1802   : > { %18153 = vmatmul.mubr.msk.f32.vlgmr.msra.gmra.mxu0 %vm962_vm1, %v14160_v1 }
0x1803   : > { %v22718_v43 = vpop.f32.mrf.mxu1 }
0x1804   : > { %v14360_v49 = vsel %vm1685_vm2, %v22718_v43, -inf }
0x1805   : > { %14361 = vmax.xlane.f32.xlu0 %v14360_v49  ;;  %v22722_v5 = vpop.f32.mrf.mxu1 }
0x1806   : > { %v14357_v57 = vsel %vm1685_vm2, %v22722_v5, -inf }
0x1807   : > { %14358 = vmax.xlane.f32.xlu1 %v14357_v57 }
0x1810   : > { %v18087_v63 = vpop.f32.mrf.mxu0 }
0x1811   : > { %v22727_v25 = vadd.f32 %v18087_v63, %v23651_v27  ;;  %v23658_v27 = vld [vmem:[#allocation67_spill] sm:$0xff] }
0x1812   : > { %v13526_v33 = vpop.f32.mrf.mxu0 }
0x1813   : > { %v22730_v12 = vadd.f32 %v13526_v33, %v23652_v14  ;;  %v22732_v61 = vpop.f32.mrf.mxu1 }
0x1814   : > { %v14372_v38 = vsel %vm1685_vm2, %v22732_v61, -inf }
0x1815   : > { %14373 = vmax.xlane.f32.xlu0 %v14372_v38  ;;  %v22736_v41 = vpop.f32.mrf.mxu1  ;;  %v23659_v38 = vld [vmem:[#allocation43_spill] sm:$0xff] }
0x1816   : > { %v18090_v8 = vpop.f32.mrf.mxu0  ;;  %v14369_v51 = vsel %vm1685_vm2, %v22736_v41, -inf }
0x1817   : > { %v22741_v34 = vadd.f32 %v18090_v8, %v23653_v56  ;;  %14370 = vmax.xlane.f32.xlu1 %v14369_v51 }
0x1818   : > { %v13536_v1 = vpop.f32.mrf.mxu0 }
0x1819   : > { %v22744_v10 = vadd.f32 %v13536_v1, %v23654_v62 }
0x181a   : > { %v18093_v44 = vpop.f32.mrf.mxu0 }
0x181b   : > { %v22747_v22 = vadd.f32 %v18093_v44, %v23655_v48 }
0x181c   : > { %v22759_v20 = vpop.f32.mrf.mxu0 }
0x1821   : > { %v22749_v23 = vpop.f32.mrf.mxu1 }
0x1822   : > { %v14384_v21 = vsel %vm1685_vm2, %v22749_v23, -inf }
0x1823   : > { %14385 = vmax.xlane.f32.xlu0 %v14384_v21  ;;  %v22753_v24 = vpop.f32.mrf.mxu1 }
0x1824   : > { %v14381_v3 = vsel %vm1685_vm2, %v22753_v24, -inf }
0x1825   : > { %14382 = vmax.xlane.f32.xlu1 %v14381_v3 }
0x1876   : > { %v14344_v19 = vpop.xlane.xlu1 %14343 }
0x1877   : > { %v14388_v37 = vsub.f32 %v22675_v17, %v14344_v19 }
0x1878   : > { %v14341_v35 = vpop.xlane.xlu0 %14340 }
0x1879   : > { %v14405_v9 = vmul.f32 1.442695, %v14388_v37  ;;  %v14387_v36 = vsub.f32 %v22679_v59, %v14341_v35 }
0x187b   : > { %18831 = vpow2.f32 %v14405_v9  ;;  %v14403_v30 = vmul.f32 1.442695, %v14387_v36 }
0x187d   : > { %18833 = vpow2.f32 %v14403_v30  ;;  %v18096_v47 = vpop.f32.mrf.mxu0 }
0x187e   : > { %v22762_v29 = vadd.f32 %v18096_v47, %v23656_v58 }
0x187f   : > { %v13556_v28 = vpop.f32.mrf.mxu0 }
0x1880   : > { %v22765_v49 = vadd.f32 %v13556_v28, %v23657_v15  ;;  %v14347_v57 = vpop.xlane.xlu0 %14346 }
0x1881   : > { %v14389_v17 = vsub.f32 %v22694_v46, %v14347_v57  ;;  %v18099_v63 = vpop.f32.mrf.mxu0 }
0x1882   : > { %v22769_v33 = vadd.f32 %v18099_v63, %v23658_v27 }
0x1883   : > { %v14407_v59 = vmul.f32 1.442695, %v14389_v17  ;;  %v13566_v14 = vpop.f32.mrf.mxu0 }
0x1884   : > { %v22772_v8 = vadd.f32 %v13566_v14, %v23659_v38  ;;  %v14350_v51 = vpop.xlane.xlu0 %14349 }
0x1885   : > { %18835 = vpow2.f32 %v14407_v59  ;;  %v14390_v56 = vsub.f32 %v22689_v32, %v14350_v51 }
0x1887   : > { %v14409_v1 = vmul.f32 1.442695, %v14390_v56 }
0x1888   : > { %v22775_v62 = vpop.eup %18831  ;;  %v14356_v44 = vpop.xlane.xlu0 %14355 }
0x1889   : > { %18837 = vpow2.f32 %v14409_v1  ;;  %v14353_v48 = vpop.xlane.xlu1 %14352  ;;  %v14392_v46 = vsub.f32 %v22706_v39, %v14356_v44  ;;  %v14438_v21 = vsel %vm1685_vm2, %v22775_v62, 0.0 }
0x188a   : > { %v22780_v3 = vpop.eup %18833  ;;  %v14391_v19 = vsub.f32 %v22710_v26, %v14353_v48  ;;  %14439 = vadd.xlane.f32.xlu0 %v14438_v21 }
0x188b   : > { %v14413_v37 = vmul.f32 1.442695, %v14392_v46  ;;  %v14435_v32 = vsel %vm1685_vm2, %v22780_v3, 0.0 }
0x188c   : > { %v14411_v35 = vmul.f32 1.442695, %v14391_v19  ;;  %14436 = vadd.xlane.f32.xlu1 %v14435_v32 }
0x188d   : > { %18839 = vpow2.f32 %v14413_v37  ;;  %v23660_v37 = vld [vmem:[#allocation35_spill] sm:$0xff] }
0x188e   : > { %18841 = vpow2.f32 %v14411_v35  ;;  %v14362_v9 = vpop.xlane.xlu0 %14361 }
0x188f   : > { %v14394_v36 = vsub.f32 %v22718_v43, %v14362_v9 }
0x1890   : > { %v14359_v39 = vpop.xlane.xlu1 %14358 }
0x1891   : > { %v14417_v30 = vmul.f32 1.442695, %v14394_v36  ;;  %v14393_v47 = vsub.f32 %v22722_v5, %v14359_v39  ;;  %v23661_v36 = vld [vmem:[#allocation69_spill] sm:$0xff] }
0x1892   : > { %v22787_v58 = vpop.eup %18835 }
0x1893   : > { %18843 = vpow2.f32 %v14417_v30  ;;  %v14415_v26 = vmul.f32 1.442695, %v14393_v47  ;;  %v14441_v28 = vsel %vm1685_vm2, %v22787_v58, 0.0  ;;  %v23662_v47 = vld [vmem:[#allocation46_spill] sm:$0xff] }
0x1894   : > { %14442 = vadd.xlane.f32.xlu1 %v14441_v28 }
0x1895   : > { %18845 = vpow2.f32 %v14415_v26 }
0x1896   : > { %v22791_v15 = vpop.eup %18837 }
0x1897   : > { %v14444_v57 = vsel %vm1685_vm2, %v22791_v15, 0.0 }
0x1898   : > { %14445 = vadd.xlane.f32.xlu0 %v14444_v57  ;;  %v23663_v57 = vld [vmem:[#allocation57_spill] sm:$0xff] }
0x189a   : > { %v22795_v43 = vpop.eup %18839 }
0x189b   : > { %v22797_v17 = vpop.eup %18841  ;;  %v14450_v5 = vsel %vm1685_vm2, %v22795_v43, 0.0 }
0x189c   : > { %v14447_v63 = vsel %vm1685_vm2, %v22797_v17, 0.0  ;;  %14451 = vadd.xlane.f32.xlu0 %v14450_v5 }
0x189d   : > { %14448 = vadd.xlane.f32.xlu1 %v14447_v63 }
0x189e   : > { %v14374_v27 = vpop.xlane.xlu0 %14373 }
0x189f   : > { %v14398_v59 = vsub.f32 %v22732_v61, %v14374_v27 }
0x18a0   : > { %v22804_v14 = vpop.eup %18843  ;;  %v14371_v38 = vpop.xlane.xlu1 %14370 }
0x18a1   : > { %v14425_v51 = vmul.f32 1.442695, %v14398_v59  ;;  %v14397_v56 = vsub.f32 %v22736_v41, %v14371_v38  ;;  %v14456_v1 = vsel %vm1685_vm2, %v22804_v14, 0.0 }
0x18a2   : > { %v22809_v44 = vpop.eup %18845  ;;  %14457 = vadd.xlane.f32.xlu0 %v14456_v1 }
0x18a3   : > { %18847 = vpow2.f32 %v14425_v51  ;;  %v14423_v48 = vmul.f32 1.442695, %v14397_v56  ;;  %v14453_v46 = vsel %vm1685_vm2, %v22809_v44, 0.0 }
0x18a4   : > { %14454 = vadd.xlane.f32.xlu1 %v14453_v46 }
0x18a5   : > { %18849 = vpow2.f32 %v14423_v48 }
0x18ac   : > { %v14386_v51 = vpop.xlane.xlu0 %14385 }
0x18ad   : > { %v14402_v1 = vsub.f32 %v22749_v23, %v14386_v51 }
0x18ae   : > { %v14383_v56 = vpop.xlane.xlu1 %14382 }
0x18af   : > { %v14401_v48 = vsub.f32 %v22753_v24, %v14383_v56  ;;  %v14433_v46 = vmul.f32 1.442695, %v14402_v1 }
0x18b0   : > { %v22813_v61 = vpop.eup %18847 }
0x18b1   : > { %v14468_v21 = vsel %vm1685_vm2, %v22813_v61, 0.0  ;;  %18851 = vpow2.f32 %v14433_v46 }
0x18b2   : > { %v22817_v19 = vpop.eup %18849  ;;  %v18102_v41 = vpop.f32.mrf.mxu0  ;;  %14469 = vadd.xlane.f32.xlu0 %v14468_v21  ;;  %v14431_v21 = vmul.f32 1.442695, %v14401_v48 }
0x18b3   : > { %v22820_v32 = vadd.f32 %v18102_v41, %v23660_v37  ;;  %v14465_v35 = vsel %vm1685_vm2, %v22817_v19, 0.0 }
0x18b4   : > { %v13576_v9 = vpop.f32.mrf.mxu0  ;;  %14466 = vadd.xlane.f32.xlu1 %v14465_v35  ;;  %18853 = vpow2.f32 %v14431_v21 }
0x18b5   : > { %v22825_v39 = vadd.f32 %v13576_v9, %v23661_v36 }
0x18b6   : > { %v18105_v30 = vpop.f32.mrf.mxu0 }
0x18b7   : > { %v22828_v26 = vadd.f32 %v18105_v30, %v23662_v47 }
0x18b8   : > { %v13586_v28 = vpop.f32.mrf.mxu0 }
0x18b9   : > { %v22831_v5 = vadd.f32 %v13586_v28, %v23663_v57 }
0x18ba   : > { %v22833_v63 = vpop.f32.mrf.mxu0 }
0x18bb   : > { %v14366_v27 = vsel %vm1685_vm2, %v22833_v63, -inf }
0x18bc   : > { %v22837_v59 = vpop.f32.mrf.mxu0  ;;  %14367 = vmax.xlane.f32.xlu0 %v14366_v27 }
0x18bd   : > { %v14363_v38 = vsel %vm1685_vm2, %v22837_v59, -inf }
0x18be   : > { %14364 = vmax.xlane.f32.xlu1 %v14363_v38  ;;  %v22853_v35 = vpop.eup %18851 }
0x18bf   : > { %v14480_v24 = vsel %vm1685_vm2, %v22853_v35, 0.0 }
0x18c1   : > { %v22857_v23 = vpop.eup %18853 }
0x18c2   : > { %v22847_v41 = vpop.f32.mrf.mxu0  ;;  %v14477_v9 = vsel %vm1685_vm2, %v22857_v23, 0.0 }
0x18c4   : > { %v22849_v37 = vpop.f32.mrf.mxu0 }
0x18cf   : > { %14517 = vrot.lane.b32.xlu1 %v19650_v31, %s19135_s18  ;;  %v14378_v31 = vsel %vm1685_vm2, %v22847_v41, -inf }
0x18d2   : > { %14515 = vrot.lane.b32.xlu0 %v19652_v16, %s19135_s18  ;;  %v14375_v16 = vsel %vm1685_vm2, %v22849_v37, -inf }
0x18f1   : > { %14379 = vmax.xlane.f32.xlu0 %v14378_v31 }
0x18f3   : > { %14376 = vmax.xlane.f32.xlu1 %v14375_v16 }
0x18f5   : > { %14481 = vadd.xlane.f32.xlu0 %v14480_v24 }
0x18f7   : > { %14478 = vadd.xlane.f32.xlu1 %v14477_v9 }
0x1908   : > { %14604 = vrot.lane.b32.xlu1 %v19663_v40, %s19135_s18 }
0x190b   : > { %14602 = vrot.lane.b32.xlu0 %v19667_v45, %s19135_s18 }
0x190c   : > { %14691 = vrot.lane.b32.xlu1 %v19671_v42, %s19135_s18 }
0x190f   : > { %14778 = vrot.lane.b32.xlu0 %v19679_v53, %s19135_s18 }
0x1910   : > { %14689 = vrot.lane.b32.xlu1 %v19673_v50, %s19135_s18 }
0x1913   : > { %14865 = vrot.lane.b32.xlu0 %v23443_v0, %s19135_s18  ;;  %v14440_v53 = vpop.xlane.xlu0 %14439 }
0x1914   : > { %14776 = vrot.lane.b32.xlu1 %v19681_v13, %s19135_s18 }
0x1915   : > { %v14437_v36 = vpop.xlane.xlu1 %14436 }
0x1916   : > { %18855 = vrcp.f32 %v14437_v36 }
0x1917   : > { %14952 = vrot.lane.b32.xlu0 %v19700_v18, %s19135_s18 }
0x1918   : > { %14863 = vrot.lane.b32.xlu1 %v19689_v60, %s19135_s18 }
0x191c   : > { %14950 = vrot.lane.b32.xlu1 %v19702_v52, %s19135_s18 }
0x191d   : > { %v14443_v40 = vpop.xlane.xlu1 %14442 }
0x1920   : > { %15037 = vrot.lane.b32.xlu1 %v19710_v6, %s19135_s18 }
0x1921   : > { %v14446_v13 = vpop.xlane.xlu0 %14445 }
0x1923   : > { %v18856_v45 = vpop.eup %18855 }
0x1924   : > { %v14484_v42 = vmul.f32 %v18856_v45, %v22780_v3 }
0x1925   : > { %v14452_v60 = vpop.xlane.xlu0 %14451 }
0x1926   : > { %v14449_v50 = vpop.xlane.xlu1 %14448  ;;  %18166 = vmatprep.mubr.msk.f32.mxu0 %vm1685_vm2, %v14484_v42 }
0x1927   : > { %18857 = vrcp.f32 %v14449_v50 }
0x1928   : > { %18859 = vrcp.f32 %v14440_v53 }
0x1929   : > { %18861 = vrcp.f32 %v14443_v40 }
0x192b   : > { %v14458_v52 = vpop.xlane.xlu0 %14457 }
0x192d   : > { %v14455_v6 = vpop.xlane.xlu1 %14454 }
0x1934   : > { %v18858_v18 = vpop.eup %18857 }
0x1935   : > { %v14492_v0 = vmul.f32 %v18858_v18, %v22797_v17  ;;  %v18860_v56 = vpop.eup %18859 }
0x1936   : > { %v18862_v1 = vpop.eup %18861  ;;  %v14486_v46 = vmul.f32 %v18860_v56, %v22775_v62 }
0x1937   : > { %18180 = vmatprep.mubr.msk.f32.mxu1 %vm1685_vm2, %v14492_v0  ;;  %v14488_v21 = vmul.f32 %v18862_v1, %v22787_v58 }
0x193b   : > { %v14470_v30 = vpop.xlane.xlu0 %14469 }
0x193d   : > { %v14467_v47 = vpop.xlane.xlu1 %14466 }
0x1945   : > { %v14368_v28 = vpop.xlane.xlu0 %14367 }
0x1946   : > { %v14396_v3 = vsub.f32 %v22833_v63, %v14368_v28 }
0x1947   : > { %v14365_v57 = vpop.xlane.xlu1 %14364 }
0x1948   : > { %v14421_v27 = vmul.f32 1.442695, %v14396_v3  ;;  %v14395_v38 = vsub.f32 %v22837_v59, %v14365_v57 }
0x1949   : > { %v14516_v48 = vpop.permute.xlu0 %14515 }
0x194a   : > { %18863 = vpow2.f32 %v14421_v27  ;;  %v14419_v51 = vmul.f32 1.442695, %v14395_v38 }
0x194b   : > { %v14518_v17 = vpop.permute.xlu1 %14517 }
0x194c   : > { %18865 = vpow2.f32 %v14419_v51  ;;  %18162 = vmatprep.subr.mxu0 %v14518_v17 }
0x194d   : > { %18163 = vmatpush3.msra.mxu0 %v14518_v17  ;;  %18867 = vrcp.f32 %v14446_v13 }
0x194e   : > { %18164 = vmatprep.subr.mxu0 %v14516_v48  ;;  %18869 = vrcp.f32 %v14455_v6 }
0x194f   : > { %18165 = vmatpush3.msra.mxu0 %v14516_v48  ;;  %18871 = vrcp.f32 %v14452_v60 }
0x1950   : > { %18167 = vmatmul.mubr.msk.f32.vlgmr.msra.gmra.mxu0 %vm1685_vm2, %v14486_v46 }
0x1951   : > { %18173 = vmatprep.mubr.msk.f32.mxu0 %vm1685_vm2, %v14488_v21 }
0x1957   : > { %v22895_v63 = vpop.eup %18863 }
0x1958   : > { %v14462_v59 = vsel %vm1685_vm2, %v22895_v63, 0.0 }
0x1959   : > { %v22899_v31 = vpop.eup %18865  ;;  %14463 = vadd.xlane.f32.xlu0 %v14462_v59 }
0x195a   : > { %v14459_v16 = vsel %vm1685_vm2, %v22899_v31, 0.0 }
0x195b   : > { %14460 = vadd.xlane.f32.xlu1 %v14459_v16 }
0x196f   : > { %15039 = vrot.lane.b32.xlu0 %v19708_v4, %s19135_s18  ;;  %v18868_v4 = vpop.eup %18867 }
0x1970   : > { %v18870_v13 = vpop.eup %18869  ;;  %v14490_v18 = vmul.f32 %v18868_v4, %v22791_v15 }
0x1971   : > { %v18872_v60 = vpop.eup %18871 }
0x1972   : > { %v14494_v28 = vmul.f32 %v18872_v60, %v22795_v43 }
0x197a   : > { %v14380_v62 = vpop.xlane.xlu0 %14379 }
0x197b   : > { %v14400_v58 = vsub.f32 %v22847_v41, %v14380_v62 }
0x197c   : > { %v14377_v24 = vpop.xlane.xlu1 %14376 }
0x197d   : > { %v14429_v9 = vmul.f32 1.442695, %v14400_v58  ;;  %v14399_v36 = vsub.f32 %v22849_v37, %v14377_v24  ;;  %v14496_v37 = vmul.f32 %v18870_v13, %v22809_v44 }
0x197e   : > { %v22907_v40 = vpop.xlane.xlu0 %14481 }
0x197f   : > { %18873 = vpow2.f32 %v14429_v9  ;;  %v14427_v45 = vmul.f32 1.442695, %v14399_v36 }
0x1980   : > { %18875 = vrcp.f32 %v14458_v52  ;;  %v14479_v42 = vpop.xlane.xlu1 %14478 }
0x1981   : > { %18877 = vpow2.f32 %v14427_v45 }
0x1982   : > { %18879 = vrcp.f32 %v14467_v47  ;;  %v14603_v50 = vpop.permute.xlu0 %14602 }
0x1983   : > { %18881 = vrcp.f32 %v14470_v30 }
0x1984   : > { %v14605_v53 = vpop.permute.xlu1 %14604  ;;  %18883 = vrcp.f32 %v14479_v42 }
0x1985   : > { %18169 = vmatprep.subr.mxu0 %v14605_v53 }
0x1986   : > { %18170 = vmatpush3.msra.mxu0 %v14605_v53  ;;  %v14779_v41 = vpop.permute.xlu0 %14778 }
0x1987   : > { %18171 = vmatprep.subr.mxu0 %v14603_v50 }
0x1988   : > { %v14692_v0 = vpop.permute.xlu1 %14691  ;;  %18172 = vmatpush3.msra.mxu0 %v14603_v50 }
0x1989   : > { %18174 = vmatmul.mubr.msk.f32.vlgmr.msra.gmra.mxu0 %vm1685_vm2, %v14490_v18  ;;  %18176 = vmatprep.subr.mxu1 %v14692_v0 }
0x198a   : > { %18183 = vmatprep.subr.mxu0 %v14779_v41  ;;  %18177 = vmatpush3.msra.mxu1 %v14692_v0  ;;  %v14866_v6 = vpop.permute.xlu0 %14865 }
0x198b   : > { %18184 = vmatpush3.msra.mxu0 %v14779_v41  ;;  %18187 = vmatprep.mubr.msk.f32.mxu0 %vm1685_vm2, %v14496_v37 }
0x198c   : > { %v22913_v52 = vpop.eup %18873  ;;  %v14690_v15 = vpop.permute.xlu1 %14689 }
0x198d   : > { %v18876_v47 = vpop.eup %18875  ;;  %18178 = vmatprep.subr.mxu1 %v14690_v15  ;;  %v14474_v30 = vsel %vm1685_vm2, %v22913_v52, 0.0 }
0x198e   : > { %v22918_v3 = vpop.eup %18877  ;;  %18179 = vmatpush3.msra.mxu1 %v14690_v15  ;;  %14475 = vadd.xlane.f32.xlu0 %v14474_v30  ;;  %v14498_v43 = vmul.f32 %v18876_v47, %v22804_v14  ;;  %v14953_v38 = vpop.permute.xlu0 %14952 }
0x198f   : > { %v18880_v44 = vpop.eup %18879  ;;  %18181 = vmatmul.mubr.msk.f32.vlgmr.msra.gmra.mxu1 %vm1685_vm2, %v14494_v28  ;;  %18190 = vmatprep.subr.mxu1 %v14866_v6  ;;  %v14471_v57 = vsel %vm1685_vm2, %v22918_v3, 0.0 }
0x1990   : > { %14472 = vadd.xlane.f32.xlu1 %v14471_v57  ;;  %v14777_v27 = vpop.permute.xlu1 %14776  ;;  %18191 = vmatpush3.msra.mxu1 %v14866_v6  ;;  %v14504_v51 = vmul.f32 %v18880_v44, %v22817_v19  ;;  %v18882_v17 = vpop.eup %18881  ;;  %v22965_v44 = vld [vmem:[%s23304_s7] ss:$0 sm:$0xff] }
0x1991   : > { %18185 = vmatprep.subr.mxu0 %v14777_v27  ;;  %v18884_v1 = vpop.eup %18883  ;;  %v14506_v46 = vmul.f32 %v18882_v17, %v22813_v61 }
0x1992   : > { %18186 = vmatpush3.msra.mxu0 %v14777_v27  ;;  %v14512_v14 = vmul.f32 %v18884_v1, %v22857_v23 }
0x1993   : > { %18188 = vmatmul.mubr.msk.f32.vlgmr.msra.gmra.mxu0 %vm1685_vm2, %v14498_v43  ;;  %18197 = vmatprep.subr.mxu0 %v14953_v38 }
0x1994   : > { %v14864_v56 = vpop.permute.xlu1 %14863  ;;  %18198 = vmatpush3.msra.mxu0 %v14953_v38  ;;  %18201 = vmatprep.mubr.msk.f32.mxu0 %vm1685_vm2, %v14504_v51 }
0x1995   : > { %18192 = vmatprep.subr.mxu1 %v14864_v56 }
0x1996   : > { %18193 = vmatpush3.msra.mxu1 %v14864_v56  ;;  %v23664_v56 = vld [vmem:[#allocation17_spill] sm:$0xff] }
0x1998   : > { %v14951_v48 = vpop.permute.xlu1 %14950 }
0x1999   : > { %18199 = vmatprep.subr.mxu0 %v14951_v48 }
0x199a   : > { %18200 = vmatpush3.msra.mxu0 %v14951_v48  ;;  %v23665_v48 = vld [vmem:[#allocation16_spill] sm:$0xff] }
0x199b   : > { %18202 = vmatmul.mubr.msk.f32.vlgmr.msra.gmra.mxu0 %vm1685_vm2, %v14506_v46 }
0x199c   : > { %18215 = vmatprep.mubr.msk.f32.mxu0 %vm1685_vm2, %v14512_v14  ;;  %v15038_v19 = vpop.permute.xlu1 %15037 }
0x19a1   : > { %15124 = vrot.lane.b32.xlu1 %v19718_v11, %s19135_s18  ;;  %v15211_v11 = vrot.slane %v22605_v2, 4 }
0x19a4   : > { %15126 = vrot.lane.b32.xlu0 %v19716_v7, %s19135_s18  ;;  %s15761_s18 = scalar_lea.sflag [#allocation4], %s19341_s6 }
0x19e2   : > { %v14464_v21 = vpop.xlane.xlu0 %14463 }
0x19e3   : > { %18885 = vrcp.f32 %v14464_v21 }
0x19e4   : > { %v14461_v59 = vpop.xlane.xlu1 %14460 }
0x19e5   : > { %18887 = vrcp.f32 %v14461_v59 }
0x19e6   : > { %v15040_v61 = vpop.permute.xlu0 %15039  ;;  %18889 = vrcp.f32 %v22907_v40 }
0x19e7   : > { %18204 = vmatprep.subr.mxu1 %v15040_v61 }
0x19f0   : > { %v18886_v16 = vpop.eup %18885 }
0x19f1   : > { %v14502_v58 = vmul.f32 %v18886_v16, %v22895_v63  ;;  %v23668_v16 = vld [vmem:[#allocation70_spill] sm:$0xff] }
0x19f2   : > { %v18888_v62 = vpop.eup %18887 }
0x19f3   : > { %v14500_v23 = vmul.f32 %v18888_v62, %v22899_v31  ;;  %v18890_v31 = vpop.eup %18889 }
0x19f4   : > { %v14514_v2 = vmul.f32 %v18890_v31, %v22853_v35 }
0x19f5   : > { %18194 = vmatprep.mubr.msk.f32.mxu1 %vm1685_vm2, %v14500_v23 }
0x19f6   : > { %18195 = vmatmul.mubr.msk.f32.vlgmr.msra.gmra.mxu1 %vm1685_vm2, %v14502_v58 }
0x19f7   : > { %18205 = vmatpush3.msra.mxu1 %v15040_v61 }
0x19f8   : > { %18206 = vmatprep.subr.mxu1 %v15038_v19 }
0x19f9   : > { %18207 = vmatpush3.msra.mxu1 %v15038_v19  ;;  %v23667_v19 = vld [vmem:[#allocation45_spill] sm:$0xff] }
0x19fa   : > { %18218 = vmatprep.subr.msk.mxu1 %vm4208_vm3, %v15211_v11 }
0x1a10   : > { %v18168_v42 = vpop.f32.mrf.mxu0 }
0x1a12   : > { %v14593_v4 = vpop.f32.mrf.mxu0 }
0x1a17   : > { %v14476_v7 = vpop.xlane.xlu0 %14475 }
0x1a18   : > { %18891 = vrcp.f32 %v14476_v7 }
0x1a19   : > { %v14473_v24 = vpop.xlane.xlu1 %14472 }
0x1a1a   : > { %18893 = vrcp.f32 %v14473_v24 }
0x1a1b   : > { %v15127_v9 = vpop.permute.xlu0 %15126 }
0x1a1c   : > { %18211 = vmatprep.subr.mxu0 %v15127_v9 }
0x1a1d   : > { %v15125_v63 = vpop.permute.xlu1 %15124  ;;  %18212 = vmatpush3.msra.mxu0 %v15127_v9  ;;  %v23670_v9 = vld [vmem:[#allocation34_spill] sm:$0xff] }
0x1a1e   : > { %18213 = vmatprep.subr.mxu0 %v15125_v63 }
0x1a1f   : > { %18214 = vmatpush3.msra.mxu0 %v15125_v63 }
0x1a20   : > { %18216 = vmatmul.mubr.msk.f32.vlgmr.msra.gmra.mxu0 %vm1685_vm2, %v14514_v2 }
0x1a25   : > { %v18892_v36 = vpop.eup %18891 }
0x1a26   : > { %v14510_v50 = vmul.f32 %v18892_v36, %v22913_v52  ;;  %v23671_v36 = vld [vmem:[#allocation18_spill] sm:$0xff] }
0x1a27   : > { %v18894_v45 = vpop.eup %18893 }
0x1a28   : > { %v14508_v40 = vmul.f32 %v18894_v45, %v22918_v3 }
0x1a2a   : > { %18208 = vmatprep.mubr.msk.f32.mxu1 %vm1685_vm2, %v14508_v40 }
0x1a2b   : > { %18209 = vmatmul.mubr.msk.f32.vlgmr.msra.gmra.mxu1 %vm1685_vm2, %v14510_v50  ;;  %v23673_v50 = vld [vmem:[#allocation36_spill] sm:$0xff] }
0x1a2c   : > { %18220 = vmatprep.mubr.msk.f32.mxu1 %vm962_vm1, %v14593_v4  ;;  %18219 = vmatpush3.msk.msra.mxu1 %vm4208_vm3, %v15211_v11  ;;  %v23669_v11 = vld [vmem:[#allocation49_spill] sm:$0xff] }
0x1a2f   : > { %18221 = vmatmul.mubr.msk.f32.vlgmr.msra.gmra.mxu1 %vm962_vm1, %v18168_v42  ;;  %v23672_v42 = vld [vmem:[#allocation19_spill] sm:$0xff] }
0x1a49   : > { %v18175_v35 = vpop.f32.mrf.mxu0 }
0x1a4b   : > { %v14680_v53 = vpop.f32.mrf.mxu0 }
0x1a4c   : > { %18223 = vmatprep.mubr.msk.f32.mxu1 %vm962_vm1, %v14680_v53 }
0x1a4d   : > { %18224 = vmatmul.mubr.msk.f32.gmra.mxu1 %vm962_vm1, %v18175_v35 }
0x1a4f   : > { %v18182_v13 = vpop.f32.mrf.mxu1 }
0x1a51   : > { %v14767_v41 = vpop.f32.mrf.mxu1 }
0x1a52   : > { %18226 = vmatprep.mubr.msk.f32.mxu1 %vm962_vm1, %v14767_v41 }
0x1a53   : > { %v18189_v18 = vpop.f32.mrf.mxu0  ;;  %18227 = vmatmul.mubr.msk.f32.gmra.mxu1 %vm962_vm1, %v18182_v13 }
0x1a55   : > { %v14854_v0 = vpop.f32.mrf.mxu0 }
0x1a56   : > { %18229 = vmatprep.mubr.msk.f32.mxu1 %vm962_vm1, %v14854_v0 }
0x1a57   : > { %18230 = vmatmul.mubr.msk.f32.gmra.mxu1 %vm962_vm1, %v18189_v18 }
0x1a5b   : > { %v18203_v37 = vpop.f32.mrf.mxu0 }
0x1a5d   : > { %v15028_v6 = vpop.f32.mrf.mxu0 }
0x1ab6   : > { %v18196_v60 = vpop.f32.mrf.mxu1 }
0x1ab8   : > { %v14941_v52 = vpop.f32.mrf.mxu1 }
0x1ab9   : > { %18232 = vmatprep.mubr.msk.f32.mxu1 %vm962_vm1, %v14941_v52 }
0x1aba   : > { %18233 = vmatmul.mubr.msk.f32.gmra.mxu1 %vm962_vm1, %v18196_v60 }
0x1abb   : > { %18235 = vmatprep.mubr.msk.f32.mxu1 %vm962_vm1, %v15028_v6  ;;  %v23674_v6 = vld [vmem:[#allocation20_spill] sm:$0xff] }
0x1abe   : > { %18236 = vmatmul.mubr.msk.f32.gmra.mxu1 %vm962_vm1, %v18203_v37 }
0x1ae0   : > { %v18217_v15 = vpop.f32.mrf.mxu0 }
0x1ae2   : > { %v15202_v30 = vpop.f32.mrf.mxu0 }
0x1aeb   : > { %v18210_v47 = vpop.f32.mrf.mxu1 }
0x1aed   : > { %v15115_v28 = vpop.f32.mrf.mxu1 }
0x1aee   : > { %18238 = vmatprep.mubr.msk.f32.mxu1 %vm962_vm1, %v15115_v28 }
0x1aef   : > { %v18222_v3 = vpop.f32.mrf.mxu1  ;;  %18239 = vmatmul.mubr.msk.f32.gmra.mxu1 %vm962_vm1, %v18210_v47 }
0x1af0   : > { %v15408_v57 = vadd.f32 %v18222_v3, %v22686_v55  ;;  %18241 = vmatprep.mubr.msk.f32.mxu1 %vm962_vm1, %v15202_v30  ;;  %v23676_v30 = vld [vmem:[#allocation22_spill] sm:$0xff] }
0x1af1   : > { %v15328_v27 = vpop.f32.mrf.mxu1 }
0x1af2   : > { %v15431_v43 = vadd.f32 %v22965_v44, %v15408_v57  ;;  %v15407_v38 = vadd.f32 %v15328_v27, %v22692_v54  ;;  %v23666_v54 = vld [vmem:[#allocation61_spill] sm:$0xff]  ;;  %v23677_v57 = vld [vmem:[#allocation23_spill] sm:$0xff] }
0x1af3   : > { %18242 = vmatmul.mubr.msk.f32.gmra.mxu1 %vm962_vm1, %v18217_v15  ;;  %v4503_v21 = vadd.f32 %v23667_v19, %v23666_v54  ;;  %v23675_v15 = vld [vmem:[#allocation21_spill] sm:$0xff] }
0x1af4   : > { %v15430_v51 = vadd.f32 %v22965_v44, %v15407_v38  ;;  %v22975_v17 = vadd.f32 %v15431_v43, %v23664_v56 }
0x1af5   : > { %v6353_v62 = vadd.f32 %v23668_v16, %v4503_v21  ;;  %v23678_v21 = vld [vmem:[#allocation25_spill] sm:$0xff] }
0x1af6   : > { %v15467_v1 = vsel %vm460_vm0, %v22975_v17, 0.0  ;;  %v22980_v46 = vadd.f32 %v15430_v51, %v23665_v48 }
0x1af7   : > { %15468 = vadd.xlane.f32.xlu1 %v15467_v1  ;;  %v8165_v7 = vadd.f32 %v23669_v11, %v6353_v62  ;;  %v23680_v11 = vld [vmem:[#allocation27_spill] sm:$0xff] }
0x1af8   : > { %v15464_v55 = vsel %vm460_vm0, %v22980_v46, 0.0 }
0x1af9   : > { %15465 = vadd.xlane.f32.xlu0 %v15464_v55  ;;  %v9977_v63 = vadd.f32 %v23670_v9, %v8165_v7 }
0x1b0d   : > { %v18225_v14 = vpop.f32.mrf.mxu1 }
0x1b0e   : > { %v15410_v59 = vadd.f32 %v18225_v14, %v22727_v25 }
0x1b0f   : > { %v15338_v61 = vpop.f32.mrf.mxu1 }
0x1b10   : > { %v15409_v23 = vadd.f32 %v15338_v61, %v22730_v12  ;;  %v15433_v58 = vadd.f32 %v22965_v44, %v15410_v59  ;;  %v11789_v12 = vadd.f32 %v23673_v50, %v9977_v63 }
0x1b12   : > { %v15432_v24 = vadd.f32 %v22965_v44, %v15409_v23  ;;  %v22998_v40 = vadd.f32 %v15433_v58, %v23672_v42  ;;  %v23679_v23 = vld [vmem:[#allocation24_spill] sm:$0xff] }
0x1b13   : > { %v18228_v31 = vpop.f32.mrf.mxu1 }
0x1b14   : > { %v15412_v2 = vadd.f32 %v18228_v31, %v22741_v34  ;;  %v22995_v45 = vadd.f32 %v15432_v24, %v23671_v36  ;;  %v13601_v34 = vadd.f32 %v22759_v20, %v11789_v12  ;;  %v15473_v37 = vsel %vm460_vm0, %v22998_v40, 0.0 }
0x1b15   : > { %v15348_v25 = vpop.f32.mrf.mxu1 }
0x1b16   : > { %v15435_v4 = vadd.f32 %v22965_v44, %v15412_v2  ;;  %v15411_v35 = vadd.f32 %v15348_v25, %v22744_v10  ;;  %v15470_v53 = vsel %vm460_vm0, %v22995_v45, 0.0 }
0x1b17   : > { %15471 = vadd.xlane.f32.xlu0 %v15470_v53  ;;  %v18231_v13 = vpop.f32.mrf.mxu1 }
0x1b18   : > { %v15434_v41 = vadd.f32 %v22965_v44, %v15411_v35  ;;  %v15414_v18 = vadd.f32 %v18231_v13, %v22747_v22  ;;  %v23015_v47 = vadd.f32 %v15435_v4, %v23675_v15 }
0x1b19   : > { %v15358_v0 = vpop.f32.mrf.mxu1 }
0x1b1a   : > { %v15437_v60 = vadd.f32 %v22965_v44, %v15414_v18  ;;  %v15413_v52 = vadd.f32 %v15358_v0, %v13601_v34  ;;  %v23012_v10 = vadd.f32 %v15434_v41, %v23674_v6  ;;  %v15479_v22 = vsel %vm460_vm0, %v23015_v47, 0.0  ;;  %v23682_v0 = vld [vmem:[#allocation29_spill] sm:$0xff] }
0x1b1b   : > { %15474 = vadd.xlane.f32.xlu0 %v15473_v37 }
0x1b1c   : > { %v15436_v20 = vadd.f32 %v22965_v44, %v15413_v52  ;;  %v15476_v28 = vsel %vm460_vm0, %v23012_v10, 0.0  ;;  %v23026_v27 = vadd.f32 %v15437_v60, %v23677_v57 }
0x1b1d   : > { %15477 = vadd.xlane.f32.xlu1 %v15476_v28  ;;  %v23683_v28 = vld [vmem:[#allocation28_spill] sm:$0xff] }
0x1b1e   : > { %v23023_v3 = vadd.f32 %v15436_v20, %v23676_v30  ;;  %v15485_v38 = vsel %vm460_vm0, %v23026_v27, 0.0 }
0x1b1f   : > { %15480 = vadd.xlane.f32.xlu0 %v15479_v22 }
0x1b20   : > { %v15482_v43 = vsel %vm460_vm0, %v23023_v3, 0.0 }
0x1b21   : > { %15483 = vadd.xlane.f32.xlu1 %v15482_v43 }
0x1b23   : > { %15486 = vadd.xlane.f32.xlu0 %v15485_v38  ;;  %v23684_v38 = vld [vmem:[#allocation31_spill] sm:$0xff] }
0x1b7a   : > { %v18234_v51 = vpop.f32.mrf.mxu1 }
0x1b7b   : > { %v15416_v56 = vadd.f32 %v18234_v51, %v22762_v29 }
0x1b7c   : > { %v15368_v1 = vpop.f32.mrf.mxu1 }
0x1b7d   : > { %v15439_v48 = vadd.f32 %v22965_v44, %v15416_v56  ;;  %v15415_v55 = vadd.f32 %v15368_v1, %v22765_v49 }
0x1b7e   : > { %v18237_v14 = vpop.f32.mrf.mxu1 }
0x1b7f   : > { %v15438_v54 = vadd.f32 %v22965_v44, %v15415_v55  ;;  %v15418_v19 = vadd.f32 %v18237_v14, %v22769_v33  ;;  %v23038_v59 = vadd.f32 %v15439_v48, %v23678_v21  ;;  %v23685_v48 = vld [vmem:[#allocation30_spill] sm:$0xff] }
0x1b80   : > { %v15378_v61 = vpop.f32.mrf.mxu1  ;;  %v15469_v36 = vpop.xlane.xlu1 %15468 }
0x1b81   : > { %v15441_v16 = vadd.f32 %v22965_v44, %v15418_v19  ;;  %v15417_v62 = vadd.f32 %v15378_v61, %v22772_v8  ;;  %v15491_v29 = vsel %vm460_vm0, %v23038_v59, 0.0  ;;  %v23045_v58 = vadd.f32 %v15438_v54, %v23679_v23  ;;  %v23681_v8 = vld [vmem:[#allocation26_spill] sm:$0xff] }
0x1b82   : > { %15492 = vadd.xlane.f32.xlu0 %v15491_v29  ;;  %v15466_v63 = vpop.xlane.xlu0 %15465  ;;  %v15513_v12 = vmul.f32 0.03125, %v15469_v36 }
0x1b83   : > { %v15440_v49 = vadd.f32 %v22965_v44, %v15417_v62  ;;  %v23049_v7 = vadd.f32 %v15441_v16, %v23680_v11  ;;  %v15488_v33 = vsel %vm460_vm0, %v23045_v58, 0.0  ;;  %v15512_v13 = vmul.f32 0.03125, %v15466_v63 }
0x1b84   : > { %15489 = vadd.xlane.f32.xlu1 %v15488_v33  ;;  %v23069_v60 = vsub.f32 %v22975_v17, %v15513_v12 }
0x1b85   : > { %v15497_v24 = vsel %vm460_vm0, %v23049_v7, 0.0  ;;  %v23056_v31 = vadd.f32 %v15440_v49, %v23681_v8 }
0x1b86   : > { %15498 = vadd.xlane.f32.xlu0 %v15497_v24 }
0x1b87   : > { %v15494_v9 = vsel %vm460_vm0, %v23056_v31, 0.0 }
0x1b88   : > { %15495 = vadd.xlane.f32.xlu1 %v15494_v9 }
0x1ba0   : > { %v15472_v2 = vpop.xlane.xlu0 %15471 }
0x1ba1   : > { %v15514_v17 = vmul.f32 0.03125, %v15472_v2 }
0x1ba3   : > { %v23098_v14 = vsub.f32 %v22995_v45, %v15514_v17 }
0x1ba4   : > { %v15475_v25 = vpop.xlane.xlu0 %15474 }
0x1ba5   : > { %v15515_v52 = vmul.f32 0.03125, %v15475_v25  ;;  %v15546_v11 = vmul.f32 %v23098_v14, %v23098_v14 }
0x1ba6   : > { %v15478_v30 = vpop.xlane.xlu1 %15477 }
0x1ba7   : > { %v23090_v56 = vsub.f32 %v22998_v40, %v15515_v52  ;;  %v15516_v54 = vmul.f32 0.03125, %v15478_v30 }
0x1ba9   : > { %v15547_v29 = vmul.f32 %v23090_v56, %v23090_v56  ;;  %v23111_v45 = vsub.f32 %v23012_v10, %v15516_v54  ;;  %v15566_v10 = vsel %vm460_vm0, %v15546_v11, 0.0 }
0x1baa   : > { %v15484_v21 = vpop.xlane.xlu1 %15483 }
0x1bab   : > { %v15518_v23 = vmul.f32 0.03125, %v15484_v21  ;;  %v15569_v33 = vsel %vm460_vm0, %v15547_v29, 0.0  ;;  %v15548_v9 = vmul.f32 %v23111_v45, %v23111_v45 }
0x1bad   : > { %v23123_v8 = vsub.f32 %v23023_v3, %v15518_v23  ;;  %v15572_v2 = vsel %vm460_vm0, %v15548_v9, 0.0 }
0x1baf   : > { %v18240_v42 = vpop.f32.mrf.mxu1  ;;  %v15550_v36 = vmul.f32 %v23123_v8, %v23123_v8 }
0x1bb0   : > { %v15420_v50 = vadd.f32 %v18240_v42, %v22820_v32  ;;  %v15481_v32 = vpop.xlane.xlu0 %15480 }
0x1bb1   : > { %v15388_v4 = vpop.f32.mrf.mxu1  ;;  %v15578_v25 = vsel %vm460_vm0, %v15550_v36, 0.0 }
0x1bb2   : > { %v15443_v35 = vadd.f32 %v22965_v44, %v15420_v50  ;;  %v15419_v53 = vadd.f32 %v15388_v4, %v22825_v39 }
0x1bb3   : > { %v18243_v34 = vpop.f32.mrf.mxu1 }
0x1bb4   : > { %v15442_v41 = vadd.f32 %v22965_v44, %v15419_v53  ;;  %v15422_v18 = vadd.f32 %v18243_v34, %v22828_v26  ;;  %v23066_v37 = vadd.f32 %v15443_v35, %v23682_v0  ;;  %v23079_v26 = vsub.f32 %v22980_v46, %v15512_v13 }
0x1bb5   : > { %v15398_v6 = vpop.f32.mrf.mxu1  ;;  %v15517_v46 = vmul.f32 0.03125, %v15481_v32 }
0x1bb6   : > { %v15445_v15 = vadd.f32 %v22965_v44, %v15422_v18  ;;  %v15421_v20 = vadd.f32 %v15398_v6, %v22831_v5  ;;  %v15503_v39 = vsel %vm460_vm0, %v23066_v37, 0.0  ;;  %v23076_v22 = vadd.f32 %v15442_v41, %v23683_v28 }
0x1bb7   : > { %15504 = vadd.xlane.f32.xlu0 %v15503_v39  ;;  %v15545_v5 = vmul.f32 %v23069_v60, %v23069_v60  ;;  %v15544_v40 = vmul.f32 %v23079_v26, %v23079_v26  ;;  %v23105_v61 = vsub.f32 %v23015_v47, %v15517_v46 }
0x1bb8   : > { %v15444_v57 = vadd.f32 %v22965_v44, %v15421_v20  ;;  %v15500_v43 = vsel %vm460_vm0, %v23076_v22, 0.0  ;;  %v23085_v51 = vadd.f32 %v15445_v15, %v23684_v38  ;;  %v15487_v44 = vpop.xlane.xlu0 %15486 }
0x1bb9   : > { %15501 = vadd.xlane.f32.xlu1 %v15500_v43  ;;  %v15519_v16 = vmul.f32 0.03125, %v15487_v44  ;;  %v15563_v62 = vsel %vm460_vm0, %v15545_v5, 0.0  ;;  %v15560_v49 = vsel %vm460_vm0, %v15544_v40, 0.0  ;;  %v15549_v24 = vmul.f32 %v23105_v61, %v23105_v61 }
0x1bba   : > { %v15509_v1 = vsel %vm460_vm0, %v23085_v51, 0.0  ;;  %v23095_v55 = vadd.f32 %v15444_v57, %v23685_v48 }
0x1bbb   : > { %15510 = vadd.xlane.f32.xlu0 %v15509_v1  ;;  %v23117_v47 = vsub.f32 %v23026_v27, %v15519_v16  ;;  %v15575_v63 = vsel %vm460_vm0, %v15549_v24, 0.0 }
0x1bbc   : > { %v15506_v19 = vsel %vm460_vm0, %v23095_v55, 0.0 }
0x1bbd   : > { %15507 = vadd.xlane.f32.xlu1 %v15506_v19  ;;  %v15551_v27 = vmul.f32 %v23117_v47, %v23117_v47 }
0x1bbf   : > { %15564 = vadd.xlane.f32.xlu0 %v15563_v62  ;;  %v15581_v3 = vsel %vm460_vm0, %v15551_v27, 0.0 }
0x1bc1   : > { %15561 = vadd.xlane.f32.xlu1 %v15560_v49 }
0x1bc3   : > { %15570 = vadd.xlane.f32.xlu0 %v15569_v33 }
0x1bc5   : > { %15567 = vadd.xlane.f32.xlu1 %v15566_v10 }
0x1bc7   : > { %15576 = vadd.xlane.f32.xlu0 %v15575_v63 }
0x1bc9   : > { %15573 = vadd.xlane.f32.xlu1 %v15572_v2 }
0x1bcb   : > { %15582 = vadd.xlane.f32.xlu0 %v15581_v3 }
0x1bcd   : > { %15579 = vadd.xlane.f32.xlu1 %v15578_v25 }
0x1c0b   : > { %v15493_v42 = vpop.xlane.xlu0 %15492 }
0x1c0c   : > { %v15521_v50 = vmul.f32 0.03125, %v15493_v42 }
0x1c0d   : > { %v15490_v4 = vpop.xlane.xlu1 %15489 }
0x1c0e   : > { %v23137_v12 = vsub.f32 %v23038_v59, %v15521_v50  ;;  %v15520_v35 = vmul.f32 0.03125, %v15490_v4 }
0x1c0f   : > { %v15499_v53 = vpop.xlane.xlu0 %15498 }
0x1c10   : > { %v15523_v13 = vmul.f32 0.03125, %v15499_v53  ;;  %v15553_v34 = vmul.f32 %v23137_v12, %v23137_v12  ;;  %v23142_v41 = vsub.f32 %v23045_v58, %v15520_v35 }
0x1c11   : > { %v15496_v0 = vpop.xlane.xlu1 %15495 }
0x1c12   : > { %v23145_v18 = vsub.f32 %v23049_v7, %v15523_v13  ;;  %v15587_v52 = vsel %vm460_vm0, %v15553_v34, 0.0  ;;  %v15522_v32 = vmul.f32 0.03125, %v15496_v0  ;;  %v15552_v59 = vmul.f32 %v23142_v41, %v23142_v41 }
0x1c13   : > { %15588 = vadd.xlane.f32.xlu0 %v15587_v52 }
0x1c14   : > { %v15555_v6 = vmul.f32 %v23145_v18, %v23145_v18  ;;  %v23153_v15 = vsub.f32 %v23056_v31, %v15522_v32  ;;  %v15584_v58 = vsel %vm460_vm0, %v15552_v59, 0.0  ;;  %v23188_v32 = vld [vmem:[%s23305_s8] ss:$0 sm:$0xff] }
0x1c15   : > { %15585 = vadd.xlane.f32.xlu1 %v15584_v58 }
0x1c16   : > { %v15593_v7 = vsel %vm460_vm0, %v15555_v6, 0.0  ;;  %v15554_v20 = vmul.f32 %v23153_v15, %v23153_v15 }
0x1c17   : > { %15594 = vadd.xlane.f32.xlu0 %v15593_v7 }
0x1c18   : > { %v15590_v39 = vsel %vm460_vm0, %v15554_v20, 0.0 }
0x1c19   : > { %15591 = vadd.xlane.f32.xlu1 %v15590_v39  ;;  %v23195_v39 = vld [vmem:[%s23306_s9] ss:$0 sm:$0xff] }
0x1c40   : > { %v15505_v28 = vpop.xlane.xlu0 %15504 }
0x1c41   : > { %v15525_v30 = vmul.f32 0.03125, %v15505_v28 }
0x1c42   : > { %v15502_v17 = vpop.xlane.xlu1 %15501 }
0x1c43   : > { %v23161_v57 = vsub.f32 %v23066_v37, %v15525_v30  ;;  %v15524_v31 = vmul.f32 0.03125, %v15502_v17 }
0x1c44   : > { %v15511_v43 = vpop.xlane.xlu0 %15510 }
0x1c45   : > { %v23164_v38 = vsub.f32 %v23076_v22, %v15524_v31  ;;  %v15527_v5 = vmul.f32 0.03125, %v15511_v43  ;;  %v15557_v46 = vmul.f32 %v23161_v57, %v23161_v57 }
0x1c46   : > { %v15508_v1 = vpop.xlane.xlu1 %15507 }
0x1c47   : > { %v23169_v48 = vsub.f32 %v23085_v51, %v15527_v5  ;;  %v15526_v44 = vmul.f32 0.03125, %v15508_v1  ;;  %v15599_v54 = vsel %vm460_vm0, %v15557_v46, 0.0  ;;  %v15556_v37 = vmul.f32 %v23164_v38, %v23164_v38 }
0x1c48   : > { %15600 = vadd.xlane.f32.xlu0 %v15599_v54  ;;  %v15565_v23 = vpop.xlane.xlu0 %15564 }
0x1c49   : > { %v23175_v19 = vsub.f32 %v23095_v55, %v15526_v44  ;;  %v15596_v22 = vsel %vm460_vm0, %v15556_v37, 0.0  ;;  %v15559_v40 = vmul.f32 %v23169_v48, %v23169_v48  ;;  %v15609_v55 = vmul.f32 0.03125, %v15565_v23 }
0x1c4a   : > { %15597 = vadd.xlane.f32.xlu1 %v15596_v22  ;;  %v15562_v62 = vpop.xlane.xlu1 %15561 }
0x1c4b   : > { %v15605_v21 = vsel %vm460_vm0, %v15559_v40, 0.0  ;;  %v15558_v51 = vmul.f32 %v23175_v19, %v23175_v19  ;;  %v15608_v29 = vmul.f32 0.03125, %v15562_v62  ;;  %v15625_v33 = vadd.f32 1e-05, %v15609_v55 }
0x1c4c   : > { %15606 = vadd.xlane.f32.xlu0 %v15605_v21  ;;  %v15571_v10 = vpop.xlane.xlu0 %15570 }
0x1c4d   : > { %v15602_v16 = vsel %vm460_vm0, %v15558_v51, 0.0  ;;  %v15624_v49 = vadd.f32 1e-05, %v15608_v29  ;;  %v15611_v9 = vmul.f32 0.03125, %v15571_v10 }
0x1c4e   : > { %15603 = vadd.xlane.f32.xlu1 %v15602_v16  ;;  %v15568_v11 = vpop.xlane.xlu1 %15567 }
0x1c4f   : > { %18895 = vrsqrt.f32 %v15624_v49  ;;  %v15610_v24 = vmul.f32 0.03125, %v15568_v11  ;;  %v15627_v2 = vadd.f32 1e-05, %v15611_v9 }
0x1c50   : > { %18897 = vrsqrt.f32 %v15625_v33  ;;  %v15577_v3 = vpop.xlane.xlu0 %15576 }
0x1c51   : > { %v15626_v63 = vadd.f32 1e-05, %v15610_v24  ;;  %v15613_v25 = vmul.f32 0.03125, %v15577_v3 }
0x1c52   : > { %v15574_v27 = vpop.xlane.xlu1 %15573 }
0x1c53   : > { %18899 = vrsqrt.f32 %v15626_v63  ;;  %v15612_v36 = vmul.f32 0.03125, %v15574_v27  ;;  %v15629_v35 = vadd.f32 1e-05, %v15613_v25 }
0x1c54   : > { %18901 = vrsqrt.f32 %v15627_v2  ;;  %v15583_v53 = vpop.xlane.xlu0 %15582 }
0x1c55   : > { %v15628_v42 = vadd.f32 1e-05, %v15612_v36  ;;  %v15615_v52 = vmul.f32 0.03125, %v15583_v53 }
0x1c56   : > { %v15580_v4 = vpop.xlane.xlu1 %15579 }
0x1c57   : > { %18903 = vrsqrt.f32 %v15628_v42  ;;  %v15614_v13 = vmul.f32 0.03125, %v15580_v4  ;;  %v15631_v20 = vadd.f32 1e-05, %v15615_v52 }
0x1c58   : > { %18905 = vrsqrt.f32 %v15629_v35 }
0x1c59   : > { %v15630_v59 = vadd.f32 1e-05, %v15614_v13 }
0x1c5b   : > { %18907 = vrsqrt.f32 %v15630_v59 }
0x1c5c   : > { %v18896_v50 = vpop.eup %18895  ;;  %18909 = vrsqrt.f32 %v15631_v20 }
0x1c5d   : > { %v15656_v34 = vmul.f32 %v18896_v50, %v23079_v26  ;;  %v18898_v0 = vpop.eup %18897 }
0x1c5e   : > { %v15657_v58 = vmul.f32 %v18898_v0, %v23069_v60 }
0x1c5f   : > { %v15678_v6 = vmul.f32 %v23188_v32, %v15656_v34 }
0x1c60   : > { %v18900_v7 = vpop.eup %18899  ;;  %v15679_v28 = vmul.f32 %v23188_v32, %v15657_v58 }
0x1c61   : > { %v15700_v26 = vadd.f32 %v23195_v39, %v15678_v6  ;;  %v15658_v30 = vmul.f32 %v18900_v7, %v23098_v14  ;;  %v18902_v17 = vpop.eup %18901 }
0x1c62   : > { %v15701_v31 = vadd.f32 %v23195_v39, %v15679_v28  ;;  %v15659_v43 = vmul.f32 %v18902_v17, %v23090_v56 }
0x1c63   : > { %v15680_v60 = vmul.f32 %v23188_v32, %v15658_v30 }
0x1c64   : > { %v18904_v5 = vpop.eup %18903  ;;  %v15681_v1 = vmul.f32 %v23188_v32, %v15659_v43 }
0x1c65   : > { %v15702_v46 = vadd.f32 %v23195_v39, %v15680_v60  ;;  %v15660_v44 = vmul.f32 %v18904_v5, %v23111_v45  ;;  %v18906_v54 = vpop.eup %18905 }
0x1c66   : > { %v15703_v14 = vadd.f32 %v23195_v39, %v15681_v1  ;;  %v15661_v22 = vmul.f32 %v18906_v54, %v23105_v61 }
0x1c67   : > { %v15682_v37 = vmul.f32 %v23188_v32, %v15660_v44 }
0x1c68   : > { %v18908_v40 = vpop.eup %18907  ;;  %v15683_v21 = vmul.f32 %v23188_v32, %v15661_v22 }
0x1c69   : > { %v15704_v56 = vadd.f32 %v23195_v39, %v15682_v37  ;;  %v15662_v51 = vmul.f32 %v18908_v40, %v23123_v8  ;;  %v18910_v16 = vpop.eup %18909 }
0x1c6a   : > { %v15705_v45 = vadd.f32 %v23195_v39, %v15683_v21  ;;  %v15663_v29 = vmul.f32 %v18910_v16, %v23117_v47 }
0x1c6b   : > { %v15684_v62 = vmul.f32 %v23188_v32, %v15662_v51 }
0x1c6c   : > { %v15685_v61 = vmul.f32 %v23188_v32, %v15663_v29 }
0x1c6d   : > { %v15706_v23 = vadd.f32 %v23195_v39, %v15684_v62 }
0x1c6e   : > { %v15707_v55 = vadd.f32 %v23195_v39, %v15685_v61  ;;  %v15749_v61 = vld [vmem:[%s19347_s11 + $0x8] sm:$0xff] }
0x1c81   : > { %15716 = vxpose.xlu1.b32.start [1/16] (narrow) %v15700_v26, 32 }
0x1c85   : > { %15717 = vxpose.xlu1.b32.cont [2/16] (narrow) %v15701_v31, 32 }
0x1c89   : > { %15718 = vxpose.xlu1.b32.cont [3/16] (narrow) %v15702_v46, 32 }
0x1c8d   : > { %15719 = vxpose.xlu1.b32.cont [4/16] (narrow) %v15703_v14, 32 }
0x1c91   : > { %15720 = vxpose.xlu1.b32.cont [5/16] (narrow) %v15704_v56, 32 }
0x1c95   : > { %15721 = vxpose.xlu1.b32.cont [6/16] (narrow) %v15705_v45, 32 }
0x1c99   : > { %15722 = vxpose.xlu1.b32.cont [7/16] (narrow) %v15706_v23, 32 }
0x1c9c   : > { %v15589_v49 = vpop.xlane.xlu0 %15588 }
0x1c9d   : > { %v15617_v11 = vmul.f32 0.03125, %v15589_v49  ;;  %15723 = vxpose.xlu1.b32.cont [8/16] (narrow) %v15707_v55, 32  ;;  %v15750_v49 = vld [vmem:[%s19347_s11 + $0x10] sm:$0xff] }
0x1c9e   : > { %v15586_v33 = vpop.xlane.xlu1 %15585 }
0x1c9f   : > { %v15633_v8 = vadd.f32 1e-05, %v15617_v11  ;;  %v15616_v24 = vmul.f32 0.03125, %v15586_v33 }
0x1ca0   : > { %v15595_v10 = vpop.xlane.xlu0 %15594 }
0x1ca1   : > { %18911 = vrsqrt.f32 %v15633_v8  ;;  %v15632_v9 = vadd.f32 1e-05, %v15616_v24  ;;  %v15619_v63 = vmul.f32 0.03125, %v15595_v10 }
0x1ca2   : > { %v15592_v27 = vpop.xlane.xlu1 %15591 }
0x1ca3   : > { %18913 = vrsqrt.f32 %v15632_v9  ;;  %v15618_v47 = vmul.f32 0.03125, %v15592_v27  ;;  %v15635_v2 = vadd.f32 1e-05, %v15619_v63 }
0x1ca5   : > { %v15634_v36 = vadd.f32 1e-05, %v15618_v47 }
0x1ca7   : > { %18915 = vrsqrt.f32 %v15634_v36 }
0x1ca8   : > { %18917 = vrsqrt.f32 %v15635_v2 }
0x1cae   : > { %v18912_v3 = vpop.eup %18911 }
0x1caf   : > { %v15665_v50 = vmul.f32 %v18912_v3, %v23137_v12 }
0x1cb0   : > { %v18914_v25 = vpop.eup %18913 }
0x1cb1   : > { %v15664_v42 = vmul.f32 %v18914_v25, %v23142_v41  ;;  %v15687_v13 = vmul.f32 %v23188_v32, %v15665_v50 }
0x1cb3   : > { %v15686_v4 = vmul.f32 %v23188_v32, %v15664_v42  ;;  %v15709_v52 = vadd.f32 %v23195_v39, %v15687_v13 }
0x1cb4   : > { %v18916_v35 = vpop.eup %18915 }
0x1cb5   : > { %v15708_v53 = vadd.f32 %v23195_v39, %v15686_v4  ;;  %v15666_v34 = vmul.f32 %v18916_v35, %v23153_v15  ;;  %v18918_v0 = vpop.eup %18917 }
0x1cb6   : > { %v15667_v6 = vmul.f32 %v18918_v0, %v23145_v18 }
0x1cb7   : > { %15724 = vxpose.xlu1.b32.cont [9/16] (narrow) %v15708_v53, 32  ;;  %v15688_v59 = vmul.f32 %v23188_v32, %v15666_v34 }
0x1cb8   : > { %v15689_v41 = vmul.f32 %v23188_v32, %v15667_v6 }
0x1cb9   : > { %v15710_v12 = vadd.f32 %v23195_v39, %v15688_v59 }
0x1cba   : > { %v15711_v58 = vadd.f32 %v23195_v39, %v15689_v41 }
0x1cbb   : > { %15725 = vxpose.xlu1.b32.cont [10/16] (narrow) %v15709_v52, 32 }
0x1cbf   : > { %15726 = vxpose.xlu1.b32.cont [11/16] (narrow) %v15710_v12, 32 }
0x1cc3   : > { %15727 = vxpose.xlu1.b32.cont [12/16] (narrow) %v15711_v58, 32 }
0x1cd1   : > { %v15601_v7 = vpop.xlane.xlu0 %15600 }
0x1cd2   : > { %v15621_v20 = vmul.f32 0.03125, %v15601_v7 }
0x1cd3   : > { %v15598_v15 = vpop.xlane.xlu1 %15597 }
0x1cd4   : > { %v15637_v26 = vadd.f32 1e-05, %v15621_v20  ;;  %v15620_v28 = vmul.f32 0.03125, %v15598_v15 }
0x1cd5   : > { %v15607_v30 = vpop.xlane.xlu0 %15606 }
0x1cd6   : > { %18919 = vrsqrt.f32 %v15637_v26  ;;  %v15636_v17 = vadd.f32 1e-05, %v15620_v28  ;;  %v15623_v31 = vmul.f32 0.03125, %v15607_v30 }
0x1cd7   : > { %v15604_v60 = vpop.xlane.xlu1 %15603 }
0x1cd8   : > { %18921 = vrsqrt.f32 %v15636_v17  ;;  %v15622_v18 = vmul.f32 0.03125, %v15604_v60  ;;  %v15639_v43 = vadd.f32 1e-05, %v15623_v31 }
0x1cda   : > { %v15638_v5 = vadd.f32 1e-05, %v15622_v18 }
0x1cdc   : > { %18923 = vrsqrt.f32 %v15638_v5 }
0x1cdd   : > { %18925 = vrsqrt.f32 %v15639_v43 }
0x1ce3   : > { %v18920_v46 = vpop.eup %18919 }
0x1ce4   : > { %v15669_v54 = vmul.f32 %v18920_v46, %v23161_v57 }
0x1ce5   : > { %v18922_v1 = vpop.eup %18921 }
0x1ce6   : > { %v15668_v44 = vmul.f32 %v18922_v1, %v23164_v38  ;;  %v15691_v40 = vmul.f32 %v23188_v32, %v15669_v54 }
0x1ce8   : > { %v15690_v14 = vmul.f32 %v23188_v32, %v15668_v44  ;;  %v15713_v51 = vadd.f32 %v23195_v39, %v15691_v40 }
0x1ce9   : > { %v18924_v37 = vpop.eup %18923 }
0x1cea   : > { %v15712_v22 = vadd.f32 %v23195_v39, %v15690_v14  ;;  %v15670_v56 = vmul.f32 %v18924_v37, %v23175_v19  ;;  %v18926_v21 = vpop.eup %18925  ;;  %v15748_v19 = vld [vmem:[%s19347_s11] sm:$0xff] }
0x1ceb   : > { %v15671_v57 = vmul.f32 %v18926_v21, %v23169_v48 }
0x1cec   : > { %15728 = vxpose.xlu1.b32.cont [13/16] (narrow) %v15712_v22, 32  ;;  %v15692_v38 = vmul.f32 %v23188_v32, %v15670_v56 }
0x1ced   : > { %v15693_v45 = vmul.f32 %v23188_v32, %v15671_v57 }
0x1cee   : > { %v15714_v16 = vadd.f32 %v23195_v39, %v15692_v38 }
0x1cef   : > { %v15715_v62 = vadd.f32 %v23195_v39, %v15693_v45  ;;  %v15751_v39 = vld [vmem:[%s19347_s11 + $0x18] sm:$0xff]  ;;  %s19037_s11 = sshll.u32 %s19136_s17, 4  ;;  %s19038_s11 = int_to_ptr.vmem [resolvable:$false] %s19037_s11 }
0x1cf0   : > { %15729 = vxpose.xlu1.b32.cont [14/16] (narrow) %v15713_v51, 32  ;;  %s19039_s24 = scalar_lea.vmem %s19038_s11, 1024  ;;  %p19040_p13 = scmp.lt.s32.totalorder %s23249_s1, %s19038_s11 }
0x1cf1   : > { %p19041_p0 = scmp.lt.s32.totalorder %s19039_s24, %s19033_s12 }
0x1cf3   : > { %p19042_p2 = por %p19041_p0, %p19040_p13 }
0x1cf4   : > { %15730 = vxpose.xlu1.b32.cont [15/16] (narrow) %v15714_v16, 32 }
0x1cf5   : > { %p19043_p10 = pnand %p19042_p2, %p19036_p9 }
0x1cf8   : > { %15731 = vxpose.xlu1.b32.end [16/16] (narrow) %v15715_v62, 32 }
0x1d38   : > { %v15732_v29 = vpop.trf.xlu1 }
0x1d39   : > { %v15752_v23 = vadd.f32 %v15748_v19, %v15732_v29 }
0x1d3b   : > { %15756 = vst [vmem:[%s421_s28] sm:$0xff] %v15752_v23 }
0x1d3c   : > { %v15733_v48 = vpop.trf.xlu1 }
0x1d3d   : > { %v15753_v55 = vadd.f32 %v15749_v61, %v15733_v48 }
0x1d3f   : > { %15757 = vst [vmem:[%s421_s28 + $0x8] sm:$0xff] %v15753_v55 }
0x1d40   : > { %v15734_v32 = vpop.trf.xlu1 }
0x1d41   : > { %v15754_v11 = vadd.f32 %v15750_v49, %v15734_v32 }
0x1d43   : > { %15758 = vst [vmem:[%s421_s28 + $0x10] sm:$0xff] %v15754_v11 }
0x1d44   : > { %v15735_v8 = vpop.trf.xlu1 }
0x1d45   : > { %v15755_v33 = vadd.f32 %v15751_v39, %v15735_v8 }
0x1d47   : > { %15759 = vst [vmem:[%s421_s28 + $0x18] sm:$0xff] %v15755_v33 }
0x1d48   : > { %19046 = shalt.err (!%p19043_p10)
}
0x1d49   : > { %s19047_s27 = scalar_lea.hbm %s23254_s30, 512  ;;  %s19051_s29 = scalar_lea.hbm %s23307_s10, 1024 }
0x1d4a   : > { %p19048_p6 = scmp.ne.s32.totalorder %s23254_s30, %s19047_s27  ;;  %p19052_p3 = scmp.lt.s32.totalorder %s23254_s30, %s23307_s10 }
0x1d4b   : > { %p19053_p11 = scmp.lt.s32.totalorder %s19051_s29, %s19047_s27 }
0x1d4c   : > { %p19049_p4 = pnand %p19048_p6, %p23686_p1 }
0x1d4d   : > { %p19054_p5 = por %p19053_p11, %p19052_p3 }
0x1d4e   : > { %p19050_p8 = pneg %p19049_p4 }
0x1d50   : > { %p19055_p7 = pnand %p19054_p5, %p19050_p8 }
0x1d52   : > { %19058 = shalt.err (!%p19055_p7)
}
0x1d53   : > { %s19137_s22 = smov 128   ;;  %s19138_s21 = smov 8  }
0x1d54   : > { %18260 = dma.vmem_to_hbm [thread:$0]  (%p23686_p1), %s23249_s1, 512, %s23254_s30, %s15761_s18, %s19137_s22, %s19137_s22, %s19138_s21  }
0x1d55 PF: > { %s15789_s12 = sand.u32 1, %s19093_s13   ;;  %p23687_p12 = scmp.ne.s32.totalorder %s23366_s20, 0 }
0x1d56   : > { %p23688_p9 = scmp.ge.s32.totalorder %s19105_s16, 2  ;;  %s15790_s17 = scalar_lea.sflag [#allocation4], %s15789_s12 }
0x1d58   : > { %p18277_p13 = pnand %p23688_p9, %p23687_p12 }
0x1d5a   : > { %p18278_p0 = pneg %p18277_p13 }
0x1d5c   : > { %19088 = dma.done.wait (%p18278_p0), %s15790_s17, 512  }
0x1d5d   : > { %19090 = vsyncadd (%p18278_p0), %s15790_s17, 4294966784  ;;  %s23689_s11 = sld [smem:[#allocation15_spill]]  ;;  %p25_p2 = scmp.ge.s32.totalorder %s19283_s26, 4  }
0x1d5e   : > { %s23690_s13 = smov %s19097_s14  ;;  %s23691_s14 = smov %s19101_s15 }
0x1d5f   : > { %s23693_s16 = smov %s19283_s26  ;;  %27 = sbr.rel (!%p25_p2) target bundleno = 11 (0xb), region = 117 }
0x1d63   : > { %s23692_s15 = smov %s23689_s11 }
0x1d64   :  { %15795 = vsyncpa [#allocation3], 1 }
0x1d65   :  { %15797 = vsyncpa [#allocation3 + $0x1], 1 }
0x1d66   :  { %15798 = vsyncpa [#allocation6], 1 }
0x1d67   :  { %15799 = vsyncpa [#allocation9], 1 }
0x1d68   :  { %15800 = vsyncpa [#allocation4], 1 }
0x1d69   :  { %15802 = vsyncpa [#allocation4 + $0x1], 1 }

</bundles_post_ra>
